<compile_context>
chip_gen: v7x
topology: tpu7x:2x2x1
jax: 0.10.0
libtpu: 0.0.40
codegen_flags: <defaults>
</compile_context>

<pallas_src>
import functools
import numpy as np
import jax
import jax.numpy as jnp
from jax.experimental import pallas as pl
from jax.experimental.pallas import tpu as pltpu

NUM_ANCHORS = 3
NUM_CLASSES = 80
PRED_CH = 5 + NUM_CLASSES                      # 85
HEAD_CH = NUM_ANCHORS * PRED_CH                # 255
HEAD_CH_PAD = 256                              # lane-dense head width
IMG_SIZE = 416.0

ANCHOR0 = np.array([[81, 82], [135, 169], [344, 319]], dtype=np.float64)
ANCHOR1 = np.array([[23, 27], [37, 58], [81, 82]], dtype=np.float64)


# ----------------------------- Pallas kernels -----------------------------

def _pointwise_kernel(x_ref, w_ref, s_ref, b_ref, o_ref, *, act):
    # 1x1 conv == matmul over channels on a tile of flattened pixels.
    # x: (TILE_P, Cin) bf16, w: (Cin, Cout) bf16, s/b: (1, Cout) f32.
    y = jnp.dot(x_ref[...], w_ref[...], preferred_element_type=jnp.float32)
    y = y * s_ref[...] + b_ref[...]
    if act:
        y = jnp.maximum(y, 0.1 * y)              # LeakyReLU(0.1), single VPU max
    o_ref[...] = y.astype(o_ref.dtype)


def _make_conv3x3_kernel(specs, H, W, Cout):
    """3x3 conv, stride 1, pad 1, folded BN + LeakyReLU.  One batch / grid step.

    specs: list of (channels, upsample2x) per input map.  Inputs are written
    into a halo-padded VMEM scratch at lane-aligned channel offsets, fusing the
    channel concat, the zero padding and (for upsample2x inputs) the nearest-2x
    upsample entirely in VMEM.  An im2col scratch (H*W, 9*Cin) is then built
    and the conv is a single MXU matmul with K = 9*Cin.
    """
    Cin = sum(c for c, _ in specs)
    n_in = len(specs)

    def kernel(*refs):
        x_refs = refs[:n_in]
        w_ref, s_ref, b_ref, o_ref, xp_ref, col_ref = refs[n_in:]

        # Zero only the 1-pixel halo border (interior is fully overwritten
        # below).  Done every step so megacore sharding of the batch axis
        # stays correct on multi-TensorCore chips (v7x).
        zrow = jnp.zeros((1, W + 2, Cin), xp_ref.dtype)
        xp_ref[0:1, :, :] = zrow
        xp_ref[H + 1:H + 2, :, :] = zrow
        zcol = jnp.zeros((H + 2, 1, Cin), xp_ref.dtype)
        xp_ref[:, 0:1, :] = zcol
        xp_ref[:, W + 1:W + 2, :] = zcol

        # Fill the interior: channel-concat of the inputs (upsampling in VMEM).
        off = 0
        for xr, (c, ups) in zip(x_refs, specs):
            if not ups:
                xp_ref[1:H + 1, 1:W + 1, off:off + c] = xr[0]
            else:
                uh, uw = H // 2, W // 2
                u = xr[0]                                        # (uh, uw, c)
                # 2x repeat along rows: only leading dims change -> cheap reshape.
                u2 = jnp.broadcast_to(u[:, None, :, :],
                                      (uh, 2, uw, c)).reshape(H, uw, c)
                # 2x repeat along cols: each source column maps to two adjacent
                # destination columns (contiguous store per source column).
                for j in range(uw):
                    xp_ref[1:H + 1, 2 * j + 1:2 * j + 3, off:off + c] = (
                        jnp.broadcast_to(u2[:, j:j + 1, :], (H, 2, c)))
            off += c

        # im2col into (H*W, 9*Cin); tap offsets are multiples of Cin (>=128)
        # so every store is lane-dense.
        for t in range(9):
            dy, dx = t // 3, t % 3
            col_ref[:, t * Cin:(t + 1) * Cin] = (
                xp_ref[dy:dy + H, dx:dx + W, :].reshape(H * W, Cin))

        # One deep-K matmul + folded-BN + LeakyReLU epilogue.
        y = jnp.dot(col_ref[...], w_ref[...],
                    preferred_element_type=jnp.float32)
        y = y * s_ref[...] + b_ref[...]
        y = jnp.maximum(y, 0.1 * y)                              # LeakyReLU(0.1)
        o_ref[0] = y.astype(o_ref.dtype)

    return kernel


def _head_decode_kernel(x_ref, w_ref, b_ref, add_ref, mul_ref, msk_ref, o_ref):
    # Fused head 1x1 conv (with bias) + YOLO decode, in the lane-dense
    # (HW, 256) layout: channel k -> anchor k//85, field k%85 (ch 255 is pad).
    p = jnp.dot(x_ref[0], w_ref[...],
                preferred_element_type=jnp.float32) + b_ref[...]
    is_exp = msk_ref[...] > 0.5                      # w/h channels -> exp path
    sig = jax.nn.sigmoid(p)
    ex = jnp.exp(jnp.where(is_exp, p, 0.0))          # exp only sees w/h logits
    o_ref[0] = (jnp.where(is_exp, ex, sig + add_ref[...])
                * mul_ref[...]).astype(o_ref.dtype)


# ----------------------------- wrappers -----------------------------------

def conv1x1(x_nhwc, w, scale, bias, act=True, out_dtype=jnp.bfloat16):
    """1x1 conv + folded BN + optional LeakyReLU as a row-tiled MXU matmul."""
    N, H, W, Cin = x_nhwc.shape
    Cout = w.shape[1]
    P = N * H * W
    xf = x_nhwc.reshape(P, Cin).astype(jnp.bfloat16)
    # Whole-P block for the small maps seen here; 512-row tiles otherwise
    # (tail block handled by Pallas boundary masking -- no HBM pad/slice).
    tile = P if P <= 1024 else 512
    out = pl.pallas_call(
        functools.partial(_pointwise_kernel, act=act),
        out_shape=jax.ShapeDtypeStruct((P, Cout), out_dtype),
        grid=(pl.cdiv(P, tile),),
        in_specs=[pl.BlockSpec((tile, Cin), lambda i: (i, 0)),
                  pl.BlockSpec((Cin, Cout), lambda i: (0, 0)),
                  pl.BlockSpec((1, Cout), lambda i: (0, 0)),
                  pl.BlockSpec((1, Cout), lambda i: (0, 0))],
        out_specs=pl.BlockSpec((tile, Cout), lambda i: (i, 0)),
        compiler_params=pltpu.CompilerParams(
            dimension_semantics=("parallel",)),
    )(xf, w.astype(jnp.bfloat16), scale, bias)
    return out.reshape(N, H, W, Cout)


def conv3x3(xs, w_col, scale, bias, out_dtype=jnp.bfloat16):
    """xs: list of (NHWC map, upsample2x flag) sharing the same output (H, W).
    Channel concat (and optional nearest-2x upsample) happen inside the kernel,
    never in HBM.  Returns a lane-dense (N, H*W, Cout) map."""
    N = xs[0][0].shape[0]
    sizes = [(x.shape[1] * (2 if u else 1), x.shape[2] * (2 if u else 1))
             for x, u in xs]
    H, W = sizes[0]
    assert all(s == (H, W) for s in sizes)
    specs = [(int(x.shape[-1]), bool(u)) for x, u in xs]
    Cin = sum(c for c, _ in specs)
    Cout = int(w_col.shape[-1])
    assert int(w_col.shape[0]) == 9 * Cin

    kernel = _make_conv3x3_kernel(specs, H, W, Cout)
    in_specs = [pl.BlockSpec((1,) + tuple(x.shape[1:]), lambda n: (n, 0, 0, 0))
                for x, _ in xs]
    in_specs += [pl.BlockSpec((9 * Cin, Cout), lambda n: (0, 0)),
                 pl.BlockSpec((1, Cout), lambda n: (0, 0)),
                 pl.BlockSpec((1, Cout), lambda n: (0, 0))]

    return pl.pallas_call(
        kernel,
        out_shape=jax.ShapeDtypeStruct((N, H * W, Cout), out_dtype),
        grid=(N,),
        in_specs=in_specs,
        out_specs=pl.BlockSpec((1, H * W, Cout), lambda n: (n, 0, 0)),
        scratch_shapes=[pltpu.VMEM((H + 2, W + 2, Cin), jnp.bfloat16),
                        pltpu.VMEM((H * W, 9 * Cin), jnp.bfloat16)],
        compiler_params=pltpu.CompilerParams(
            dimension_semantics=("parallel",),
            vmem_limit_bytes=32 * 1024 * 1024),   # raises v5e's 16 MiB default
    )(*[x.astype(jnp.bfloat16) for x, _ in xs],
      w_col.astype(jnp.bfloat16), scale, bias)


def _decode_consts(H, W, anchors_np):
    # Per-channel decode constants in the lane-dense 256-wide layout.
    stride_h = IMG_SIZE / H
    stride_w = IMG_SIZE / W
    scaled = (np.asarray(anchors_np, np.float64)
              / np.array([stride_w, stride_h])).astype(np.float32)

    HW = H * W
    k = np.arange(HEAD_CH_PAD)
    a = np.minimum(k // PRED_CH, NUM_ANCHORS - 1)     # anchor index per channel
    c = k % PRED_CH                                   # within-anchor channel
    r = np.arange(HW)
    gx = (r % W).astype(np.float32)
    gy = (r // W).astype(np.float32)

    add = np.zeros((HW, HEAD_CH_PAD), np.float32)     # grid_x / grid_y offsets
    add[:, c == 0] = gx[:, None]
    add[:, c == 1] = gy[:, None]
    mul = np.ones((HEAD_CH_PAD,), np.float32)
    mul[c == 0] = np.float32(stride_w)
    mul[c == 1] = np.float32(stride_h)
    mul[c == 2] = scaled[a[c == 2], 0] * np.float32(stride_w)
    mul[c == 3] = scaled[a[c == 3], 1] * np.float32(stride_h)
    is_exp = ((c == 2) | (c == 3)).astype(np.float32)
    return (jnp.asarray(add),                         # (HW, 256)
            jnp.asarray(mul)[None, :],                # (1, 256)
            jnp.asarray(is_exp)[None, :])             # (1, 256)


def head_conv_decode(x_flat, w, bias, H, W, anchors_np):
    """Fused head Conv2d(Cin, 255, 1) (padded to 256) + YOLO decode.

    x_flat: (N, H*W, Cin) bf16.  Returns (N, 3*H*W, 85) f32 in the PyTorch
    (batch, anchor*H*W, 85) ordering."""
    N, HW, Cin = x_flat.shape
    add, mul, msk = _decode_consts(H, W, anchors_np)

    dec = pl.pallas_call(
        _head_decode_kernel,
        out_shape=jax.ShapeDtypeStruct((N, HW, HEAD_CH_PAD), jnp.float32),
        grid=(N,),
        in_specs=[pl.BlockSpec((1, HW, Cin), lambda n: (n, 0, 0)),
                  pl.BlockSpec((Cin, HEAD_CH_PAD), lambda n: (0, 0)),
                  pl.BlockSpec((1, HEAD_CH_PAD), lambda n: (0, 0)),
                  pl.BlockSpec((HW, HEAD_CH_PAD), lambda n: (0, 0)),
                  pl.BlockSpec((1, HEAD_CH_PAD), lambda n: (0, 0)),
                  pl.BlockSpec((1, HEAD_CH_PAD), lambda n: (0, 0))],
        out_specs=pl.BlockSpec((1, HW, HEAD_CH_PAD), lambda n: (n, 0, 0)),
        compiler_params=pltpu.CompilerParams(
            dimension_semantics=("parallel",)),
    )(x_flat.astype(jnp.bfloat16), w.astype(jnp.bfloat16), bias, add, mul, msk)

    # Reorder to the PyTorch (b, anchor*H*W, 85) layout (tiny, post-kernel).
    dec = dec.reshape(N, H, W, HEAD_CH_PAD)[..., :HEAD_CH]
    dec = dec.reshape(N, H, W, NUM_ANCHORS, PRED_CH)
    return dec.transpose(0, 3, 1, 2, 4).reshape(N, NUM_ANCHORS * H * W, PRED_CH)


# ----------------------------- parameters ---------------------------------

def _bn_fold(key, c):
    k1, k2, k3, k4 = jax.random.split(key, 4)
    gamma = 1.0 + 0.1 * jax.random.normal(k1, (c,), jnp.float32)
    beta = 0.1 * jax.random.normal(k2, (c,), jnp.float32)
    mean = 0.1 * jax.random.normal(k3, (c,), jnp.float32)
    var = 1.0 + 0.1 * jnp.abs(jax.random.normal(k4, (c,), jnp.float32))
    scale = gamma / jnp.sqrt(var + 1e-5)
    bias = beta - mean * scale
    return scale[None, :], bias[None, :]


def init_params(key):
    ks = iter(jax.random.split(key, 16))

    def w(shape, fan_in):
        return (jax.random.normal(next(ks), shape, jnp.float32)
                / np.sqrt(fan_in)).astype(jnp.bfloat16)

    def head_w(cin):
        w2 = jax.random.normal(next(ks), (cin, HEAD_CH), jnp.float32) / np.sqrt(cin)
        return jnp.pad(w2, ((0, 0), (0, 1))).astype(jnp.bfloat16)   # 255 -> 256

    def head_b():
        b = 0.1 * jax.random.normal(next(ks), (1, HEAD_CH), jnp.float32)
        return jnp.pad(b, ((0, 0), (0, 1)))

    p = {}
    # conv_for_P5: BasicConv(512, 256, 1)
    p['p5_w'] = w((512, 256), 512)
    p['p5_s'], p['p5_b'] = _bn_fold(next(ks), 256)
    # yolo_headP5: BasicConv(256, 512, 3) + Conv2d(512, 255, 1)
    p['h5_w1'] = w((3, 3, 256, 512), 9 * 256).reshape(9 * 256, 512)   # im2col layout
    p['h5_s1'], p['h5_b1'] = _bn_fold(next(ks), 512)
    p['h5_w2'] = head_w(512)
    p['h5_bias2'] = head_b()
    # upsample: BasicConv(256, 128, 1) + nearest 2x (2x fold happens in conv3x3)
    p['up_w'] = w((256, 128), 256)
    p['up_s'], p['up_b'] = _bn_fold(next(ks), 128)
    # yolo_headP4: BasicConv(384, 256, 3) + Conv2d(256, 255, 1)
    p['h4_w1'] = w((3, 3, 384, 256), 9 * 384).reshape(9 * 384, 256)   # im2col layout
    p['h4_s1'], p['h4_b1'] = _bn_fold(next(ks), 256)
    p['h4_w2'] = head_w(256)
    p['h4_bias2'] = head_b()
    return p


# ----------------------------- forward ------------------------------------

def yolo_body_forward(params, feat1_nchw, feat2_nchw):
    # TODO(synk): darknet53_tiny backbone is not defined in the reference; its
    # two outputs feat1 (256ch) and feat2 (512ch) are taken as inputs here.
    feat1 = jnp.transpose(feat1_nchw, (0, 2, 3, 1)).astype(jnp.bfloat16)  # NHWC
    feat2 = jnp.transpose(feat2_nchw, (0, 2, 3, 1)).astype(jnp.bfloat16)
    p = params
    H5, W5 = feat2.shape[1], feat2.shape[2]
    H4, W4 = feat1.shape[1], feat1.shape[2]

    # P5 branch: conv_for_P5 -> yolo_headP5 (3x3 BasicConv + 1x1 head + decode)
    P5 = conv1x1(feat2, p['p5_w'], p['p5_s'], p['p5_b'])                # (N,H5,W5,256)
    t5 = conv3x3([(P5, False)], p['h5_w1'], p['h5_s1'], p['h5_b1'])     # (N,H5*W5,512)
    out0 = head_conv_decode(t5, p['h5_w2'], p['h5_bias2'], H5, W5, ANCHOR0)

    # P4 branch: upsample(P5) ++ feat1 -> yolo_headP4; the nearest-2x upsample
    # and the 384-channel concat are fused inside the conv3x3 kernel (VMEM).
    up = conv1x1(P5, p['up_w'], p['up_s'], p['up_b'])                   # (N,H5,W5,128)
    t4 = conv3x3([(feat1, False), (up, True)],
                 p['h4_w1'], p['h4_s1'], p['h4_b1'])                    # (N,H4*W4,256)
    out1 = head_conv_decode(t4, p['h4_w2'], p['h4_bias2'], H4, W4, ANCHOR1)

    return out0, out1


if __name__ == "__main__":
    key = jax.random.PRNGKey(0)
    kp, k1, k2 = jax.random.split(key, 3)
    params = init_params(kp)

    # Synthetic backbone feature maps (NCHW, PyTorch convention), small spatial.
    feat1 = jax.random.normal(k1, (2, 256, 8, 8), jnp.float32)   # P4 branch input
    feat2 = jax.random.normal(k2, (2, 512, 4, 4), jnp.float32)   # P5 branch input

    out0, out1 = jax.jit(yolo_body_forward)(params, feat1, feat2)
    jax.block_until_ready((out0, out1))
    assert out0.shape == (2, 3 * 4 * 4, 85)
    assert out1.shape == (2, 3 * 8 * 8, 85)
    assert bool(jnp.all(jnp.isfinite(out0))) and bool(jnp.all(jnp.isfinite(out1)))
    print("KERNEL_OK")
</pallas_src>

<mosaic_0001>
module attributes {stable_mosaic.version = 11 : i64} {
  func.func @_pointwise_kernel(%arg0: i32, %arg1: memref<32x512xbf16, #tpu.memory_space<vmem>>, %arg2: memref<512x256xbf16, #tpu.memory_space<vmem>>, %arg3: memref<1x256xf32, #tpu.memory_space<vmem>>, %arg4: memref<1x256xf32, #tpu.memory_space<vmem>>, %arg5: memref<32x256xbf16, #tpu.memory_space<vmem>>) attributes {dimension_semantics = [#tpu.dimension_semantics<parallel>], iteration_bounds = array<i64: 1>, scalar_prefetch = 0 : i64, scratch_operands = 0 : i64, tpu.core_type = #tpu.core_type<tc>, window_params = [{transform_indices = @transform_0, window_bounds = array<i64: 32, 512>}, {pipeline_mode = #tpu.pipeline_mode<synchronous>, transform_indices = @transform_1, window_bounds = array<i64: 512, 256>}, {pipeline_mode = #tpu.pipeline_mode<synchronous>, transform_indices = @transform_2, window_bounds = array<i64: 1, 256>}, {pipeline_mode = #tpu.pipeline_mode<synchronous>, transform_indices = @transform_3, window_bounds = array<i64: 1, 256>}, {transform_indices = @transform_4, window_bounds = array<i64: 32, 256>}]} {
    %c0 = arith.constant 0 : index
    %c0_0 = arith.constant 0 : index
    %0 = vector.load %arg1[%c0, %c0_0] : memref<32x512xbf16, #tpu.memory_space<vmem>>, vector<32x512xbf16>
    %c0_1 = arith.constant 0 : index
    %c0_2 = arith.constant 0 : index
    %1 = vector.load %arg2[%c0_1, %c0_2] : memref<512x256xbf16, #tpu.memory_space<vmem>>, vector<512x256xbf16>
    %cst = arith.constant dense<0.000000e+00> : vector<32x256xf32>
    %2 = tpu.matmul %0, %1, %cst {dimension_numbers = #tpu.dot_dimension_numbers<[1], [0], [0], [1], [0, 0, 1, 1], [], []>} : vector<32x512xbf16>, vector<512x256xbf16>, vector<32x256xf32> -> vector<32x256xf32>
    %c0_3 = arith.constant 0 : index
    %c0_4 = arith.constant 0 : index
    %3 = vector.load %arg3[%c0_3, %c0_4] : memref<1x256xf32, #tpu.memory_space<vmem>>, vector<1x256xf32>
    %4 = vector.broadcast %3 : vector<1x256xf32> to vector<32x256xf32>
    %5 = arith.mulf %2, %4 : vector<32x256xf32>
    %c0_5 = arith.constant 0 : index
    %c0_6 = arith.constant 0 : index
    %6 = vector.load %arg4[%c0_5, %c0_6] : memref<1x256xf32, #tpu.memory_space<vmem>>, vector<1x256xf32>
    %7 = vector.broadcast %6 : vector<1x256xf32> to vector<32x256xf32>
    %8 = arith.addf %5, %7 : vector<32x256xf32>
    %cst_7 = arith.constant 1.000000e-01 : f32
    %9 = vector.broadcast %cst_7 : f32 to vector<32x256xf32>
    %10 = arith.mulf %9, %8 : vector<32x256xf32>
    %11 = arith.maximumf %8, %10 : vector<32x256xf32>
    %12 = arith.truncf %11 : vector<32x256xf32> to vector<32x256xbf16>
    %c0_8 = arith.constant 0 : index
    %c0_9 = arith.constant 0 : index
    %13 = vector.load %arg5[%c0_8, %c0_9] : memref<32x256xbf16, #tpu.memory_space<vmem>>, vector<32x256xbf16>
    tpu.vector_store %arg5[%c0_8, %c0_9], %12 {strides = array<i32>} : memref<32x256xbf16, #tpu.memory_space<vmem>>, vector<32x256xbf16>,
    return
  }
  func.func @transform_0(%arg0: i32) -> (i32, i32) {
    %c0_i32 = arith.constant 0 : i32
    %c0_i32_0 = arith.constant 0 : i32
    return %arg0, %c0_i32 : i32, i32
  }
  func.func @transform_1(%arg0: i32) -> (i32, i32) {
    %c0_i32 = arith.constant 0 : i32
    %c0_i32_0 = arith.constant 0 : i32
    %c0_i32_1 = arith.constant 0 : i32
    return %c0_i32, %c0_i32_0 : i32, i32
  }
  func.func @transform_2(%arg0: i32) -> (i32, i32) {
    %c0_i32 = arith.constant 0 : i32
    %c0_i32_0 = arith.constant 0 : i32
    %c0_i32_1 = arith.constant 0 : i32
    return %c0_i32, %c0_i32_0 : i32, i32
  }
  func.func @transform_3(%arg0: i32) -> (i32, i32) {
    %c0_i32 = arith.constant 0 : i32
    %c0_i32_0 = arith.constant 0 : i32
    %c0_i32_1 = arith.constant 0 : i32
    return %c0_i32, %c0_i32_0 : i32, i32
  }
  func.func @transform_4(%arg0: i32) -> (i32, i32) {
    %c0_i32 = arith.constant 0 : i32
    %c0_i32_0 = arith.constant 0 : i32
    return %arg0, %c0_i32 : i32, i32
  }
}

module attributes {stable_mosaic.version = 11 : i64} {
  func.func @_pointwise_kernel(%arg0: i32, %arg1: memref<32x256xbf16, #tpu.memory_space<vmem>>, %arg2: memref<256x128xbf16, #tpu.memory_space<vmem>>, %arg3: memref<1x128xf32, #tpu.memory_space<vmem>>, %arg4: memref<1x128xf32, #tpu.memory_space<vmem>>, %arg5: memref<32x128xbf16, #tpu.memory_space<vmem>>) attributes {dimension_semantics = [#tpu.dimension_semantics<parallel>], iteration_bounds = array<i64: 1>, scalar_prefetch = 0 : i64, scratch_operands = 0 : i64, tpu.core_type = #tpu.core_type<tc>, window_params = [{transform_indices = @transform_0, window_bounds = array<i64: 32, 256>}, {pipeline_mode = #tpu.pipeline_mode<synchronous>, transform_indices = @transform_1, window_bounds = array<i64: 256, 128>}, {pipeline_mode = #tpu.pipeline_mode<synchronous>, transform_indices = @transform_2, window_bounds = array<i64: 1, 128>}, {pipeline_mode = #tpu.pipeline_mode<synchronous>, transform_indices = @transform_3, window_bounds = array<i64: 1, 128>}, {transform_indices = @transform_4, window_bounds = array<i64: 32, 128>}]} {
    %c0 = arith.constant 0 : index
    %c0_0 = arith.constant 0 : index
    %0 = vector.load %arg1[%c0, %c0_0] : memref<32x256xbf16, #tpu.memory_space<vmem>>, vector<32x256xbf16>
    %c0_1 = arith.constant 0 : index
    %c0_2 = arith.constant 0 : index
    %1 = vector.load %arg2[%c0_1, %c0_2] : memref<256x128xbf16, #tpu.memory_space<vmem>>, vector<256x128xbf16>
    %cst = arith.constant dense<0.000000e+00> : vector<32x128xf32>
    %2 = tpu.matmul %0, %1, %cst {dimension_numbers = #tpu.dot_dimension_numbers<[1], [0], [0], [1], [0, 0, 1, 1], [], []>} : vector<32x256xbf16>, vector<256x128xbf16>, vector<32x128xf32> -> vector<32x128xf32>
    %c0_3 = arith.constant 0 : index
    %c0_4 = arith.constant 0 : index
    %3 = vector.load %arg3[%c0_3, %c0_4] : memref<1x128xf32, #tpu.memory_space<vmem>>, vector<1x128xf32>
    %4 = vector.broadcast %3 : vector<1x128xf32> to vector<32x128xf32>
    %5 = arith.mulf %2, %4 : vector<32x128xf32>
    %c0_5 = arith.constant 0 : index
    %c0_6 = arith.constant 0 : index
    %6 = vector.load %arg4[%c0_5, %c0_6] : memref<1x128xf32, #tpu.memory_space<vmem>>, vector<1x128xf32>
    %7 = vector.broadcast %6 : vector<1x128xf32> to vector<32x128xf32>
    %8 = arith.addf %5, %7 : vector<32x128xf32>
    %cst_7 = arith.constant 1.000000e-01 : f32
    %9 = vector.broadcast %cst_7 : f32 to vector<32x128xf32>
    %10 = arith.mulf %9, %8 : vector<32x128xf32>
    %11 = arith.maximumf %8, %10 : vector<32x128xf32>
    %12 = arith.truncf %11 : vector<32x128xf32> to vector<32x128xbf16>
    %c0_8 = arith.constant 0 : index
    %c0_9 = arith.constant 0 : index
    %13 = vector.load %arg5[%c0_8, %c0_9] : memref<32x128xbf16, #tpu.memory_space<vmem>>, vector<32x128xbf16>
    tpu.vector_store %arg5[%c0_8, %c0_9], %12 {strides = array<i32>} : memref<32x128xbf16, #tpu.memory_space<vmem>>, vector<32x128xbf16>,
    return
  }
  func.func @transform_0(%arg0: i32) -> (i32, i32) {
    %c0_i32 = arith.constant 0 : i32
    %c0_i32_0 = arith.constant 0 : i32
    return %arg0, %c0_i32 : i32, i32
  }
  func.func @transform_1(%arg0: i32) -> (i32, i32) {
    %c0_i32 = arith.constant 0 : i32
    %c0_i32_0 = arith.constant 0 : i32
    %c0_i32_1 = arith.constant 0 : i32
    return %c0_i32, %c0_i32_0 : i32, i32
  }
  func.func @transform_2(%arg0: i32) -> (i32, i32) {
    %c0_i32 = arith.constant 0 : i32
    %c0_i32_0 = arith.constant 0 : i32
    %c0_i32_1 = arith.constant 0 : i32
    return %c0_i32, %c0_i32_0 : i32, i32
  }
  func.func @transform_3(%arg0: i32) -> (i32, i32) {
    %c0_i32 = arith.constant 0 : i32
    %c0_i32_0 = arith.constant 0 : i32
    %c0_i32_1 = arith.constant 0 : i32
    return %c0_i32, %c0_i32_0 : i32, i32
  }
  func.func @transform_4(%arg0: i32) -> (i32, i32) {
    %c0_i32 = arith.constant 0 : i32
    %c0_i32_0 = arith.constant 0 : i32
    return %arg0, %c0_i32 : i32, i32
  }
}

module attributes {stable_mosaic.version = 11 : i64} {
  func.func @kernel(%arg0: i32, %arg1: memref<1x8x8x256xbf16, #tpu.memory_space<vmem>>, %arg2: memref<1x4x4x128xbf16, #tpu.memory_space<vmem>>, %arg3: memref<3456x256xbf16, #tpu.memory_space<vmem>>, %arg4: memref<1x256xf32, #tpu.memory_space<vmem>>, %arg5: memref<1x256xf32, #tpu.memory_space<vmem>>, %arg6: memref<1x64x256xbf16, #tpu.memory_space<vmem>>, %arg7: memref<10x10x384xbf16, #tpu.memory_space<vmem>>, %arg8: memref<64x3456xbf16, #tpu.memory_space<vmem>>) attributes {dimension_semantics = [#tpu.dimension_semantics<parallel>], iteration_bounds = array<i64: 2>, scalar_prefetch = 0 : i64, scratch_operands = 2 : i64, tpu.core_type = #tpu.core_type<tc>, window_params = [{transform_indices = @transform_0, window_bounds = array<i64: 1, 8, 8, 256>}, {transform_indices = @transform_1, window_bounds = array<i64: 1, 4, 4, 128>}, {pipeline_mode = #tpu.pipeline_mode<synchronous>, transform_indices = @transform_2, window_bounds = array<i64: 3456, 256>}, {pipeline_mode = #tpu.pipeline_mode<synchronous>, transform_indices = @transform_3, window_bounds = array<i64: 1, 256>}, {pipeline_mode = #tpu.pipeline_mode<synchronous>, transform_indices = @transform_4, window_bounds = array<i64: 1, 256>}, {transform_indices = @transform_5, window_bounds = array<i64: 1, 64, 256>}]} {
    %cst = arith.constant 0.000000e+00 : bf16
    %0 = vector.broadcast %cst : bf16 to vector<1x10x384xbf16>
    %c0 = arith.constant 0 : index
    %c0_0 = arith.constant 0 : index
    %c0_1 = arith.constant 0 : index
    %1 = vector.load %arg7[%c0, %c0_0, %c0_1] : memref<10x10x384xbf16, #tpu.memory_space<vmem>>, vector<1x10x384xbf16>
    tpu.vector_store %arg7[%c0, %c0_0, %c0_1], %0 {strides = array<i32>} : memref<10x10x384xbf16, #tpu.memory_space<vmem>>, vector<1x10x384xbf16>,
    %c9 = arith.constant 9 : index
    %c0_2 = arith.constant 0 : index
    %c0_3 = arith.constant 0 : index
    %2 = vector.load %arg7[%c9, %c0_2, %c0_3] : memref<10x10x384xbf16, #tpu.memory_space<vmem>>, vector<1x10x384xbf16>
    tpu.vector_store %arg7[%c9, %c0_2, %c0_3], %0 {strides = array<i32>} : memref<10x10x384xbf16, #tpu.memory_space<vmem>>, vector<1x10x384xbf16>,
    %cst_4 = arith.constant 0.000000e+00 : bf16
    %3 = vector.broadcast %cst_4 : bf16 to vector<10x1x384xbf16>
    %c0_5 = arith.constant 0 : index
    %c0_6 = arith.constant 0 : index
    %c0_7 = arith.constant 0 : index
    %4 = vector.load %arg7[%c0_5, %c0_6, %c0_7] : memref<10x10x384xbf16, #tpu.memory_space<vmem>>, vector<10x1x384xbf16>
    tpu.vector_store %arg7[%c0_5, %c0_6, %c0_7], %3 {strides = array<i32>} : memref<10x10x384xbf16, #tpu.memory_space<vmem>>, vector<10x1x384xbf16>,
    %c0_8 = arith.constant 0 : index
    %c9_9 = arith.constant 9 : index
    %c0_10 = arith.constant 0 : index
    %5 = vector.load %arg7[%c0_8, %c9_9, %c0_10] : memref<10x10x384xbf16, #tpu.memory_space<vmem>>, vector<10x1x384xbf16>
    tpu.vector_store %arg7[%c0_8, %c9_9, %c0_10], %3 {strides = array<i32>} : memref<10x10x384xbf16, #tpu.memory_space<vmem>>, vector<10x1x384xbf16>,
    %c0_11 = arith.constant 0 : index
    %c0_12 = arith.constant 0 : index
    %c0_13 = arith.constant 0 : index
    %c0_14 = arith.constant 0 : index
    %6 = vector.load %arg1[%c0_11, %c0_12, %c0_13, %c0_14] : memref<1x8x8x256xbf16, #tpu.memory_space<vmem>>, vector<1x8x8x256xbf16>
    %7 = vector.shape_cast %6 : vector<1x8x8x256xbf16> to vector<8x8x256xbf16>
    %c1 = arith.constant 1 : index
    %c1_15 = arith.constant 1 : index
    %c0_16 = arith.constant 0 : index
    %8 = vector.load %arg7[%c1, %c1_15, %c0_16] : memref<10x10x384xbf16, #tpu.memory_space<vmem>>, vector<8x8x256xbf16>
    tpu.vector_store %arg7[%c1, %c1_15, %c0_16], %7 {strides = array<i32>} : memref<10x10x384xbf16, #tpu.memory_space<vmem>>, vector<8x8x256xbf16>,
    %c0_17 = arith.constant 0 : index
    %c0_18 = arith.constant 0 : index
    %c0_19 = arith.constant 0 : index
    %c0_20 = arith.constant 0 : index
    %9 = vector.load %arg2[%c0_17, %c0_18, %c0_19, %c0_20] : memref<1x4x4x128xbf16, #tpu.memory_space<vmem>>, vector<1x4x4x128xbf16>
    %10 = vector.shape_cast %9 : vector<1x4x4x128xbf16> to vector<4x4x128xbf16>
    %11 = vector.shape_cast %10 : vector<4x4x128xbf16> to vector<4x1x4x128xbf16>
    %12 = vector.shape_cast %11 : vector<4x1x4x128xbf16> to vector<4x1x4x128xbf16>
    %13 = vector.broadcast %12 : vector<4x1x4x128xbf16> to vector<4x2x4x128xbf16>
    %14 = vector.shape_cast %13 : vector<4x2x4x128xbf16> to vector<8x4x128xbf16>
    %15 = vector.extract_strided_slice %14 {offsets = [0, 0, 0], sizes = [8, 1, 128], strides = [1, 1, 1]} : vector<8x4x128xbf16> to vector<8x1x128xbf16>
    %16 = vector.shape_cast %15 : vector<8x1x128xbf16> to vector<8x1x128xbf16>
    %17 = vector.broadcast %16 : vector<8x1x128xbf16> to vector<8x2x128xbf16>
    %c1_21 = arith.constant 1 : index
    %c1_22 = arith.constant 1 : index
    %c256 = arith.constant 256 : index
    %18 = vector.load %arg7[%c1_21, %c1_22, %c256] : memref<10x10x384xbf16, #tpu.memory_space<vmem>>, vector<8x2x128xbf16>
    tpu.vector_store %arg7[%c1_21, %c1_22, %c256], %17 {strides = array<i32>} : memref<10x10x384xbf16, #tpu.memory_space<vmem>>, vector<8x2x128xbf16>,
    %19 = vector.extract_strided_slice %14 {offsets = [0, 1, 0], sizes = [8, 1, 128], strides = [1, 1, 1]} : vector<8x4x128xbf16> to vector<8x1x128xbf16>
    %20 = vector.shape_cast %19 : vector<8x1x128xbf16> to vector<8x1x128xbf16>
    %21 = vector.broadcast %20 : vector<8x1x128xbf16> to vector<8x2x128xbf16>
    %c1_23 = arith.constant 1 : index
    %c3 = arith.constant 3 : index
    %c256_24 = arith.constant 256 : index
    %22 = vector.load %arg7[%c1_23, %c3, %c256_24] : memref<10x10x384xbf16, #tpu.memory_space<vmem>>, vector<8x2x128xbf16>
    tpu.vector_store %arg7[%c1_23, %c3, %c256_24], %21 {strides = array<i32>} : memref<10x10x384xbf16, #tpu.memory_space<vmem>>, vector<8x2x128xbf16>,
    %23 = vector.extract_strided_slice %14 {offsets = [0, 2, 0], sizes = [8, 1, 128], strides = [1, 1, 1]} : vector<8x4x128xbf16> to vector<8x1x128xbf16>
    %24 = vector.shape_cast %23 : vector<8x1x128xbf16> to vector<8x1x128xbf16>
    %25 = vector.broadcast %24 : vector<8x1x128xbf16> to vector<8x2x128xbf16>
    %c1_25 = arith.constant 1 : index
    %c5 = arith.constant 5 : index
    %c256_26 = arith.constant 256 : index
    %26 = vector.load %arg7[%c1_25, %c5, %c256_26] : memref<10x10x384xbf16, #tpu.memory_space<vmem>>, vector<8x2x128xbf16>
    tpu.vector_store %arg7[%c1_25, %c5, %c256_26], %25 {strides = array<i32>} : memref<10x10x384xbf16, #tpu.memory_space<vmem>>, vector<8x2x128xbf16>,
    %27 = vector.extract_strided_slice %14 {offsets = [0, 3, 0], sizes = [8, 1, 128], strides = [1, 1, 1]} : vector<8x4x128xbf16> to vector<8x1x128xbf16>
    %28 = vector.shape_cast %27 : vector<8x1x128xbf16> to vector<8x1x128xbf16>
    %29 = vector.broadcast %28 : vector<8x1x128xbf16> to vector<8x2x128xbf16>
    %c1_27 = arith.constant 1 : index
    %c7 = arith.constant 7 : index
    %c256_28 = arith.constant 256 : index
    %30 = vector.load %arg7[%c1_27, %c7, %c256_28] : memref<10x10x384xbf16, #tpu.memory_space<vmem>>, vector<8x2x128xbf16>
    tpu.vector_store %arg7[%c1_27, %c7, %c256_28], %29 {strides = array<i32>} : memref<10x10x384xbf16, #tpu.memory_space<vmem>>, vector<8x2x128xbf16>,
    %c0_29 = arith.constant 0 : index
    %c0_30 = arith.constant 0 : index
    %c0_31 = arith.constant 0 : index
    %31 = vector.load %arg7[%c0_29, %c0_30, %c0_31] : memref<10x10x384xbf16, #tpu.memory_space<vmem>>, vector<8x8x384xbf16>
    %32 = vector.shape_cast %31 : vector<8x8x384xbf16> to vector<64x384xbf16>
    %c0_32 = arith.constant 0 : index
    %c0_33 = arith.constant 0 : index
    %33 = vector.load %arg8[%c0_32, %c0_33] : memref<64x3456xbf16, #tpu.memory_space<vmem>>, vector<64x384xbf16>
    tpu.vector_store %arg8[%c0_32, %c0_33], %32 {strides = array<i32>} : memref<64x3456xbf16, #tpu.memory_space<vmem>>, vector<64x384xbf16>,
    %c0_34 = arith.constant 0 : index
    %c1_35 = arith.constant 1 : index
    %c0_36 = arith.constant 0 : index
    %34 = vector.load %arg7[%c0_34, %c1_35, %c0_36] : memref<10x10x384xbf16, #tpu.memory_space<vmem>>, vector<8x8x384xbf16>
    %35 = vector.shape_cast %34 : vector<8x8x384xbf16> to vector<64x384xbf16>
    %c0_37 = arith.constant 0 : index
    %c384 = arith.constant 384 : index
    %36 = vector.load %arg8[%c0_37, %c384] : memref<64x3456xbf16, #tpu.memory_space<vmem>>, vector<64x384xbf16>
    tpu.vector_store %arg8[%c0_37, %c384], %35 {strides = array<i32>} : memref<64x3456xbf16, #tpu.memory_space<vmem>>, vector<64x384xbf16>,
    %c0_38 = arith.constant 0 : index
    %c2 = arith.constant 2 : index
    %c0_39 = arith.constant 0 : index
    %37 = vector.load %arg7[%c0_38, %c2, %c0_39] : memref<10x10x384xbf16, #tpu.memory_space<vmem>>, vector<8x8x384xbf16>
    %38 = vector.shape_cast %37 : vector<8x8x384xbf16> to vector<64x384xbf16>
    %c0_40 = arith.constant 0 : index
    %c768 = arith.constant 768 : index
    %39 = vector.load %arg8[%c0_40, %c768] : memref<64x3456xbf16, #tpu.memory_space<vmem>>, vector<64x384xbf16>
    tpu.vector_store %arg8[%c0_40, %c768], %38 {strides = array<i32>} : memref<64x3456xbf16, #tpu.memory_space<vmem>>, vector<64x384xbf16>,
    %c1_41 = arith.constant 1 : index
    %c0_42 = arith.constant 0 : index
    %c0_43 = arith.constant 0 : index
    %40 = vector.load %arg7[%c1_41, %c0_42, %c0_43] : memref<10x10x384xbf16, #tpu.memory_space<vmem>>, vector<8x8x384xbf16>
    %41 = vector.shape_cast %40 : vector<8x8x384xbf16> to vector<64x384xbf16>
    %c0_44 = arith.constant 0 : index
    %c1152 = arith.constant 1152 : index
    %42 = vector.load %arg8[%c0_44, %c1152] : memref<64x3456xbf16, #tpu.memory_space<vmem>>, vector<64x384xbf16>
    tpu.vector_store %arg8[%c0_44, %c1152], %41 {strides = array<i32>} : memref<64x3456xbf16, #tpu.memory_space<vmem>>, vector<64x384xbf16>,
    %c1_45 = arith.constant 1 : index
    %c1_46 = arith.constant 1 : index
    %c0_47 = arith.constant 0 : index
    %43 = vector.load %arg7[%c1_45, %c1_46, %c0_47] : memref<10x10x384xbf16, #tpu.memory_space<vmem>>, vector<8x8x384xbf16>
    %44 = vector.shape_cast %43 : vector<8x8x384xbf16> to vector<64x384xbf16>
    %c0_48 = arith.constant 0 : index
    %c1536 = arith.constant 1536 : index
    %45 = vector.load %arg8[%c0_48, %c1536] : memref<64x3456xbf16, #tpu.memory_space<vmem>>, vector<64x384xbf16>
    tpu.vector_store %arg8[%c0_48, %c1536], %44 {strides = array<i32>} : memref<64x3456xbf16, #tpu.memory_space<vmem>>, vector<64x384xbf16>,
    %c1_49 = arith.constant 1 : index
    %c2_50 = arith.constant 2 : index
    %c0_51 = arith.constant 0 : index
    %46 = vector.load %arg7[%c1_49, %c2_50, %c0_51] : memref<10x10x384xbf16, #tpu.memory_space<vmem>>, vector<8x8x384xbf16>
    %47 = vector.shape_cast %46 : vector<8x8x384xbf16> to vector<64x384xbf16>
    %c0_52 = arith.constant 0 : index
    %c1920 = arith.constant 1920 : index
    %48 = vector.load %arg8[%c0_52, %c1920] : memref<64x3456xbf16, #tpu.memory_space<vmem>>, vector<64x384xbf16>
    tpu.vector_store %arg8[%c0_52, %c1920], %47 {strides = array<i32>} : memref<64x3456xbf16, #tpu.memory_space<vmem>>, vector<64x384xbf16>,
    %c2_53 = arith.constant 2 : index
    %c0_54 = arith.constant 0 : index
    %c0_55 = arith.constant 0 : index
    %49 = vector.load %arg7[%c2_53, %c0_54, %c0_55] : memref<10x10x384xbf16, #tpu.memory_space<vmem>>, vector<8x8x384xbf16>
    %50 = vector.shape_cast %49 : vector<8x8x384xbf16> to vector<64x384xbf16>
    %c0_56 = arith.constant 0 : index
    %c2304 = arith.constant 2304 : index
    %51 = vector.load %arg8[%c0_56, %c2304] : memref<64x3456xbf16, #tpu.memory_space<vmem>>, vector<64x384xbf16>
    tpu.vector_store %arg8[%c0_56, %c2304], %50 {strides = array<i32>} : memref<64x3456xbf16, #tpu.memory_space<vmem>>, vector<64x384xbf16>,
    %c2_57 = arith.constant 2 : index
    %c1_58 = arith.constant 1 : index
    %c0_59 = arith.constant 0 : index
    %52 = vector.load %arg7[%c2_57, %c1_58, %c0_59] : memref<10x10x384xbf16, #tpu.memory_space<vmem>>, vector<8x8x384xbf16>
    %53 = vector.shape_cast %52 : vector<8x8x384xbf16> to vector<64x384xbf16>
    %c0_60 = arith.constant 0 : index
    %c2688 = arith.constant 2688 : index
    %54 = vector.load %arg8[%c0_60, %c2688] : memref<64x3456xbf16, #tpu.memory_space<vmem>>, vector<64x384xbf16>
    tpu.vector_store %arg8[%c0_60, %c2688], %53 {strides = array<i32>} : memref<64x3456xbf16, #tpu.memory_space<vmem>>, vector<64x384xbf16>,
    %c2_61 = arith.constant 2 : index
    %c2_62 = arith.constant 2 : index
    %c0_63 = arith.constant 0 : index
    %55 = vector.load %arg7[%c2_61, %c2_62, %c0_63] : memref<10x10x384xbf16, #tpu.memory_space<vmem>>, vector<8x8x384xbf16>
    %56 = vector.shape_cast %55 : vector<8x8x384xbf16> to vector<64x384xbf16>
    %c0_64 = arith.constant 0 : index
    %c3072 = arith.constant 3072 : index
    %57 = vector.load %arg8[%c0_64, %c3072] : memref<64x3456xbf16, #tpu.memory_space<vmem>>, vector<64x384xbf16>
    tpu.vector_store %arg8[%c0_64, %c3072], %56 {strides = array<i32>} : memref<64x3456xbf16, #tpu.memory_space<vmem>>, vector<64x384xbf16>,
    %c0_65 = arith.constant 0 : index
    %c0_66 = arith.constant 0 : index
    %58 = vector.load %arg8[%c0_65, %c0_66] : memref<64x3456xbf16, #tpu.memory_space<vmem>>, vector<64x3456xbf16>
    %c0_67 = arith.constant 0 : index
    %c0_68 = arith.constant 0 : index
    %59 = vector.load %arg3[%c0_67, %c0_68] : memref<3456x256xbf16, #tpu.memory_space<vmem>>, vector<3456x256xbf16>
    %cst_69 = arith.constant dense<0.000000e+00> : vector<64x256xf32>
    %60 = tpu.matmul %58, %59, %cst_69 {dimension_numbers = #tpu.dot_dimension_numbers<[1], [0], [0], [1], [0, 0, 1, 1], [], []>} : vector<64x3456xbf16>, vector<3456x256xbf16>, vector<64x256xf32> -> vector<64x256xf32>
    %c0_70 = arith.constant 0 : index
    %c0_71 = arith.constant 0 : index
    %61 = vector.load %arg4[%c0_70, %c0_71] : memref<1x256xf32, #tpu.memory_space<vmem>>, vector<1x256xf32>
    %62 = vector.broadcast %61 : vector<1x256xf32> to vector<64x256xf32>
    %63 = arith.mulf %60, %62 : vector<64x256xf32>
    %c0_72 = arith.constant 0 : index
    %c0_73 = arith.constant 0 : index
    %64 = vector.load %arg5[%c0_72, %c0_73] : memref<1x256xf32, #tpu.memory_space<vmem>>, vector<1x256xf32>
    %65 = vector.broadcast %64 : vector<1x256xf32> to vector<64x256xf32>
    %66 = arith.addf %63, %65 : vector<64x256xf32>
    %cst_74 = arith.constant 1.000000e-01 : f32
    %67 = vector.broadcast %cst_74 : f32 to vector<64x256xf32>
    %68 = arith.mulf %67, %66 : vector<64x256xf32>
    %69 = arith.maximumf %66, %68 : vector<64x256xf32>
    %70 = arith.truncf %69 : vector<64x256xf32> to vector<64x256xbf16>
    %c0_75 = arith.constant 0 : index
    %c0_76 = arith.constant 0 : index
    %c0_77 = arith.constant 0 : index
    %71 = vector.load %arg6[%c0_75, %c0_76, %c0_77] : memref<1x64x256xbf16, #tpu.memory_space<vmem>>, vector<1x64x256xbf16>
    %72 = vector.shape_cast %71 : vector<1x64x256xbf16> to vector<64x256xbf16>
    %73 = vector.shape_cast %70 : vector<64x256xbf16> to vector<1x64x256xbf16>
    tpu.vector_store %arg6[%c0_75, %c0_76, %c0_77], %73 {strides = array<i32>} : memref<1x64x256xbf16, #tpu.memory_space<vmem>>, vector<1x64x256xbf16>,
    return
  }
  func.func @transform_0(%arg0: i32) -> (i32, i32, i32, i32) {
    %c0_i32 = arith.constant 0 : i32
    %c0_i32_0 = arith.constant 0 : i32
    %c0_i32_1 = arith.constant 0 : i32
    %c0_i32_2 = arith.constant 0 : i32
    return %arg0, %c0_i32, %c0_i32_0, %c0_i32_1 : i32, i32, i32, i32
  }
  func.func @transform_1(%arg0: i32) -> (i32, i32, i32, i32) {
    %c0_i32 = arith.constant 0 : i32
    %c0_i32_0 = arith.constant 0 : i32
    %c0_i32_1 = arith.constant 0 : i32
    %c0_i32_2 = arith.constant 0 : i32
    return %arg0, %c0_i32, %c0_i32_0, %c0_i32_1 : i32, i32, i32, i32
  }
  func.func @transform_2(%arg0: i32) -> (i32, i32) {
    %c0_i32 = arith.constant 0 : i32
    %c0_i32_0 = arith.constant 0 : i32
    %c0_i32_1 = arith.constant 0 : i32
    return %c0_i32, %c0_i32_0 : i32, i32
  }
  func.func @transform_3(%arg0: i32) -> (i32, i32) {
    %c0_i32 = arith.constant 0 : i32
    %c0_i32_0 = arith.constant 0 : i32
    %c0_i32_1 = arith.constant 0 : i32
    return %c0_i32, %c0_i32_0 : i32, i32
  }
  func.func @transform_4(%arg0: i32) -> (i32, i32) {
    %c0_i32 = arith.constant 0 : i32
    %c0_i32_0 = arith.constant 0 : i32
    %c0_i32_1 = arith.constant 0 : i32
    return %c0_i32, %c0_i32_0 : i32, i32
  }
  func.func @transform_5(%arg0: i32) -> (i32, i32, i32) {
    %c0_i32 = arith.constant 0 : i32
    %c0_i32_0 = arith.constant 0 : i32
    %c0_i32_1 = arith.constant 0 : i32
    return %arg0, %c0_i32, %c0_i32_0 : i32, i32, i32
  }
}

module attributes {stable_mosaic.version = 11 : i64} {
  func.func @_head_decode_kernel(%arg0: i32, %arg1: memref<1x64x256xbf16, #tpu.memory_space<vmem>>, %arg2: memref<256x256xbf16, #tpu.memory_space<vmem>>, %arg3: memref<1x256xf32, #tpu.memory_space<vmem>>, %arg4: memref<64x256xf32, #tpu.memory_space<vmem>>, %arg5: memref<1x256xf32, #tpu.memory_space<vmem>>, %arg6: memref<1x256xf32, #tpu.memory_space<vmem>>, %arg7: memref<1x64x256xf32, #tpu.memory_space<vmem>>) attributes {dimension_semantics = [#tpu.dimension_semantics<parallel>], iteration_bounds = array<i64: 2>, scalar_prefetch = 0 : i64, scratch_operands = 0 : i64, tpu.core_type = #tpu.core_type<tc>, window_params = [{transform_indices = @transform_0, window_bounds = array<i64: 1, 64, 256>}, {pipeline_mode = #tpu.pipeline_mode<synchronous>, transform_indices = @transform_1, window_bounds = array<i64: 256, 256>}, {pipeline_mode = #tpu.pipeline_mode<synchronous>, transform_indices = @transform_2, window_bounds = array<i64: 1, 256>}, {pipeline_mode = #tpu.pipeline_mode<synchronous>, transform_indices = @transform_3, window_bounds = array<i64: 64, 256>}, {pipeline_mode = #tpu.pipeline_mode<synchronous>, transform_indices = @transform_4, window_bounds = array<i64: 1, 256>}, {pipeline_mode = #tpu.pipeline_mode<synchronous>, transform_indices = @transform_5, window_bounds = array<i64: 1, 256>}, {transform_indices = @transform_6, window_bounds = array<i64: 1, 64, 256>}]} {
    %c0 = arith.constant 0 : index
    %c0_0 = arith.constant 0 : index
    %c0_1 = arith.constant 0 : index
    %0 = vector.load %arg1[%c0, %c0_0, %c0_1] : memref<1x64x256xbf16, #tpu.memory_space<vmem>>, vector<1x64x256xbf16>
    %1 = vector.shape_cast %0 : vector<1x64x256xbf16> to vector<64x256xbf16>
    %c0_2 = arith.constant 0 : index
    %c0_3 = arith.constant 0 : index
    %2 = vector.load %arg2[%c0_2, %c0_3] : memref<256x256xbf16, #tpu.memory_space<vmem>>, vector<256x256xbf16>
    %cst = arith.constant dense<0.000000e+00> : vector<64x256xf32>
    %3 = tpu.matmul %1, %2, %cst {dimension_numbers = #tpu.dot_dimension_numbers<[1], [0], [0], [1], [0, 0, 1, 1], [], []>} : vector<64x256xbf16>, vector<256x256xbf16>, vector<64x256xf32> -> vector<64x256xf32>
    %c0_4 = arith.constant 0 : index
    %c0_5 = arith.constant 0 : index
    %4 = vector.load %arg3[%c0_4, %c0_5] : memref<1x256xf32, #tpu.memory_space<vmem>>, vector<1x256xf32>
    %5 = vector.broadcast %4 : vector<1x256xf32> to vector<64x256xf32>
    %6 = arith.addf %3, %5 : vector<64x256xf32>
    %c0_6 = arith.constant 0 : index
    %c0_7 = arith.constant 0 : index
    %7 = vector.load %arg6[%c0_6, %c0_7] : memref<1x256xf32, #tpu.memory_space<vmem>>, vector<1x256xf32>
    %cst_8 = arith.constant 5.000000e-01 : f32
    %8 = vector.broadcast %cst_8 : f32 to vector<1x256xf32>
    %9 = arith.cmpf ogt, %7, %8 : vector<1x256xf32>
    %10 = arith.negf %6 : vector<64x256xf32>
    %11 = math.exp %10 : vector<64x256xf32>
    %cst_9 = arith.constant 1.000000e+00 : f32
    %12 = vector.broadcast %cst_9 : f32 to vector<64x256xf32>
    %13 = arith.addf %12, %11 : vector<64x256xf32>
    %14 = arith.divf %12, %13 : vector<64x256xf32>
    %cst_10 = arith.constant 0.000000e+00 : f32
    %15 = vector.shape_cast %9 : vector<1x256xi1> to vector<1x256xi1>
    %16 = vector.broadcast %15 : vector<1x256xi1> to vector<64x256xi1>
    %17 = vector.broadcast %cst_10 : f32 to vector<64x256xf32>
    %18 = arith.select %16, %6, %17 : vector<64x256xi1>, vector<64x256xf32>
    %19 = math.exp %18 : vector<64x256xf32>
    %c0_11 = arith.constant 0 : index
    %c0_12 = arith.constant 0 : index
    %20 = vector.load %arg4[%c0_11, %c0_12] : memref<64x256xf32, #tpu.memory_space<vmem>>, vector<64x256xf32>
    %21 = arith.addf %14, %20 : vector<64x256xf32>
    %22 = vector.shape_cast %9 : vector<1x256xi1> to vector<1x256xi1>
    %23 = vector.broadcast %22 : vector<1x256xi1> to vector<64x256xi1>
    %24 = arith.select %23, %19, %21 : vector<64x256xi1>, vector<64x256xf32>
    %c0_13 = arith.constant 0 : index
    %c0_14 = arith.constant 0 : index
    %25 = vector.load %arg5[%c0_13, %c0_14] : memref<1x256xf32, #tpu.memory_space<vmem>>, vector<1x256xf32>
    %26 = vector.broadcast %25 : vector<1x256xf32> to vector<64x256xf32>
    %27 = arith.mulf %24, %26 : vector<64x256xf32>
    %c0_15 = arith.constant 0 : index
    %c0_16 = arith.constant 0 : index
    %c0_17 = arith.constant 0 : index
    %28 = vector.load %arg7[%c0_15, %c0_16, %c0_17] : memref<1x64x256xf32, #tpu.memory_space<vmem>>, vector<1x64x256xf32>
    %29 = vector.shape_cast %28 : vector<1x64x256xf32> to vector<64x256xf32>
    %30 = vector.shape_cast %27 : vector<64x256xf32> to vector<1x64x256xf32>
    tpu.vector_store %arg7[%c0_15, %c0_16, %c0_17], %30 {strides = array<i32>} : memref<1x64x256xf32, #tpu.memory_space<vmem>>, vector<1x64x256xf32>,
    return
  }
  func.func @transform_0(%arg0: i32) -> (i32, i32, i32) {
    %c0_i32 = arith.constant 0 : i32
    %c0_i32_0 = arith.constant 0 : i32
    %c0_i32_1 = arith.constant 0 : i32
    return %arg0, %c0_i32, %c0_i32_0 : i32, i32, i32
  }
  func.func @transform_1(%arg0: i32) -> (i32, i32) {
    %c0_i32 = arith.constant 0 : i32
    %c0_i32_0 = arith.constant 0 : i32
    %c0_i32_1 = arith.constant 0 : i32
    return %c0_i32, %c0_i32_0 : i32, i32
  }
  func.func @transform_2(%arg0: i32) -> (i32, i32) {
    %c0_i32 = arith.constant 0 : i32
    %c0_i32_0 = arith.constant 0 : i32
    %c0_i32_1 = arith.constant 0 : i32
    return %c0_i32, %c0_i32_0 : i32, i32
  }
  func.func @transform_3(%arg0: i32) -> (i32, i32) {
    %c0_i32 = arith.constant 0 : i32
    %c0_i32_0 = arith.constant 0 : i32
    %c0_i32_1 = arith.constant 0 : i32
    return %c0_i32, %c0_i32_0 : i32, i32
  }
  func.func @transform_4(%arg0: i32) -> (i32, i32) {
    %c0_i32 = arith.constant 0 : i32
    %c0_i32_0 = arith.constant 0 : i32
    %c0_i32_1 = arith.constant 0 : i32
    return %c0_i32, %c0_i32_0 : i32, i32
  }
  func.func @transform_5(%arg0: i32) -> (i32, i32) {
    %c0_i32 = arith.constant 0 : i32
    %c0_i32_0 = arith.constant 0 : i32
    %c0_i32_1 = arith.constant 0 : i32
    return %c0_i32, %c0_i32_0 : i32, i32
  }
  func.func @transform_6(%arg0: i32) -> (i32, i32, i32) {
    %c0_i32 = arith.constant 0 : i32
    %c0_i32_0 = arith.constant 0 : i32
    %c0_i32_1 = arith.constant 0 : i32
    return %arg0, %c0_i32, %c0_i32_0 : i32, i32, i32
  }
}

module attributes {stable_mosaic.version = 11 : i64} {
  func.func @_head_decode_kernel(%arg0: i32, %arg1: memref<1x16x512xbf16, #tpu.memory_space<vmem>>, %arg2: memref<512x256xbf16, #tpu.memory_space<vmem>>, %arg3: memref<1x256xf32, #tpu.memory_space<vmem>>, %arg4: memref<16x256xf32, #tpu.memory_space<vmem>>, %arg5: memref<1x256xf32, #tpu.memory_space<vmem>>, %arg6: memref<1x256xf32, #tpu.memory_space<vmem>>, %arg7: memref<1x16x256xf32, #tpu.memory_space<vmem>>) attributes {dimension_semantics = [#tpu.dimension_semantics<parallel>], iteration_bounds = array<i64: 2>, scalar_prefetch = 0 : i64, scratch_operands = 0 : i64, tpu.core_type = #tpu.core_type<tc>, window_params = [{transform_indices = @transform_0, window_bounds = array<i64: 1, 16, 512>}, {pipeline_mode = #tpu.pipeline_mode<synchronous>, transform_indices = @transform_1, window_bounds = array<i64: 512, 256>}, {pipeline_mode = #tpu.pipeline_mode<synchronous>, transform_indices = @transform_2, window_bounds = array<i64: 1, 256>}, {pipeline_mode = #tpu.pipeline_mode<synchronous>, transform_indices = @transform_3, window_bounds = array<i64: 16, 256>}, {pipeline_mode = #tpu.pipeline_mode<synchronous>, transform_indices = @transform_4, window_bounds = array<i64: 1, 256>}, {pipeline_mode = #tpu.pipeline_mode<synchronous>, transform_indices = @transform_5, window_bounds = array<i64: 1, 256>}, {transform_indices = @transform_6, window_bounds = array<i64: 1, 16, 256>}]} {
    %c0 = arith.constant 0 : index
    %c0_0 = arith.constant 0 : index
    %c0_1 = arith.constant 0 : index
    %0 = vector.load %arg1[%c0, %c0_0, %c0_1] : memref<1x16x512xbf16, #tpu.memory_space<vmem>>, vector<1x16x512xbf16>
    %1 = vector.shape_cast %0 : vector<1x16x512xbf16> to vector<16x512xbf16>
    %c0_2 = arith.constant 0 : index
    %c0_3 = arith.constant 0 : index
    %2 = vector.load %arg2[%c0_2, %c0_3] : memref<512x256xbf16, #tpu.memory_space<vmem>>, vector<512x256xbf16>
    %cst = arith.constant dense<0.000000e+00> : vector<16x256xf32>
    %3 = tpu.matmul %1, %2, %cst {dimension_numbers = #tpu.dot_dimension_numbers<[1], [0], [0], [1], [0, 0, 1, 1], [], []>} : vector<16x512xbf16>, vector<512x256xbf16>, vector<16x256xf32> -> vector<16x256xf32>
    %c0_4 = arith.constant 0 : index
    %c0_5 = arith.constant 0 : index
    %4 = vector.load %arg3[%c0_4, %c0_5] : memref<1x256xf32, #tpu.memory_space<vmem>>, vector<1x256xf32>
    %5 = vector.broadcast %4 : vector<1x256xf32> to vector<16x256xf32>
    %6 = arith.addf %3, %5 : vector<16x256xf32>
    %c0_6 = arith.constant 0 : index
    %c0_7 = arith.constant 0 : index
    %7 = vector.load %arg6[%c0_6, %c0_7] : memref<1x256xf32, #tpu.memory_space<vmem>>, vector<1x256xf32>
    %cst_8 = arith.constant 5.000000e-01 : f32
    %8 = vector.broadcast %cst_8 : f32 to vector<1x256xf32>
    %9 = arith.cmpf ogt, %7, %8 : vector<1x256xf32>
    %10 = arith.negf %6 : vector<16x256xf32>
    %11 = math.exp %10 : vector<16x256xf32>
    %cst_9 = arith.constant 1.000000e+00 : f32
    %12 = vector.broadcast %cst_9 : f32 to vector<16x256xf32>
    %13 = arith.addf %12, %11 : vector<16x256xf32>
    %14 = arith.divf %12, %13 : vector<16x256xf32>
    %cst_10 = arith.constant 0.000000e+00 : f32
    %15 = vector.shape_cast %9 : vector<1x256xi1> to vector<1x256xi1>
    %16 = vector.broadcast %15 : vector<1x256xi1> to vector<16x256xi1>
    %17 = vector.broadcast %cst_10 : f32 to vector<16x256xf32>
    %18 = arith.select %16, %6, %17 : vector<16x256xi1>, vector<16x256xf32>
    %19 = math.exp %18 : vector<16x256xf32>
    %c0_11 = arith.constant 0 : index
    %c0_12 = arith.constant 0 : index
    %20 = vector.load %arg4[%c0_11, %c0_12] : memref<16x256xf32, #tpu.memory_space<vmem>>, vector<16x256xf32>
    %21 = arith.addf %14, %20 : vector<16x256xf32>
    %22 = vector.shape_cast %9 : vector<1x256xi1> to vector<1x256xi1>
    %23 = vector.broadcast %22 : vector<1x256xi1> to vector<16x256xi1>
    %24 = arith.select %23, %19, %21 : vector<16x256xi1>, vector<16x256xf32>
    %c0_13 = arith.constant 0 : index
    %c0_14 = arith.constant 0 : index
    %25 = vector.load %arg5[%c0_13, %c0_14] : memref<1x256xf32, #tpu.memory_space<vmem>>, vector<1x256xf32>
    %26 = vector.broadcast %25 : vector<1x256xf32> to vector<16x256xf32>
    %27 = arith.mulf %24, %26 : vector<16x256xf32>
    %c0_15 = arith.constant 0 : index
    %c0_16 = arith.constant 0 : index
    %c0_17 = arith.constant 0 : index
    %28 = vector.load %arg7[%c0_15, %c0_16, %c0_17] : memref<1x16x256xf32, #tpu.memory_space<vmem>>, vector<1x16x256xf32>
    %29 = vector.shape_cast %28 : vector<1x16x256xf32> to vector<16x256xf32>
    %30 = vector.shape_cast %27 : vector<16x256xf32> to vector<1x16x256xf32>
    tpu.vector_store %arg7[%c0_15, %c0_16, %c0_17], %30 {strides = array<i32>} : memref<1x16x256xf32, #tpu.memory_space<vmem>>, vector<1x16x256xf32>,
    return
  }
  func.func @transform_0(%arg0: i32) -> (i32, i32, i32) {
    %c0_i32 = arith.constant 0 : i32
    %c0_i32_0 = arith.constant 0 : i32
    %c0_i32_1 = arith.constant 0 : i32
    return %arg0, %c0_i32, %c0_i32_0 : i32, i32, i32
  }
  func.func @transform_1(%arg0: i32) -> (i32, i32) {
    %c0_i32 = arith.constant 0 : i32
    %c0_i32_0 = arith.constant 0 : i32
    %c0_i32_1 = arith.constant 0 : i32
    return %c0_i32, %c0_i32_0 : i32, i32
  }
  func.func @transform_2(%arg0: i32) -> (i32, i32) {
    %c0_i32 = arith.constant 0 : i32
    %c0_i32_0 = arith.constant 0 : i32
    %c0_i32_1 = arith.constant 0 : i32
    return %c0_i32, %c0_i32_0 : i32, i32
  }
  func.func @transform_3(%arg0: i32) -> (i32, i32) {
    %c0_i32 = arith.constant 0 : i32
    %c0_i32_0 = arith.constant 0 : i32
    %c0_i32_1 = arith.constant 0 : i32
    return %c0_i32, %c0_i32_0 : i32, i32
  }
  func.func @transform_4(%arg0: i32) -> (i32, i32) {
    %c0_i32 = arith.constant 0 : i32
    %c0_i32_0 = arith.constant 0 : i32
    %c0_i32_1 = arith.constant 0 : i32
    return %c0_i32, %c0_i32_0 : i32, i32
  }
  func.func @transform_5(%arg0: i32) -> (i32, i32) {
    %c0_i32 = arith.constant 0 : i32
    %c0_i32_0 = arith.constant 0 : i32
    %c0_i32_1 = arith.constant 0 : i32
    return %c0_i32, %c0_i32_0 : i32, i32
  }
  func.func @transform_6(%arg0: i32) -> (i32, i32, i32) {
    %c0_i32 = arith.constant 0 : i32
    %c0_i32_0 = arith.constant 0 : i32
    %c0_i32_1 = arith.constant 0 : i32
    return %arg0, %c0_i32, %c0_i32_0 : i32, i32, i32
  }
}

module attributes {stable_mosaic.version = 11 : i64} {
  func.func @kernel(%arg0: i32, %arg1: memref<1x4x4x256xbf16, #tpu.memory_space<vmem>>, %arg2: memref<2304x512xbf16, #tpu.memory_space<vmem>>, %arg3: memref<1x512xf32, #tpu.memory_space<vmem>>, %arg4: memref<1x512xf32, #tpu.memory_space<vmem>>, %arg5: memref<1x16x512xbf16, #tpu.memory_space<vmem>>, %arg6: memref<6x6x256xbf16, #tpu.memory_space<vmem>>, %arg7: memref<16x2304xbf16, #tpu.memory_space<vmem>>) attributes {dimension_semantics = [#tpu.dimension_semantics<parallel>], iteration_bounds = array<i64: 2>, scalar_prefetch = 0 : i64, scratch_operands = 2 : i64, tpu.core_type = #tpu.core_type<tc>, window_params = [{transform_indices = @transform_0, window_bounds = array<i64: 1, 4, 4, 256>}, {pipeline_mode = #tpu.pipeline_mode<synchronous>, transform_indices = @transform_1, window_bounds = array<i64: 2304, 512>}, {pipeline_mode = #tpu.pipeline_mode<synchronous>, transform_indices = @transform_2, window_bounds = array<i64: 1, 512>}, {pipeline_mode = #tpu.pipeline_mode<synchronous>, transform_indices = @transform_3, window_bounds = array<i64: 1, 512>}, {transform_indices = @transform_4, window_bounds = array<i64: 1, 16, 512>}]} {
    %cst = arith.constant 0.000000e+00 : bf16
    %0 = vector.broadcast %cst : bf16 to vector<1x6x256xbf16>
    %c0 = arith.constant 0 : index
    %c0_0 = arith.constant 0 : index
    %c0_1 = arith.constant 0 : index
    %1 = vector.load %arg6[%c0, %c0_0, %c0_1] : memref<6x6x256xbf16, #tpu.memory_space<vmem>>, vector<1x6x256xbf16>
    tpu.vector_store %arg6[%c0, %c0_0, %c0_1], %0 {strides = array<i32>} : memref<6x6x256xbf16, #tpu.memory_space<vmem>>, vector<1x6x256xbf16>,
    %c5 = arith.constant 5 : index
    %c0_2 = arith.constant 0 : index
    %c0_3 = arith.constant 0 : index
    %2 = vector.load %arg6[%c5, %c0_2, %c0_3] : memref<6x6x256xbf16, #tpu.memory_space<vmem>>, vector<1x6x256xbf16>
    tpu.vector_store %arg6[%c5, %c0_2, %c0_3], %0 {strides = array<i32>} : memref<6x6x256xbf16, #tpu.memory_space<vmem>>, vector<1x6x256xbf16>,
    %cst_4 = arith.constant 0.000000e+00 : bf16
    %3 = vector.broadcast %cst_4 : bf16 to vector<6x1x256xbf16>
    %c0_5 = arith.constant 0 : index
    %c0_6 = arith.constant 0 : index
    %c0_7 = arith.constant 0 : index
    %4 = vector.load %arg6[%c0_5, %c0_6, %c0_7] : memref<6x6x256xbf16, #tpu.memory_space<vmem>>, vector<6x1x256xbf16>
    tpu.vector_store %arg6[%c0_5, %c0_6, %c0_7], %3 {strides = array<i32>} : memref<6x6x256xbf16, #tpu.memory_space<vmem>>, vector<6x1x256xbf16>,
    %c0_8 = arith.constant 0 : index
    %c5_9 = arith.constant 5 : index
    %c0_10 = arith.constant 0 : index
    %5 = vector.load %arg6[%c0_8, %c5_9, %c0_10] : memref<6x6x256xbf16, #tpu.memory_space<vmem>>, vector<6x1x256xbf16>
    tpu.vector_store %arg6[%c0_8, %c5_9, %c0_10], %3 {strides = array<i32>} : memref<6x6x256xbf16, #tpu.memory_space<vmem>>, vector<6x1x256xbf16>,
    %c0_11 = arith.constant 0 : index
    %c0_12 = arith.constant 0 : index
    %c0_13 = arith.constant 0 : index
    %c0_14 = arith.constant 0 : index
    %6 = vector.load %arg1[%c0_11, %c0_12, %c0_13, %c0_14] : memref<1x4x4x256xbf16, #tpu.memory_space<vmem>>, vector<1x4x4x256xbf16>
    %7 = vector.shape_cast %6 : vector<1x4x4x256xbf16> to vector<4x4x256xbf16>
    %c1 = arith.constant 1 : index
    %c1_15 = arith.constant 1 : index
    %c0_16 = arith.constant 0 : index
    %8 = vector.load %arg6[%c1, %c1_15, %c0_16] : memref<6x6x256xbf16, #tpu.memory_space<vmem>>, vector<4x4x256xbf16>
    tpu.vector_store %arg6[%c1, %c1_15, %c0_16], %7 {strides = array<i32>} : memref<6x6x256xbf16, #tpu.memory_space<vmem>>, vector<4x4x256xbf16>,
    %c0_17 = arith.constant 0 : index
    %c0_18 = arith.constant 0 : index
    %c0_19 = arith.constant 0 : index
    %9 = vector.load %arg6[%c0_17, %c0_18, %c0_19] : memref<6x6x256xbf16, #tpu.memory_space<vmem>>, vector<4x4x256xbf16>
    %10 = vector.shape_cast %9 : vector<4x4x256xbf16> to vector<16x256xbf16>
    %c0_20 = arith.constant 0 : index
    %c0_21 = arith.constant 0 : index
    %11 = vector.load %arg7[%c0_20, %c0_21] : memref<16x2304xbf16, #tpu.memory_space<vmem>>, vector<16x256xbf16>
    tpu.vector_store %arg7[%c0_20, %c0_21], %10 {strides = array<i32>} : memref<16x2304xbf16, #tpu.memory_space<vmem>>, vector<16x256xbf16>,
    %c0_22 = arith.constant 0 : index
    %c1_23 = arith.constant 1 : index
    %c0_24 = arith.constant 0 : index
    %12 = vector.load %arg6[%c0_22, %c1_23, %c0_24] : memref<6x6x256xbf16, #tpu.memory_space<vmem>>, vector<4x4x256xbf16>
    %13 = vector.shape_cast %12 : vector<4x4x256xbf16> to vector<16x256xbf16>
    %c0_25 = arith.constant 0 : index
    %c256 = arith.constant 256 : index
    %14 = vector.load %arg7[%c0_25, %c256] : memref<16x2304xbf16, #tpu.memory_space<vmem>>, vector<16x256xbf16>
    tpu.vector_store %arg7[%c0_25, %c256], %13 {strides = array<i32>} : memref<16x2304xbf16, #tpu.memory_space<vmem>>, vector<16x256xbf16>,
    %c0_26 = arith.constant 0 : index
    %c2 = arith.constant 2 : index
    %c0_27 = arith.constant 0 : index
    %15 = vector.load %arg6[%c0_26, %c2, %c0_27] : memref<6x6x256xbf16, #tpu.memory_space<vmem>>, vector<4x4x256xbf16>
    %16 = vector.shape_cast %15 : vector<4x4x256xbf16> to vector<16x256xbf16>
    %c0_28 = arith.constant 0 : index
    %c512 = arith.constant 512 : index
    %17 = vector.load %arg7[%c0_28, %c512] : memref<16x2304xbf16, #tpu.memory_space<vmem>>, vector<16x256xbf16>
    tpu.vector_store %arg7[%c0_28, %c512], %16 {strides = array<i32>} : memref<16x2304xbf16, #tpu.memory_space<vmem>>, vector<16x256xbf16>,
    %c1_29 = arith.constant 1 : index
    %c0_30 = arith.constant 0 : index
    %c0_31 = arith.constant 0 : index
    %18 = vector.load %arg6[%c1_29, %c0_30, %c0_31] : memref<6x6x256xbf16, #tpu.memory_space<vmem>>, vector<4x4x256xbf16>
    %19 = vector.shape_cast %18 : vector<4x4x256xbf16> to vector<16x256xbf16>
    %c0_32 = arith.constant 0 : index
    %c768 = arith.constant 768 : index
    %20 = vector.load %arg7[%c0_32, %c768] : memref<16x2304xbf16, #tpu.memory_space<vmem>>, vector<16x256xbf16>
    tpu.vector_store %arg7[%c0_32, %c768], %19 {strides = array<i32>} : memref<16x2304xbf16, #tpu.memory_space<vmem>>, vector<16x256xbf16>,
    %c1_33 = arith.constant 1 : index
    %c1_34 = arith.constant 1 : index
    %c0_35 = arith.constant 0 : index
    %21 = vector.load %arg6[%c1_33, %c1_34, %c0_35] : memref<6x6x256xbf16, #tpu.memory_space<vmem>>, vector<4x4x256xbf16>
    %22 = vector.shape_cast %21 : vector<4x4x256xbf16> to vector<16x256xbf16>
    %c0_36 = arith.constant 0 : index
    %c1024 = arith.constant 1024 : index
    %23 = vector.load %arg7[%c0_36, %c1024] : memref<16x2304xbf16, #tpu.memory_space<vmem>>, vector<16x256xbf16>
    tpu.vector_store %arg7[%c0_36, %c1024], %22 {strides = array<i32>} : memref<16x2304xbf16, #tpu.memory_space<vmem>>, vector<16x256xbf16>,
    %c1_37 = arith.constant 1 : index
    %c2_38 = arith.constant 2 : index
    %c0_39 = arith.constant 0 : index
    %24 = vector.load %arg6[%c1_37, %c2_38, %c0_39] : memref<6x6x256xbf16, #tpu.memory_space<vmem>>, vector<4x4x256xbf16>
    %25 = vector.shape_cast %24 : vector<4x4x256xbf16> to vector<16x256xbf16>
    %c0_40 = arith.constant 0 : index
    %c1280 = arith.constant 1280 : index
    %26 = vector.load %arg7[%c0_40, %c1280] : memref<16x2304xbf16, #tpu.memory_space<vmem>>, vector<16x256xbf16>
    tpu.vector_store %arg7[%c0_40, %c1280], %25 {strides = array<i32>} : memref<16x2304xbf16, #tpu.memory_space<vmem>>, vector<16x256xbf16>,
    %c2_41 = arith.constant 2 : index
    %c0_42 = arith.constant 0 : index
    %c0_43 = arith.constant 0 : index
    %27 = vector.load %arg6[%c2_41, %c0_42, %c0_43] : memref<6x6x256xbf16, #tpu.memory_space<vmem>>, vector<4x4x256xbf16>
    %28 = vector.shape_cast %27 : vector<4x4x256xbf16> to vector<16x256xbf16>
    %c0_44 = arith.constant 0 : index
    %c1536 = arith.constant 1536 : index
    %29 = vector.load %arg7[%c0_44, %c1536] : memref<16x2304xbf16, #tpu.memory_space<vmem>>, vector<16x256xbf16>
    tpu.vector_store %arg7[%c0_44, %c1536], %28 {strides = array<i32>} : memref<16x2304xbf16, #tpu.memory_space<vmem>>, vector<16x256xbf16>,
    %c2_45 = arith.constant 2 : index
    %c1_46 = arith.constant 1 : index
    %c0_47 = arith.constant 0 : index
    %30 = vector.load %arg6[%c2_45, %c1_46, %c0_47] : memref<6x6x256xbf16, #tpu.memory_space<vmem>>, vector<4x4x256xbf16>
    %31 = vector.shape_cast %30 : vector<4x4x256xbf16> to vector<16x256xbf16>
    %c0_48 = arith.constant 0 : index
    %c1792 = arith.constant 1792 : index
    %32 = vector.load %arg7[%c0_48, %c1792] : memref<16x2304xbf16, #tpu.memory_space<vmem>>, vector<16x256xbf16>
    tpu.vector_store %arg7[%c0_48, %c1792], %31 {strides = array<i32>} : memref<16x2304xbf16, #tpu.memory_space<vmem>>, vector<16x256xbf16>,
    %c2_49 = arith.constant 2 : index
    %c2_50 = arith.constant 2 : index
    %c0_51 = arith.constant 0 : index
    %33 = vector.load %arg6[%c2_49, %c2_50, %c0_51] : memref<6x6x256xbf16, #tpu.memory_space<vmem>>, vector<4x4x256xbf16>
    %34 = vector.shape_cast %33 : vector<4x4x256xbf16> to vector<16x256xbf16>
    %c0_52 = arith.constant 0 : index
    %c2048 = arith.constant 2048 : index
    %35 = vector.load %arg7[%c0_52, %c2048] : memref<16x2304xbf16, #tpu.memory_space<vmem>>, vector<16x256xbf16>
    tpu.vector_store %arg7[%c0_52, %c2048], %34 {strides = array<i32>} : memref<16x2304xbf16, #tpu.memory_space<vmem>>, vector<16x256xbf16>,
    %c0_53 = arith.constant 0 : index
    %c0_54 = arith.constant 0 : index
    %36 = vector.load %arg7[%c0_53, %c0_54] : memref<16x2304xbf16, #tpu.memory_space<vmem>>, vector<16x2304xbf16>
    %c0_55 = arith.constant 0 : index
    %c0_56 = arith.constant 0 : index
    %37 = vector.load %arg2[%c0_55, %c0_56] : memref<2304x512xbf16, #tpu.memory_space<vmem>>, vector<2304x512xbf16>
    %cst_57 = arith.constant dense<0.000000e+00> : vector<16x512xf32>
    %38 = tpu.matmul %36, %37, %cst_57 {dimension_numbers = #tpu.dot_dimension_numbers<[1], [0], [0], [1], [0, 0, 1, 1], [], []>} : vector<16x2304xbf16>, vector<2304x512xbf16>, vector<16x512xf32> -> vector<16x512xf32>
    %c0_58 = arith.constant 0 : index
    %c0_59 = arith.constant 0 : index
    %39 = vector.load %arg3[%c0_58, %c0_59] : memref<1x512xf32, #tpu.memory_space<vmem>>, vector<1x512xf32>
    %40 = vector.broadcast %39 : vector<1x512xf32> to vector<16x512xf32>
    %41 = arith.mulf %38, %40 : vector<16x512xf32>
    %c0_60 = arith.constant 0 : index
    %c0_61 = arith.constant 0 : index
    %42 = vector.load %arg4[%c0_60, %c0_61] : memref<1x512xf32, #tpu.memory_space<vmem>>, vector<1x512xf32>
    %43 = vector.broadcast %42 : vector<1x512xf32> to vector<16x512xf32>
    %44 = arith.addf %41, %43 : vector<16x512xf32>
    %cst_62 = arith.constant 1.000000e-01 : f32
    %45 = vector.broadcast %cst_62 : f32 to vector<16x512xf32>
    %46 = arith.mulf %45, %44 : vector<16x512xf32>
    %47 = arith.maximumf %44, %46 : vector<16x512xf32>
    %48 = arith.truncf %47 : vector<16x512xf32> to vector<16x512xbf16>
    %c0_63 = arith.constant 0 : index
    %c0_64 = arith.constant 0 : index
    %c0_65 = arith.constant 0 : index
    %49 = vector.load %arg5[%c0_63, %c0_64, %c0_65] : memref<1x16x512xbf16, #tpu.memory_space<vmem>>, vector<1x16x512xbf16>
    %50 = vector.shape_cast %49 : vector<1x16x512xbf16> to vector<16x512xbf16>
    %51 = vector.shape_cast %48 : vector<16x512xbf16> to vector<1x16x512xbf16>
    tpu.vector_store %arg5[%c0_63, %c0_64, %c0_65], %51 {strides = array<i32>} : memref<1x16x512xbf16, #tpu.memory_space<vmem>>, vector<1x16x512xbf16>,
    return
  }
  func.func @transform_0(%arg0: i32) -> (i32, i32, i32, i32) {
    %c0_i32 = arith.constant 0 : i32
    %c0_i32_0 = arith.constant 0 : i32
    %c0_i32_1 = arith.constant 0 : i32
    %c0_i32_2 = arith.constant 0 : i32
    return %arg0, %c0_i32, %c0_i32_0, %c0_i32_1 : i32, i32, i32, i32
  }
  func.func @transform_1(%arg0: i32) -> (i32, i32) {
    %c0_i32 = arith.constant 0 : i32
    %c0_i32_0 = arith.constant 0 : i32
    %c0_i32_1 = arith.constant 0 : i32
    return %c0_i32, %c0_i32_0 : i32, i32
  }
  func.func @transform_2(%arg0: i32) -> (i32, i32) {
    %c0_i32 = arith.constant 0 : i32
    %c0_i32_0 = arith.constant 0 : i32
    %c0_i32_1 = arith.constant 0 : i32
    return %c0_i32, %c0_i32_0 : i32, i32
  }
  func.func @transform_3(%arg0: i32) -> (i32, i32) {
    %c0_i32 = arith.constant 0 : i32
    %c0_i32_0 = arith.constant 0 : i32
    %c0_i32_1 = arith.constant 0 : i32
    return %c0_i32, %c0_i32_0 : i32, i32
  }
  func.func @transform_4(%arg0: i32) -> (i32, i32, i32) {
    %c0_i32 = arith.constant 0 : i32
    %c0_i32_0 = arith.constant 0 : i32
    %c0_i32_1 = arith.constant 0 : i32
    return %arg0, %c0_i32, %c0_i32_0 : i32, i32, i32
  }
}

</mosaic_0001>

<bundles_post_ra>
// kernel: yolo_body_forward.9
= control target key start
LH: loop header
LB: loop body
LE: loop exit
PB: predicated region body
PF: predicated region fallthrough
CT: control target
= control target key end

     0   :  { %9 = vsyncpa [#allocation3], 0  ;;  %s585_s0 = inlined_call_operand.vmem [shape: bf16[32,256], index: 0, kind: input, shape index: {}]   ;;  %s586_s1 = inlined_call_operand.hbm [shape: bf16[256,128], index: 1, kind: input, shape index: {}]   ;;  %s587_s2 = inlined_call_operand.hbm [shape: f32[1,128], index: 2, kind: input, shape index: {}]   ;;  %s588_s3 = inlined_call_operand.hbm [shape: f32[1,128], index: 3, kind: input, shape index: {}]   ;;  %s589_s4 = inlined_call_operand.vmem [shape: bf16[32,128], index: 4, kind: output, shape index: {}]  }
   0x1   :  { %10 = vsyncpa [#allocation5], 0  ;;  %s494_s15 = smov [#allocation4]   ;;  %s495_s17 = smov [#allocation2]  }
   0x2   :  { %s31_s16 = sshll.u32 %s494_s15, 4  ;;  %s18_s18 = sshll.u32 %s495_s17, 4  ;;  %s32_s16 = int_to_ptr.vmem [resolvable:$true] %s31_s16  ;;  %s524_s18 = int_to_ptr.vmem [resolvable:$true] %s18_s18 }
   0x3   :  { %s424_s21 = scalar_lea.hbm %s587_s2, 16 }
   0x4   :  { %p425_p0 = scmp.ne.s32.totalorder %s587_s2, %s424_s21  ;;  %p428_p1 = scmp.lt.u32.totalorder %s424_s21, %s587_s2 }
   0x6   :  { %p430_p2 = pnand %p428_p1, %p425_p0 }
   0x8   :  { %433 = shalt.err (!%p430_p2)
}
   0x9   :  { %s434_s26 = scalar_lea.vmem %s32_s16, 16  ;;  %s438_s27 = scalar_lea.vmem %s32_s16, 32 }
   0xa   :  { %p435_p3 = scmp.ne.s32.totalorder %s32_s16, %s434_s26  ;;  %p439_p4 = scmp.lt.s32.totalorder %s32_s16, %s32_s16 }
   0xb   :  { %p440_p5 = scmp.lt.s32.totalorder %s438_s27, %s434_s26 }
   0xd   :  { %p441_p6 = por %p440_p5, %p439_p4 }
   0xf   :  { %p442_p7 = pnand %p441_p6, %p435_p3 }
  0x11   :  { %445 = shalt.err (!%p442_p7)
}
  0x12   :  { %34 = dma.hbm_to_vmem [thread:$0]  %s587_s2, 16, %s32_s16, [#allocation5]  }
  0x13   :  { %s446_s6 = scalar_lea.hbm %s586_s1, 2048 }
  0x14   :  { %p447_p8 = scmp.ne.s32.totalorder %s586_s1, %s446_s6  ;;  %p450_p9 = scmp.lt.u32.totalorder %s446_s6, %s586_s1 }
  0x16   :  { %p452_p10 = pnand %p450_p9, %p447_p8 }
  0x18   :  { %455 = shalt.err (!%p452_p10)
}
  0x19   :  { %s456_s11 = scalar_lea.vmem %s524_s18, 2048  ;;  %p461_p12 = scmp.lt.s32.totalorder %s524_s18, %s524_s18 }
  0x1a   :  { %p457_p11 = scmp.ne.s32.totalorder %s524_s18, %s456_s11  ;;  %p462_p13 = scmp.lt.s32.totalorder %s456_s11, %s456_s11 }
  0x1c   :  { %p463_p0 = por %p462_p13, %p461_p12 }
  0x1e   :  { %p464_p1 = pnand %p463_p0, %p457_p11 }
  0x20   :  { %467 = shalt.err (!%p464_p1)
}
  0x21   :  { %s496_s2 = smov 64   ;;  %s497_s12 = smov 4  }
  0x22   :  { %24 = dma.hbm_to_vmem [thread:$0]  %s586_s1, 2048, %s524_s18, [#allocation3], %s496_s2, %s496_s2, %s497_s12  }
  0x23   :  { %s498_s15 = smov [#allocation6]   ;;  %s468_s20 = scalar_lea.hbm %s588_s3, 16 }
  0x24   :  { %s41_s16 = sshll.u32 %s498_s15, 4  ;;  %p469_p2 = scmp.ne.s32.totalorder %s588_s3, %s468_s20  ;;  %s42_s16 = int_to_ptr.vmem [resolvable:$true] %s41_s16 }
  0x25   :  { %p472_p3 = scmp.lt.u32.totalorder %s468_s20, %s588_s3 }
  0x27   :  { %p474_p4 = pnand %p472_p3, %p469_p2 }
  0x29   :  { %477 = shalt.err (!%p474_p4)
}
  0x2a   :  { %s478_s25 = scalar_lea.vmem %s42_s16, 16  ;;  %s482_s1 = scalar_lea.vmem %s42_s16, 32 }
  0x2b   :  { %p479_p5 = scmp.ne.s32.totalorder %s42_s16, %s478_s25  ;;  %p483_p6 = scmp.lt.s32.totalorder %s42_s16, %s42_s16 }
  0x2c   :  { %p484_p7 = scmp.lt.s32.totalorder %s482_s1, %s478_s25 }
  0x2e   :  { %p485_p8 = por %p484_p7, %p483_p6 }
  0x30   :  { %p486_p9 = pnand %p485_p8, %p479_p5 }
  0x32   :  { %489 = shalt.err (!%p486_p9)
}
  0x33   :  { %44 = dma.hbm_to_vmem [thread:$0]  %s588_s3, 16, %s42_s16, [#allocation5]  }
  0x34   :  { %490 = dma.done.wait [#allocation3], 2048  }
  0x35   :  { %491 = vsyncadd [#allocation3], 4294965248 }
  0x36   :  { %492 = dma.done.wait [#allocation5], 32  }
  0x37   :  { %493 = vsyncadd [#allocation5], 4294967264  ;;  %v402_v0 = vld [vmem:[#allocation2 + $0x40] sm:$0xff]   ;;  %v404_v2 = vld [vmem:[#allocation2 + $0x48] sm:$0xff]  }
  0x38   :  { %v403_v1 = vld [vmem:[#allocation2] sm:$0xff]   ;;  %353 = vmatprep.subr.bf16.mxu0 %v402_v0  ;;  %381 = vmatprep.subr.bf16.mxu1 %v402_v0  ;;  %v405_v3 = vld [vmem:[#allocation2 + $0x8] sm:$0xff]   ;;  %v406_v4 = vld [vmem:[#allocation2 + $0x50] sm:$0xff]  }
  0x39   :  { %354 = vmatpush3.bf16.msra.mxu0 %v403_v1  ;;  %389 = vmatpush3.bf16.msra.mxu1 %v403_v1  ;;  %v407_v5 = vld [vmem:[#allocation2 + $0x10] sm:$0xff]   ;;  %v408_v6 = vld [vmem:[#allocation2 + $0x58] sm:$0xff]   ;;  %v410_v8 = vld [vmem:[#allocation2 + $0x60] sm:$0xff]  }
  0x3a   :  { %355 = vmatprep.subr.bf16.mxu0 %v404_v2  ;;  %382 = vmatprep.subr.bf16.mxu1 %v404_v2  ;;  %v409_v7 = vld [vmem:[#allocation2 + $0x18] sm:$0xff]   ;;  %v411_v9 = vld [vmem:[#allocation2 + $0x20] sm:$0xff]   ;;  %v412_v10 = vld [vmem:[#allocation2 + $0x68] sm:$0xff]  }
  0x3b   :  { %v420_v11 = vld [vmem:[%s585_s0 + $0x4] ss:$8 sps:$4 sm:$0xff]   ;;  %v423_v12 = vld [vmem:[%s585_s0 + $0x14] ss:$8 sps:$4 sm:$0xff]   ;;  %v418_v18 = vld [vmem:[%s585_s0] ss:$8 sps:$4 sm:$0xff]  }
  0x3c   :  { %v413_v13 = vld [vmem:[#allocation2 + $0x28] sm:$0xff]   ;;  %v414_v14 = vld [vmem:[#allocation2 + $0x70] sm:$0xff]   ;;  %239 = vmatprep.mubr.bf16.mxu0 %v420_v11  ;;  %247 = vmatprep.mubr.bf16.mxu1 %v423_v12  ;;  %v416_v16 = vld [vmem:[#allocation2 + $0x78] sm:$0xff]  }
  0x3d   :  { %356 = vmatpush3.bf16.msra.mxu0 %v405_v3  ;;  %390 = vmatpush3.bf16.msra.mxu1 %v405_v3  ;;  %v415_v15 = vld [vmem:[#allocation2 + $0x30] sm:$0xff]   ;;  %v417_v17 = vld [vmem:[#allocation2 + $0x38] sm:$0xff]   ;;  %v332_v23 = vld [vmem:[#allocation4] ss:$0 sm:$0xff] }
  0x3e   :  { %357 = vmatprep.subr.bf16.mxu0 %v406_v4  ;;  %383 = vmatprep.subr.bf16.mxu1 %v406_v4  ;;  %v421_v19 = vld [vmem:[%s585_s0 + $0x10] ss:$8 sps:$4 sm:$0xff]   ;;  %v333_v29 = vld [vmem:[#allocation6] ss:$0 sm:$0xff] }
  0x41   :  { %358 = vmatpush3.bf16.msra.mxu0 %v407_v5  ;;  %391 = vmatpush3.bf16.msra.mxu1 %v407_v5 }
  0x42   :  { %359 = vmatprep.subr.bf16.mxu0 %v408_v6  ;;  %384 = vmatprep.subr.bf16.mxu1 %v408_v6 }
  0x45   :  { %360 = vmatpush3.bf16.msra.mxu0 %v409_v7  ;;  %392 = vmatpush3.bf16.msra.mxu1 %v409_v7 }
  0x46   :  { %361 = vmatprep.subr.bf16.mxu0 %v410_v8  ;;  %385 = vmatprep.subr.bf16.mxu1 %v410_v8 }
  0x49   :  { %362 = vmatpush3.bf16.msra.mxu0 %v411_v9  ;;  %393 = vmatpush3.bf16.msra.mxu1 %v411_v9 }
  0x4a   :  { %363 = vmatprep.subr.bf16.mxu0 %v412_v10  ;;  %386 = vmatprep.subr.bf16.mxu1 %v412_v10 }
  0x4d   :  { %364 = vmatpush3.bf16.msra.mxu0 %v413_v13  ;;  %394 = vmatpush3.bf16.msra.mxu1 %v413_v13 }
  0x4e   :  { %365 = vmatprep.subr.bf16.mxu0 %v414_v14  ;;  %387 = vmatprep.subr.bf16.mxu1 %v414_v14 }
  0x51   :  { %366 = vmatpush3.bf16.msra.mxu0 %v415_v15  ;;  %395 = vmatpush3.bf16.msra.mxu1 %v415_v15 }
  0x52   :  { %367 = vmatprep.subr.bf16.mxu0 %v416_v16  ;;  %388 = vmatprep.subr.bf16.mxu1 %v416_v16 }
  0x55   :  { %368 = vmatpush3.bf16.msra.mxu0 %v417_v17  ;;  %396 = vmatpush3.bf16.msra.mxu1 %v417_v17 }
  0x58   :  { %240 = vmatmul.mubr.bf16.vlgmr.msra.gmra.mrb[0].mxu0 %v418_v18  ;;  %248 = vmatmul.mubr.bf16.vlgmr.msra.gmra.mrb[0].mxu1 %v421_v19 }
 0x12b   :  { %v369_v20 = vpop.f32.mrb[0].mxu0  ;;  %v375_v21 = vpop.f32.mrb[0].mxu1 }
 0x12c   :  { %v370_v22 = vpop.f32.mrb[1].mxu0  ;;  %v376_v24 = vpop.f32.mrb[1].mxu1 }
 0x12d   :  { %v371_v25 = vadd.f32 %v370_v22, %v369_v20  ;;  %v377_v26 = vadd.f32 %v376_v24, %v375_v21  ;;  %v372_v27 = vpop.f32.mrb[2].mxu0  ;;  %v378_v28 = vpop.f32.mrb[2].mxu1 }
 0x12e   :  { %v373_v30 = vpop.f32.mrb[3].mxu0  ;;  %v379_v31 = vpop.f32.mrb[3].mxu1 }
 0x12f   :  { %v263_v32 = vmul.f32 %v371_v25, %v332_v23  ;;  %v265_v33 = vmul.f32 %v377_v26, %v332_v23  ;;  %v374_v34 = vadd.f32 %v373_v30, %v372_v27  ;;  %v380_v35 = vadd.f32 %v379_v31, %v378_v28 }
 0x131   :  { %v274_v36 = vadd.f32 %v333_v29, %v263_v32  ;;  %v276_v37 = vadd.f32 %v333_v29, %v265_v33  ;;  %v264_v38 = vmul.f32 %v374_v34, %v332_v23  ;;  %v266_v39 = vmul.f32 %v380_v35, %v332_v23 }
 0x133   :  { %v278_v40 = vmul.f32 0.1, %v274_v36  ;;  %v280_v41 = vmul.f32 0.1, %v276_v37  ;;  %v275_v42 = vadd.f32 %v333_v29, %v264_v38  ;;  %v277_v43 = vadd.f32 %v333_v29, %v266_v39 }
 0x135   :  { %v279_v44 = vmul.f32 0.1, %v275_v42  ;;  %v281_v45 = vmul.f32 0.1, %v277_v43  ;;  %v282_v46 = vmax.f32 %v274_v36, %v278_v40  ;;  %v284_v47 = vmax.f32 %v276_v37, %v280_v41 }
 0x137   :  { %v283_v48 = vmax.f32 %v275_v42, %v279_v44  ;;  %v285_v49 = vmax.f32 %v277_v43, %v281_v45 }
 0x139   :  { %v345_v50 = vpack.c.bf16 %v283_v48, %v282_v46  ;;  %v350_v51 = vpack.c.bf16 %v285_v49, %v284_v47 }
 0x13b   :  { %346 = vst [vmem:[%s589_s4] sm:$0xff] %v345_v50   ;;  %352 = vst [vmem:[%s589_s4 + $0x8] sm:$0xff] %v350_v51  }
 0x13c   :  { %310 = vsyncpa [#allocation3], 1 }
 0x13d   :  { %311 = vsyncpa [#allocation5], 1 }

// kernel: yolo_body_forward.6
= control target key start
LH: loop header
LB: loop body
LE: loop exit
PB: predicated region body
PF: predicated region fallthrough
CT: control target
= control target key end

     0   :  { %9 = vsyncpa [#allocation3], 0  ;;  %s1062_s0 = inlined_call_operand.vmem [shape: bf16[32,512], index: 0, kind: input, shape index: {}]   ;;  %s1063_s1 = inlined_call_operand.hbm [shape: bf16[512,256], index: 1, kind: input, shape index: {}]   ;;  %s1064_s2 = inlined_call_operand.hbm [shape: f32[1,256], index: 2, kind: input, shape index: {}]   ;;  %s1065_s3 = inlined_call_operand.hbm [shape: f32[1,256], index: 3, kind: input, shape index: {}]   ;;  %s1066_s4 = inlined_call_operand.vmem [shape: bf16[32,256], index: 4, kind: output, shape index: {}]  }
   0x1   :  { %10 = vsyncpa [#allocation5], 0  ;;  %s953_s15 = smov [#allocation4]   ;;  %s954_s17 = smov [#allocation2]  }
   0x2   :  { %s31_s16 = sshll.u32 %s953_s15, 4  ;;  %s18_s18 = sshll.u32 %s954_s17, 4  ;;  %s32_s16 = int_to_ptr.vmem [resolvable:$true] %s31_s16  ;;  %s983_s18 = int_to_ptr.vmem [resolvable:$true] %s18_s18 }
   0x3   :  { %s883_s21 = scalar_lea.hbm %s1064_s2, 32 }
   0x4   :  { %p884_p0 = scmp.ne.s32.totalorder %s1064_s2, %s883_s21  ;;  %p887_p1 = scmp.lt.u32.totalorder %s883_s21, %s1064_s2 }
   0x6   :  { %p889_p2 = pnand %p887_p1, %p884_p0 }
   0x8   :  { %892 = shalt.err (!%p889_p2)
}
   0x9   :  { %s893_s26 = scalar_lea.vmem %s32_s16, 32  ;;  %p898_p4 = scmp.lt.s32.totalorder %s32_s16, %s32_s16 }
   0xa   :  { %p894_p3 = scmp.ne.s32.totalorder %s32_s16, %s893_s26  ;;  %p899_p5 = scmp.lt.s32.totalorder %s893_s26, %s893_s26 }
   0xc   :  { %p900_p6 = por %p899_p5, %p898_p4 }
   0xe   :  { %p901_p7 = pnand %p900_p6, %p894_p3 }
  0x10   :  { %904 = shalt.err (!%p901_p7)
}
  0x11   :  { %34 = dma.hbm_to_vmem [thread:$0]  %s1064_s2, 32, %s32_s16, [#allocation5]  }
  0x12   :  { %s905_s5 = scalar_lea.hbm %s1063_s1, 8192 }
  0x13   :  { %p906_p8 = scmp.ne.s32.totalorder %s1063_s1, %s905_s5  ;;  %p909_p9 = scmp.lt.u32.totalorder %s905_s5, %s1063_s1 }
  0x15   :  { %p911_p10 = pnand %p909_p9, %p906_p8 }
  0x17   :  { %914 = shalt.err (!%p911_p10)
}
  0x18   :  { %s915_s10 = scalar_lea.vmem %s983_s18, 8192  ;;  %p920_p12 = scmp.lt.s32.totalorder %s983_s18, %s983_s18 }
  0x19   :  { %p916_p11 = scmp.ne.s32.totalorder %s983_s18, %s915_s10  ;;  %p921_p13 = scmp.lt.s32.totalorder %s915_s10, %s915_s10 }
  0x1b   :  { %p922_p0 = por %p921_p13, %p920_p12 }
  0x1d   :  { %p923_p1 = pnand %p922_p0, %p916_p11 }
  0x1f   :  { %926 = shalt.err (!%p923_p1)
}
  0x20   :  { %s955_s2 = smov 128   ;;  %s956_s11 = smov 8  }
  0x21   :  { %24 = dma.hbm_to_vmem [thread:$0]  %s1063_s1, 8192, %s983_s18, [#allocation3], %s955_s2, %s955_s2, %s956_s11  }
  0x22   :  { %s957_s14 = smov [#allocation6]   ;;  %s927_s19 = scalar_lea.hbm %s1065_s3, 32 }
  0x23   :  { %s41_s15 = sshll.u32 %s957_s14, 4  ;;  %p928_p2 = scmp.ne.s32.totalorder %s1065_s3, %s927_s19  ;;  %s42_s15 = int_to_ptr.vmem [resolvable:$true] %s41_s15 }
  0x24   :  { %p931_p3 = scmp.lt.u32.totalorder %s927_s19, %s1065_s3 }
  0x26   :  { %p933_p4 = pnand %p931_p3, %p928_p2 }
  0x28   :  { %936 = shalt.err (!%p933_p4)
}
  0x29   :  { %s937_s24 = scalar_lea.vmem %s42_s15, 32  ;;  %p942_p6 = scmp.lt.s32.totalorder %s42_s15, %s42_s15 }
  0x2a   :  { %p938_p5 = scmp.ne.s32.totalorder %s42_s15, %s937_s24  ;;  %p943_p7 = scmp.lt.s32.totalorder %s937_s24, %s937_s24 }
  0x2c   :  { %p944_p8 = por %p943_p7, %p942_p6 }
  0x2e   :  { %p945_p9 = pnand %p944_p8, %p938_p5 }
  0x30   :  { %948 = shalt.err (!%p945_p9)
}
  0x31   :  { %44 = dma.hbm_to_vmem [thread:$0]  %s1065_s3, 32, %s42_s15, [#allocation5]  }
  0x32   :  { %949 = dma.done.wait [#allocation3], 8192  }
  0x33   :  { %950 = vsyncadd [#allocation3], 4294959104 }
  0x34   :  { %951 = dma.done.wait [#allocation5], 64  }
  0x35   :  { %952 = vsyncadd [#allocation5], 4294967232  ;;  %v775_v0 = vld [vmem:[#allocation2 + $0x4] ss:$8 sps:$4 sm:$0xff]   ;;  %v779_v2 = vld [vmem:[#allocation2] ss:$8 sps:$4 sm:$0xff]  }
  0x36   :  { %v777_v1 = vld [vmem:[#allocation2 + $0x104] ss:$8 sps:$4 sm:$0xff]   ;;  %486 = vmatprep.subr.bf16.mxu1 %v775_v0  ;;  %v780_v3 = vld [vmem:[#allocation2 + $0x100] ss:$8 sps:$4 sm:$0xff]   ;;  %v781_v4 = vld [vmem:[#allocation2 + $0x14] ss:$8 sps:$4 sm:$0xff]  }
  0x37   :  { %539 = vmatprep.subr.bf16.mxu0 %v777_v1  ;;  %487 = vmatpush1.bf16.msra.mxu1 %v779_v2  ;;  %v783_v5 = vld [vmem:[#allocation2 + $0x114] ss:$8 sps:$4 sm:$0xff]   ;;  %v785_v6 = vld [vmem:[#allocation2 + $0x10] ss:$8 sps:$4 sm:$0xff]   ;;  %v787_v8 = vld [vmem:[#allocation2 + $0x24] ss:$8 sps:$4 sm:$0xff]  }
  0x38   :  { %540 = vmatpush1.bf16.msra.mxu0 %v780_v3  ;;  %488 = vmatprep.subr.bf16.mxu1 %v781_v4  ;;  %v786_v7 = vld [vmem:[#allocation2 + $0x110] ss:$8 sps:$4 sm:$0xff]   ;;  %v789_v9 = vld [vmem:[#allocation2 + $0x124] ss:$8 sps:$4 sm:$0xff]   ;;  %v791_v10 = vld [vmem:[#allocation2 + $0x20] ss:$8 sps:$4 sm:$0xff]  }
  0x39   :  { %541 = vmatprep.subr.bf16.mxu0 %v783_v5  ;;  %v792_v11 = vld [vmem:[#allocation2 + $0x120] ss:$8 sps:$4 sm:$0xff]   ;;  %v793_v12 = vld [vmem:[#allocation2 + $0x34] ss:$8 sps:$4 sm:$0xff]   ;;  %v797_v14 = vld [vmem:[#allocation2 + $0x30] ss:$8 sps:$4 sm:$0xff]  }
  0x3a   :  { %v795_v13 = vld [vmem:[#allocation2 + $0x134] ss:$8 sps:$4 sm:$0xff]   ;;  %v798_v15 = vld [vmem:[#allocation2 + $0x130] ss:$8 sps:$4 sm:$0xff]   ;;  %v799_v16 = vld [vmem:[#allocation2 + $0x44] ss:$8 sps:$4 sm:$0xff]  }
  0x3b   :  { %489 = vmatpush1.bf16.msra.mxu1 %v785_v6  ;;  %v801_v17 = vld [vmem:[#allocation2 + $0x144] ss:$8 sps:$4 sm:$0xff]   ;;  %v803_v18 = vld [vmem:[#allocation2 + $0x40] ss:$8 sps:$4 sm:$0xff]   ;;  %v805_v20 = vld [vmem:[#allocation2 + $0x54] ss:$8 sps:$4 sm:$0xff]  }
  0x3c   :  { %542 = vmatpush1.bf16.msra.mxu0 %v786_v7  ;;  %490 = vmatprep.subr.bf16.mxu1 %v787_v8  ;;  %v804_v19 = vld [vmem:[#allocation2 + $0x140] ss:$8 sps:$4 sm:$0xff]   ;;  %v807_v21 = vld [vmem:[#allocation2 + $0x154] ss:$8 sps:$4 sm:$0xff]   ;;  %v809_v22 = vld [vmem:[#allocation2 + $0x50] ss:$8 sps:$4 sm:$0xff]   ;;  %v594_v8 = vlaneseq }
  0x3d   :  { %543 = vmatprep.subr.bf16.mxu0 %v789_v9  ;;  %v810_v23 = vld [vmem:[#allocation2 + $0x150] ss:$8 sps:$4 sm:$0xff]   ;;  %v811_v24 = vld [vmem:[#allocation2 + $0x64] ss:$8 sps:$4 sm:$0xff]   ;;  %v815_v26 = vld [vmem:[#allocation2 + $0x60] ss:$8 sps:$4 sm:$0xff]  }
  0x3e   :  { %v813_v25 = vld [vmem:[#allocation2 + $0x164] ss:$8 sps:$4 sm:$0xff]   ;;  %v816_v27 = vld [vmem:[#allocation2 + $0x160] ss:$8 sps:$4 sm:$0xff]   ;;  %v817_v28 = vld [vmem:[#allocation2 + $0x74] ss:$8 sps:$4 sm:$0xff]  }
  0x3f   :  { %491 = vmatpush1.bf16.msra.mxu1 %v791_v10  ;;  %v819_v29 = vld [vmem:[#allocation2 + $0x174] ss:$8 sps:$4 sm:$0xff]   ;;  %v821_v30 = vld [vmem:[#allocation2 + $0x70] ss:$8 sps:$4 sm:$0xff]   ;;  %v823_v32 = vld [vmem:[#allocation2 + $0x84] ss:$8 sps:$4 sm:$0xff]  }
  0x40   :  { %544 = vmatpush1.bf16.msra.mxu0 %v792_v11  ;;  %492 = vmatprep.subr.bf16.mxu1 %v793_v12  ;;  %v822_v31 = vld [vmem:[#allocation2 + $0x170] ss:$8 sps:$4 sm:$0xff]   ;;  %v825_v33 = vld [vmem:[#allocation2 + $0x184] ss:$8 sps:$4 sm:$0xff]   ;;  %v827_v34 = vld [vmem:[#allocation2 + $0x80] ss:$8 sps:$4 sm:$0xff]  }
  0x41   :  { %545 = vmatprep.subr.bf16.mxu0 %v795_v13  ;;  %v828_v35 = vld [vmem:[#allocation2 + $0x180] ss:$8 sps:$4 sm:$0xff]   ;;  %v829_v36 = vld [vmem:[#allocation2 + $0x94] ss:$8 sps:$4 sm:$0xff]   ;;  %v833_v38 = vld [vmem:[#allocation2 + $0x90] ss:$8 sps:$4 sm:$0xff]  }
  0x42   :  { %v831_v37 = vld [vmem:[#allocation2 + $0x194] ss:$8 sps:$4 sm:$0xff]   ;;  %v834_v39 = vld [vmem:[#allocation2 + $0x190] ss:$8 sps:$4 sm:$0xff]   ;;  %v835_v40 = vld [vmem:[#allocation2 + $0xa4] ss:$8 sps:$4 sm:$0xff]  }
  0x43   :  { %493 = vmatpush1.bf16.msra.mxu1 %v797_v14  ;;  %v837_v41 = vld [vmem:[#allocation2 + $0x1a4] ss:$8 sps:$4 sm:$0xff]   ;;  %v839_v42 = vld [vmem:[#allocation2 + $0xa0] ss:$8 sps:$4 sm:$0xff]   ;;  %v841_v44 = vld [vmem:[#allocation2 + $0xb4] ss:$8 sps:$4 sm:$0xff]  }
  0x44   :  { %546 = vmatpush1.bf16.msra.mxu0 %v798_v15  ;;  %494 = vmatprep.subr.bf16.mxu1 %v799_v16  ;;  %v840_v43 = vld [vmem:[#allocation2 + $0x1a0] ss:$8 sps:$4 sm:$0xff]   ;;  %v843_v45 = vld [vmem:[#allocation2 + $0x1b4] ss:$8 sps:$4 sm:$0xff]   ;;  %v845_v46 = vld [vmem:[#allocation2 + $0xb0] ss:$8 sps:$4 sm:$0xff]  }
  0x45   :  { %547 = vmatprep.subr.bf16.mxu0 %v801_v17  ;;  %v846_v47 = vld [vmem:[#allocation2 + $0x1b0] ss:$8 sps:$4 sm:$0xff]   ;;  %v847_v48 = vld [vmem:[#allocation2 + $0xc4] ss:$8 sps:$4 sm:$0xff]   ;;  %v851_v52 = vld [vmem:[#allocation2 + $0xc0] ss:$8 sps:$4 sm:$0xff]  }
  0x46   :  { %v873_v49 = vld [vmem:[%s1062_s0 + $0x4] ss:$16 sps:$4 sm:$0xff]   ;;  %v876_v51 = vld [vmem:[%s1062_s0 + $0xc] ss:$16 sps:$4 sm:$0xff]   ;;  %v852_v53 = vld [vmem:[#allocation2 + $0x1c0] ss:$8 sps:$4 sm:$0xff]  }
  0x47   :  { %495 = vmatpush1.bf16.msra.mxu1 %v803_v18  ;;  %v849_v50 = vld [vmem:[#allocation2 + $0x1c4] ss:$8 sps:$4 sm:$0xff]   ;;  %518 = vmatprep.mubr.bf16.mxu1 %v873_v49  ;;  %v853_v54 = vld [vmem:[#allocation2 + $0xd4] ss:$8 sps:$4 sm:$0xff]   ;;  %v857_v56 = vld [vmem:[#allocation2 + $0xd0] ss:$8 sps:$4 sm:$0xff]  }
  0x48   :  { %548 = vmatpush1.bf16.msra.mxu0 %v804_v19  ;;  %496 = vmatprep.subr.bf16.mxu1 %v805_v20  ;;  %v855_v55 = vld [vmem:[#allocation2 + $0x1d4] ss:$8 sps:$4 sm:$0xff]   ;;  %v858_v57 = vld [vmem:[#allocation2 + $0x1d0] ss:$8 sps:$4 sm:$0xff]   ;;  %v859_v58 = vld [vmem:[#allocation2 + $0xe4] ss:$8 sps:$4 sm:$0xff]  }
  0x49   :  { %549 = vmatprep.subr.bf16.mxu0 %v807_v21  ;;  %571 = vmatprep.mubr.bf16.mxu0 %v876_v51  ;;  %v861_v59 = vld [vmem:[#allocation2 + $0x1e4] ss:$8 sps:$4 sm:$0xff]   ;;  %v863_v60 = vld [vmem:[#allocation2 + $0xe0] ss:$8 sps:$4 sm:$0xff]   ;;  %v865_v62 = vld [vmem:[#allocation2 + $0xf4] ss:$8 sps:$4 sm:$0xff]  }
  0x4a   :  { %v864_v61 = vld [vmem:[#allocation2 + $0x1e0] ss:$8 sps:$4 sm:$0xff]   ;;  %v867_v63 = vld [vmem:[#allocation2 + $0x1f4] ss:$8 sps:$4 sm:$0xff]   ;;  %v869_v0 = vld [vmem:[#allocation2 + $0xf0] ss:$8 sps:$4 sm:$0xff]  }
  0x4b   :  { %497 = vmatpush1.bf16.msra.mxu1 %v809_v22  ;;  %v870_v1 = vld [vmem:[#allocation2 + $0x1f0] ss:$8 sps:$4 sm:$0xff]   ;;  %v877_v4 = vld [vmem:[%s1062_s0 + $0x24] ss:$16 sps:$4 sm:$0xff]   ;;  %v879_v5 = vld [vmem:[%s1062_s0 + $0x2c] ss:$16 sps:$4 sm:$0xff]  }
  0x4c   :  { %550 = vmatpush1.bf16.msra.mxu0 %v810_v23  ;;  %498 = vmatprep.subr.bf16.mxu1 %v811_v24  ;;  %v871_v2 = vld [vmem:[%s1062_s0] ss:$16 sps:$4 sm:$0xff]   ;;  %v874_v3 = vld [vmem:[%s1062_s0 + $0x8] ss:$16 sps:$4 sm:$0xff]   ;;  %v595_v9 = vshrl.u32 %v594_v8, 7 }
  0x4d   :  { %551 = vmatprep.subr.bf16.mxu0 %v813_v25  ;;  %v881_v6 = vld [vmem:[%s1062_s0 + $0x20] ss:$16 sps:$4 sm:$0xff]   ;;  %v882_v7 = vld [vmem:[%s1062_s0 + $0x28] ss:$16 sps:$4 sm:$0xff]  }
  0x4e   :  { %v596_v10 = vsub.s32 0, %v595_v9  ;;  %v592_v11 = vld [vmem:[#allocation4] sm:$0x3]  ;;  %v600_v12 = vsub.s32 1, %v595_v9  ;;  %v612_v13 = vld [vmem:[#allocation6] sm:$0x3] }
  0x4f   :  { %499 = vmatpush1.bf16.msra.mxu1 %v815_v26 }
  0x50   :  { %552 = vmatpush1.bf16.msra.mxu0 %v816_v27  ;;  %500 = vmatprep.subr.bf16.mxu1 %v817_v28  ;;  %v597_v14 = vrot.slane %v592_v11, %v596_v10  ;;  %v601_v17 = vrot.slane %v592_v11, %v600_v12  ;;  %v617_v19 = vrot.slane %v612_v13, %v596_v10 }
  0x51   :  { %553 = vmatprep.subr.bf16.mxu0 %v819_v29  ;;  %v621_v23 = vrot.slane %v612_v13, %v600_v12 }
  0x53   :  { %501 = vmatpush1.bf16.msra.mxu1 %v821_v30 }
  0x54   :  { %554 = vmatpush1.bf16.msra.mxu0 %v822_v31  ;;  %502 = vmatprep.subr.bf16.mxu1 %v823_v32 }
  0x55   :  { %555 = vmatprep.subr.bf16.mxu0 %v825_v33 }
  0x57   :  { %503 = vmatpush1.bf16.msra.mxu1 %v827_v34 }
  0x58   :  { %556 = vmatpush1.bf16.msra.mxu0 %v828_v35  ;;  %504 = vmatprep.subr.bf16.mxu1 %v829_v36 }
  0x59   :  { %557 = vmatprep.subr.bf16.mxu0 %v831_v37 }
  0x5b   :  { %505 = vmatpush1.bf16.msra.mxu1 %v833_v38 }
  0x5c   :  { %558 = vmatpush1.bf16.msra.mxu0 %v834_v39  ;;  %506 = vmatprep.subr.bf16.mxu1 %v835_v40 }
  0x5d   :  { %559 = vmatprep.subr.bf16.mxu0 %v837_v41 }
  0x5f   :  { %507 = vmatpush1.bf16.msra.mxu1 %v839_v42 }
  0x60   :  { %560 = vmatpush1.bf16.msra.mxu0 %v840_v43  ;;  %508 = vmatprep.subr.bf16.mxu1 %v841_v44 }
  0x61   :  { %561 = vmatprep.subr.bf16.mxu0 %v843_v45 }
  0x63   :  { %509 = vmatpush1.bf16.msra.mxu1 %v845_v46 }
  0x64   :  { %562 = vmatpush1.bf16.msra.mxu0 %v846_v47  ;;  %510 = vmatprep.subr.bf16.mxu1 %v847_v48 }
  0x65   :  { %563 = vmatprep.subr.bf16.mxu0 %v849_v50 }
  0x67   :  { %511 = vmatpush1.bf16.msra.mxu1 %v851_v52 }
  0x68   :  { %564 = vmatpush1.bf16.msra.mxu0 %v852_v53  ;;  %512 = vmatprep.subr.bf16.mxu1 %v853_v54 }
  0x69   :  { %565 = vmatprep.subr.bf16.mxu0 %v855_v55 }
  0x6b   :  { %513 = vmatpush1.bf16.msra.mxu1 %v857_v56 }
  0x6c   :  { %566 = vmatpush1.bf16.msra.mxu0 %v858_v57  ;;  %514 = vmatprep.subr.bf16.mxu1 %v859_v58 }
  0x6d   :  { %567 = vmatprep.subr.bf16.mxu0 %v861_v59 }
  0x6f   :  { %515 = vmatpush1.bf16.msra.mxu1 %v863_v60 }
  0x70   :  { %568 = vmatpush1.bf16.msra.mxu0 %v864_v61  ;;  %516 = vmatprep.subr.bf16.mxu1 %v865_v62 }
  0x71   :  { %569 = vmatprep.subr.bf16.mxu0 %v867_v63 }
  0x73   :  { %517 = vmatpush1.bf16.msra.mxu1 %v869_v0 }
  0x74   :  { %570 = vmatpush1.bf16.msra.mxu0 %v870_v1 }
  0x76   :  { %519 = vmatmul.mubr.bf16.vlgmr.msra.gmra.mrb[0].mxu1 %v871_v2 }
  0x77   :  { %572 = vmatmul.mubr.bf16.vlgmr.msra.gmra.mrb[0].mxu0 %v874_v3  ;;  %528 = vmatprep.mubr.bf16.mxu1 %v877_v4 }
  0x78   :  { %581 = vmatprep.mubr.bf16.mxu0 %v879_v5 }
  0x7e   :  { %529 = vmatmul.mubr.bf16.gmra.mrb[4].mxu1 %v881_v6 }
  0x7f   :  { %582 = vmatmul.mubr.bf16.gmra.mrb[4].mxu0 %v882_v7 }
 0x149   :  { %v520_v15 = vpop.f32.mrb[0].mxu1 }
 0x14a   :  { %v573_v16 = vpop.f32.mrb[0].mxu0  ;;  %v522_v20 = vpop.f32.mrb[1].mxu1 }
 0x14b   :  { %v574_v18 = vadd.f32 %v573_v16, %v520_v15  ;;  %v575_v21 = vpop.f32.mrb[1].mxu0  ;;  %v524_v24 = vpop.f32.mrb[2].mxu1 }
 0x14c   :  { %v576_v22 = vadd.f32 %v575_v21, %v522_v20  ;;  %v577_v25 = vpop.f32.mrb[2].mxu0  ;;  %v526_v28 = vpop.f32.mrb[3].mxu1 }
 0x14d   :  { %v604_v26 = vmul.f32 %v597_v14, %v574_v18  ;;  %v578_v27 = vadd.f32 %v577_v25, %v524_v24  ;;  %v579_v29 = vpop.f32.mrb[3].mxu0 }
 0x14e   :  { %v605_v30 = vmul.f32 %v601_v17, %v576_v22  ;;  %v580_v31 = vadd.f32 %v579_v29, %v526_v28 }
 0x14f   :  { %v624_v32 = vadd.f32 %v617_v19, %v604_v26  ;;  %v606_v33 = vmul.f32 %v597_v14, %v578_v27 }
 0x150   :  { %v625_v34 = vadd.f32 %v621_v23, %v605_v30  ;;  %v607_v35 = vmul.f32 %v601_v17, %v580_v31 }
 0x151   :  { %v632_v36 = vmul.f32 0.1, %v624_v32  ;;  %v626_v37 = vadd.f32 %v617_v19, %v606_v33  ;;  %v530_v40 = vpop.f32.mrb[4].mxu1 }
 0x152   :  { %v633_v38 = vmul.f32 0.1, %v625_v34  ;;  %v627_v39 = vadd.f32 %v621_v23, %v607_v35  ;;  %v583_v41 = vpop.f32.mrb[4].mxu0  ;;  %v532_v45 = vpop.f32.mrb[5].mxu1 }
 0x153   :  { %v640_v42 = vmax.f32 %v624_v32, %v632_v36  ;;  %v634_v43 = vmul.f32 0.1, %v626_v37  ;;  %v584_v44 = vadd.f32 %v583_v41, %v530_v40  ;;  %v585_v46 = vpop.f32.mrb[5].mxu0  ;;  %v534_v50 = vpop.f32.mrb[6].mxu1 }
 0x154   :  { %v641_v47 = vmax.f32 %v625_v34, %v633_v38  ;;  %v635_v48 = vmul.f32 0.1, %v627_v39  ;;  %v586_v49 = vadd.f32 %v585_v46, %v532_v45  ;;  %v587_v51 = vpop.f32.mrb[6].mxu0  ;;  %v536_v55 = vpop.f32.mrb[7].mxu1 }
 0x155   :  { %v642_v52 = vmax.f32 %v626_v37, %v634_v43  ;;  %v608_v53 = vmul.f32 %v597_v14, %v584_v44  ;;  %v588_v54 = vadd.f32 %v587_v51, %v534_v50  ;;  %v589_v56 = vpop.f32.mrb[7].mxu0 }
 0x156   :  { %v758_v57 = vpack.c.bf16 %v641_v47, %v640_v42  ;;  %v643_v58 = vmax.f32 %v627_v39, %v635_v48  ;;  %v609_v59 = vmul.f32 %v601_v17, %v586_v49  ;;  %v590_v60 = vadd.f32 %v589_v56, %v536_v55 }
 0x157   :  { %v628_v61 = vadd.f32 %v617_v19, %v608_v53  ;;  %v610_v62 = vmul.f32 %v597_v14, %v588_v54 }
 0x158   :  { %672 = vst [vmem:[%s1066_s4] sm:$0xff] %v758_v57  ;;  %v759_v63 = vpack.c.bf16 %v643_v58, %v642_v52  ;;  %v629_v0 = vadd.f32 %v621_v23, %v609_v59  ;;  %v611_v1 = vmul.f32 %v601_v17, %v590_v60 }
 0x159   :  { %v636_v2 = vmul.f32 0.1, %v628_v61  ;;  %v630_v3 = vadd.f32 %v617_v19, %v610_v62 }
 0x15a   :  { %673 = vst [vmem:[%s1066_s4 + $0x8] sm:$0xff] %v759_v63  ;;  %v637_v4 = vmul.f32 0.1, %v629_v0  ;;  %v631_v5 = vadd.f32 %v621_v23, %v611_v1 }
 0x15b   :  { %v644_v6 = vmax.f32 %v628_v61, %v636_v2  ;;  %v638_v7 = vmul.f32 0.1, %v630_v3 }
 0x15c   :  { %v645_v8 = vmax.f32 %v629_v0, %v637_v4  ;;  %v639_v9 = vmul.f32 0.1, %v631_v5 }
 0x15d   :  { %v646_v10 = vmax.f32 %v630_v3, %v638_v7 }
 0x15e   :  { %v760_v11 = vpack.c.bf16 %v645_v8, %v644_v6  ;;  %v647_v12 = vmax.f32 %v631_v5, %v639_v9 }
 0x160   :  { %674 = vst [vmem:[%s1066_s4 + $0x10] sm:$0xff] %v760_v11  ;;  %v761_v13 = vpack.c.bf16 %v647_v12, %v646_v10 }
 0x162   :  { %675 = vst [vmem:[%s1066_s4 + $0x18] sm:$0xff] %v761_v13 }
 0x163   :  { %680 = vsyncpa [#allocation3], 1 }
 0x164   :  { %681 = vsyncpa [#allocation5], 1 }

// kernel: yolo_body_forward.11
= control target key start
LH: loop header
LB: loop body
LE: loop exit
PB: predicated region body
PF: predicated region fallthrough
CT: control target
= control target key end

     0   :  { %s1191_s21 = smov 0   ;;  %s1563_s0 = inlined_call_operand.vmem [shape: bf16[2,64,256], index: 0, kind: input, shape index: {}]   ;;  %s1564_s1 = inlined_call_operand.vmem [shape: bf16[256,256], index: 1, kind: input, shape index: {}]   ;;  %s1565_s2 = inlined_call_operand.vmem [shape: f32[1,256], index: 2, kind: input, shape index: {}]   ;;  %s1566_s3 = inlined_call_operand.vmem [shape: f32[64,256], index: 3, kind: input, shape index: {}]   ;;  %s1567_s4 = inlined_call_operand.vmem [shape: f32[1,256], index: 4, kind: input, shape index: {}]   ;;  %s1568_s5 = inlined_call_operand.vmem [shape: f32[1,256], index: 5, kind: input, shape index: {}]   ;;  %s1569_s6 = inlined_call_operand.vmem [shape: f32[2,64,256], index: 6, kind: output, shape index: {}]  }
   0x1 LB: > { %s881_s22 = sadd.s32 4294967295, %s1153_s21   ;;  %p885_p0 = scmp.ge.s32.totalorder %s1153_s21, 1  ;;  %s1153_s21 = sphi %s1191_s21, %s16_s21  }
   0x2   : > { %p212_p1 = scmp.lt.s32.totalorder %s1153_s21, 3 }
   0x4   : > { %p213_p2 = pnand %p885_p0, %p212_p1 }
   0x5   : > { %v991_v0 = vld [vmem:[%s1564_s1 + $0x4] ss:$8 sps:$4 sm:$0xff] (!%p213_p2)   ;;  %v993_v1 = vld [vmem:[%s1564_s1] ss:$8 sps:$4 sm:$0xff] (!%p213_p2)   ;;  %v994_v2 = vld [vmem:[%s1564_s1 + $0x14] ss:$8 sps:$4 sm:$0xff] (!%p213_p2)   ;;  %v294_v40 = vlaneseq (!%p213_p2) }
   0x6   : > { %216 = sbr.rel (%p213_p2) target bundleno = 357 (0x165), region = 44  ;;  %504 = vmatprep.subr.bf16.mxu0 (!%p213_p2), %v991_v0  ;;  %950 = vmatprep.subr.bf16.mxu1 (!%p213_p2), %v991_v0  ;;  %v996_v3 = vld [vmem:[%s1564_s1 + $0x10] ss:$8 sps:$4 sm:$0xff] (!%p213_p2)   ;;  %v997_v4 = vld [vmem:[%s1564_s1 + $0x24] ss:$8 sps:$4 sm:$0xff] (!%p213_p2)   ;;  %p242_p3 = scmp.lt.s32.totalorder (!%p213_p2), %s881_s22, 1 }
   0x7   : > { %505 = vmatpush1.bf16.msra.mxu0 (!%p213_p2), %v993_v1  ;;  %966 = vmatpush1.bf16.msra.mxu1 (!%p213_p2), %v993_v1  ;;  %v999_v5 = vld [vmem:[%s1564_s1 + $0x20] ss:$8 sps:$4 sm:$0xff] (!%p213_p2)   ;;  %v1000_v6 = vld [vmem:[%s1564_s1 + $0x34] ss:$8 sps:$4 sm:$0xff] (!%p213_p2)   ;;  %v1002_v7 = vld [vmem:[%s1564_s1 + $0x30] ss:$8 sps:$4 sm:$0xff] (!%p213_p2)  }
   0x8   : > { %506 = vmatprep.subr.bf16.mxu0 (!%p213_p2), %v994_v2  ;;  %951 = vmatprep.subr.bf16.mxu1 (!%p213_p2), %v994_v2  ;;  %v1003_v8 = vld [vmem:[%s1564_s1 + $0x44] ss:$8 sps:$4 sm:$0xff] (!%p213_p2)   ;;  %v1005_v9 = vld [vmem:[%s1564_s1 + $0x40] ss:$8 sps:$4 sm:$0xff] (!%p213_p2)   ;;  %v1006_v10 = vld [vmem:[%s1564_s1 + $0x54] ss:$8 sps:$4 sm:$0xff] (!%p213_p2)  }
   0x9   : > { %v1008_v11 = vld [vmem:[%s1564_s1 + $0x50] ss:$8 sps:$4 sm:$0xff] (!%p213_p2)   ;;  %v1009_v12 = vld [vmem:[%s1564_s1 + $0x64] ss:$8 sps:$4 sm:$0xff] (!%p213_p2)   ;;  %v1011_v14 = vld [vmem:[%s1564_s1 + $0x60] ss:$8 sps:$4 sm:$0xff] (!%p213_p2)  }
   0xa   : > { %v1012_v16 = vld [vmem:[%s1564_s1 + $0x74] ss:$8 sps:$4 sm:$0xff] (!%p213_p2)   ;;  %v1014_v17 = vld [vmem:[%s1564_s1 + $0x70] ss:$8 sps:$4 sm:$0xff] (!%p213_p2)   ;;  %v1015_v18 = vld [vmem:[%s1564_s1 + $0x84] ss:$8 sps:$4 sm:$0xff] (!%p213_p2)  }
   0xb   : > { %507 = vmatpush1.bf16.msra.mxu0 (!%p213_p2), %v996_v3  ;;  %967 = vmatpush1.bf16.msra.mxu1 (!%p213_p2), %v996_v3  ;;  %v1017_v19 = vld [vmem:[%s1564_s1 + $0x80] ss:$8 sps:$4 sm:$0xff] (!%p213_p2)   ;;  %v1018_v20 = vld [vmem:[%s1564_s1 + $0x94] ss:$8 sps:$4 sm:$0xff] (!%p213_p2)   ;;  %v1020_v21 = vld [vmem:[%s1564_s1 + $0x90] ss:$8 sps:$4 sm:$0xff] (!%p213_p2)  }
   0xc   : > { %508 = vmatprep.subr.bf16.mxu0 (!%p213_p2), %v997_v4  ;;  %952 = vmatprep.subr.bf16.mxu1 (!%p213_p2), %v997_v4  ;;  %v1021_v22 = vld [vmem:[%s1564_s1 + $0xa4] ss:$8 sps:$4 sm:$0xff] (!%p213_p2)   ;;  %v1023_v23 = vld [vmem:[%s1564_s1 + $0xa0] ss:$8 sps:$4 sm:$0xff] (!%p213_p2)   ;;  %v1024_v24 = vld [vmem:[%s1564_s1 + $0xb4] ss:$8 sps:$4 sm:$0xff] (!%p213_p2)  }
   0xd   : > { %s1575_s22 = smov (!%p242_p3, %s881_s22), 1  ;;  %v1026_v25 = vld [vmem:[%s1564_s1 + $0xb0] ss:$8 sps:$4 sm:$0xff]   ;;  %v1027_v26 = vld [vmem:[%s1564_s1 + $0xc4] ss:$8 sps:$4 sm:$0xff]   ;;  %v295_v41 = vshrl.u32 %v294_v40, 7 }
   0xe   : > { %s948_s23 = sshll.u32 %s1575_s22, 6  ;;  %v1029_v27 = vld [vmem:[%s1564_s1 + $0xc0] ss:$8 sps:$4 sm:$0xff]   ;;  %v1030_v28 = vld [vmem:[%s1564_s1 + $0xd4] ss:$8 sps:$4 sm:$0xff]   ;;  %v1155_v46 = vmov 0  }
   0xf   : > { %509 = vmatpush1.bf16.msra.mxu0 %v999_v5  ;;  %968 = vmatpush1.bf16.msra.mxu1 %v999_v5  ;;  %s1241_s28 = scalar_lea.vmem %s1563_s0, %s948_s23  ;;  %v1032_v29 = vld [vmem:[%s1564_s1 + $0xd0] ss:$8 sps:$4 sm:$0xff]   ;;  %v1033_v30 = vld [vmem:[%s1564_s1 + $0xe4] ss:$8 sps:$4 sm:$0xff]   ;;  %v1035_v31 = vld [vmem:[%s1564_s1 + $0xe0] ss:$8 sps:$4 sm:$0xff]  }
  0x10   : > { %510 = vmatprep.subr.bf16.mxu0 %v1000_v6  ;;  %953 = vmatprep.subr.bf16.mxu1 %v1000_v6  ;;  %v1041_v13 = vld [vmem:[%s1241_s28 + $0x4] ss:$8 sps:$4 sm:$0xff]   ;;  %v1036_v32 = vld [vmem:[%s1564_s1 + $0xf4] ss:$8 sps:$4 sm:$0xff]   ;;  %v1038_v33 = vld [vmem:[%s1564_s1 + $0xf0] ss:$8 sps:$4 sm:$0xff]  }
  0x11   : > { %v1044_v15 = vld [vmem:[%s1241_s28 + $0x24] ss:$8 sps:$4 sm:$0xff]   ;;  %536 = vmatprep.mubr.bf16.mxu0 %v1041_v13  ;;  %v1039_v34 = vld [vmem:[%s1241_s28] ss:$8 sps:$4 sm:$0xff]   ;;  %v1045_v36 = vld [vmem:[%s1241_s28 + $0x14] ss:$8 sps:$4 sm:$0xff]  }
  0x12   : > { %556 = vmatprep.mubr.bf16.mxu1 %v1044_v15  ;;  %v1042_v35 = vld [vmem:[%s1241_s28 + $0x20] ss:$8 sps:$4 sm:$0xff]   ;;  %v1047_v37 = vld [vmem:[%s1241_s28 + $0x34] ss:$8 sps:$4 sm:$0xff]   ;;  %v1049_v38 = vld [vmem:[%s1241_s28 + $0x10] ss:$8 sps:$4 sm:$0xff]  }
  0x13   : > { %511 = vmatpush1.bf16.msra.mxu0 %v1002_v7  ;;  %969 = vmatpush1.bf16.msra.mxu1 %v1002_v7  ;;  %v1050_v39 = vld [vmem:[%s1241_s28 + $0x30] ss:$8 sps:$4 sm:$0xff]   ;;  %v577_v42 = vld [vmem:[%s1568_s5] sm:$0x3]  ;;  %v1314_v43 = vsub.s32 0, %v295_v41  ;;  %v1319_v45 = vsub.s32 1, %v295_v41 }
  0x14   : > { %512 = vmatprep.subr.bf16.mxu0 %v1003_v8  ;;  %954 = vmatprep.subr.bf16.mxu1 %v1003_v8  ;;  %vm578_vm0 = vcmp.gt.f32.partialorder %v577_v42, 0.5  ;;  %v292_v44 = vld [vmem:[%s1565_s2] sm:$0x3]  ;;  %s949_s10 = sshll.u32 %s1575_s22, 7 }
  0x15   : > { %v675_v47 = vsel %vm578_vm0, 1, %v1155_v46  ;;  %v1322_v48 = vrot.slane %v292_v44, %v1314_v43  ;;  %v1326_v50 = vrot.slane %v292_v44, %v1319_v45  ;;  %s1417_s16 = scalar_lea.vmem %s1569_s6, %s949_s10 }
  0x16   : > { %v679_v49 = vrot.slane %v675_v47, %v1314_v43  ;;  %v683_v59 = vrot.slane %v675_v47, %v1319_v45 }
  0x17   : > { %513 = vmatpush1.bf16.msra.mxu0 %v1005_v9  ;;  %970 = vmatpush1.bf16.msra.mxu1 %v1005_v9 }
  0x18   : > { %514 = vmatprep.subr.bf16.mxu0 %v1006_v10  ;;  %955 = vmatprep.subr.bf16.mxu1 %v1006_v10  ;;  %vm1330_vm1 = vcmp.eq.s32.totalorder %v679_v49, 1  ;;  %vm1340_vm2 = vcmp.eq.s32.totalorder %v683_v59, 1 }
  0x1b   : > { %515 = vmatpush1.bf16.msra.mxu0 %v1008_v11  ;;  %971 = vmatpush1.bf16.msra.mxu1 %v1008_v11 }
  0x1c   : > { %516 = vmatprep.subr.bf16.mxu0 %v1009_v12  ;;  %956 = vmatprep.subr.bf16.mxu1 %v1009_v12 }
  0x1f   : > { %517 = vmatpush1.bf16.msra.mxu0 %v1011_v14  ;;  %972 = vmatpush1.bf16.msra.mxu1 %v1011_v14 }
  0x20   : > { %518 = vmatprep.subr.bf16.mxu0 %v1012_v16  ;;  %957 = vmatprep.subr.bf16.mxu1 %v1012_v16 }
  0x23   : > { %519 = vmatpush1.bf16.msra.mxu0 %v1014_v17  ;;  %973 = vmatpush1.bf16.msra.mxu1 %v1014_v17 }
  0x24   : > { %520 = vmatprep.subr.bf16.mxu0 %v1015_v18  ;;  %958 = vmatprep.subr.bf16.mxu1 %v1015_v18 }
  0x27   : > { %521 = vmatpush1.bf16.msra.mxu0 %v1017_v19  ;;  %974 = vmatpush1.bf16.msra.mxu1 %v1017_v19 }
  0x28   : > { %522 = vmatprep.subr.bf16.mxu0 %v1018_v20  ;;  %959 = vmatprep.subr.bf16.mxu1 %v1018_v20 }
  0x2b   : > { %523 = vmatpush1.bf16.msra.mxu0 %v1020_v21  ;;  %975 = vmatpush1.bf16.msra.mxu1 %v1020_v21 }
  0x2c   : > { %524 = vmatprep.subr.bf16.mxu0 %v1021_v22  ;;  %960 = vmatprep.subr.bf16.mxu1 %v1021_v22 }
  0x2f   : > { %525 = vmatpush1.bf16.msra.mxu0 %v1023_v23  ;;  %976 = vmatpush1.bf16.msra.mxu1 %v1023_v23 }
  0x30   : > { %526 = vmatprep.subr.bf16.mxu0 %v1024_v24  ;;  %961 = vmatprep.subr.bf16.mxu1 %v1024_v24 }
  0x33   : > { %527 = vmatpush1.bf16.msra.mxu0 %v1026_v25  ;;  %977 = vmatpush1.bf16.msra.mxu1 %v1026_v25 }
  0x34   : > { %528 = vmatprep.subr.bf16.mxu0 %v1027_v26  ;;  %962 = vmatprep.subr.bf16.mxu1 %v1027_v26 }
  0x37   : > { %529 = vmatpush1.bf16.msra.mxu0 %v1029_v27  ;;  %978 = vmatpush1.bf16.msra.mxu1 %v1029_v27 }
  0x38   : > { %530 = vmatprep.subr.bf16.mxu0 %v1030_v28  ;;  %963 = vmatprep.subr.bf16.mxu1 %v1030_v28 }
  0x3b   : > { %531 = vmatpush1.bf16.msra.mxu0 %v1032_v29  ;;  %979 = vmatpush1.bf16.msra.mxu1 %v1032_v29 }
  0x3c   : > { %532 = vmatprep.subr.bf16.mxu0 %v1033_v30  ;;  %964 = vmatprep.subr.bf16.mxu1 %v1033_v30 }
  0x3f   : > { %533 = vmatpush1.bf16.msra.mxu0 %v1035_v31  ;;  %980 = vmatpush1.bf16.msra.mxu1 %v1035_v31 }
  0x40   : > { %534 = vmatprep.subr.bf16.mxu0 %v1036_v32  ;;  %965 = vmatprep.subr.bf16.mxu1 %v1036_v32 }
  0x43   : > { %535 = vmatpush1.bf16.msra.mxu0 %v1038_v33  ;;  %981 = vmatpush1.bf16.msra.mxu1 %v1038_v33 }
  0x46   : > { %537 = vmatmul.mubr.bf16.vlgmr.msra.gmra.mrb[0].mxu0 %v1039_v34  ;;  %557 = vmatmul.mubr.bf16.vlgmr.msra.gmra.mrb[0].mxu1 %v1042_v35 }
  0x47   : > { %546 = vmatprep.mubr.bf16.mxu0 %v1045_v36  ;;  %566 = vmatprep.mubr.bf16.mxu1 %v1047_v37 }
  0x4e   : > { %547 = vmatmul.mubr.bf16.gmra.mrb[4].mxu0 %v1049_v38  ;;  %567 = vmatmul.mubr.bf16.gmra.mrb[4].mxu1 %v1050_v39 }
 0x119   : > { %v538_v51 = vpop.f32.mrb[0].mxu0  ;;  %v558_v52 = vpop.f32.mrb[0].mxu1 }
 0x11a   : > { %v539_v53 = vadd.f32 %v538_v51, %v1322_v48  ;;  %v559_v54 = vadd.f32 %v558_v52, %v1322_v48  ;;  %v540_v55 = vpop.f32.mrb[1].mxu0  ;;  %v560_v56 = vpop.f32.mrb[1].mxu1 }
 0x11b   : > { %v541_v58 = vadd.f32 %v540_v55, %v1326_v50  ;;  %v542_v60 = vpop.f32.mrb[2].mxu0  ;;  %v562_v61 = vpop.f32.mrb[2].mxu1  ;;  %v561_v0 = vadd.f32 %v560_v56, %v1326_v50  ;;  %v782_v56 = vld [vmem:[%s1567_s4] sm:$0x3] }
 0x11c   : > { %v930_v62 = vmul.f32 -1.442695, %v539_v53  ;;  %v938_v63 = vmul.f32 -1.442695, %v559_v54  ;;  %v686_v1 = vsel %vm1330_vm1, %v539_v53, 0.0  ;;  %v543_v3 = vadd.f32 %v542_v60, %v1322_v48  ;;  %v544_v4 = vpop.f32.mrb[3].mxu0 }
 0x11d   : > { %v931_v2 = vmul.f32 -1.442695, %v541_v58  ;;  %v564_v5 = vpop.f32.mrb[3].mxu1  ;;  %v694_v7 = vsel %vm1330_vm1, %v559_v54, 0.0  ;;  %v939_v8 = vmul.f32 -1.442695, %v561_v0  ;;  %v563_v9 = vadd.f32 %v562_v61, %v1322_v48 }
 0x11e   : > { %1051 = vpow2.f32 %v930_v62  ;;  %v702_v10 = vmul.f32 1.442695, %v686_v1  ;;  %v687_v13 = vsel %vm1340_vm2, %v541_v58, 0.0  ;;  %v932_v14 = vmul.f32 -1.442695, %v543_v3  ;;  %v734_v60 = vld [vmem:[%s1566_s3] sm:$0xff] }
 0x11f   : > { %1053 = vpow2.f32 %v938_v63  ;;  %v545_v15 = vadd.f32 %v544_v4, %v1326_v50  ;;  %v718_v17 = vmul.f32 1.442695, %v694_v7  ;;  %v940_v19 = vmul.f32 -1.442695, %v563_v9  ;;  %v742_v4 = vld [vmem:[%s1566_s3 + $0x40] sm:$0xff] }
 0x120   : > { %1055 = vpow2.f32 %v931_v2  ;;  %v704_v22 = vmul.f32 1.442695, %v687_v13  ;;  %v695_v23 = vsel %vm1340_vm2, %v561_v0, 0.0  ;;  %v1361_v27 = vadd.f32 %v564_v5, %v1326_v50 }
 0x121   : > { %v548_v11 = vpop.f32.mrb[4].mxu0  ;;  %v568_v12 = vpop.f32.mrb[4].mxu1  ;;  %1057 = vpow2.f32 %v939_v8  ;;  %v933_v26 = vmul.f32 -1.442695, %v545_v15  ;;  %v720_v29 = vmul.f32 1.442695, %v695_v23 }
 0x122   : > { %v550_v16 = vpop.f32.mrb[5].mxu0  ;;  %v570_v18 = vpop.f32.mrb[5].mxu1  ;;  %1059 = vpow2.f32 %v702_v10  ;;  %v688_v31 = vsel %vm1330_vm1, %v543_v3, 0.0  ;;  %v941_v33 = vmul.f32 -1.442695, %v1361_v27  ;;  %v1367_v34 = vadd.f32 %v548_v11, %v1322_v48 }
 0x123   : > { %v1350_v20 = vpop.f32.mrb[6].mxu0  ;;  %v1352_v21 = vpop.f32.mrb[6].mxu1  ;;  %1061 = vpow2.f32 %v932_v14  ;;  %v706_v37 = vmul.f32 1.442695, %v688_v31  ;;  %v696_v39 = vsel %vm1330_vm1, %v563_v9, 0.0  ;;  %v1373_v42 = vadd.f32 %v568_v12, %v1322_v48 }
 0x124   : > { %v1356_v24 = vpop.f32.mrb[7].mxu0  ;;  %v1358_v25 = vpop.f32.mrb[7].mxu1  ;;  %1063 = vpow2.f32 %v718_v17  ;;  %v934_v41 = vmul.f32 -1.442695, %v1367_v34  ;;  %v722_v49 = vmul.f32 1.442695, %v696_v39  ;;  %v1378_v54 = vadd.f32 %v550_v16, %v1326_v50 }
 0x125   : > { %1065 = vpow2.f32 %v940_v19  ;;  %v689_v53 = vsel %vm1340_vm2, %v545_v15, 0.0  ;;  %v942_v58 = vmul.f32 -1.442695, %v1373_v42  ;;  %v697_v0 = vsel %vm1340_vm2, %v1361_v27, 0.0  ;;  %v744_v39 = vld [vmem:[%s1566_s3 + $0x50] sm:$0xff] }
 0x126   : > { %1067 = vpow2.f32 %v704_v22  ;;  %v708_v63 = vmul.f32 1.442695, %v689_v53  ;;  %v1391_v1 = vadd.f32 %v570_v18, %v1326_v50  ;;  %v1395_v3 = vrot.slane %v782_v56, %v1314_v43  ;;  %v735_v43 = vld [vmem:[%s1566_s3 + $0x8] sm:$0xff] }
 0x127   : > { %1069 = vpow2.f32 %v933_v26  ;;  %v935_v7 = vmul.f32 -1.442695, %v1378_v54  ;;  %v1403_v10 = vadd.f32 %v1350_v20, %v1322_v48  ;;  %v1409_v12 = vrot.slane %v782_v56, %v1319_v45  ;;  %v743_v20 = vld [vmem:[%s1566_s3 + $0x48] sm:$0xff] }
 0x128   : > { %v1052_v28 = vpop.eup %1051  ;;  %v724_v13 = vmul.f32 1.442695, %v697_v0  ;;  %v690_v14 = vsel %vm1330_vm1, %v1367_v34, 0.0  ;;  %v943_v45 = vmul.f32 -1.442695, %v1391_v1  ;;  %v1428_v23 = vadd.f32 %v1352_v21, %v1322_v48 }
 0x129   : > { %v627_v30 = vadd.f32 1.0, %v1052_v28  ;;  %v1054_v32 = vpop.eup %1053  ;;  %v698_v48 = vsel %vm1330_vm1, %v1373_v42, 0.0 }
 0x12a   : > { %v635_v35 = vadd.f32 1.0, %v1054_v32  ;;  %v1056_v36 = vpop.eup %1055  ;;  %v736_v32 = vld [vmem:[%s1566_s3 + $0x10] sm:$0xff] }
 0x12b   : > { %1071 = vrcp.f32 %v627_v30  ;;  %v628_v38 = vadd.f32 1.0, %v1056_v36  ;;  %v1058_v40 = vpop.eup %1057  ;;  %v1445_v36 = vadd.f32 %v1356_v24, %v1326_v50 }
 0x12c   : > { %1073 = vpow2.f32 %v720_v29  ;;  %v1060_v44 = vpop.eup %1059  ;;  %v636_v46 = vadd.f32 1.0, %v1058_v40  ;;  %v936_v29 = vmul.f32 -1.442695, %v1403_v10 }
 0x12d   : > { %1075 = vrcp.f32 %v635_v35  ;;  %v1062_v47 = vpop.eup %1061 }
 0x12e   : > { %1077 = vpow2.f32 %v941_v33  ;;  %v1064_v51 = vpop.eup %1063  ;;  %v629_v52 = vadd.f32 1.0, %v1062_v47  ;;  %v710_v33 = vmul.f32 1.442695, %v690_v14 }
 0x12f   : > { %1079 = vrcp.f32 %v628_v38  ;;  %v1066_v55 = vpop.eup %1065 }
 0x130   : > { %1081 = vpow2.f32 %v706_v37  ;;  %v1068_v59 = vpop.eup %1067  ;;  %v637_v61 = vadd.f32 1.0, %v1066_v55 }
 0x131   : > { %1083 = vrcp.f32 %v636_v46  ;;  %v1070_v62 = vpop.eup %1069 }
 0x132   : > { %1085 = vpow2.f32 %v934_v41  ;;  %v630_v5 = vadd.f32 1.0, %v1070_v62  ;;  %v944_v41 = vmul.f32 -1.442695, %v1428_v23  ;;  %v691_v62 = vsel %vm1340_vm2, %v1378_v54, 0.0 }
 0x133   : > { %1087 = vrcp.f32 %v629_v52  ;;  %v1462_v52 = vadd.f32 %v1358_v25, %v1326_v50  ;;  %v699_v54 = vsel %vm1340_vm2, %v1391_v1, 0.0 }
 0x134   : > { %1089 = vpow2.f32 %v722_v49  ;;  %v737_v49 = vld [vmem:[%s1566_s3 + $0x18] sm:$0xff] }
 0x135   : > { %v1072_v2 = vpop.eup %1071  ;;  %1091 = vrcp.f32 %v637_v61 }
 0x136   : > { %v1074_v8 = vpop.eup %1073  ;;  %v750_v9 = vadd.f32 %v1072_v2, %v734_v60  ;;  %1093 = vpow2.f32 %v942_v58  ;;  %v937_v58 = vmul.f32 -1.442695, %v1445_v36 }
 0x137   : > { %v1076_v11 = vpop.eup %1075  ;;  %1095 = vrcp.f32 %v630_v5  ;;  %v945_v5 = vmul.f32 -1.442695, %v1462_v52 }
 0x138   : > { %v1078_v15 = vpop.eup %1077  ;;  %v766_v16 = vsel %vm1330_vm1, %v1060_v44, %v750_v9  ;;  %v758_v17 = vadd.f32 %v1076_v11, %v742_v4  ;;  %1097 = vpow2.f32 %v708_v63  ;;  %v745_v4 = vld [vmem:[%s1566_s3 + $0x58] sm:$0xff]  ;;  %v712_v9 = vmul.f32 1.442695, %v691_v62 }
 0x139   : > { %v1080_v18 = vpop.eup %1079  ;;  %v794_v19 = vmul.f32 %v1395_v3, %v766_v16  ;;  %v638_v22 = vadd.f32 1.0, %v1078_v15  ;;  %1099 = vpow2.f32 %v935_v7  ;;  %v728_v15 = vmul.f32 1.442695, %v699_v54 }
 0x13a   : > { %v1082_v26 = vpop.eup %1081  ;;  %v774_v27 = vsel %vm1330_vm1, %v1064_v51, %v758_v17  ;;  %v751_v28 = vadd.f32 %v1080_v18, %v735_v43  ;;  %v726_v51 = vmul.f32 1.442695, %v698_v48  ;;  %v738_v17 = vld [vmem:[%s1566_s3 + $0x20] sm:$0xff] }
 0x13b   : > { %v1084_v30 = vpop.eup %1083  ;;  %810 = vst [vmem:[%s1417_s16] sm:$0xff] %v794_v19  ;;  %v802_v31 = vmul.f32 %v1395_v3, %v774_v27  ;;  %1101 = vrcp.f32 %v638_v22  ;;  %v700_v27 = vsel %vm1330_vm1, %v1428_v23, 0.0  ;;  %v693_v23 = vsel %vm1340_vm2, %v1445_v36, 0.0 }
 0x13c   : > { %v1086_v21 = vpop.eup %1085  ;;  %v767_v34 = vsel %vm1340_vm2, %v1068_v59, %v751_v28  ;;  %v759_v35 = vadd.f32 %v1084_v30, %v743_v20  ;;  %1103 = vpow2.f32 %v943_v45  ;;  %v730_v48 = vmul.f32 1.442695, %v700_v27 }
 0x13d   : > { %v1088_v37 = vpop.eup %1087  ;;  %818 = vst [vmem:[%s1417_s16 + $0x40] sm:$0xff] %v802_v31  ;;  %v795_v38 = vmul.f32 %v1409_v12, %v767_v34  ;;  %1105 = vpow2.f32 %v724_v13  ;;  %v631_v40 = vadd.f32 1.0, %v1086_v21  ;;  %v692_v13 = vsel %vm1330_vm1, %v1403_v10, 0.0  ;;  %v746_v31 = vld [vmem:[%s1566_s3 + $0x60] sm:$0xff] }
 0x13e   : > { %v1090_v42 = vpop.eup %1089  ;;  %v775_v44 = vsel %vm1340_vm2, %v1074_v8, %v759_v35  ;;  %v752_v46 = vadd.f32 %v1088_v37, %v736_v32  ;;  %1107 = vpow2.f32 %v936_v29  ;;  %v714_v20 = vmul.f32 1.442695, %v692_v13 }
 0x13f   : > { %v1092_v24 = vpop.eup %1091  ;;  %811 = vst [vmem:[%s1417_s16 + $0x8] sm:$0xff] %v795_v38  ;;  %v803_v47 = vmul.f32 %v1409_v12, %v775_v44  ;;  %1109 = vrcp.f32 %v631_v40  ;;  %v739_v38 = vld [vmem:[%s1566_s3 + $0x28] sm:$0xff]  ;;  %v701_v36 = vsel %vm1340_vm2, %v1462_v52, 0.0 }
 0x140   : > { %v1094_v53 = vpop.eup %1093  ;;  %v768_v55 = vsel %vm1330_vm1, %v1082_v26, %v752_v46  ;;  %v760_v56 = vadd.f32 %v1092_v24, %v744_v39  ;;  %1111 = vpow2.f32 %v710_v33 }
 0x141   : > { %v1096_v59 = vpop.eup %1095  ;;  %819 = vst [vmem:[%s1417_s16 + $0x48] sm:$0xff] %v803_v47  ;;  %v796_v60 = vmul.f32 %v1395_v3, %v768_v55  ;;  %v639_v61 = vadd.f32 1.0, %v1094_v53  ;;  %1113 = vpow2.f32 %v944_v41  ;;  %v716_v41 = vmul.f32 1.442695, %v693_v23 }
 0x142   : > { %v1098_v50 = vpop.eup %1097  ;;  %v776_v25 = vsel %vm1330_vm1, %v1090_v42, %v760_v56  ;;  %v753_v63 = vadd.f32 %v1096_v59, %v737_v49  ;;  %v747_v49 = vld [vmem:[%s1566_s3 + $0x68] sm:$0xff]  ;;  %v732_v55 = vmul.f32 1.442695, %v701_v36 }
 0x143   : > { %v1100_v0 = vpop.eup %1099  ;;  %812 = vst [vmem:[%s1417_s16 + $0x10] sm:$0xff] %v796_v60  ;;  %v804_v2 = vmul.f32 %v1395_v3, %v776_v25  ;;  %1115 = vrcp.f32 %v639_v61 }
 0x144   : > { %v769_v7 = vsel %vm1340_vm2, %v1098_v50, %v753_v63  ;;  %v632_v8 = vadd.f32 1.0, %v1100_v0  ;;  %1117 = vpow2.f32 %v937_v58  ;;  %v740_v58 = vld [vmem:[%s1566_s3 + $0x30] sm:$0xff] }
 0x145   : > { %v1102_v11 = vpop.eup %1101  ;;  %820 = vst [vmem:[%s1417_s16 + $0x50] sm:$0xff] %v804_v2  ;;  %v797_v43 = vmul.f32 %v1409_v12, %v769_v7  ;;  %1119 = vpow2.f32 %v726_v51  ;;  %v748_v63 = vld [vmem:[%s1566_s3 + $0x70] sm:$0xff] }
 0x146   : > { %v1104_v14 = vpop.eup %1103  ;;  %v761_v1 = vadd.f32 %v1102_v11, %v745_v4  ;;  %1121 = vrcp.f32 %v632_v8  ;;  %v741_v8 = vld [vmem:[%s1566_s3 + $0x38] sm:$0xff] }
 0x147   : > { %v1106_v16 = vpop.eup %1105  ;;  %813 = vst [vmem:[%s1417_s16 + $0x18] sm:$0xff] %v797_v43  ;;  %v640_v45 = vadd.f32 1.0, %v1104_v14  ;;  %1123 = vpow2.f32 %v945_v5 }
 0x148   : > { %v1108_v18 = vpop.eup %1107  ;;  %v777_v19 = vsel %vm1340_vm2, %v1106_v16, %v761_v1  ;;  %1125 = vpow2.f32 %v712_v9  ;;  %v749_v1 = vld [vmem:[%s1566_s3 + $0x78] sm:$0xff] }
 0x149   : > { %v1110_v10 = vpop.eup %1109  ;;  %v805_v22 = vmul.f32 %v1409_v12, %v777_v19  ;;  %1127 = vrcp.f32 %v640_v45  ;;  %v633_v26 = vadd.f32 1.0, %v1108_v18 }
 0x14a   : > { %v1112_v28 = vpop.eup %1111  ;;  %v754_v29 = vadd.f32 %v1110_v10, %v738_v17  ;;  %1129 = vpow2.f32 %v728_v15 }
 0x14b   : > { %v1114_v30 = vpop.eup %1113  ;;  %821 = vst [vmem:[%s1417_s16 + $0x58] sm:$0xff] %v805_v22  ;;  %1131 = vrcp.f32 %v633_v26 }
 0x14c   : > { %v770_v32 = vsel %vm1330_vm1, %v1112_v28, %v754_v29  ;;  %v641_v33 = vadd.f32 1.0, %v1114_v30  ;;  %1133 = vpow2.f32 %v714_v20 }
 0x14d   : > { %v1116_v21 = vpop.eup %1115  ;;  %v798_v34 = vmul.f32 %v1395_v3, %v770_v32 }
 0x14e   : > { %v1118_v35 = vpop.eup %1117  ;;  %v762_v37 = vadd.f32 %v1116_v21, %v746_v31  ;;  %1135 = vrcp.f32 %v641_v33 }
 0x14f   : > { %v1120_v39 = vpop.eup %1119  ;;  %814 = vst [vmem:[%s1417_s16 + $0x20] sm:$0xff] %v798_v34  ;;  %v634_v40 = vadd.f32 1.0, %v1118_v35  ;;  %1137 = vpow2.f32 %v730_v48 }
 0x150   : > { %v1122_v42 = vpop.eup %1121  ;;  %v778_v44 = vsel %vm1330_vm1, %v1120_v39, %v762_v37 }
 0x151   : > { %v1124_v46 = vpop.eup %1123  ;;  %v806_v24 = vmul.f32 %v1395_v3, %v778_v44  ;;  %v755_v47 = vadd.f32 %v1122_v42, %v739_v38  ;;  %1139 = vrcp.f32 %v634_v40 }
 0x152   : > { %v1126_v51 = vpop.eup %1125  ;;  %v642_v53 = vadd.f32 1.0, %v1124_v46  ;;  %1141 = vpow2.f32 %v716_v41 }
 0x153   : > { %v1128_v56 = vpop.eup %1127  ;;  %822 = vst [vmem:[%s1417_s16 + $0x60] sm:$0xff] %v806_v24  ;;  %v771_v52 = vsel %vm1340_vm2, %v1126_v51, %v755_v47 }
 0x154   : > { %v1130_v59 = vpop.eup %1129  ;;  %v799_v60 = vmul.f32 %v1409_v12, %v771_v52  ;;  %v763_v61 = vadd.f32 %v1128_v56, %v747_v49  ;;  %1143 = vrcp.f32 %v642_v53 }
 0x155   : > { %v1132_v62 = vpop.eup %1131  ;;  %1145 = vpow2.f32 %v732_v55 }
 0x156   : > { %815 = vst [vmem:[%s1417_s16 + $0x28] sm:$0xff] %v799_v60  ;;  %v779_v50 = vsel %vm1340_vm2, %v1130_v59, %v763_v61  ;;  %v756_v25 = vadd.f32 %v1132_v62, %v740_v58  ;;  %v1134_v0 = vpop.eup %1133 }
 0x157   : > { %v807_v2 = vmul.f32 %v1409_v12, %v779_v50 }
 0x158   : > { %v1136_v4 = vpop.eup %1135  ;;  %v772_v54 = vsel %vm1330_vm1, %v1134_v0, %v756_v25 }
 0x159   : > { %823 = vst [vmem:[%s1417_s16 + $0x68] sm:$0xff] %v807_v2  ;;  %v800_v5 = vmul.f32 %v1395_v3, %v772_v54  ;;  %v764_v7 = vadd.f32 %v1136_v4, %v748_v63  ;;  %v1138_v9 = vpop.eup %1137 }
 0x15b   : > { %v1140_v11 = vpop.eup %1139  ;;  %816 = vst [vmem:[%s1417_s16 + $0x30] sm:$0xff] %v800_v5  ;;  %v780_v43 = vsel %vm1330_vm1, %v1138_v9, %v764_v7 }
 0x15c   : > { %v808_v13 = vmul.f32 %v1395_v3, %v780_v43  ;;  %v757_v14 = vadd.f32 %v1140_v11, %v741_v8  ;;  %v1142_v15 = vpop.eup %1141 }
 0x15e   : > { %v1144_v16 = vpop.eup %1143  ;;  %824 = vst [vmem:[%s1417_s16 + $0x70] sm:$0xff] %v808_v13  ;;  %v773_v17 = vsel %vm1340_vm2, %v1142_v15, %v757_v14 }
 0x15f   : > { %v801_v45 = vmul.f32 %v1409_v12, %v773_v17  ;;  %v765_v18 = vadd.f32 %v1144_v16, %v749_v1  ;;  %v1146_v19 = vpop.eup %1145 }
 0x161   : > { %817 = vst [vmem:[%s1417_s16 + $0x38] sm:$0xff] %v801_v45  ;;  %v781_v57 = vsel %vm1340_vm2, %v1146_v19, %v765_v18 }
 0x162   : > { %v809_v3 = vmul.f32 %v1409_v12, %v781_v57 }
 0x164   : > { %825 = vst [vmem:[%s1417_s16 + $0x78] sm:$0xff] %v809_v3 }
 0x165 PF: > { %s16_s21 = sadd.s32 1, %s1153_s21  }
 0x166   : > { %p13_p4 = scmp.ge.s32.totalorder %s16_s21, 4  }
 0x168   :  { %15 = sbr.rel (!%p13_p4) target bundleno = 1 (0x1), region = 74 }

// kernel: yolo_body_forward.8
= control target key start
LH: loop header
LB: loop body
LE: loop exit
PB: predicated region body
PF: predicated region fallthrough
CT: control target
= control target key end

     0   :  { %s1166_s21 = smov 0   ;;  %s1447_s0 = inlined_call_operand.vmem [shape: bf16[2,16,512], index: 0, kind: input, shape index: {}]   ;;  %s1448_s1 = inlined_call_operand.vmem [shape: bf16[512,256], index: 1, kind: input, shape index: {}]   ;;  %s1449_s2 = inlined_call_operand.vmem [shape: f32[1,256], index: 2, kind: input, shape index: {}]   ;;  %s1450_s3 = inlined_call_operand.vmem [shape: f32[16,256], index: 3, kind: input, shape index: {}]   ;;  %s1451_s4 = inlined_call_operand.vmem [shape: f32[1,256], index: 4, kind: input, shape index: {}]   ;;  %s1452_s5 = inlined_call_operand.vmem [shape: f32[1,256], index: 5, kind: input, shape index: {}]   ;;  %s1453_s6 = inlined_call_operand.vmem [shape: f32[2,16,256], index: 6, kind: output, shape index: {}]  }
   0x1 LB: > { %s894_s22 = sadd.s32 4294967295, %s1128_s21   ;;  %p898_p0 = scmp.ge.s32.totalorder %s1128_s21, 1  ;;  %s1128_s21 = sphi %s1166_s21, %s16_s21  }
   0x2   : > { %p212_p1 = scmp.lt.s32.totalorder %s1128_s21, 3 }
   0x4   : > { %p213_p2 = pnand %p898_p0, %p212_p1 }
   0x5   : > { %v996_v0 = vld [vmem:[%s1448_s1 + $0x4] ss:$8 sps:$4 sm:$0xff] (!%p213_p2)   ;;  %v1000_v2 = vld [vmem:[%s1448_s1] ss:$8 sps:$4 sm:$0xff] (!%p213_p2)   ;;  %v1002_v4 = vld [vmem:[%s1448_s1 + $0x14] ss:$8 sps:$4 sm:$0xff] (!%p213_p2)  }
   0x6   : > { %216 = sbr.rel (%p213_p2) target bundleno = 324 (0x144), region = 44  ;;  %v998_v1 = vld [vmem:[%s1448_s1 + $0x104] ss:$8 sps:$4 sm:$0xff] (!%p213_p2)   ;;  %672 = vmatprep.subr.bf16.mxu1 (!%p213_p2), %v996_v0  ;;  %v1001_v3 = vld [vmem:[%s1448_s1 + $0x100] ss:$8 sps:$4 sm:$0xff] (!%p213_p2)   ;;  %p242_p3 = scmp.lt.s32.totalorder (!%p213_p2), %s894_s22, 1 }
   0x7   : > { %715 = vmatprep.subr.bf16.mxu0 (!%p213_p2), %v998_v1  ;;  %673 = vmatpush1.bf16.msra.mxu1 (!%p213_p2), %v1000_v2  ;;  %v1004_v5 = vld [vmem:[%s1448_s1 + $0x114] ss:$8 sps:$4 sm:$0xff] (!%p213_p2)   ;;  %v1006_v6 = vld [vmem:[%s1448_s1 + $0x10] ss:$8 sps:$4 sm:$0xff] (!%p213_p2)   ;;  %v1008_v8 = vld [vmem:[%s1448_s1 + $0x24] ss:$8 sps:$4 sm:$0xff] (!%p213_p2)  }
   0x8   : > { %716 = vmatpush1.bf16.msra.mxu0 (!%p213_p2), %v1001_v3  ;;  %674 = vmatprep.subr.bf16.mxu1 (!%p213_p2), %v1002_v4  ;;  %v1007_v7 = vld [vmem:[%s1448_s1 + $0x110] ss:$8 sps:$4 sm:$0xff] (!%p213_p2)   ;;  %v1010_v9 = vld [vmem:[%s1448_s1 + $0x124] ss:$8 sps:$4 sm:$0xff] (!%p213_p2)   ;;  %v1012_v10 = vld [vmem:[%s1448_s1 + $0x20] ss:$8 sps:$4 sm:$0xff] (!%p213_p2)   ;;  %v322_v4 = vlaneseq (!%p213_p2) }
   0x9   : > { %717 = vmatprep.subr.bf16.mxu0 (!%p213_p2), %v1004_v5  ;;  %v1013_v11 = vld [vmem:[%s1448_s1 + $0x120] ss:$8 sps:$4 sm:$0xff] (!%p213_p2)   ;;  %v1014_v12 = vld [vmem:[%s1448_s1 + $0x34] ss:$8 sps:$4 sm:$0xff] (!%p213_p2)   ;;  %v1018_v14 = vld [vmem:[%s1448_s1 + $0x30] ss:$8 sps:$4 sm:$0xff] (!%p213_p2)  }
   0xa   : > { %v1016_v13 = vld [vmem:[%s1448_s1 + $0x134] ss:$8 sps:$4 sm:$0xff] (!%p213_p2)   ;;  %v1019_v15 = vld [vmem:[%s1448_s1 + $0x130] ss:$8 sps:$4 sm:$0xff] (!%p213_p2)   ;;  %v1020_v16 = vld [vmem:[%s1448_s1 + $0x44] ss:$8 sps:$4 sm:$0xff] (!%p213_p2)  }
   0xb   : > { %675 = vmatpush1.bf16.msra.mxu1 (!%p213_p2), %v1006_v6  ;;  %v1022_v17 = vld [vmem:[%s1448_s1 + $0x144] ss:$8 sps:$4 sm:$0xff] (!%p213_p2)   ;;  %v1024_v18 = vld [vmem:[%s1448_s1 + $0x40] ss:$8 sps:$4 sm:$0xff] (!%p213_p2)   ;;  %v1026_v20 = vld [vmem:[%s1448_s1 + $0x54] ss:$8 sps:$4 sm:$0xff] (!%p213_p2)  }
   0xc   : > { %718 = vmatpush1.bf16.msra.mxu0 (!%p213_p2), %v1007_v7  ;;  %676 = vmatprep.subr.bf16.mxu1 (!%p213_p2), %v1008_v8  ;;  %v1025_v19 = vld [vmem:[%s1448_s1 + $0x140] ss:$8 sps:$4 sm:$0xff] (!%p213_p2)   ;;  %v1028_v21 = vld [vmem:[%s1448_s1 + $0x154] ss:$8 sps:$4 sm:$0xff] (!%p213_p2)   ;;  %v1030_v22 = vld [vmem:[%s1448_s1 + $0x50] ss:$8 sps:$4 sm:$0xff] (!%p213_p2)  }
   0xd   : > { %719 = vmatprep.subr.bf16.mxu0 %v1010_v9  ;;  %v1031_v23 = vld [vmem:[%s1448_s1 + $0x150] ss:$8 sps:$4 sm:$0xff]   ;;  %v1032_v24 = vld [vmem:[%s1448_s1 + $0x64] ss:$8 sps:$4 sm:$0xff]   ;;  %v1036_v26 = vld [vmem:[%s1448_s1 + $0x60] ss:$8 sps:$4 sm:$0xff]  }
   0xe   : > { %v1034_v25 = vld [vmem:[%s1448_s1 + $0x164] ss:$8 sps:$4 sm:$0xff]   ;;  %v1037_v27 = vld [vmem:[%s1448_s1 + $0x160] ss:$8 sps:$4 sm:$0xff]   ;;  %v1038_v28 = vld [vmem:[%s1448_s1 + $0x74] ss:$8 sps:$4 sm:$0xff]  }
   0xf   : > { %677 = vmatpush1.bf16.msra.mxu1 %v1012_v10  ;;  %v1040_v29 = vld [vmem:[%s1448_s1 + $0x174] ss:$8 sps:$4 sm:$0xff]   ;;  %v1042_v30 = vld [vmem:[%s1448_s1 + $0x70] ss:$8 sps:$4 sm:$0xff]   ;;  %v1044_v32 = vld [vmem:[%s1448_s1 + $0x84] ss:$8 sps:$4 sm:$0xff]  }
  0x10   : > { %720 = vmatpush1.bf16.msra.mxu0 %v1013_v11  ;;  %678 = vmatprep.subr.bf16.mxu1 %v1014_v12  ;;  %v1043_v31 = vld [vmem:[%s1448_s1 + $0x170] ss:$8 sps:$4 sm:$0xff]   ;;  %v1046_v33 = vld [vmem:[%s1448_s1 + $0x184] ss:$8 sps:$4 sm:$0xff]   ;;  %v1048_v34 = vld [vmem:[%s1448_s1 + $0x80] ss:$8 sps:$4 sm:$0xff]  }
  0x11   : > { %721 = vmatprep.subr.bf16.mxu0 %v1016_v13  ;;  %v1049_v35 = vld [vmem:[%s1448_s1 + $0x180] ss:$8 sps:$4 sm:$0xff]   ;;  %v1050_v36 = vld [vmem:[%s1448_s1 + $0x94] ss:$8 sps:$4 sm:$0xff]   ;;  %s1459_s22 = smov (!%p242_p3, %s894_s22), 1  ;;  %v323_v5 = vshrl.u32 %v322_v4, 7 }
  0x12   : > { %v1052_v37 = vld [vmem:[%s1448_s1 + $0x194] ss:$8 sps:$4 sm:$0xff]   ;;  %v1054_v38 = vld [vmem:[%s1448_s1 + $0x90] ss:$8 sps:$4 sm:$0xff]   ;;  %v1056_v40 = vld [vmem:[%s1448_s1 + $0xa4] ss:$8 sps:$4 sm:$0xff]  }
  0x13   : > { %679 = vmatpush1.bf16.msra.mxu1 %v1018_v14  ;;  %v1055_v39 = vld [vmem:[%s1448_s1 + $0x190] ss:$8 sps:$4 sm:$0xff]   ;;  %v1058_v41 = vld [vmem:[%s1448_s1 + $0x1a4] ss:$8 sps:$4 sm:$0xff]   ;;  %s977_s17 = sshll.u32 %s1459_s22, 5  ;;  %v1384_v6 = vsub.s32 0, %v323_v5 }
  0x14   : > { %722 = vmatpush1.bf16.msra.mxu0 %v1019_v15  ;;  %680 = vmatprep.subr.bf16.mxu1 %v1020_v16  ;;  %v1060_v42 = vld [vmem:[%s1448_s1 + $0xa0] ss:$8 sps:$4 sm:$0xff]   ;;  %v1062_v44 = vld [vmem:[%s1448_s1 + $0xb4] ss:$8 sps:$4 sm:$0xff]   ;;  %s1321_s28 = scalar_lea.vmem %s1447_s0, %s977_s17  ;;  %v1066_v46 = vld [vmem:[%s1448_s1 + $0xb0] ss:$8 sps:$4 sm:$0xff]   ;;  %s251_s16 = scalar_lea.vmem %s1453_s6, %s977_s17 }
  0x15   : > { %723 = vmatprep.subr.bf16.mxu0 %v1022_v17  ;;  %v1061_v43 = vld [vmem:[%s1448_s1 + $0x1a0] ss:$8 sps:$4 sm:$0xff]   ;;  %v1064_v45 = vld [vmem:[%s1448_s1 + $0x1b4] ss:$8 sps:$4 sm:$0xff]   ;;  %v1067_v48 = vld [vmem:[%s1448_s1 + $0x1b0] ss:$8 sps:$4 sm:$0xff]  }
  0x16   : > { %v1094_v47 = vld [vmem:[%s1321_s28 + $0x4] ss:$16 sps:$4 sm:$0xff]   ;;  %v1097_v51 = vld [vmem:[%s1321_s28 + $0xc] ss:$16 sps:$4 sm:$0xff]   ;;  %v1072_v52 = vld [vmem:[%s1448_s1 + $0xc0] ss:$8 sps:$4 sm:$0xff]  }
  0x17   : > { %681 = vmatpush1.bf16.msra.mxu1 %v1024_v18  ;;  %v1068_v49 = vld [vmem:[%s1448_s1 + $0xc4] ss:$8 sps:$4 sm:$0xff]   ;;  %704 = vmatprep.mubr.bf16.mxu1 %v1094_v47  ;;  %v1073_v53 = vld [vmem:[%s1448_s1 + $0x1c0] ss:$8 sps:$4 sm:$0xff]   ;;  %v1074_v54 = vld [vmem:[%s1448_s1 + $0xd4] ss:$8 sps:$4 sm:$0xff]  }
  0x18   : > { %724 = vmatpush1.bf16.msra.mxu0 %v1025_v19  ;;  %682 = vmatprep.subr.bf16.mxu1 %v1026_v20  ;;  %v1070_v50 = vld [vmem:[%s1448_s1 + $0x1c4] ss:$8 sps:$4 sm:$0xff]   ;;  %v1076_v55 = vld [vmem:[%s1448_s1 + $0x1d4] ss:$8 sps:$4 sm:$0xff]   ;;  %v1078_v56 = vld [vmem:[%s1448_s1 + $0xd0] ss:$8 sps:$4 sm:$0xff]  }
  0x19   : > { %725 = vmatprep.subr.bf16.mxu0 %v1028_v21  ;;  %747 = vmatprep.mubr.bf16.mxu0 %v1097_v51  ;;  %v1079_v57 = vld [vmem:[%s1448_s1 + $0x1d0] ss:$8 sps:$4 sm:$0xff]   ;;  %v1080_v58 = vld [vmem:[%s1448_s1 + $0xe4] ss:$8 sps:$4 sm:$0xff]   ;;  %v1084_v60 = vld [vmem:[%s1448_s1 + $0xe0] ss:$8 sps:$4 sm:$0xff]  }
  0x1a   : > { %v1082_v59 = vld [vmem:[%s1448_s1 + $0x1e4] ss:$8 sps:$4 sm:$0xff]   ;;  %v1085_v61 = vld [vmem:[%s1448_s1 + $0x1e0] ss:$8 sps:$4 sm:$0xff]   ;;  %v1086_v62 = vld [vmem:[%s1448_s1 + $0xf4] ss:$8 sps:$4 sm:$0xff]  }
  0x1b   : > { %683 = vmatpush1.bf16.msra.mxu1 %v1030_v22  ;;  %v1088_v63 = vld [vmem:[%s1448_s1 + $0x1f4] ss:$8 sps:$4 sm:$0xff]   ;;  %v1090_v0 = vld [vmem:[%s1448_s1 + $0xf0] ss:$8 sps:$4 sm:$0xff]   ;;  %v320_v7 = vld [vmem:[%s1449_s2] sm:$0x3] }
  0x1c   : > { %726 = vmatpush1.bf16.msra.mxu0 %v1031_v23  ;;  %684 = vmatprep.subr.bf16.mxu1 %v1032_v24  ;;  %v1091_v1 = vld [vmem:[%s1448_s1 + $0x1f0] ss:$8 sps:$4 sm:$0xff]   ;;  %v1389_v8 = vsub.s32 1, %v323_v5  ;;  %v325_v9 = vrot.slane %v320_v7, %v1384_v6  ;;  %v758_v10 = vld [vmem:[%s1452_s5] sm:$0x3]  ;;  %v1130_v24 = vmov 0  }
  0x1d   : > { %727 = vmatprep.subr.bf16.mxu0 %v1034_v25  ;;  %v1092_v2 = vld [vmem:[%s1321_s28] ss:$16 sps:$4 sm:$0xff]   ;;  %v1095_v3 = vld [vmem:[%s1321_s28 + $0x8] ss:$16 sps:$4 sm:$0xff]   ;;  %vm759_vm0 = vcmp.gt.f32.partialorder %v758_v10, 0.5 }
  0x1e   : > { %v329_v11 = vrot.slane %v320_v7, %v1389_v8  ;;  %v784_v25 = vsel %vm759_vm0, 1, %v1130_v24  ;;  %v810_v5 = vld [vmem:[%s1450_s3 + $0x18] sm:$0xff] }
  0x1f   : > { %685 = vmatpush1.bf16.msra.mxu1 %v1036_v26 }
  0x20   : > { %728 = vmatpush1.bf16.msra.mxu0 %v1037_v27  ;;  %686 = vmatprep.subr.bf16.mxu1 %v1038_v28 }
  0x21   : > { %729 = vmatprep.subr.bf16.mxu0 %v1040_v29 }
  0x23   : > { %687 = vmatpush1.bf16.msra.mxu1 %v1042_v30 }
  0x24   : > { %730 = vmatpush1.bf16.msra.mxu0 %v1043_v31  ;;  %688 = vmatprep.subr.bf16.mxu1 %v1044_v32  ;;  %v788_v32 = vrot.slane %v784_v25, %v1384_v6 }
  0x25   : > { %731 = vmatprep.subr.bf16.mxu0 %v1046_v33 }
  0x26   : > { %vm1398_vm1 = vcmp.eq.s32.totalorder %v788_v32, 1 }
  0x27   : > { %689 = vmatpush1.bf16.msra.mxu1 %v1048_v34  ;;  %v792_v34 = vrot.slane %v784_v25, %v1389_v8 }
  0x28   : > { %732 = vmatpush1.bf16.msra.mxu0 %v1049_v35  ;;  %690 = vmatprep.subr.bf16.mxu1 %v1050_v36 }
  0x29   : > { %733 = vmatprep.subr.bf16.mxu0 %v1052_v37  ;;  %vm1402_vm2 = vcmp.eq.s32.totalorder %v792_v34, 1 }
  0x2b   : > { %691 = vmatpush1.bf16.msra.mxu1 %v1054_v38 }
  0x2c   : > { %734 = vmatpush1.bf16.msra.mxu0 %v1055_v39  ;;  %692 = vmatprep.subr.bf16.mxu1 %v1056_v40 }
  0x2d   : > { %735 = vmatprep.subr.bf16.mxu0 %v1058_v41 }
  0x2f   : > { %693 = vmatpush1.bf16.msra.mxu1 %v1060_v42 }
  0x30   : > { %736 = vmatpush1.bf16.msra.mxu0 %v1061_v43  ;;  %694 = vmatprep.subr.bf16.mxu1 %v1062_v44 }
  0x31   : > { %737 = vmatprep.subr.bf16.mxu0 %v1064_v45 }
  0x33   : > { %695 = vmatpush1.bf16.msra.mxu1 %v1066_v46 }
  0x34   : > { %738 = vmatpush1.bf16.msra.mxu0 %v1067_v48  ;;  %696 = vmatprep.subr.bf16.mxu1 %v1068_v49 }
  0x35   : > { %739 = vmatprep.subr.bf16.mxu0 %v1070_v50 }
  0x37   : > { %697 = vmatpush1.bf16.msra.mxu1 %v1072_v52 }
  0x38   : > { %740 = vmatpush1.bf16.msra.mxu0 %v1073_v53  ;;  %698 = vmatprep.subr.bf16.mxu1 %v1074_v54  ;;  %v819_v54 = vld [vmem:[%s1451_s4] sm:$0x3] }
  0x39   : > { %741 = vmatprep.subr.bf16.mxu0 %v1076_v55  ;;  %v807_v55 = vld [vmem:[%s1450_s3] sm:$0xff] }
  0x3b   : > { %699 = vmatpush1.bf16.msra.mxu1 %v1078_v56 }
  0x3c   : > { %742 = vmatpush1.bf16.msra.mxu0 %v1079_v57  ;;  %700 = vmatprep.subr.bf16.mxu1 %v1080_v58  ;;  %v824_v57 = vrot.slane %v819_v54, %v1384_v6  ;;  %v808_v58 = vld [vmem:[%s1450_s3 + $0x8] sm:$0xff] }
  0x3d   : > { %743 = vmatprep.subr.bf16.mxu0 %v1082_v59 }
  0x3f   : > { %701 = vmatpush1.bf16.msra.mxu1 %v1084_v60 }
  0x40   : > { %744 = vmatpush1.bf16.msra.mxu0 %v1085_v61  ;;  %702 = vmatprep.subr.bf16.mxu1 %v1086_v62  ;;  %v828_v62 = vrot.slane %v819_v54, %v1389_v8 }
  0x41   : > { %745 = vmatprep.subr.bf16.mxu0 %v1088_v63  ;;  %v809_v63 = vld [vmem:[%s1450_s3 + $0x10] sm:$0xff] }
  0x43   : > { %703 = vmatpush1.bf16.msra.mxu1 %v1090_v0 }
  0x44   : > { %746 = vmatpush1.bf16.msra.mxu0 %v1091_v1 }
  0x46   : > { %705 = vmatmul.mubr.bf16.vlgmr.msra.gmra.mrb[0].mxu1 %v1092_v2 }
  0x47   : > { %748 = vmatmul.mubr.bf16.vlgmr.msra.gmra.mrb[0].mxu0 %v1095_v3 }
 0x119   : > { %v706_v12 = vpop.f32.mrb[0].mxu1 }
 0x11a   : > { %v749_v13 = vpop.f32.mrb[0].mxu0  ;;  %v707_v14 = vadd.f32 %v706_v12, %v325_v9  ;;  %v708_v15 = vpop.f32.mrb[1].mxu1 }
 0x11b   : > { %v751_v16 = vpop.f32.mrb[1].mxu0  ;;  %v709_v17 = vadd.f32 %v708_v15, %v329_v11  ;;  %v710_v18 = vpop.f32.mrb[2].mxu1 }
 0x11c   : > { %v753_v19 = vpop.f32.mrb[2].mxu0  ;;  %v750_v20 = vadd.f32 %v749_v13, %v707_v14  ;;  %v711_v21 = vadd.f32 %v710_v18, %v325_v9  ;;  %v712_v22 = vpop.f32.mrb[3].mxu1 }
 0x11d   : > { %v755_v23 = vpop.f32.mrb[3].mxu0  ;;  %v752_v26 = vadd.f32 %v751_v16, %v709_v17  ;;  %v713_v27 = vadd.f32 %v712_v22, %v329_v11 }
 0x11e   : > { %v971_v28 = vmul.f32 -1.442695, %v750_v20  ;;  %v754_v29 = vadd.f32 %v753_v19, %v711_v21  ;;  %v795_v38 = vsel %vm1398_vm1, %v750_v20, 0.0 }
 0x11f   : > { %v972_v30 = vmul.f32 -1.442695, %v752_v26  ;;  %v756_v31 = vadd.f32 %v755_v23, %v713_v27  ;;  %v796_v39 = vsel %vm1402_vm2, %v752_v26, 0.0  ;;  %v799_v41 = vmul.f32 1.442695, %v795_v38 }
 0x120   : > { %1098 = vpow2.f32 %v971_v28  ;;  %v973_v33 = vmul.f32 -1.442695, %v754_v29  ;;  %v797_v43 = vsel %vm1398_vm1, %v754_v29, 0.0  ;;  %v801_v45 = vmul.f32 1.442695, %v796_v39 }
 0x121   : > { %1100 = vpow2.f32 %v972_v30  ;;  %v974_v35 = vmul.f32 -1.442695, %v756_v31  ;;  %v803_v48 = vmul.f32 1.442695, %v797_v43  ;;  %v798_v49 = vsel %vm1402_vm2, %v756_v31, 0.0 }
 0x122   : > { %1102 = vpow2.f32 %v973_v33  ;;  %v805_v53 = vmul.f32 1.442695, %v798_v49 }
 0x123   : > { %1104 = vpow2.f32 %v974_v35 }
 0x12a   : > { %v1099_v40 = vpop.eup %1098 }
 0x12b   : > { %v772_v42 = vadd.f32 1.0, %v1099_v40  ;;  %v1101_v44 = vpop.eup %1100 }
 0x12c   : > { %v773_v46 = vadd.f32 1.0, %v1101_v44  ;;  %v1103_v47 = vpop.eup %1102 }
 0x12d   : > { %1106 = vrcp.f32 %v772_v42  ;;  %v774_v50 = vadd.f32 1.0, %v1103_v47  ;;  %v1105_v51 = vpop.eup %1104 }
 0x12e   : > { %1108 = vpow2.f32 %v799_v41  ;;  %v775_v52 = vadd.f32 1.0, %v1105_v51 }
 0x12f   : > { %1110 = vrcp.f32 %v773_v46 }
 0x130   : > { %1112 = vpow2.f32 %v801_v45 }
 0x131   : > { %1114 = vrcp.f32 %v774_v50 }
 0x132   : > { %1116 = vpow2.f32 %v803_v48 }
 0x133   : > { %1118 = vrcp.f32 %v775_v52 }
 0x134   : > { %1120 = vpow2.f32 %v805_v53 }
 0x137   : > { %v1107_v56 = vpop.eup %1106 }
 0x138   : > { %v1109_v59 = vpop.eup %1108  ;;  %v811_v60 = vadd.f32 %v1107_v56, %v807_v55 }
 0x139   : > { %v1111_v61 = vpop.eup %1110 }
 0x13a   : > { %v1113_v0 = vpop.eup %1112  ;;  %v815_v1 = vsel %vm1398_vm1, %v1109_v59, %v811_v60  ;;  %v812_v2 = vadd.f32 %v1111_v61, %v808_v58 }
 0x13b   : > { %v1115_v3 = vpop.eup %1114  ;;  %v831_v4 = vmul.f32 %v824_v57, %v815_v1 }
 0x13c   : > { %v1117_v6 = vpop.eup %1116  ;;  %v816_v7 = vsel %vm1402_vm2, %v1113_v0, %v812_v2  ;;  %v813_v8 = vadd.f32 %v1115_v3, %v809_v63 }
 0x13d   : > { %v1119_v9 = vpop.eup %1118  ;;  %835 = vst [vmem:[%s251_s16] sm:$0xff] %v831_v4  ;;  %v832_v10 = vmul.f32 %v828_v62, %v816_v7 }
 0x13e   : > { %v817_v11 = vsel %vm1398_vm1, %v1117_v6, %v813_v8  ;;  %v814_v12 = vadd.f32 %v1119_v9, %v810_v5  ;;  %v1121_v13 = vpop.eup %1120 }
 0x13f   : > { %836 = vst [vmem:[%s251_s16 + $0x8] sm:$0xff] %v832_v10  ;;  %v833_v14 = vmul.f32 %v824_v57, %v817_v11 }
 0x140   : > { %v818_v15 = vsel %vm1402_vm2, %v1121_v13, %v814_v12 }
 0x141   : > { %837 = vst [vmem:[%s251_s16 + $0x10] sm:$0xff] %v833_v14  ;;  %v834_v16 = vmul.f32 %v828_v62, %v818_v15 }
 0x143   : > { %838 = vst [vmem:[%s251_s16 + $0x18] sm:$0xff] %v834_v16 }
 0x144 PF: > { %s16_s21 = sadd.s32 1, %s1128_s21  }
 0x145   : > { %p13_p4 = scmp.ge.s32.totalorder %s16_s21, 4  }
 0x147   :  { %15 = sbr.rel (!%p13_p4) target bundleno = 1 (0x1), region = 74 }

// kernel: yolo_body_forward.7
= control target key start
LH: loop header
LB: loop body
LE: loop exit
PB: predicated region body
PF: predicated region fallthrough
CT: control target
= control target key end

     0   :  { %s7142_s15 = smov 0   ;;  %s9134_s0 = inlined_call_operand.vmem [shape: bf16[2,4,4,256], index: 0, kind: input, shape index: {}]   ;;  %s9135_s1 = inlined_call_operand.vmem [shape: bf16[2304,512], index: 1, kind: input, shape index: {}]   ;;  %s9136_s2 = inlined_call_operand.vmem [shape: f32[1,512], index: 2, kind: input, shape index: {}]   ;;  %s9137_s3 = inlined_call_operand.vmem [shape: f32[1,512], index: 3, kind: input, shape index: {}]   ;;  %s9138_s4 = inlined_call_operand.vmem [shape: bf16[2,16,512], index: 4, kind: output, shape index: {}]  }
   0x1 LB: > { %s5520_s16 = sadd.s32 4294967295, %s7113_s15   ;;  %p5524_p0 = scmp.ge.s32.totalorder %s7113_s15, 1  ;;  %s7113_s15 = sphi %s7142_s15, %s14_s15  }
   0x2   : > { %p162_p1 = scmp.lt.s32.totalorder %s7113_s15, 3 }
   0x4   : > { %p163_p2 = pnand %p5524_p0, %p162_p1 }
   0x5   : > { %v6243_v0 = vld [vmem:[%s9135_s1 + $0x4] ss:$16 sps:$4 sm:$0xff] (!%p163_p2)   ;;  %v6245_v1 = vld [vmem:[%s9135_s1 + $0xc] ss:$16 sps:$4 sm:$0xff] (!%p163_p2)   ;;  %v7115_v2 = vmov (!%p163_p2), 0   ;;  %p188_p3 = scmp.lt.s32.totalorder (!%p163_p2), %s5520_s16, 1 }
   0x6   : > { %166 = sbr.rel (%p163_p2) target bundleno = 809 (0x329), region = 36  ;;  %199 = vst [vmem:[#allocation2] sm:$0x77] (!%p163_p2), %v7115_v2  ;;  %201 = vst [vmem:[#allocation2 + $0x28] sm:$0x77] (!%p163_p2), %v7115_v2  ;;  %4587 = vmatprep.subr.bf16.mxu0 (!%p163_p2), %v6243_v0  ;;  %4974 = vmatprep.subr.bf16.mxu1 (!%p163_p2), %v6245_v1  ;;  %vm202_vm0 = vcmask (!%p163_p2), 1040384  }
   0x7   : > { %v6247_v3 = vld [vmem:[%s9135_s1] ss:$16 sps:$4 sm:$0xff] (!%p163_p2)   ;;  %v6248_v4 = vld [vmem:[%s9135_s1 + $0x8] ss:$16 sps:$4 sm:$0xff] (!%p163_p2)   ;;  %v6249_v5 = vld [vmem:[%s9135_s1 + $0x24] ss:$16 sps:$4 sm:$0xff] (!%p163_p2)  }
   0x8   : > { %4588 = vmatpush1.bf16.msra.mxu0 (!%p163_p2), %v6247_v3  ;;  %4975 = vmatpush1.bf16.msra.mxu1 (!%p163_p2), %v6248_v4  ;;  %v6251_v6 = vld [vmem:[%s9135_s1 + $0x2c] ss:$16 sps:$4 sm:$0xff] (!%p163_p2)   ;;  %v6253_v7 = vld [vmem:[%s9135_s1 + $0x20] ss:$16 sps:$4 sm:$0xff] (!%p163_p2)   ;;  %v6254_v8 = vld [vmem:[%s9135_s1 + $0x28] ss:$16 sps:$4 sm:$0xff] (!%p163_p2)  }
   0x9   : > { %4589 = vmatprep.subr.bf16.mxu0 (!%p163_p2), %v6249_v5  ;;  %4976 = vmatprep.subr.bf16.mxu1 (!%p163_p2), %v6251_v6  ;;  %v6255_v9 = vld [vmem:[%s9135_s1 + $0x44] ss:$16 sps:$4 sm:$0xff] (!%p163_p2)   ;;  %v6257_v10 = vld [vmem:[%s9135_s1 + $0x4c] ss:$16 sps:$4 sm:$0xff] (!%p163_p2)   ;;  %v6259_v11 = vld [vmem:[%s9135_s1 + $0x40] ss:$16 sps:$4 sm:$0xff] (!%p163_p2)  }
   0xa   : > { %v6260_v12 = vld [vmem:[%s9135_s1 + $0x48] ss:$16 sps:$4 sm:$0xff] (!%p163_p2)   ;;  %v6261_v13 = vld [vmem:[%s9135_s1 + $0x64] ss:$16 sps:$4 sm:$0xff] (!%p163_p2)   ;;  %v6263_v14 = vld [vmem:[%s9135_s1 + $0x6c] ss:$16 sps:$4 sm:$0xff] (!%p163_p2)  }
   0xb   : > { %v6265_v15 = vld [vmem:[%s9135_s1 + $0x60] ss:$16 sps:$4 sm:$0xff] (!%p163_p2)   ;;  %v6266_v16 = vld [vmem:[%s9135_s1 + $0x68] ss:$16 sps:$4 sm:$0xff] (!%p163_p2)   ;;  %v6267_v17 = vld [vmem:[%s9135_s1 + $0x84] ss:$16 sps:$4 sm:$0xff] (!%p163_p2)  }
   0xc   : > { %4590 = vmatpush1.bf16.msra.mxu0 (!%p163_p2), %v6253_v7  ;;  %4977 = vmatpush1.bf16.msra.mxu1 (!%p163_p2), %v6254_v8  ;;  %v6269_v18 = vld [vmem:[%s9135_s1 + $0x8c] ss:$16 sps:$4 sm:$0xff] (!%p163_p2)   ;;  %v6271_v19 = vld [vmem:[%s9135_s1 + $0x80] ss:$16 sps:$4 sm:$0xff] (!%p163_p2)   ;;  %v6272_v20 = vld [vmem:[%s9135_s1 + $0x88] ss:$16 sps:$4 sm:$0xff] (!%p163_p2)  }
   0xd   : > { %4591 = vmatprep.subr.bf16.mxu0 %v6255_v9  ;;  %4978 = vmatprep.subr.bf16.mxu1 %v6257_v10  ;;  %v6273_v21 = vld [vmem:[%s9135_s1 + $0xa4] ss:$16 sps:$4 sm:$0xff]   ;;  %v6275_v22 = vld [vmem:[%s9135_s1 + $0xac] ss:$16 sps:$4 sm:$0xff]   ;;  %v6277_v23 = vld [vmem:[%s9135_s1 + $0xa0] ss:$16 sps:$4 sm:$0xff]  }
   0xe   : > { %v6278_v24 = vld [vmem:[%s9135_s1 + $0xa8] ss:$16 sps:$4 sm:$0xff]   ;;  %v6279_v25 = vld [vmem:[%s9135_s1 + $0xc4] ss:$16 sps:$4 sm:$0xff]   ;;  %v6281_v26 = vld [vmem:[%s9135_s1 + $0xcc] ss:$16 sps:$4 sm:$0xff]  }
   0xf   : > { %v6283_v27 = vld [vmem:[%s9135_s1 + $0xc0] ss:$16 sps:$4 sm:$0xff]   ;;  %v6284_v28 = vld [vmem:[%s9135_s1 + $0xc8] ss:$16 sps:$4 sm:$0xff]   ;;  %v6285_v29 = vld [vmem:[%s9135_s1 + $0xe4] ss:$16 sps:$4 sm:$0xff]  }
  0x10   : > { %4592 = vmatpush1.bf16.msra.mxu0 %v6259_v11  ;;  %4979 = vmatpush1.bf16.msra.mxu1 %v6260_v12  ;;  %v6287_v30 = vld [vmem:[%s9135_s1 + $0xec] ss:$16 sps:$4 sm:$0xff]   ;;  %v6289_v31 = vld [vmem:[%s9135_s1 + $0xe0] ss:$16 sps:$4 sm:$0xff]   ;;  %v6290_v32 = vld [vmem:[%s9135_s1 + $0xe8] ss:$16 sps:$4 sm:$0xff]  }
  0x11   : > { %4593 = vmatprep.subr.bf16.mxu0 %v6261_v13  ;;  %4980 = vmatprep.subr.bf16.mxu1 %v6263_v14  ;;  %v6291_v33 = vld [vmem:[%s9135_s1 + $0x104] ss:$16 sps:$4 sm:$0xff]   ;;  %v6293_v34 = vld [vmem:[%s9135_s1 + $0x10c] ss:$16 sps:$4 sm:$0xff]   ;;  %v6295_v35 = vld [vmem:[%s9135_s1 + $0x100] ss:$16 sps:$4 sm:$0xff]  }
  0x12   : > { %v6296_v36 = vld [vmem:[%s9135_s1 + $0x108] ss:$16 sps:$4 sm:$0xff]   ;;  %v6297_v37 = vld [vmem:[%s9135_s1 + $0x124] ss:$16 sps:$4 sm:$0xff]   ;;  %v6299_v38 = vld [vmem:[%s9135_s1 + $0x12c] ss:$16 sps:$4 sm:$0xff]  }
  0x13   : > { %v6301_v39 = vld [vmem:[%s9135_s1 + $0x120] ss:$16 sps:$4 sm:$0xff]   ;;  %v6302_v40 = vld [vmem:[%s9135_s1 + $0x128] ss:$16 sps:$4 sm:$0xff]   ;;  %v6303_v41 = vld [vmem:[%s9135_s1 + $0x144] ss:$16 sps:$4 sm:$0xff]  }
  0x14   : > { %4594 = vmatpush1.bf16.msra.mxu0 %v6265_v15  ;;  %4981 = vmatpush1.bf16.msra.mxu1 %v6266_v16  ;;  %s9158_s16 = smov (!%p188_p3, %s5520_s16), 1  ;;  %v6305_v42 = vld [vmem:[%s9135_s1 + $0x14c] ss:$16 sps:$4 sm:$0xff]   ;;  %vm203_vm1 = vsmask.f32 256  ;;  %vm205_vm2 = vcmask 1044484  }
  0x15   : > { %4595 = vmatprep.subr.bf16.mxu0 %v6267_v17  ;;  %4982 = vmatprep.subr.bf16.mxu1 %v6269_v18  ;;  %v6307_v43 = vld [vmem:[%s9135_s1 + $0x140] ss:$16 sps:$4 sm:$0xff]   ;;  %v6308_v44 = vld [vmem:[%s9135_s1 + $0x148] ss:$16 sps:$4 sm:$0xff]   ;;  %vm206_vm3 = vsmask.f32 4352  ;;  %vm204_vm6 = vmand %vm202_vm0, %vm203_vm1 }
  0x16   : > { %v6309_v45 = vld [vmem:[%s9135_s1 + $0x164] ss:$16 sps:$4 sm:$0xff]   ;;  %s6163_s9 = sshll.u32 %s9158_s16, 4  ;;  %vm227_vm4 = vcmask 1042434   ;;  %v6311_v46 = vld [vmem:[%s9135_s1 + $0x16c] ss:$16 sps:$4 sm:$0xff]   ;;  %vm207_vm8 = vmand %vm205_vm2, %vm206_vm3 }
  0x17   : > { %vm228_vm5 = vsmask.f32 7946  ;;  %v6313_v47 = vld [vmem:[%s9135_s1 + $0x160] ss:$16 sps:$4 sm:$0xff]   ;;  %v6314_v48 = vld [vmem:[%s9135_s1 + $0x168] ss:$16 sps:$4 sm:$0xff]   ;;  %s7314_s24 = scalar_lea.vmem %s9134_s0, %s6163_s9  ;;  %vm7316_vm11 = vmor %vm207_vm8, %vm204_vm6 }
  0x18   : > { %4596 = vmatpush1.bf16.msra.mxu0 %v6271_v19  ;;  %4983 = vmatpush1.bf16.msra.mxu1 %v6272_v20  ;;  %vm231_vm7 = vsmask.f32 7962  ;;  %v6315_v49 = vld [vmem:[%s9135_s1 + $0x184] ss:$16 sps:$4 sm:$0xff]   ;;  %v6317_v50 = vld [vmem:[%s9135_s1 + $0x18c] ss:$16 sps:$4 sm:$0xff]   ;;  %vm229_vm13 = vmand %vm227_vm4, %vm228_vm5 }
  0x19   : > { %4597 = vmatprep.subr.bf16.mxu0 %v6273_v21  ;;  %4984 = vmatprep.subr.bf16.mxu1 %v6275_v22  ;;  %v209_v51 = vld [vmem:[#allocation2] sm:$0x11]  ;;  %v212_v52 = vld [vmem:[#allocation2 + $0x8] sm:$0x11]  ;;  %vm230_vm9 = vcmask 1046534   ;;  %vm321_vm10 = vcmask 1042432   ;;  %vm7420_vm8 = vmor %vm202_vm0, %vm227_vm4 }
  0x1a   : > { %v215_v54 = vld [vmem:[#allocation2 + $0x10] sm:$0x11]  ;;  %v218_v55 = vld [vmem:[#allocation2 + $0x18] sm:$0x11]  ;;  %vm322_vm12 = vsmask.f32 2306  ;;  %vm232_vm14 = vmand %vm230_vm9, %vm231_vm7 }
  0x1b   : > { %v210_v56 = vsel %vm7316_vm11, 0, %v209_v51  ;;  %v213_v57 = vsel %vm7316_vm11, 0, %v212_v52  ;;  %v216_v58 = vsel %vm7316_vm11, 0, %v215_v54  ;;  %v219_v59 = vsel %vm7316_vm11, 0, %v218_v55  ;;  %v237_v60 = vld [vmem:[#allocation2 + $0x8] sm:$0x44]  ;;  %vm7344_vm1 = vmor %vm232_vm14, %vm229_vm13 }
  0x1c   : > { %4598 = vmatpush1.bf16.msra.mxu0 %v6277_v23  ;;  %4985 = vmatpush1.bf16.msra.mxu1 %v6278_v24  ;;  %v6319_v61 = vld [vmem:[%s9135_s1 + $0x180] ss:$16 sps:$4 sm:$0xff]   ;;  %v6320_v62 = vld [vmem:[%s9135_s1 + $0x188] ss:$16 sps:$4 sm:$0xff]   ;;  %211 = vst [vmem:[#allocation2] sm:$0x11] %v210_v56  ;;  %vm7359_vm5 = vmand %vm321_vm10, %vm322_vm12 }
  0x1d   : > { %4599 = vmatprep.subr.bf16.mxu0 %v6279_v25  ;;  %4986 = vmatprep.subr.bf16.mxu1 %v6281_v26  ;;  %214 = vst [vmem:[#allocation2 + $0x8] sm:$0x11] %v213_v57  ;;  %217 = vst [vmem:[#allocation2 + $0x10] sm:$0x11] %v216_v58  ;;  %v240_v63 = vld [vmem:[#allocation2 + $0x10] sm:$0x44] }
  0x1e   : > { %220 = vst [vmem:[#allocation2 + $0x18] sm:$0x11] %v219_v59  ;;  %v243_v0 = vld [vmem:[#allocation2 + $0x18] sm:$0x44]  ;;  %vm325_vm15 = vsmask.f32 6418  ;;  %vm564_vm13 = vmor %vm7420_vm8, %vm205_vm2 }
  0x1f   : > { %v6321_v1 = vld [vmem:[%s9135_s1 + $0x1a4] ss:$16 sps:$4 sm:$0xff]   ;;  %v6323_v2 = vld [vmem:[%s9135_s1 + $0x1ac] ss:$16 sps:$4 sm:$0xff]   ;;  %vm324_vm3 = vcmask 1046532   ;;  %v238_v5 = vsel %vm7344_vm1, 0, %v237_v60  ;;  %vm7516_vm14 = vmor %vm564_vm13, %vm230_vm9 }
  0x20   : > { %4600 = vmatpush1.bf16.msra.mxu0 %v6283_v27  ;;  %4987 = vmatpush1.bf16.msra.mxu1 %v6284_v28  ;;  %v5529_v4 = vld.sshfl [vmem:[%s7314_s24] sm:$0x33 pattern:$0x76325410]  ;;  %v241_v6 = vsel %vm7344_vm1, 0, %v240_v63  ;;  %v244_v7 = vsel %vm7344_vm1, 0, %v243_v0  ;;  %vm326_vm6 = vmand %vm324_vm3, %vm325_vm15 }
  0x21   : > { %4601 = vmatprep.subr.bf16.mxu0 %v6285_v29  ;;  %4988 = vmatprep.subr.bf16.mxu1 %v6287_v30  ;;  %v289_v8 = vshrl.u32 %v5529_v4, 16  ;;  %239 = vst [vmem:[#allocation2 + $0x8] sm:$0x44] %v238_v5  ;;  %242 = vst [vmem:[#allocation2 + $0x10] sm:$0x44] %v241_v6  ;;  %v292_v10 = vshll.u32 %v5529_v4, 16 }
  0x22   : > { %245 = vst [vmem:[#allocation2 + $0x18] sm:$0x44] %v244_v7  ;;  %v5530_v9 = vld.sshfl [vmem:[%s7314_s24 + $0x4] sm:$0x33 pattern:$0x76325410]  ;;  %vm7382_vm7 = vmor %vm326_vm6, %vm7359_vm5 }
  0x23   : > { %v5531_v11 = vld.sshfl [vmem:[%s7314_s24 + $0x8] sm:$0x33 pattern:$0x76325410]  ;;  %v291_v12 = vrot.slane %v289_v8, 7  ;;  %v296_v13 = vshrl.u32 %v5530_v9, 16 }
  0x24   : > { %4602 = vmatpush1.bf16.msra.mxu0 %v6289_v31  ;;  %4989 = vmatpush1.bf16.msra.mxu1 %v6290_v32  ;;  %v299_v15 = vshll.u32 %v5530_v9, 16  ;;  %v303_v16 = vshrl.u32 %v5531_v11, 16  ;;  %v306_v17 = vshll.u32 %v5531_v11, 16  ;;  %v6325_v18 = vld [vmem:[%s9135_s1 + $0x1a0] ss:$16 sps:$4 sm:$0xff]   ;;  %s6164_s10 = sshll.u32 %s9158_s16, 5 }
  0x25   : > { %4603 = vmatprep.subr.bf16.mxu0 %v6291_v33  ;;  %4990 = vmatprep.subr.bf16.mxu1 %v6293_v34  ;;  %v6326_v19 = vld [vmem:[%s9135_s1 + $0x1a8] ss:$16 sps:$4 sm:$0xff]   ;;  %v298_v20 = vrot.slane %v296_v13, 7  ;;  %v6327_v21 = vld [vmem:[%s9135_s1 + $0x1c4] ss:$16 sps:$4 sm:$0xff]   ;;  %v294_v23 = vor.u32 %v292_v10, %v291_v12  ;;  %s197_s13 = scalar_lea.vmem %s9138_s4, %s6164_s10 }
  0x26   : > { %v6329_v22 = vld [vmem:[%s9135_s1 + $0x1cc] ss:$16 sps:$4 sm:$0xff]   ;;  %v305_v24 = vrot.slane %v303_v16, 7  ;;  %v6331_v25 = vld [vmem:[%s9135_s1 + $0x1c0] ss:$16 sps:$4 sm:$0xff]  }
  0x27   : > { %v301_v26 = vor.u32 %v299_v15, %v298_v20  ;;  %v6332_v28 = vld [vmem:[%s9135_s1 + $0x1c8] ss:$16 sps:$4 sm:$0xff]   ;;  %v6333_v29 = vld [vmem:[%s9135_s1 + $0x1e4] ss:$16 sps:$4 sm:$0xff]   ;;  %v7116_v34 = vmov 1983009808  }
  0x28   : > { %4604 = vmatpush1.bf16.msra.mxu0 %v6295_v35  ;;  %4991 = vmatpush1.bf16.msra.mxu1 %v6296_v36  ;;  %v308_v30 = vor.u32 %v306_v17, %v305_v24  ;;  %v328_v31 = vld [vmem:[#allocation2 + $0x8] sm:$0x77]  ;;  %v331_v32 = vld [vmem:[#allocation2 + $0x10] sm:$0x77]  ;;  %v379_v35 = vunpack.c.l.s4 %v7116_v34  ;;  %v381_v36 = vlaneseq  ;;  %vm438_vm0 = vsmask.f32 1280 }
  0x29   : > { %4605 = vmatprep.subr.bf16.mxu0 %v6297_v37  ;;  %4992 = vmatprep.subr.bf16.mxu1 %v6299_v38  ;;  %v334_v33 = vld [vmem:[#allocation2 + $0x18] sm:$0x77]  ;;  %v329_v38 = vsel %vm7382_vm7, %v294_v23, %v328_v31  ;;  %v6339_v58 = vld [vmem:[%s9135_s1 + $0x200] ss:$16 sps:$4 sm:$0xff]   ;;  %v6359_v7 = vld [vmem:[%s9135_s1 + $0x264] ss:$16 sps:$4 sm:$0xff]  }
  0x2a   : > { %v6335_v37 = vld [vmem:[%s9135_s1 + $0x1ec] ss:$16 sps:$4 sm:$0xff]   ;;  %330 = vst [vmem:[#allocation2 + $0x8] sm:$0x77] %v329_v38  ;;  %v6342_v59 = vld [vmem:[%s9135_s1 + $0x208] ss:$16 sps:$4 sm:$0xff]  }
  0x2b   : > { %v6350_v63 = vld [vmem:[%s9135_s1 + $0x22c] ss:$16 sps:$4 sm:$0xff]   ;;  %v6345_v0 = vld [vmem:[%s9135_s1 + $0x220] ss:$16 sps:$4 sm:$0xff]   ;;  %v6354_v6 = vld [vmem:[%s9135_s1 + $0x248] ss:$16 sps:$4 sm:$0xff]  }
  0x2c   : > { %4606 = vmatpush1.bf16.msra.mxu0 %v6301_v39  ;;  %4993 = vmatpush1.bf16.msra.mxu1 %v6302_v40  ;;  %v332_v39 = vsel %vm7382_vm7, %v301_v26, %v331_v32  ;;  %v335_v40 = vsel %vm7382_vm7, %v308_v30, %v334_v33  ;;  %v6356_v4 = vld [vmem:[%s9135_s1 + $0x24c] ss:$16 sps:$4 sm:$0xff]   ;;  %v6351_v5 = vld [vmem:[%s9135_s1 + $0x240] ss:$16 sps:$4 sm:$0xff]   ;;  %v6360_v10 = vld [vmem:[%s9135_s1 + $0x268] ss:$16 sps:$4 sm:$0xff]  }
  0x2d   : > { %4607 = vmatprep.subr.bf16.mxu0 %v6303_v41  ;;  %4994 = vmatprep.subr.bf16.mxu1 %v6305_v42  ;;  %333 = vst [vmem:[#allocation2 + $0x10] sm:$0x77] %v332_v39  ;;  %336 = vst [vmem:[#allocation2 + $0x18] sm:$0x77] %v335_v40  ;;  %v6337_v41 = vld [vmem:[%s9135_s1 + $0x1e0] ss:$16 sps:$4 sm:$0xff]  }
  0x2e   : > { %v6338_v42 = vld [vmem:[%s9135_s1 + $0x1e8] ss:$16 sps:$4 sm:$0xff]   ;;  %v6362_v8 = vld [vmem:[%s9135_s1 + $0x26c] ss:$16 sps:$4 sm:$0xff]   ;;  %v6357_v9 = vld [vmem:[%s9135_s1 + $0x260] ss:$16 sps:$4 sm:$0xff]  }
  0x2f   : > { %v6365_v11 = vld [vmem:[%s9135_s1 + $0x284] ss:$16 sps:$4 sm:$0xff]   ;;  %v6368_v12 = vld [vmem:[%s9135_s1 + $0x28c] ss:$16 sps:$4 sm:$0xff]   ;;  %v6363_v13 = vld [vmem:[%s9135_s1 + $0x280] ss:$16 sps:$4 sm:$0xff]  }
  0x30   : > { %4608 = vmatpush1.bf16.msra.mxu0 %v6307_v43  ;;  %4995 = vmatpush1.bf16.msra.mxu1 %v6308_v44  ;;  %v380_v43 = vunpack.c.0.s8 %v379_v35  ;;  %v7407_v44 = vshrl.u32 %v381_v36, 7  ;;  %v6366_v14 = vld [vmem:[%s9135_s1 + $0x288] ss:$16 sps:$4 sm:$0xff]   ;;  %v6371_v15 = vld [vmem:[%s9135_s1 + $0x2a4] ss:$16 sps:$4 sm:$0xff]  }
  0x31   : > { %4609 = vmatprep.subr.bf16.mxu0 %v6309_v45  ;;  %4996 = vmatprep.subr.bf16.mxu1 %v6311_v46  ;;  %v6341_v45 = vld [vmem:[%s9135_s1 + $0x204] ss:$16 sps:$4 sm:$0xff]   ;;  %v6344_v46 = vld [vmem:[%s9135_s1 + $0x20c] ss:$16 sps:$4 sm:$0xff]   ;;  %v6369_v17 = vld [vmem:[%s9135_s1 + $0x2a0] ss:$16 sps:$4 sm:$0xff]  }
  0x32   : > { %v6374_v16 = vld [vmem:[%s9135_s1 + $0x2ac] ss:$16 sps:$4 sm:$0xff]   ;;  %vm439_vm4 = vsmask.f32 3336  ;;  %vm441_vm10 = vsmask.f32 5392 }
  0x33   : > { %v6380_v20 = vld [vmem:[%s9135_s1 + $0x2cc] ss:$16 sps:$4 sm:$0xff]   ;;  %vm443_vm12 = vsmask.f32 7448  ;;  %v6383_v23 = vld [vmem:[%s9135_s1 + $0x2e4] ss:$16 sps:$4 sm:$0xff]   ;;  %vm7528_vm2 = vmor %vm438_vm0, %vm439_vm4 }
  0x34   : > { %4610 = vmatpush1.bf16.msra.mxu0 %v6313_v47  ;;  %4997 = vmatpush1.bf16.msra.mxu1 %v6314_v48  ;;  %v5533_v47 = vld.sshfl [vmem:[#allocation2] sm:$0xf pattern:$0x76325410]  ;;  %v7416_v48 = vsub.s32 %v380_v43, %v7407_v44  ;;  %v6386_v24 = vld [vmem:[%s9135_s1 + $0x2ec] ss:$16 sps:$4 sm:$0xff]   ;;  %vm7541_vm9 = vmor %vm7528_vm2, %vm441_vm10 }
  0x35   : > { %4611 = vmatprep.subr.bf16.mxu0 %v6315_v49  ;;  %4998 = vmatprep.subr.bf16.mxu1 %v6317_v50  ;;  %v5534_v49 = vld.sshfl [vmem:[#allocation2 + $0x8] sm:$0xf pattern:$0x76325410]  ;;  %v6381_v32 = vld [vmem:[%s9135_s1 + $0x2e0] ss:$16 sps:$4 sm:$0xff]   ;;  %vm7560_vm15 = vmor %vm7541_vm9, %vm443_vm12 }
  0x36   : > { %v5535_v50 = vld.sshfl [vmem:[#allocation2 + $0x10] sm:$0xf pattern:$0x76325410]  ;;  %v376_v51 = vcombine.low %v5533_v47, %v5534_v49  ;;  %v6384_v33 = vld [vmem:[%s9135_s1 + $0x2e8] ss:$16 sps:$4 sm:$0xff]  }
  0x37   : > { %v5536_v52 = vld.sshfl [vmem:[#allocation2 + $0x18] sm:$0xf pattern:$0x76325410]  ;;  %v6389_v43 = vld [vmem:[%s9135_s1 + $0x304] ss:$16 sps:$4 sm:$0xff]  }
  0x38   : > { %4612 = vmatpush1.bf16.msra.mxu0 %v6319_v61  ;;  %4999 = vmatpush1.bf16.msra.mxu1 %v6320_v62  ;;  %v377_v55 = vcombine.low %v5535_v50, %v5536_v52  ;;  %v384_v56 = vrot.slane %v376_v51, %v7416_v48  ;;  %v6347_v62 = vld [vmem:[%s9135_s1 + $0x224] ss:$16 sps:$4 sm:$0xff]   ;;  %v5538_v26 = vld.sshfl [vmem:[#allocation2 + $0x8] sm:$0x5f pattern:$0x76325410] }
  0x39   : > { %4613 = vmatprep.subr.bf16.mxu0 %v6321_v1  ;;  %5000 = vmatprep.subr.bf16.mxu1 %v6323_v2  ;;  %v6348_v1 = vld [vmem:[%s9135_s1 + $0x228] ss:$16 sps:$4 sm:$0xff]   ;;  %v6353_v2 = vld [vmem:[%s9135_s1 + $0x244] ss:$16 sps:$4 sm:$0xff]   ;;  %v460_v30 = vshrl.u32 %v5538_v26, 16  ;;  %v421_v39 = vcombine.high %v5538_v26, %v5538_v26 }
  0x3a   : > { %v391_v57 = vrot.slane %v377_v55, %v7416_v48  ;;  %v5540_v34 = vld.sshfl [vmem:[#allocation2 + $0x18] sm:$0x5f pattern:$0x76325410]  ;;  %v6425_v51 = vld [vmem:[%s9135_s1 + $0x3c4] ss:$16 sps:$4 sm:$0xff]  }
  0x3b   : > { %v437_v40 = vcombine.high %v5540_v34, %v5540_v34  ;;  %v488_v49 = vshrl.u32 %v5540_v34, 16  ;;  %v6392_v50 = vld [vmem:[%s9135_s1 + $0x30c] ss:$16 sps:$4 sm:$0xff]   ;;  %v491_v54 = vshll.u32 %v5540_v34, 16  ;;  %v6408_v36 = vld [vmem:[%s9135_s1 + $0x368] ss:$16 sps:$4 sm:$0xff]  }
  0x3c   : > { %4614 = vmatpush1.bf16.msra.mxu0 %v6325_v18  ;;  %5001 = vmatpush1.bf16.msra.mxu1 %v6326_v19  ;;  %v393_v60 = vcombine.high %v384_v56, %v391_v57  ;;  %v392_v61 = vcombine.low %v384_v56, %v391_v57  ;;  %v6372_v18 = vld [vmem:[%s9135_s1 + $0x2a8] ss:$16 sps:$4 sm:$0xff]   ;;  %v6377_v19 = vld [vmem:[%s9135_s1 + $0x2c4] ss:$16 sps:$4 sm:$0xff]   ;;  %v6387_v56 = vld [vmem:[%s9135_s1 + $0x300] ss:$16 sps:$4 sm:$0xff]  }
  0x3d   : > { %4615 = vmatprep.subr.bf16.mxu0 %v6327_v21  ;;  %5002 = vmatprep.subr.bf16.mxu1 %v6329_v22  ;;  %v6375_v21 = vld [vmem:[%s9135_s1 + $0x2c0] ss:$16 sps:$4 sm:$0xff]   ;;  %v6378_v22 = vld [vmem:[%s9135_s1 + $0x2c8] ss:$16 sps:$4 sm:$0xff]   ;;  %v497_v55 = vshll.u32 %v437_v40, 16 }
  0x3e   : > { %4619 = vmatprep.mubr.bf16.mxu0 %v393_v60  ;;  %5006 = vmatprep.mubr.bf16.mxu1 %v393_v60  ;;  %v6390_v57 = vld [vmem:[%s9135_s1 + $0x308] ss:$16 sps:$4 sm:$0xff]   ;;  %v6416_v40 = vld [vmem:[%s9135_s1 + $0x38c] ss:$16 sps:$4 sm:$0xff]   ;;  %v6545_v27 = vld [vmem:[%s9135_s1 + $0x644] ss:$16 sps:$4 sm:$0xff]  }
  0x3f   : > { %v6735_v53 = vld [vmem:[%s9135_s1 + $0xa40] ss:$16 sps:$4 sm:$0xff]   ;;  %v6800_v3 = vld [vmem:[%s9135_s1 + $0xb8c] ss:$16 sps:$4 sm:$0xff]  }
  0x40   : > { %4616 = vmatpush1.bf16.msra.mxu0 %v6331_v25  ;;  %5003 = vmatpush1.bf16.msra.mxu1 %v6332_v28  ;;  %v234_v25 = vld [vmem:[#allocation2] sm:$0x44]  ;;  %v7010_v31 = vld [vmem:[%s9135_s1 + $0xfec] ss:$16 sps:$4 sm:$0xff]  }
  0x41   : > { %4617 = vmatprep.subr.bf16.mxu0 %v6333_v29  ;;  %5004 = vmatprep.subr.bf16.mxu1 %v6335_v37  ;;  %v235_v28 = vsel %vm7344_vm1, 0, %v234_v25  ;;  %v5539_v29 = vld.sshfl [vmem:[#allocation2 + $0x10] sm:$0x5f pattern:$0x76325410]  ;;  %v463_v37 = vshll.u32 %v5538_v26, 16 }
  0x42   : > { %236 = vst [vmem:[#allocation2] sm:$0x44] %v235_v28  ;;  %v429_v35 = vcombine.high %v5539_v29, %v5539_v29  ;;  %v474_v38 = vshrl.u32 %v5539_v29, 16  ;;  %v6399_v25 = vld [vmem:[%s9135_s1 + $0x340] ss:$16 sps:$4 sm:$0xff]  }
  0x43   : > { %v6402_v26 = vld [vmem:[%s9135_s1 + $0x348] ss:$16 sps:$4 sm:$0xff]  }
  0x44   : > { %4618 = vmatpush1.bf16.msra.mxu0 %v6337_v41  ;;  %5005 = vmatpush1.bf16.msra.mxu1 %v6338_v42  ;;  %v462_v41 = vrot.slane %v460_v30, 6  ;;  %v477_v42 = vshll.u32 %v5539_v29, 16  ;;  %v483_v47 = vshll.u32 %v429_v35, 16  ;;  %v6407_v29 = vld [vmem:[%s9135_s1 + $0x364] ss:$16 sps:$4 sm:$0xff]  }
  0x45   : > { %4630 = vmatprep.subr.bf16.mxu0 %v6341_v45  ;;  %5017 = vmatprep.subr.bf16.mxu1 %v6344_v46  ;;  %v465_v45 = vrot.slane %v463_v37, 7  ;;  %v476_v46 = vrot.slane %v474_v38, 6  ;;  %v6405_v35 = vld [vmem:[%s9135_s1 + $0x360] ss:$16 sps:$4 sm:$0xff]  }
  0x46   : > { %v479_v52 = vrot.slane %v477_v42, 7  ;;  %v6411_v42 = vld [vmem:[%s9135_s1 + $0x380] ss:$16 sps:$4 sm:$0xff]  }
  0x47   : > { %4620 = vmatmul.mubr.bf16.vlgmr.msra.gmra.mrb[0].mxu0 %v392_v61  ;;  %5007 = vmatmul.mubr.bf16.vlgmr.msra.gmra.mrb[0].mxu1 %v392_v61  ;;  %v466_v60 = vor.u32 %v465_v45, %v462_v41  ;;  %v469_v61 = vshll.u32 %v421_v39, 16  ;;  %v6413_v39 = vld [vmem:[%s9135_s1 + $0x384] ss:$16 sps:$4 sm:$0xff]  }
  0x48   : > { %4631 = vmatpush1.bf16.msra.mxu0 %v6339_v58  ;;  %5018 = vmatpush1.bf16.msra.mxu1 %v6342_v59  ;;  %v490_v58 = vrot.slane %v488_v49, 6  ;;  %v6395_v59 = vld [vmem:[%s9135_s1 + $0x324] ss:$16 sps:$4 sm:$0xff]   ;;  %v6417_v49 = vld [vmem:[%s9135_s1 + $0x3a0] ss:$16 sps:$4 sm:$0xff]  }
  0x49   : > { %4632 = vmatprep.subr.bf16.mxu0 %v6347_v62  ;;  %5019 = vmatprep.subr.bf16.mxu1 %v6350_v63  ;;  %v480_v62 = vor.u32 %v479_v52, %v476_v46  ;;  %v493_v63 = vrot.slane %v491_v54, 7  ;;  %v6419_v46 = vld [vmem:[%s9135_s1 + $0x3a4] ss:$16 sps:$4 sm:$0xff]   ;;  %v6428_v52 = vld [vmem:[%s9135_s1 + $0x3cc] ss:$16 sps:$4 sm:$0xff]  }
  0x4a   : > { %v6423_v54 = vld [vmem:[%s9135_s1 + $0x3c0] ss:$16 sps:$4 sm:$0xff]  }
  0x4c   : > { %4633 = vmatpush1.bf16.msra.mxu0 %v6345_v0  ;;  %5020 = vmatpush1.bf16.msra.mxu1 %v6348_v1  ;;  %v6398_v0 = vld [vmem:[%s9135_s1 + $0x32c] ss:$16 sps:$4 sm:$0xff]   ;;  %v485_v1 = vrot.slane %v483_v47, 7 }
  0x4d   : > { %4634 = vmatprep.subr.bf16.mxu0 %v6353_v2  ;;  %5021 = vmatprep.subr.bf16.mxu1 %v6356_v4  ;;  %v499_v2 = vrot.slane %v497_v55, 7  ;;  %v5537_v4 = vld.sshfl [vmem:[#allocation2] sm:$0x5f pattern:$0x76325410] }
  0x4e   : > { %v6422_v47 = vld [vmem:[%s9135_s1 + $0x3ac] ss:$16 sps:$4 sm:$0xff]   ;;  %v6426_v55 = vld [vmem:[%s9135_s1 + $0x3c8] ss:$16 sps:$4 sm:$0xff]  }
  0x50   : > { %4635 = vmatpush1.bf16.msra.mxu0 %v6351_v5  ;;  %5022 = vmatpush1.bf16.msra.mxu1 %v6354_v6  ;;  %v481_v6 = vrot.slane %v480_v62, 2  ;;  %v6435_v62 = vld [vmem:[%s9135_s1 + $0x400] ss:$16 sps:$4 sm:$0xff]   ;;  %v6914_v5 = vld [vmem:[%s9135_s1 + $0xdec] ss:$16 sps:$4 sm:$0xff]  }
  0x51   : > { %4636 = vmatprep.subr.bf16.mxu0 %v6359_v7  ;;  %5023 = vmatprep.subr.bf16.mxu1 %v6362_v8  ;;  %v494_v7 = vor.u32 %v493_v63, %v490_v58  ;;  %v6393_v8 = vld [vmem:[%s9135_s1 + $0x320] ss:$16 sps:$4 sm:$0xff]   ;;  %v6438_v63 = vld [vmem:[%s9135_s1 + $0x408] ss:$16 sps:$4 sm:$0xff]  }
  0x52   : > { %v6429_v58 = vld [vmem:[%s9135_s1 + $0x3e0] ss:$16 sps:$4 sm:$0xff]  }
  0x54   : > { %4637 = vmatpush1.bf16.msra.mxu0 %v6357_v9  ;;  %5024 = vmatpush1.bf16.msra.mxu1 %v6360_v10  ;;  %v413_v9 = vcombine.high %v5537_v4, %v5537_v4  ;;  %v446_v10 = vshrl.u32 %v5537_v4, 16 }
  0x55   : > { %4638 = vmatprep.subr.bf16.mxu0 %v6365_v11  ;;  %5025 = vmatprep.subr.bf16.mxu1 %v6368_v12  ;;  %v449_v11 = vshll.u32 %v5537_v4, 16  ;;  %v6396_v12 = vld [vmem:[%s9135_s1 + $0x328] ss:$16 sps:$4 sm:$0xff]   ;;  %v6441_v4 = vld [vmem:[%s9135_s1 + $0x420] ss:$16 sps:$4 sm:$0xff]  }
  0x58   : > { %4639 = vmatpush1.bf16.msra.mxu0 %v6363_v13  ;;  %5026 = vmatpush1.bf16.msra.mxu1 %v6366_v14  ;;  %v467_v13 = vrot.slane %v466_v60, 2  ;;  %v471_v14 = vrot.slane %v469_v61, 7  ;;  %v6437_v60 = vld [vmem:[%s9135_s1 + $0x404] ss:$16 sps:$4 sm:$0xff]   ;;  %v6440_v61 = vld [vmem:[%s9135_s1 + $0x40c] ss:$16 sps:$4 sm:$0xff]  }
  0x59   : > { %4640 = vmatprep.subr.bf16.mxu0 %v6371_v15  ;;  %5027 = vmatprep.subr.bf16.mxu1 %v6374_v16  ;;  %v495_v15 = vrot.slane %v494_v7, 2  ;;  %v448_v16 = vrot.slane %v446_v10, 6  ;;  %v6449_v7 = vld [vmem:[%s9135_s1 + $0x444] ss:$16 sps:$4 sm:$0xff]   ;;  %v6450_v10 = vld [vmem:[%s9135_s1 + $0x448] ss:$16 sps:$4 sm:$0xff]  }
  0x5c   : > { %4641 = vmatpush1.bf16.msra.mxu0 %v6369_v17  ;;  %5028 = vmatpush1.bf16.msra.mxu1 %v6372_v18  ;;  %v451_v17 = vrot.slane %v449_v11, 7  ;;  %v455_v18 = vshll.u32 %v413_v9, 16  ;;  %v6447_v9 = vld [vmem:[%s9135_s1 + $0x440] ss:$16 sps:$4 sm:$0xff]   ;;  %v6455_v11 = vld [vmem:[%s9135_s1 + $0x464] ss:$16 sps:$4 sm:$0xff]  }
  0x5d   : > { %4642 = vmatprep.subr.bf16.mxu0 %v6377_v19  ;;  %5029 = vmatprep.subr.bf16.mxu1 %v6380_v20  ;;  %v486_v19 = vsel %vm7560_vm15, %v481_v6, %v485_v1  ;;  %v6401_v20 = vld [vmem:[%s9135_s1 + $0x344] ss:$16 sps:$4 sm:$0xff]   ;;  %v6444_v6 = vld [vmem:[%s9135_s1 + $0x428] ss:$16 sps:$4 sm:$0xff]  }
  0x5e   : > { %v6443_v1 = vld [vmem:[%s9135_s1 + $0x424] ss:$16 sps:$4 sm:$0xff]  }
  0x60   : > { %4643 = vmatpush1.bf16.msra.mxu0 %v6375_v21  ;;  %5030 = vmatpush1.bf16.msra.mxu1 %v6378_v22  ;;  %v6404_v21 = vld [vmem:[%s9135_s1 + $0x34c] ss:$16 sps:$4 sm:$0xff]   ;;  %v500_v22 = vsel %vm7560_vm15, %v495_v15, %v499_v2 }
  0x61   : > { %4644 = vmatprep.subr.bf16.mxu0 %v6383_v23  ;;  %5031 = vmatprep.subr.bf16.mxu1 %v6386_v24  ;;  %v452_v23 = vor.u32 %v451_v17, %v448_v16  ;;  %v457_v24 = vrot.slane %v455_v18, 7  ;;  %v502_v28 = vcombine.low %v486_v19, %v500_v22  ;;  %v6446_v2 = vld [vmem:[%s9135_s1 + $0x42c] ss:$16 sps:$4 sm:$0xff]  }
  0x62   : > { %v5543_v17 = vld.sshfl [vmem:[#allocation2 + $0x10] sm:$0x5a pattern:$0x76325410] }
  0x63   : > { %v453_v30 = vrot.slane %v452_v23, 2  ;;  %v516_v38 = vrot.slane %v502_v28, %v7416_v48  ;;  %v5547_v23 = vrot.slane %v5543_v17, 9 }
  0x64   : > { %4645 = vmatpush1.bf16.msra.mxu0 %v6381_v32  ;;  %5032 = vmatpush1.bf16.msra.mxu1 %v6384_v33  ;;  %v472_v32 = vsel %vm7560_vm15, %v467_v13, %v471_v14  ;;  %v6410_v33 = vld [vmem:[%s9135_s1 + $0x36c] ss:$16 sps:$4 sm:$0xff]   ;;  %v5541_v13 = vld.sshfl [vmem:[#allocation2] sm:$0x5a pattern:$0x76325410] }
  0x65   : > { %4646 = vmatprep.subr.bf16.mxu0 %v6389_v43  ;;  %5033 = vmatprep.subr.bf16.mxu1 %v6392_v50  ;;  %v458_v34 = vsel %vm7560_vm15, %v453_v30, %v457_v24  ;;  %v6414_v43 = vld [vmem:[%s9135_s1 + $0x388] ss:$16 sps:$4 sm:$0xff]   ;;  %v538_v15 = vcombine.high %v5541_v13, %v5541_v13  ;;  %v5545_v16 = vrot.slane %v5541_v13, 9  ;;  %v6453_v24 = vld [vmem:[%s9135_s1 + $0x460] ss:$16 sps:$4 sm:$0xff]  }
  0x66   : > { %v501_v37 = vcombine.low %v458_v34, %v472_v32  ;;  %v6420_v50 = vld [vmem:[%s9135_s1 + $0x3a8] ss:$16 sps:$4 sm:$0xff]   ;;  %v6461_v30 = vld [vmem:[%s9135_s1 + $0x484] ss:$16 sps:$4 sm:$0xff]   ;;  %v6464_v32 = vld [vmem:[%s9135_s1 + $0x48c] ss:$16 sps:$4 sm:$0xff]  }
  0x67   : > { %v5542_v14 = vld.sshfl [vmem:[#allocation2 + $0x8] sm:$0x5a pattern:$0x76325410]  ;;  %v568_v22 = vrot.slane %v538_v15, 7 }
  0x68   : > { %4647 = vmatpush1.bf16.msra.mxu0 %v6387_v56  ;;  %5034 = vmatpush1.bf16.msra.mxu1 %v6390_v57  ;;  %v509_v41 = vrot.slane %v501_v37, %v7416_v48  ;;  %v6431_v56 = vld [vmem:[%s9135_s1 + $0x3e4] ss:$16 sps:$4 sm:$0xff]   ;;  %v6434_v57 = vld [vmem:[%s9135_s1 + $0x3ec] ss:$16 sps:$4 sm:$0xff]   ;;  %v546_v18 = vcombine.high %v5542_v14, %v5542_v14  ;;  %v5546_v19 = vrot.slane %v5542_v14, 9 }
  0x69   : > { %4648 = vmatprep.subr.bf16.mxu0 %v6395_v59  ;;  %5035 = vmatprep.subr.bf16.mxu1 %v6398_v0  ;;  %v6432_v59 = vld [vmem:[%s9135_s1 + $0x3e8] ss:$16 sps:$4 sm:$0xff]   ;;  %v6459_v37 = vld [vmem:[%s9135_s1 + $0x480] ss:$16 sps:$4 sm:$0xff]   ;;  %v6509_v15 = vld [vmem:[%s9135_s1 + $0x584] ss:$16 sps:$4 sm:$0xff]  }
  0x6a   : > { %v518_v45 = vcombine.high %v509_v41, %v516_v38  ;;  %v517_v0 = vcombine.low %v509_v41, %v516_v38  ;;  %v572_v28 = vrot.slane %v546_v18, 7  ;;  %v6501_v13 = vld [vmem:[%s9135_s1 + $0x560] ss:$16 sps:$4 sm:$0xff]   ;;  %v6504_v14 = vld [vmem:[%s9135_s1 + $0x568] ss:$16 sps:$4 sm:$0xff]  }
  0x6b   : > { %v6510_v18 = vld [vmem:[%s9135_s1 + $0x588] ss:$16 sps:$4 sm:$0xff]  }
  0x6c   : > { %4649 = vmatpush1.bf16.msra.mxu0 %v6393_v8  ;;  %5036 = vmatpush1.bf16.msra.mxu1 %v6396_v12  ;;  %v6452_v8 = vld [vmem:[%s9135_s1 + $0x44c] ss:$16 sps:$4 sm:$0xff]  }
  0x6d   : > { %4650 = vmatprep.subr.bf16.mxu0 %v6401_v20  ;;  %5037 = vmatprep.subr.bf16.mxu1 %v6404_v21  ;;  %v6458_v12 = vld [vmem:[%s9135_s1 + $0x46c] ss:$16 sps:$4 sm:$0xff]   ;;  %v554_v21 = vcombine.high %v5543_v17, %v5543_v17  ;;  %v6507_v17 = vld [vmem:[%s9135_s1 + $0x580] ss:$16 sps:$4 sm:$0xff]  }
  0x6e   : > { %4662 = vmatprep.mubr.bf16.mxu0 %v518_v45  ;;  %5049 = vmatprep.mubr.bf16.mxu1 %v518_v45  ;;  %v5544_v20 = vld.sshfl [vmem:[#allocation2 + $0x18] sm:$0x5a pattern:$0x76325410] }
  0x6f   : > { %v576_v34 = vrot.slane %v554_v21, 7  ;;  %v6513_v21 = vld [vmem:[%s9135_s1 + $0x5a0] ss:$16 sps:$4 sm:$0xff]  }
  0x70   : > { %4651 = vmatpush1.bf16.msra.mxu0 %v6399_v25  ;;  %5038 = vmatpush1.bf16.msra.mxu1 %v6402_v26  ;;  %v6456_v25 = vld [vmem:[%s9135_s1 + $0x468] ss:$16 sps:$4 sm:$0xff]   ;;  %v562_v26 = vcombine.high %v5544_v20, %v5544_v20 }
  0x71   : > { %4652 = vmatprep.subr.bf16.mxu0 %v6407_v29  ;;  %5039 = vmatprep.subr.bf16.mxu1 %v6410_v33  ;;  %v5548_v29 = vrot.slane %v5544_v20, 9  ;;  %v569_v33 = vsel %vm7516_vm14, %v5545_v16, %v568_v22  ;;  %v577_v38 = vsel %vm7516_vm14, %v5547_v23, %v576_v34  ;;  %v6512_v16 = vld [vmem:[%s9135_s1 + $0x58c] ss:$16 sps:$4 sm:$0xff]   ;;  %v6516_v22 = vld [vmem:[%s9135_s1 + $0x5a8] ss:$16 sps:$4 sm:$0xff]  }
  0x72   : > { %v6518_v20 = vld [vmem:[%s9135_s1 + $0x5ac] ss:$16 sps:$4 sm:$0xff]   ;;  %v6521_v23 = vld [vmem:[%s9135_s1 + $0x5c4] ss:$16 sps:$4 sm:$0xff]  }
  0x74   : > { %4653 = vmatpush1.bf16.msra.mxu0 %v6405_v35  ;;  %5040 = vmatpush1.bf16.msra.mxu1 %v6408_v36  ;;  %v573_v35 = vsel %vm7516_vm14, %v5546_v19, %v572_v28  ;;  %v580_v36 = vrot.slane %v562_v26, 7  ;;  %v6515_v19 = vld [vmem:[%s9135_s1 + $0x5a4] ss:$16 sps:$4 sm:$0xff]  }
  0x75   : > { %4654 = vmatprep.subr.bf16.mxu0 %v6413_v39  ;;  %5041 = vmatprep.subr.bf16.mxu1 %v6416_v40  ;;  %v582_v39 = vcombine.low %v569_v33, %v573_v35  ;;  %v6462_v40 = vld [vmem:[%s9135_s1 + $0x488] ss:$16 sps:$4 sm:$0xff]   ;;  %v246_v28 = vld [vmem:[#allocation2 + $0x20] sm:$0x44] }
  0x76   : > { %v581_v41 = vsel %vm7516_vm14, %v5548_v29, %v580_v36  ;;  %v247_v29 = vsel %vm7344_vm1, 0, %v246_v28  ;;  %v6522_v33 = vld [vmem:[%s9135_s1 + $0x5c8] ss:$16 sps:$4 sm:$0xff]   ;;  %v6527_v36 = vld [vmem:[%s9135_s1 + $0x5e4] ss:$16 sps:$4 sm:$0xff]  }
  0x77   : > { %v583_v45 = vcombine.low %v577_v38, %v581_v41  ;;  %248 = vst [vmem:[#allocation2 + $0x20] sm:$0x44] %v247_v29  ;;  %v6533_v41 = vld [vmem:[%s9135_s1 + $0x604] ss:$16 sps:$4 sm:$0xff]   ;;  %v6584_v28 = vld [vmem:[%s9135_s1 + $0x70c] ss:$16 sps:$4 sm:$0xff]  }
  0x78   : > { %4655 = vmatpush1.bf16.msra.mxu0 %v6411_v42  ;;  %5042 = vmatpush1.bf16.msra.mxu1 %v6414_v43  ;;  %v6467_v42 = vld [vmem:[%s9135_s1 + $0x4a4] ss:$16 sps:$4 sm:$0xff]   ;;  %v6470_v43 = vld [vmem:[%s9135_s1 + $0x4ac] ss:$16 sps:$4 sm:$0xff]   ;;  %v6579_v29 = vld [vmem:[%s9135_s1 + $0x700] ss:$16 sps:$4 sm:$0xff]  }
  0x79   : > { %4656 = vmatprep.subr.bf16.mxu0 %v6419_v46  ;;  %5043 = vmatprep.subr.bf16.mxu1 %v6422_v47  ;;  %v7727_v46 = vrot.slane %v582_v39, %v7416_v48  ;;  %v6465_v47 = vld [vmem:[%s9135_s1 + $0x4a0] ss:$16 sps:$4 sm:$0xff]  }
  0x7a   : > { %v6525_v39 = vld [vmem:[%s9135_s1 + $0x5e0] ss:$16 sps:$4 sm:$0xff]  }
  0x7c   : > { %4657 = vmatpush1.bf16.msra.mxu0 %v6417_v49  ;;  %5044 = vmatpush1.bf16.msra.mxu1 %v6420_v50  ;;  %v7733_v49 = vrot.slane %v583_v45, %v7416_v48  ;;  %v6468_v50 = vld [vmem:[%s9135_s1 + $0x4a8] ss:$16 sps:$4 sm:$0xff]   ;;  %v6531_v45 = vld [vmem:[%s9135_s1 + $0x600] ss:$16 sps:$4 sm:$0xff]  }
  0x7d   : > { %4658 = vmatprep.subr.bf16.mxu0 %v6425_v51  ;;  %5045 = vmatprep.subr.bf16.mxu1 %v6428_v52  ;;  %v6473_v51 = vld [vmem:[%s9135_s1 + $0x4c4] ss:$16 sps:$4 sm:$0xff]   ;;  %v6476_v52 = vld [vmem:[%s9135_s1 + $0x4cc] ss:$16 sps:$4 sm:$0xff]  }
  0x80   : > { %4659 = vmatpush1.bf16.msra.mxu0 %v6423_v54  ;;  %5046 = vmatpush1.bf16.msra.mxu1 %v6426_v55  ;;  %v599_v54 = vcombine.high %v7727_v46, %v7733_v49  ;;  %v6471_v55 = vld [vmem:[%s9135_s1 + $0x4c0] ss:$16 sps:$4 sm:$0xff]  }
  0x81   : > { %4660 = vmatprep.subr.bf16.mxu0 %v6431_v56  ;;  %5047 = vmatprep.subr.bf16.mxu1 %v6434_v57  ;;  %v6474_v56 = vld [vmem:[%s9135_s1 + $0x4c8] ss:$16 sps:$4 sm:$0xff]   ;;  %v6479_v57 = vld [vmem:[%s9135_s1 + $0x4e4] ss:$16 sps:$4 sm:$0xff]  }
  0x84   : > { %4661 = vmatpush1.bf16.msra.mxu0 %v6429_v58  ;;  %5048 = vmatpush1.bf16.msra.mxu1 %v6432_v59  ;;  %v6482_v58 = vld [vmem:[%s9135_s1 + $0x4ec] ss:$16 sps:$4 sm:$0xff]   ;;  %v6477_v59 = vld [vmem:[%s9135_s1 + $0x4e0] ss:$16 sps:$4 sm:$0xff]  }
  0x85   : > { %4673 = vmatprep.subr.bf16.mxu0 %v6437_v60  ;;  %5060 = vmatprep.subr.bf16.mxu1 %v6440_v61  ;;  %v6480_v60 = vld [vmem:[%s9135_s1 + $0x4e8] ss:$16 sps:$4 sm:$0xff]   ;;  %v6485_v61 = vld [vmem:[%s9135_s1 + $0x504] ss:$16 sps:$4 sm:$0xff]  }
  0x87   : > { %4663 = vmatmul.mubr.bf16.vlgmr.msra.gmra.mrb[0].mxu0 %v517_v0  ;;  %5050 = vmatmul.mubr.bf16.vlgmr.msra.gmra.mrb[0].mxu1 %v517_v0  ;;  %v6486_v0 = vld [vmem:[%s9135_s1 + $0x508] ss:$16 sps:$4 sm:$0xff]  }
  0x88   : > { %4674 = vmatpush1.bf16.msra.mxu0 %v6435_v62  ;;  %5061 = vmatpush1.bf16.msra.mxu1 %v6438_v63  ;;  %v6488_v62 = vld [vmem:[%s9135_s1 + $0x50c] ss:$16 sps:$4 sm:$0xff]   ;;  %v6483_v63 = vld [vmem:[%s9135_s1 + $0x500] ss:$16 sps:$4 sm:$0xff]  }
  0x89   : > { %4675 = vmatprep.subr.bf16.mxu0 %v6443_v1  ;;  %5062 = vmatprep.subr.bf16.mxu1 %v6446_v2  ;;  %v6491_v1 = vld [vmem:[%s9135_s1 + $0x524] ss:$16 sps:$4 sm:$0xff]   ;;  %v6494_v2 = vld [vmem:[%s9135_s1 + $0x52c] ss:$16 sps:$4 sm:$0xff]  }
  0x8a   : > { %4705 = vmatprep.mubr.bf16.mxu0 %v599_v54  ;;  %5092 = vmatprep.mubr.bf16.mxu1 %v599_v54  ;;  %v6542_v54 = vld [vmem:[%s9135_s1 + $0x62c] ss:$16 sps:$4 sm:$0xff]  }
  0x8c   : > { %4676 = vmatpush1.bf16.msra.mxu0 %v6441_v4  ;;  %5063 = vmatpush1.bf16.msra.mxu1 %v6444_v6  ;;  %v6489_v4 = vld [vmem:[%s9135_s1 + $0x520] ss:$16 sps:$4 sm:$0xff]   ;;  %v6492_v6 = vld [vmem:[%s9135_s1 + $0x528] ss:$16 sps:$4 sm:$0xff]  }
  0x8d   : > { %4677 = vmatprep.subr.bf16.mxu0 %v6449_v7  ;;  %5064 = vmatprep.subr.bf16.mxu1 %v6452_v8  ;;  %v6497_v7 = vld [vmem:[%s9135_s1 + $0x544] ss:$16 sps:$4 sm:$0xff]   ;;  %v6500_v8 = vld [vmem:[%s9135_s1 + $0x54c] ss:$16 sps:$4 sm:$0xff]  }
  0x90   : > { %4678 = vmatpush1.bf16.msra.mxu0 %v6447_v9  ;;  %5065 = vmatpush1.bf16.msra.mxu1 %v6450_v10  ;;  %v6495_v9 = vld [vmem:[%s9135_s1 + $0x540] ss:$16 sps:$4 sm:$0xff]   ;;  %v6498_v10 = vld [vmem:[%s9135_s1 + $0x548] ss:$16 sps:$4 sm:$0xff]  }
  0x91   : > { %4679 = vmatprep.subr.bf16.mxu0 %v6455_v11  ;;  %5066 = vmatprep.subr.bf16.mxu1 %v6458_v12  ;;  %v6503_v11 = vld [vmem:[%s9135_s1 + $0x564] ss:$16 sps:$4 sm:$0xff]   ;;  %v6506_v12 = vld [vmem:[%s9135_s1 + $0x56c] ss:$16 sps:$4 sm:$0xff]  }
  0x94   : > { %4680 = vmatpush1.bf16.msra.mxu0 %v6453_v24  ;;  %5067 = vmatpush1.bf16.msra.mxu1 %v6456_v25  ;;  %v6524_v24 = vld [vmem:[%s9135_s1 + $0x5cc] ss:$16 sps:$4 sm:$0xff]   ;;  %v221_v25 = vld [vmem:[#allocation2 + $0x20] sm:$0x11] }
  0x95   : > { %4681 = vmatprep.subr.bf16.mxu0 %v6461_v30  ;;  %5068 = vmatprep.subr.bf16.mxu1 %v6464_v32  ;;  %v222_v26 = vsel %vm7316_vm11, 0, %v221_v25  ;;  %v5532_v30 = vld.sshfl [vmem:[%s7314_s24 + $0xc] sm:$0x33 pattern:$0x76325410] }
  0x96   : > { %223 = vst [vmem:[#allocation2 + $0x20] sm:$0x11] %v222_v26  ;;  %v6519_v32 = vld [vmem:[%s9135_s1 + $0x5c0] ss:$16 sps:$4 sm:$0xff]   ;;  %v310_v34 = vshrl.u32 %v5532_v30, 16  ;;  %v313_v35 = vshll.u32 %v5532_v30, 16 }
  0x97   : > { %v6576_v25 = vld [vmem:[%s9135_s1 + $0x6e8] ss:$16 sps:$4 sm:$0xff]   ;;  %v6581_v26 = vld [vmem:[%s9135_s1 + $0x704] ss:$16 sps:$4 sm:$0xff]  }
  0x98   : > { %4682 = vmatpush1.bf16.msra.mxu0 %v6459_v37  ;;  %5069 = vmatpush1.bf16.msra.mxu1 %v6462_v40  ;;  %v6530_v37 = vld [vmem:[%s9135_s1 + $0x5ec] ss:$16 sps:$4 sm:$0xff]   ;;  %v312_v38 = vrot.slane %v310_v34, 7  ;;  %v6528_v40 = vld [vmem:[%s9135_s1 + $0x5e8] ss:$16 sps:$4 sm:$0xff]  }
  0x99   : > { %4683 = vmatprep.subr.bf16.mxu0 %v6467_v42  ;;  %5070 = vmatprep.subr.bf16.mxu1 %v6470_v43  ;;  %v6536_v43 = vld [vmem:[%s9135_s1 + $0x60c] ss:$16 sps:$4 sm:$0xff]   ;;  %v6582_v30 = vld [vmem:[%s9135_s1 + $0x708] ss:$16 sps:$4 sm:$0xff]   ;;  %v6585_v34 = vld [vmem:[%s9135_s1 + $0x720] ss:$16 sps:$4 sm:$0xff]  }
  0x9a   : > { %v315_v42 = vor.u32 %v313_v35, %v312_v38  ;;  %v6588_v35 = vld [vmem:[%s9135_s1 + $0x728] ss:$16 sps:$4 sm:$0xff]  }
  0x9b   : > { %v5553_v38 = vld.sshfl [vmem:[#allocation2 + $0x8] sm:$0x5f pattern:$0x76325410] }
  0x9c   : > { %4684 = vmatpush1.bf16.msra.mxu0 %v6465_v47  ;;  %5071 = vmatpush1.bf16.msra.mxu1 %v6468_v50  ;;  %v6534_v47 = vld [vmem:[%s9135_s1 + $0x608] ss:$16 sps:$4 sm:$0xff]   ;;  %v598_v50 = vcombine.low %v7727_v46, %v7733_v49  ;;  %v6537_v46 = vld [vmem:[%s9135_s1 + $0x620] ss:$16 sps:$4 sm:$0xff]  }
  0x9d   : > { %4685 = vmatprep.subr.bf16.mxu0 %v6473_v51  ;;  %5072 = vmatprep.subr.bf16.mxu1 %v6476_v52  ;;  %v6539_v51 = vld [vmem:[%s9135_s1 + $0x624] ss:$16 sps:$4 sm:$0xff]   ;;  %v6540_v49 = vld [vmem:[%s9135_s1 + $0x628] ss:$16 sps:$4 sm:$0xff]  }
  0x9e   : > { %v337_v52 = vld [vmem:[#allocation2 + $0x20] sm:$0x77] }
  0xa0   : > { %4686 = vmatpush1.bf16.msra.mxu0 %v6471_v55  ;;  %5073 = vmatpush1.bf16.msra.mxu1 %v6474_v56  ;;  %v338_v55 = vsel %vm7382_vm7, %v315_v42, %v337_v52  ;;  %v5549_v56 = vld.sshfl [vmem:[#allocation2 + $0x8] sm:$0xf pattern:$0x76325410]  ;;  %v703_v42 = vshrl.u32 %v5553_v38, 16 }
  0xa1   : > { %4687 = vmatprep.subr.bf16.mxu0 %v6479_v57  ;;  %5074 = vmatprep.subr.bf16.mxu1 %v6482_v58  ;;  %339 = vst [vmem:[#allocation2 + $0x20] sm:$0x77] %v338_v55  ;;  %v5550_v57 = vld.sshfl [vmem:[#allocation2 + $0x10] sm:$0xf pattern:$0x76325410]  ;;  %v677_v55 = vcombine.high %v5553_v38, %v5553_v38 }
  0xa2   : > { %v6548_v58 = vld [vmem:[%s9135_s1 + $0x64c] ss:$16 sps:$4 sm:$0xff]  }
  0xa4   : > { %4688 = vmatpush1.bf16.msra.mxu0 %v6477_v59  ;;  %5075 = vmatpush1.bf16.msra.mxu1 %v6480_v60  ;;  %v640_v59 = vcombine.low %v5549_v56, %v5550_v57  ;;  %v6543_v60 = vld [vmem:[%s9135_s1 + $0x640] ss:$16 sps:$4 sm:$0xff]   ;;  %v705_v57 = vrot.slane %v703_v42, 6 }
  0xa5   : > { %4689 = vmatprep.subr.bf16.mxu0 %v6485_v61  ;;  %5076 = vmatprep.subr.bf16.mxu1 %v6488_v62  ;;  %v5551_v61 = vld.sshfl [vmem:[#allocation2 + $0x18] sm:$0xf pattern:$0x76325410] }
  0xa6   : > { %v6546_v62 = vld [vmem:[%s9135_s1 + $0x648] ss:$16 sps:$4 sm:$0xff]  }
  0xa8   : > { %4690 = vmatpush1.bf16.msra.mxu0 %v6483_v63  ;;  %5077 = vmatpush1.bf16.msra.mxu1 %v6486_v0  ;;  %v6551_v63 = vld [vmem:[%s9135_s1 + $0x664] ss:$16 sps:$4 sm:$0xff]  }
  0xa9   : > { %4691 = vmatprep.subr.bf16.mxu0 %v6491_v1  ;;  %5078 = vmatprep.subr.bf16.mxu1 %v6494_v2  ;;  %v5552_v0 = vld.sshfl [vmem:[#allocation2 + $0x20] sm:$0xf pattern:$0x76325410]  ;;  %v6554_v1 = vld [vmem:[%s9135_s1 + $0x66c] ss:$16 sps:$4 sm:$0xff]  }
  0xaa   : > { %v641_v2 = vcombine.low %v5551_v61, %v5552_v0  ;;  %v5556_v52 = vld.sshfl [vmem:[#allocation2 + $0x20] sm:$0x5f pattern:$0x76325410]  ;;  %v6600_v0 = vld [vmem:[%s9135_s1 + $0x768] ss:$16 sps:$4 sm:$0xff]  }
  0xac   : > { %4692 = vmatpush1.bf16.msra.mxu0 %v6489_v4  ;;  %5079 = vmatpush1.bf16.msra.mxu1 %v6492_v6  ;;  %v7912_v4 = vrot.slane %v640_v59, %v7416_v48  ;;  %v6549_v6 = vld [vmem:[%s9135_s1 + $0x660] ss:$16 sps:$4 sm:$0xff]  }
  0xad   : > { %4693 = vmatprep.subr.bf16.mxu0 %v6497_v7  ;;  %5080 = vmatprep.subr.bf16.mxu1 %v6500_v8  ;;  %v7918_v7 = vrot.slane %v641_v2, %v7416_v48  ;;  %v6552_v8 = vld [vmem:[%s9135_s1 + $0x668] ss:$16 sps:$4 sm:$0xff]  }
  0xb0   : > { %4694 = vmatpush1.bf16.msra.mxu0 %v6495_v9  ;;  %5081 = vmatpush1.bf16.msra.mxu1 %v6498_v10  ;;  %v6557_v9 = vld [vmem:[%s9135_s1 + $0x684] ss:$16 sps:$4 sm:$0xff]   ;;  %v6560_v10 = vld [vmem:[%s9135_s1 + $0x68c] ss:$16 sps:$4 sm:$0xff]  }
  0xb1   : > { %4695 = vmatprep.subr.bf16.mxu0 %v6503_v11  ;;  %5082 = vmatprep.subr.bf16.mxu1 %v6506_v12  ;;  %v657_v11 = vcombine.high %v7912_v4, %v7918_v7  ;;  %v6555_v12 = vld [vmem:[%s9135_s1 + $0x680] ss:$16 sps:$4 sm:$0xff]  }
  0xb4   : > { %4696 = vmatpush1.bf16.msra.mxu0 %v6501_v13  ;;  %5083 = vmatpush1.bf16.msra.mxu1 %v6504_v14  ;;  %v6558_v13 = vld [vmem:[%s9135_s1 + $0x688] ss:$16 sps:$4 sm:$0xff]   ;;  %v6563_v14 = vld [vmem:[%s9135_s1 + $0x6a4] ss:$16 sps:$4 sm:$0xff]  }
  0xb5   : > { %4697 = vmatprep.subr.bf16.mxu0 %v6509_v15  ;;  %5084 = vmatprep.subr.bf16.mxu1 %v6512_v16  ;;  %v6566_v15 = vld [vmem:[%s9135_s1 + $0x6ac] ss:$16 sps:$4 sm:$0xff]   ;;  %v6561_v16 = vld [vmem:[%s9135_s1 + $0x6a0] ss:$16 sps:$4 sm:$0xff]  }
  0xb8   : > { %4698 = vmatpush1.bf16.msra.mxu0 %v6507_v17  ;;  %5085 = vmatpush1.bf16.msra.mxu1 %v6510_v18  ;;  %v6564_v17 = vld [vmem:[%s9135_s1 + $0x6a8] ss:$16 sps:$4 sm:$0xff]   ;;  %v6569_v18 = vld [vmem:[%s9135_s1 + $0x6c4] ss:$16 sps:$4 sm:$0xff]  }
  0xb9   : > { %4699 = vmatprep.subr.bf16.mxu0 %v6515_v19  ;;  %5086 = vmatprep.subr.bf16.mxu1 %v6518_v20  ;;  %v6572_v19 = vld [vmem:[%s9135_s1 + $0x6cc] ss:$16 sps:$4 sm:$0xff]   ;;  %v6567_v20 = vld [vmem:[%s9135_s1 + $0x6c0] ss:$16 sps:$4 sm:$0xff]  }
  0xbc   : > { %4700 = vmatpush1.bf16.msra.mxu0 %v6513_v21  ;;  %5087 = vmatpush1.bf16.msra.mxu1 %v6516_v22  ;;  %v6570_v21 = vld [vmem:[%s9135_s1 + $0x6c8] ss:$16 sps:$4 sm:$0xff]   ;;  %v6575_v22 = vld [vmem:[%s9135_s1 + $0x6e4] ss:$16 sps:$4 sm:$0xff]  }
  0xbd   : > { %4701 = vmatprep.subr.bf16.mxu0 %v6521_v23  ;;  %5088 = vmatprep.subr.bf16.mxu1 %v6524_v24  ;;  %v6578_v23 = vld [vmem:[%s9135_s1 + $0x6ec] ss:$16 sps:$4 sm:$0xff]   ;;  %v6573_v24 = vld [vmem:[%s9135_s1 + $0x6e0] ss:$16 sps:$4 sm:$0xff]  }
  0xc0   : > { %4702 = vmatpush1.bf16.msra.mxu0 %v6519_v32  ;;  %5089 = vmatpush1.bf16.msra.mxu1 %v6522_v33  ;;  %v6587_v32 = vld [vmem:[%s9135_s1 + $0x724] ss:$16 sps:$4 sm:$0xff]   ;;  %v6590_v33 = vld [vmem:[%s9135_s1 + $0x72c] ss:$16 sps:$4 sm:$0xff]  }
  0xc1   : > { %4703 = vmatprep.subr.bf16.mxu0 %v6527_v36  ;;  %5090 = vmatprep.subr.bf16.mxu1 %v6530_v37  ;;  %v6593_v36 = vld [vmem:[%s9135_s1 + $0x744] ss:$16 sps:$4 sm:$0xff]   ;;  %v6596_v37 = vld [vmem:[%s9135_s1 + $0x74c] ss:$16 sps:$4 sm:$0xff]  }
  0xc4   : > { %4704 = vmatpush1.bf16.msra.mxu0 %v6525_v39  ;;  %5091 = vmatpush1.bf16.msra.mxu1 %v6528_v40  ;;  %v6591_v39 = vld [vmem:[%s9135_s1 + $0x740] ss:$16 sps:$4 sm:$0xff]   ;;  %v6594_v40 = vld [vmem:[%s9135_s1 + $0x748] ss:$16 sps:$4 sm:$0xff]  }
  0xc5   : > { %4716 = vmatprep.subr.bf16.mxu0 %v6533_v41  ;;  %5103 = vmatprep.subr.bf16.mxu1 %v6536_v43  ;;  %v5554_v41 = vld.sshfl [vmem:[#allocation2 + $0x10] sm:$0x5f pattern:$0x76325410]  ;;  %v706_v43 = vshll.u32 %v5553_v38, 16 }
  0xc6   : > { %v685_v56 = vcombine.high %v5554_v41, %v5554_v41  ;;  %v6615_v38 = vld [vmem:[%s9135_s1 + $0x7c0] ss:$16 sps:$4 sm:$0xff]  }
  0xc7   : > { %4706 = vmatmul.mubr.bf16.vlgmr.msra.gmra.mrb[0].mxu0 %v598_v50  ;;  %5093 = vmatmul.mubr.bf16.vlgmr.msra.gmra.mrb[0].mxu1 %v598_v50  ;;  %v720_v50 = vshll.u32 %v5554_v41, 16 }
  0xc8   : > { %4717 = vmatpush1.bf16.msra.mxu0 %v6531_v45  ;;  %5104 = vmatpush1.bf16.msra.mxu1 %v6534_v47  ;;  %v5555_v45 = vld.sshfl [vmem:[#allocation2 + $0x18] sm:$0x5f pattern:$0x76325410]  ;;  %v717_v47 = vshrl.u32 %v5554_v41, 16 }
  0xc9   : > { %4718 = vmatprep.subr.bf16.mxu0 %v6539_v51  ;;  %5105 = vmatprep.subr.bf16.mxu1 %v6542_v54  ;;  %v6599_v51 = vld [vmem:[%s9135_s1 + $0x764] ss:$16 sps:$4 sm:$0xff]   ;;  %v6602_v54 = vld [vmem:[%s9135_s1 + $0x76c] ss:$16 sps:$4 sm:$0xff]   ;;  %v734_v59 = vshll.u32 %v5555_v45, 16  ;;  %v693_v61 = vcombine.high %v5555_v45, %v5555_v45 }
  0xca   : > { %4748 = vmatprep.mubr.bf16.mxu0 %v657_v11  ;;  %5135 = vmatprep.mubr.bf16.mxu1 %v657_v11 }
  0xcc   : > { %4719 = vmatpush1.bf16.msra.mxu0 %v6537_v46  ;;  %5106 = vmatpush1.bf16.msra.mxu1 %v6540_v49  ;;  %v708_v46 = vrot.slane %v706_v43, 7  ;;  %v719_v49 = vrot.slane %v717_v47, 6  ;;  %v6618_v43 = vld [vmem:[%s9135_s1 + $0x7c8] ss:$16 sps:$4 sm:$0xff]   ;;  %v6626_v47 = vld [vmem:[%s9135_s1 + $0x7ec] ss:$16 sps:$4 sm:$0xff]  }
  0xcd   : > { %4720 = vmatprep.subr.bf16.mxu0 %v6545_v27  ;;  %5107 = vmatprep.subr.bf16.mxu1 %v6548_v58  ;;  %v722_v27 = vrot.slane %v720_v50, 7  ;;  %v731_v58 = vshrl.u32 %v5555_v45, 16  ;;  %v6623_v45 = vld [vmem:[%s9135_s1 + $0x7e4] ss:$16 sps:$4 sm:$0xff]  }
  0xce   : > { %v709_v11 = vor.u32 %v708_v46, %v705_v57 }
  0xcf   : > { %v733_v2 = vrot.slane %v731_v58, 6  ;;  %v6630_v58 = vld [vmem:[%s9135_s1 + $0x808] ss:$16 sps:$4 sm:$0xff]  }
  0xd0   : > { %4721 = vmatpush1.bf16.msra.mxu0 %v6543_v60  ;;  %5108 = vmatpush1.bf16.msra.mxu1 %v6546_v62  ;;  %v6597_v60 = vld [vmem:[%s9135_s1 + $0x760] ss:$16 sps:$4 sm:$0xff]   ;;  %v701_v62 = vcombine.high %v5556_v52, %v5556_v52 }
  0xd1   : > { %4722 = vmatprep.subr.bf16.mxu0 %v6551_v63  ;;  %5109 = vmatprep.subr.bf16.mxu1 %v6554_v1  ;;  %v745_v63 = vshrl.u32 %v5556_v52, 16  ;;  %v6605_v1 = vld [vmem:[%s9135_s1 + $0x784] ss:$16 sps:$4 sm:$0xff]  }
  0xd4   : > { %4723 = vmatpush1.bf16.msra.mxu0 %v6549_v6  ;;  %5110 = vmatpush1.bf16.msra.mxu1 %v6552_v8  ;;  %v736_v6 = vrot.slane %v734_v59, 7  ;;  %v6608_v8 = vld [vmem:[%s9135_s1 + $0x78c] ss:$16 sps:$4 sm:$0xff]   ;;  %v6635_v59 = vld [vmem:[%s9135_s1 + $0x824] ss:$16 sps:$4 sm:$0xff]  }
  0xd5   : > { %4724 = vmatprep.subr.bf16.mxu0 %v6557_v9  ;;  %5111 = vmatprep.subr.bf16.mxu1 %v6560_v10  ;;  %v747_v9 = vrot.slane %v745_v63, 6  ;;  %v748_v10 = vshll.u32 %v5556_v52, 16  ;;  %v6621_v52 = vld [vmem:[%s9135_s1 + $0x7e0] ss:$16 sps:$4 sm:$0xff]   ;;  %v6644_v63 = vld [vmem:[%s9135_s1 + $0x84c] ss:$16 sps:$4 sm:$0xff]  }
  0xd8   : > { %4725 = vmatpush1.bf16.msra.mxu0 %v6555_v12  ;;  %5112 = vmatpush1.bf16.msra.mxu1 %v6558_v13  ;;  %v712_v12 = vshll.u32 %v677_v55, 16  ;;  %v723_v13 = vor.u32 %v722_v27, %v719_v49  ;;  %v6629_v55 = vld [vmem:[%s9135_s1 + $0x804] ss:$16 sps:$4 sm:$0xff]   ;;  %v6627_v49 = vld [vmem:[%s9135_s1 + $0x800] ss:$16 sps:$4 sm:$0xff]   ;;  %v656_v27 = vcombine.low %v7912_v4, %v7918_v7 }
  0xd9   : > { %4726 = vmatprep.subr.bf16.mxu0 %v6563_v14  ;;  %5113 = vmatprep.subr.bf16.mxu1 %v6566_v15  ;;  %v726_v14 = vshll.u32 %v685_v56, 16  ;;  %v6603_v15 = vld [vmem:[%s9135_s1 + $0x780] ss:$16 sps:$4 sm:$0xff]   ;;  %v6632_v56 = vld [vmem:[%s9135_s1 + $0x80c] ss:$16 sps:$4 sm:$0xff]  }
  0xda   : > { %v6633_v4 = vld [vmem:[%s9135_s1 + $0x820] ss:$16 sps:$4 sm:$0xff]   ;;  %v6636_v7 = vld [vmem:[%s9135_s1 + $0x828] ss:$16 sps:$4 sm:$0xff]  }
  0xdc   : > { %4727 = vmatpush1.bf16.msra.mxu0 %v6561_v16  ;;  %5114 = vmatpush1.bf16.msra.mxu1 %v6564_v17  ;;  %v737_v16 = vor.u32 %v736_v6, %v733_v2  ;;  %v740_v17 = vshll.u32 %v693_v61, 16  ;;  %v6647_v2 = vld [vmem:[%s9135_s1 + $0x864] ss:$16 sps:$4 sm:$0xff]   ;;  %v6650_v6 = vld [vmem:[%s9135_s1 + $0x86c] ss:$16 sps:$4 sm:$0xff]  }
  0xdd   : > { %4728 = vmatprep.subr.bf16.mxu0 %v6569_v18  ;;  %5115 = vmatprep.subr.bf16.mxu1 %v6572_v19  ;;  %v750_v18 = vrot.slane %v748_v10, 7  ;;  %v754_v19 = vshll.u32 %v701_v62, 16  ;;  %v6641_v62 = vld [vmem:[%s9135_s1 + $0x844] ss:$16 sps:$4 sm:$0xff]  }
  0xde   : > { %v6653_v10 = vld [vmem:[%s9135_s1 + $0x884] ss:$16 sps:$4 sm:$0xff]  }
  0xe0   : > { %4729 = vmatpush1.bf16.msra.mxu0 %v6567_v20  ;;  %5116 = vmatpush1.bf16.msra.mxu1 %v6570_v21  ;;  %v6606_v20 = vld [vmem:[%s9135_s1 + $0x788] ss:$16 sps:$4 sm:$0xff]   ;;  %v6611_v21 = vld [vmem:[%s9135_s1 + $0x7a4] ss:$16 sps:$4 sm:$0xff]  }
  0xe1   : > { %4730 = vmatprep.subr.bf16.mxu0 %v6575_v22  ;;  %5117 = vmatprep.subr.bf16.mxu1 %v6578_v23  ;;  %v6614_v22 = vld [vmem:[%s9135_s1 + $0x7ac] ss:$16 sps:$4 sm:$0xff]   ;;  %v751_v23 = vor.u32 %v750_v18, %v747_v9  ;;  %v6648_v9 = vld [vmem:[%s9135_s1 + $0x868] ss:$16 sps:$4 sm:$0xff]   ;;  %v6665_v18 = vld [vmem:[%s9135_s1 + $0x8c4] ss:$16 sps:$4 sm:$0xff]  }
  0xe4   : > { %4731 = vmatpush1.bf16.msra.mxu0 %v6573_v24  ;;  %5118 = vmatpush1.bf16.msra.mxu1 %v6576_v25  ;;  %v6609_v24 = vld [vmem:[%s9135_s1 + $0x7a0] ss:$16 sps:$4 sm:$0xff]   ;;  %v710_v25 = vrot.slane %v709_v11, 2  ;;  %v6656_v11 = vld [vmem:[%s9135_s1 + $0x88c] ss:$16 sps:$4 sm:$0xff]  }
  0xe5   : > { %4732 = vmatprep.subr.bf16.mxu0 %v6581_v26  ;;  %5119 = vmatprep.subr.bf16.mxu1 %v6584_v28  ;;  %v714_v26 = vrot.slane %v712_v12, 7  ;;  %v724_v28 = vrot.slane %v723_v13, 2  ;;  %v6651_v12 = vld [vmem:[%s9135_s1 + $0x880] ss:$16 sps:$4 sm:$0xff]   ;;  %v6654_v13 = vld [vmem:[%s9135_s1 + $0x888] ss:$16 sps:$4 sm:$0xff]  }
  0xe8   : > { %4733 = vmatpush1.bf16.msra.mxu0 %v6579_v29  ;;  %5120 = vmatpush1.bf16.msra.mxu1 %v6582_v30  ;;  %v728_v29 = vrot.slane %v726_v14, 7  ;;  %v738_v30 = vrot.slane %v737_v16, 2  ;;  %v6659_v14 = vld [vmem:[%s9135_s1 + $0x8a4] ss:$16 sps:$4 sm:$0xff]   ;;  %v6657_v16 = vld [vmem:[%s9135_s1 + $0x8a0] ss:$16 sps:$4 sm:$0xff]  }
  0xe9   : > { %4734 = vmatprep.subr.bf16.mxu0 %v6587_v32  ;;  %5121 = vmatprep.subr.bf16.mxu1 %v6590_v33  ;;  %v742_v32 = vrot.slane %v740_v17, 7  ;;  %v752_v33 = vrot.slane %v751_v23, 2  ;;  %v6660_v17 = vld [vmem:[%s9135_s1 + $0x8a8] ss:$16 sps:$4 sm:$0xff]   ;;  %v6674_v23 = vld [vmem:[%s9135_s1 + $0x8ec] ss:$16 sps:$4 sm:$0xff]  }
  0xeb   : > { %v743_v41 = vsel %vm7560_vm15, %v738_v30, %v742_v32  ;;  %v6678_v30 = vld [vmem:[%s9135_s1 + $0x908] ss:$16 sps:$4 sm:$0xff]   ;;  %v6683_v32 = vld [vmem:[%s9135_s1 + $0x924] ss:$16 sps:$4 sm:$0xff]  }
  0xec   : > { %4735 = vmatpush1.bf16.msra.mxu0 %v6585_v34  ;;  %5122 = vmatpush1.bf16.msra.mxu1 %v6588_v35  ;;  %v756_v34 = vrot.slane %v754_v19, 7  ;;  %v6612_v35 = vld [vmem:[%s9135_s1 + $0x7a8] ss:$16 sps:$4 sm:$0xff]   ;;  %v6668_v19 = vld [vmem:[%s9135_s1 + $0x8cc] ss:$16 sps:$4 sm:$0xff]  }
  0xed   : > { %4736 = vmatprep.subr.bf16.mxu0 %v6593_v36  ;;  %5123 = vmatprep.subr.bf16.mxu1 %v6596_v37  ;;  %v6617_v36 = vld [vmem:[%s9135_s1 + $0x7c4] ss:$16 sps:$4 sm:$0xff]   ;;  %v6620_v37 = vld [vmem:[%s9135_s1 + $0x7cc] ss:$16 sps:$4 sm:$0xff]  }
  0xee   : > { %v757_v42 = vsel %vm7560_vm15, %v752_v33, %v756_v34  ;;  %v6686_v33 = vld [vmem:[%s9135_s1 + $0x92c] ss:$16 sps:$4 sm:$0xff]   ;;  %v6681_v34 = vld [vmem:[%s9135_s1 + $0x920] ss:$16 sps:$4 sm:$0xff]  }
  0xf0   : > { %4737 = vmatpush1.bf16.msra.mxu0 %v6591_v39  ;;  %5124 = vmatpush1.bf16.msra.mxu1 %v6594_v40  ;;  %v715_v39 = vsel %vm7560_vm15, %v710_v25, %v714_v26  ;;  %v729_v40 = vsel %vm7560_vm15, %v724_v28, %v728_v29  ;;  %v6672_v25 = vld [vmem:[%s9135_s1 + $0x8e8] ss:$16 sps:$4 sm:$0xff]   ;;  %v6677_v26 = vld [vmem:[%s9135_s1 + $0x904] ss:$16 sps:$4 sm:$0xff]   ;;  %v6680_v28 = vld [vmem:[%s9135_s1 + $0x90c] ss:$16 sps:$4 sm:$0xff]  }
  0xf1   : > { %4738 = vmatprep.subr.bf16.mxu0 %v6599_v51  ;;  %5125 = vmatprep.subr.bf16.mxu1 %v6602_v54  ;;  %v758_v50 = vcombine.low %v715_v39, %v729_v40  ;;  %v759_v51 = vcombine.low %v743_v41, %v757_v42  ;;  %v6624_v54 = vld [vmem:[%s9135_s1 + $0x7e8] ss:$16 sps:$4 sm:$0xff]   ;;  %v6675_v29 = vld [vmem:[%s9135_s1 + $0x900] ss:$16 sps:$4 sm:$0xff]   ;;  %v6695_v40 = vld [vmem:[%s9135_s1 + $0x964] ss:$16 sps:$4 sm:$0xff]  }
  0xf2   : > { %v6690_v39 = vld [vmem:[%s9135_s1 + $0x948] ss:$16 sps:$4 sm:$0xff]   ;;  %v6698_v41 = vld [vmem:[%s9135_s1 + $0x96c] ss:$16 sps:$4 sm:$0xff]  }
  0xf3   : > { %v8084_v57 = vrot.slane %v758_v50, %v7416_v48  ;;  %v8087_v46 = vrot.slane %v759_v51, %v7416_v48  ;;  %v5557_v42 = vld.sshfl [vmem:[#allocation2 + $0x8] sm:$0x5a pattern:$0x76325410]  ;;  %v6701_v50 = vld [vmem:[%s9135_s1 + $0x984] ss:$16 sps:$4 sm:$0xff]  }
  0xf4   : > { %4739 = vmatpush1.bf16.msra.mxu0 %v6597_v60  ;;  %5126 = vmatpush1.bf16.msra.mxu1 %v6600_v0  ;;  %v6638_v60 = vld [vmem:[%s9135_s1 + $0x82c] ss:$16 sps:$4 sm:$0xff]   ;;  %v6639_v0 = vld [vmem:[%s9135_s1 + $0x840] ss:$16 sps:$4 sm:$0xff]  }
  0xf5   : > { %4740 = vmatprep.subr.bf16.mxu0 %v6605_v1  ;;  %5127 = vmatprep.subr.bf16.mxu1 %v6608_v8  ;;  %v775_v61 = vcombine.high %v8084_v57, %v8087_v46  ;;  %v6642_v1 = vld [vmem:[%s9135_s1 + $0x848] ss:$16 sps:$4 sm:$0xff]   ;;  %v6645_v8 = vld [vmem:[%s9135_s1 + $0x860] ss:$16 sps:$4 sm:$0xff]  }
  0xf6   : > { %v5559_v51 = vld.sshfl [vmem:[#allocation2 + $0x18] sm:$0x5a pattern:$0x76325410] }
  0xf8   : > { %4741 = vmatpush1.bf16.msra.mxu0 %v6603_v15  ;;  %5128 = vmatpush1.bf16.msra.mxu1 %v6606_v20  ;;  %v6662_v15 = vld [vmem:[%s9135_s1 + $0x8ac] ss:$16 sps:$4 sm:$0xff]   ;;  %v6663_v20 = vld [vmem:[%s9135_s1 + $0x8c0] ss:$16 sps:$4 sm:$0xff]  }
  0xf9   : > { %4742 = vmatprep.subr.bf16.mxu0 %v6611_v21  ;;  %5129 = vmatprep.subr.bf16.mxu1 %v6614_v22  ;;  %v6666_v21 = vld [vmem:[%s9135_s1 + $0x8c8] ss:$16 sps:$4 sm:$0xff]   ;;  %v6671_v22 = vld [vmem:[%s9135_s1 + $0x8e4] ss:$16 sps:$4 sm:$0xff]  }
  0xfc   : > { %4743 = vmatpush1.bf16.msra.mxu0 %v6609_v24  ;;  %5130 = vmatpush1.bf16.msra.mxu1 %v6612_v35  ;;  %v6669_v24 = vld [vmem:[%s9135_s1 + $0x8e0] ss:$16 sps:$4 sm:$0xff]   ;;  %v6684_v35 = vld [vmem:[%s9135_s1 + $0x928] ss:$16 sps:$4 sm:$0xff]  }
  0xfd   : > { %4744 = vmatprep.subr.bf16.mxu0 %v6617_v36  ;;  %5131 = vmatprep.subr.bf16.mxu1 %v6620_v37  ;;  %v6689_v36 = vld [vmem:[%s9135_s1 + $0x944] ss:$16 sps:$4 sm:$0xff]   ;;  %v6692_v37 = vld [vmem:[%s9135_s1 + $0x94c] ss:$16 sps:$4 sm:$0xff]  }
 0x100   : > { %4745 = vmatpush1.bf16.msra.mxu0 %v6615_v38  ;;  %5132 = vmatpush1.bf16.msra.mxu1 %v6618_v43  ;;  %v6687_v38 = vld [vmem:[%s9135_s1 + $0x940] ss:$16 sps:$4 sm:$0xff]  }
 0x101   : > { %4746 = vmatprep.subr.bf16.mxu0 %v6623_v45  ;;  %5133 = vmatprep.subr.bf16.mxu1 %v6626_v47  ;;  %v6693_v43 = vld [vmem:[%s9135_s1 + $0x960] ss:$16 sps:$4 sm:$0xff]   ;;  %v6696_v45 = vld [vmem:[%s9135_s1 + $0x968] ss:$16 sps:$4 sm:$0xff]  }
 0x102   : > { %v5558_v47 = vld.sshfl [vmem:[#allocation2 + $0x10] sm:$0x5a pattern:$0x76325410] }
 0x104   : > { %4747 = vmatpush1.bf16.msra.mxu0 %v6621_v52  ;;  %5134 = vmatpush1.bf16.msra.mxu1 %v6624_v54  ;;  %v5560_v52 = vld.sshfl [vmem:[#allocation2 + $0x20] sm:$0x5a pattern:$0x76325410]  ;;  %v6704_v54 = vld [vmem:[%s9135_s1 + $0x98c] ss:$16 sps:$4 sm:$0xff]  }
 0x105   : > { %4759 = vmatprep.subr.bf16.mxu0 %v6629_v55  ;;  %5146 = vmatprep.subr.bf16.mxu1 %v6632_v56  ;;  %v795_v55 = vcombine.high %v5557_v42, %v5557_v42  ;;  %v6699_v56 = vld [vmem:[%s9135_s1 + $0x980] ss:$16 sps:$4 sm:$0xff]  }
 0x107   : > { %4749 = vmatmul.mubr.bf16.vlgmr.msra.gmra.mrb[0].mxu0 %v656_v27  ;;  %5136 = vmatmul.mubr.bf16.vlgmr.msra.gmra.mrb[0].mxu1 %v656_v27  ;;  %v803_v27 = vcombine.high %v5558_v47, %v5558_v47 }
 0x108   : > { %4760 = vmatpush1.bf16.msra.mxu0 %v6627_v49  ;;  %5147 = vmatpush1.bf16.msra.mxu1 %v6630_v58  ;;  %v6702_v49 = vld [vmem:[%s9135_s1 + $0x988] ss:$16 sps:$4 sm:$0xff]   ;;  %v811_v58 = vcombine.high %v5559_v51, %v5559_v51 }
 0x109   : > { %4761 = vmatprep.subr.bf16.mxu0 %v6635_v59  ;;  %5148 = vmatprep.subr.bf16.mxu1 %v6638_v60  ;;  %v819_v59 = vcombine.high %v5560_v52, %v5560_v52  ;;  %v6707_v60 = vld [vmem:[%s9135_s1 + $0x9a4] ss:$16 sps:$4 sm:$0xff]  }
 0x10a   : > { %4791 = vmatprep.mubr.bf16.mxu0 %v775_v61  ;;  %5178 = vmatprep.mubr.bf16.mxu1 %v775_v61  ;;  %v6710_v61 = vld [vmem:[%s9135_s1 + $0x9ac] ss:$16 sps:$4 sm:$0xff]  }
 0x10c   : > { %4762 = vmatpush1.bf16.msra.mxu0 %v6633_v4  ;;  %5149 = vmatpush1.bf16.msra.mxu1 %v6636_v7  ;;  %v6705_v4 = vld [vmem:[%s9135_s1 + $0x9a0] ss:$16 sps:$4 sm:$0xff]   ;;  %v6708_v7 = vld [vmem:[%s9135_s1 + $0x9a8] ss:$16 sps:$4 sm:$0xff]  }
 0x10d   : > { %4763 = vmatprep.subr.bf16.mxu0 %v6641_v62  ;;  %5150 = vmatprep.subr.bf16.mxu1 %v6644_v63  ;;  %v5561_v62 = vrot.slane %v5557_v42, 9  ;;  %v822_v63 = vrot.slane %v795_v55, 7  ;;  %v6746_v42 = vld [vmem:[%s9135_s1 + $0xa6c] ss:$16 sps:$4 sm:$0xff]  }
 0x10e   : > { %v6758_v55 = vld [vmem:[%s9135_s1 + $0xaac] ss:$16 sps:$4 sm:$0xff]  }
 0x110   : > { %4764 = vmatpush1.bf16.msra.mxu0 %v6639_v0  ;;  %5151 = vmatpush1.bf16.msra.mxu1 %v6642_v1  ;;  %v5562_v0 = vrot.slane %v5558_v47, 9  ;;  %v5563_v1 = vrot.slane %v5559_v51, 9  ;;  %v6749_v47 = vld [vmem:[%s9135_s1 + $0xa84] ss:$16 sps:$4 sm:$0xff]   ;;  %v6747_v51 = vld [vmem:[%s9135_s1 + $0xa80] ss:$16 sps:$4 sm:$0xff]  }
 0x111   : > { %4765 = vmatprep.subr.bf16.mxu0 %v6647_v2  ;;  %5152 = vmatprep.subr.bf16.mxu1 %v6650_v6  ;;  %v826_v2 = vrot.slane %v803_v27, 7  ;;  %v830_v6 = vrot.slane %v811_v58, 7  ;;  %v6761_v27 = vld [vmem:[%s9135_s1 + $0xac4] ss:$16 sps:$4 sm:$0xff]   ;;  %v6764_v58 = vld [vmem:[%s9135_s1 + $0xacc] ss:$16 sps:$4 sm:$0xff]  }
 0x114   : > { %4766 = vmatpush1.bf16.msra.mxu0 %v6645_v8  ;;  %5153 = vmatpush1.bf16.msra.mxu1 %v6648_v9  ;;  %v5564_v8 = vrot.slane %v5560_v52, 9  ;;  %v834_v9 = vrot.slane %v819_v59, 7  ;;  %v6750_v52 = vld [vmem:[%s9135_s1 + $0xa88] ss:$16 sps:$4 sm:$0xff]   ;;  %v6759_v59 = vld [vmem:[%s9135_s1 + $0xac0] ss:$16 sps:$4 sm:$0xff]  }
 0x115   : > { %4767 = vmatprep.subr.bf16.mxu0 %v6653_v10  ;;  %5154 = vmatprep.subr.bf16.mxu1 %v6656_v11  ;;  %v6713_v10 = vld [vmem:[%s9135_s1 + $0x9c4] ss:$16 sps:$4 sm:$0xff]   ;;  %v6716_v11 = vld [vmem:[%s9135_s1 + $0x9cc] ss:$16 sps:$4 sm:$0xff]  }
 0x118   : > { %4768 = vmatpush1.bf16.msra.mxu0 %v6651_v12  ;;  %5155 = vmatpush1.bf16.msra.mxu1 %v6654_v13  ;;  %v6711_v12 = vld [vmem:[%s9135_s1 + $0x9c0] ss:$16 sps:$4 sm:$0xff]   ;;  %v6714_v13 = vld [vmem:[%s9135_s1 + $0x9c8] ss:$16 sps:$4 sm:$0xff]  }
 0x119   : > { %4769 = vmatprep.subr.bf16.mxu0 %v6659_v14  ;;  %5156 = vmatprep.subr.bf16.mxu1 %v6662_v15  ;;  %v823_v14 = vsel %vm7516_vm14, %v5561_v62, %v822_v63  ;;  %v827_v15 = vsel %vm7516_vm14, %v5562_v0, %v826_v2  ;;  %v6768_v62 = vld [vmem:[%s9135_s1 + $0xae8] ss:$16 sps:$4 sm:$0xff]   ;;  %v6773_v63 = vld [vmem:[%s9135_s1 + $0xb04] ss:$16 sps:$4 sm:$0xff]   ;;  %v6776_v0 = vld [vmem:[%s9135_s1 + $0xb0c] ss:$16 sps:$4 sm:$0xff]  }
 0x11a   : > { %v6774_v2 = vld [vmem:[%s9135_s1 + $0xb08] ss:$16 sps:$4 sm:$0xff]  }
 0x11c   : > { %4770 = vmatpush1.bf16.msra.mxu0 %v6657_v16  ;;  %5157 = vmatpush1.bf16.msra.mxu1 %v6660_v17  ;;  %v831_v16 = vsel %vm7516_vm14, %v5563_v1, %v830_v6  ;;  %v835_v17 = vsel %vm7516_vm14, %v5564_v8, %v834_v9  ;;  %v6771_v1 = vld [vmem:[%s9135_s1 + $0xb00] ss:$16 sps:$4 sm:$0xff]   ;;  %v6779_v6 = vld [vmem:[%s9135_s1 + $0xb24] ss:$16 sps:$4 sm:$0xff]   ;;  %v6782_v8 = vld [vmem:[%s9135_s1 + $0xb2c] ss:$16 sps:$4 sm:$0xff]  }
 0x11d   : > { %4771 = vmatprep.subr.bf16.mxu0 %v6665_v18  ;;  %5158 = vmatprep.subr.bf16.mxu1 %v6668_v19  ;;  %v6719_v18 = vld [vmem:[%s9135_s1 + $0x9e4] ss:$16 sps:$4 sm:$0xff]   ;;  %v6722_v19 = vld [vmem:[%s9135_s1 + $0x9ec] ss:$16 sps:$4 sm:$0xff]   ;;  %v6777_v9 = vld [vmem:[%s9135_s1 + $0xb20] ss:$16 sps:$4 sm:$0xff]  }
 0x120   : > { %4772 = vmatpush1.bf16.msra.mxu0 %v6663_v20  ;;  %5159 = vmatpush1.bf16.msra.mxu1 %v6666_v21  ;;  %v836_v20 = vcombine.low %v823_v14, %v827_v15  ;;  %v837_v21 = vcombine.low %v831_v16, %v835_v17  ;;  %v6786_v14 = vld [vmem:[%s9135_s1 + $0xb48] ss:$16 sps:$4 sm:$0xff]   ;;  %v6791_v15 = vld [vmem:[%s9135_s1 + $0xb64] ss:$16 sps:$4 sm:$0xff]   ;;  %v6794_v16 = vld [vmem:[%s9135_s1 + $0xb6c] ss:$16 sps:$4 sm:$0xff]  }
 0x121   : > { %4773 = vmatprep.subr.bf16.mxu0 %v6671_v22  ;;  %5160 = vmatprep.subr.bf16.mxu1 %v6674_v23  ;;  %v6717_v22 = vld [vmem:[%s9135_s1 + $0x9e0] ss:$16 sps:$4 sm:$0xff]   ;;  %v6720_v23 = vld [vmem:[%s9135_s1 + $0x9e8] ss:$16 sps:$4 sm:$0xff]  }
 0x122   : > { %v249_v17 = vld [vmem:[#allocation2 + $0x28] sm:$0x44] }
 0x124   : > { %4774 = vmatpush1.bf16.msra.mxu0 %v6669_v24  ;;  %5161 = vmatpush1.bf16.msra.mxu1 %v6672_v25  ;;  %v6725_v24 = vld [vmem:[%s9135_s1 + $0xa04] ss:$16 sps:$4 sm:$0xff]   ;;  %v6728_v25 = vld [vmem:[%s9135_s1 + $0xa0c] ss:$16 sps:$4 sm:$0xff]  }
 0x125   : > { %4775 = vmatprep.subr.bf16.mxu0 %v6677_v26  ;;  %5162 = vmatprep.subr.bf16.mxu1 %v6680_v28  ;;  %v8294_v26 = vrot.slane %v836_v20, %v7416_v48  ;;  %v8297_v28 = vrot.slane %v837_v21, %v7416_v48  ;;  %v6792_v20 = vld [vmem:[%s9135_s1 + $0xb68] ss:$16 sps:$4 sm:$0xff]   ;;  %v6797_v21 = vld [vmem:[%s9135_s1 + $0xb84] ss:$16 sps:$4 sm:$0xff]  }
 0x128   : > { %4776 = vmatpush1.bf16.msra.mxu0 %v6675_v29  ;;  %5163 = vmatpush1.bf16.msra.mxu1 %v6678_v30  ;;  %v6723_v29 = vld [vmem:[%s9135_s1 + $0xa00] ss:$16 sps:$4 sm:$0xff]   ;;  %v6726_v30 = vld [vmem:[%s9135_s1 + $0xa08] ss:$16 sps:$4 sm:$0xff]  }
 0x129   : > { %4777 = vmatprep.subr.bf16.mxu0 %v6683_v32  ;;  %5164 = vmatprep.subr.bf16.mxu1 %v6686_v33  ;;  %v774_v32 = vcombine.low %v8084_v57, %v8087_v46  ;;  %v6731_v33 = vld [vmem:[%s9135_s1 + $0xa24] ss:$16 sps:$4 sm:$0xff]   ;;  %v6729_v57 = vld [vmem:[%s9135_s1 + $0xa20] ss:$16 sps:$4 sm:$0xff]  }
 0x12c   : > { %4778 = vmatpush1.bf16.msra.mxu0 %v6681_v34  ;;  %5165 = vmatpush1.bf16.msra.mxu1 %v6684_v35  ;;  %v6734_v34 = vld [vmem:[%s9135_s1 + $0xa2c] ss:$16 sps:$4 sm:$0xff]   ;;  %v853_v35 = vcombine.high %v8294_v26, %v8297_v28 }
 0x12d   : > { %4779 = vmatprep.subr.bf16.mxu0 %v6689_v36  ;;  %5166 = vmatprep.subr.bf16.mxu1 %v6692_v37  ;;  %v224_v36 = vld [vmem:[#allocation2 + $0x28] sm:$0x11] }
 0x12e   : > { %v225_v46 = vsel %vm7316_vm11, 0, %v224_v36  ;;  %v6732_v37 = vld [vmem:[%s9135_s1 + $0xa28] ss:$16 sps:$4 sm:$0xff]  }
 0x12f   : > { %226 = vst [vmem:[#allocation2 + $0x28] sm:$0x11] %v225_v46  ;;  %v5567_v36 = vld.sshfl [vmem:[#allocation2 + $0x20] sm:$0xf pattern:$0x76325410] }
 0x130   : > { %4780 = vmatpush1.bf16.msra.mxu0 %v6687_v38  ;;  %5167 = vmatpush1.bf16.msra.mxu1 %v6690_v39  ;;  %v6737_v38 = vld [vmem:[%s9135_s1 + $0xa44] ss:$16 sps:$4 sm:$0xff]   ;;  %v6740_v39 = vld [vmem:[%s9135_s1 + $0xa4c] ss:$16 sps:$4 sm:$0xff]   ;;  %v6807_v46 = vld [vmem:[%s9135_s1 + $0xbc0] ss:$16 sps:$4 sm:$0xff]  }
 0x131   : > { %4781 = vmatprep.subr.bf16.mxu0 %v6695_v40  ;;  %5168 = vmatprep.subr.bf16.mxu1 %v6698_v41  ;;  %v6738_v40 = vld [vmem:[%s9135_s1 + $0xa48] ss:$16 sps:$4 sm:$0xff]   ;;  %v6743_v41 = vld [vmem:[%s9135_s1 + $0xa64] ss:$16 sps:$4 sm:$0xff]  }
 0x134   : > { %4782 = vmatpush1.bf16.msra.mxu0 %v6693_v43  ;;  %5169 = vmatpush1.bf16.msra.mxu1 %v6696_v45  ;;  %v6741_v43 = vld [vmem:[%s9135_s1 + $0xa60] ss:$16 sps:$4 sm:$0xff]   ;;  %v6744_v45 = vld [vmem:[%s9135_s1 + $0xa68] ss:$16 sps:$4 sm:$0xff]  }
 0x135   : > { %4783 = vmatprep.subr.bf16.mxu0 %v6701_v50  ;;  %5170 = vmatprep.subr.bf16.mxu1 %v6704_v54  ;;  %v6752_v50 = vld [vmem:[%s9135_s1 + $0xa8c] ss:$16 sps:$4 sm:$0xff]   ;;  %v6755_v54 = vld [vmem:[%s9135_s1 + $0xaa4] ss:$16 sps:$4 sm:$0xff]  }
 0x138   : > { %4784 = vmatpush1.bf16.msra.mxu0 %v6699_v56  ;;  %5171 = vmatpush1.bf16.msra.mxu1 %v6702_v49  ;;  %v6753_v56 = vld [vmem:[%s9135_s1 + $0xaa0] ss:$16 sps:$4 sm:$0xff]   ;;  %v6756_v49 = vld [vmem:[%s9135_s1 + $0xaa8] ss:$16 sps:$4 sm:$0xff]  }
 0x139   : > { %4785 = vmatprep.subr.bf16.mxu0 %v6707_v60  ;;  %5172 = vmatprep.subr.bf16.mxu1 %v6710_v61  ;;  %v6762_v60 = vld [vmem:[%s9135_s1 + $0xac8] ss:$16 sps:$4 sm:$0xff]   ;;  %v6767_v61 = vld [vmem:[%s9135_s1 + $0xae4] ss:$16 sps:$4 sm:$0xff]  }
 0x13c   : > { %4786 = vmatpush1.bf16.msra.mxu0 %v6705_v4  ;;  %5173 = vmatpush1.bf16.msra.mxu1 %v6708_v7  ;;  %v6770_v4 = vld [vmem:[%s9135_s1 + $0xaec] ss:$16 sps:$4 sm:$0xff]   ;;  %v6765_v7 = vld [vmem:[%s9135_s1 + $0xae0] ss:$16 sps:$4 sm:$0xff]  }
 0x13d   : > { %4787 = vmatprep.subr.bf16.mxu0 %v6713_v10  ;;  %5174 = vmatprep.subr.bf16.mxu1 %v6716_v11  ;;  %v6780_v10 = vld [vmem:[%s9135_s1 + $0xb28] ss:$16 sps:$4 sm:$0xff]   ;;  %v6785_v11 = vld [vmem:[%s9135_s1 + $0xb44] ss:$16 sps:$4 sm:$0xff]  }
 0x140   : > { %4788 = vmatpush1.bf16.msra.mxu0 %v6711_v12  ;;  %5175 = vmatpush1.bf16.msra.mxu1 %v6714_v13  ;;  %v6788_v12 = vld [vmem:[%s9135_s1 + $0xb4c] ss:$16 sps:$4 sm:$0xff]   ;;  %v6783_v13 = vld [vmem:[%s9135_s1 + $0xb40] ss:$16 sps:$4 sm:$0xff]  }
 0x141   : > { %4789 = vmatprep.subr.bf16.mxu0 %v6719_v18  ;;  %5176 = vmatprep.subr.bf16.mxu1 %v6722_v19  ;;  %v250_v18 = vsel %vm7344_vm1, 0, %v249_v17  ;;  %v6789_v19 = vld [vmem:[%s9135_s1 + $0xb60] ss:$16 sps:$4 sm:$0xff]  }
 0x142   : > { %251 = vst [vmem:[#allocation2 + $0x28] sm:$0x44] %v250_v18  ;;  %v6861_v17 = vld [vmem:[%s9135_s1 + $0xce0] ss:$16 sps:$4 sm:$0xff]   ;;  %v6864_v18 = vld [vmem:[%s9135_s1 + $0xce8] ss:$16 sps:$4 sm:$0xff]  }
 0x144   : > { %4790 = vmatpush1.bf16.msra.mxu0 %v6717_v22  ;;  %5177 = vmatpush1.bf16.msra.mxu1 %v6720_v23  ;;  %v6795_v22 = vld [vmem:[%s9135_s1 + $0xb80] ss:$16 sps:$4 sm:$0xff]   ;;  %v6798_v23 = vld [vmem:[%s9135_s1 + $0xb88] ss:$16 sps:$4 sm:$0xff]  }
 0x145   : > { %4802 = vmatprep.subr.bf16.mxu0 %v6725_v24  ;;  %5189 = vmatprep.subr.bf16.mxu1 %v6728_v25  ;;  %v6803_v24 = vld [vmem:[%s9135_s1 + $0xba4] ss:$16 sps:$4 sm:$0xff]   ;;  %v6806_v25 = vld [vmem:[%s9135_s1 + $0xbac] ss:$16 sps:$4 sm:$0xff]  }
 0x147   : > { %4792 = vmatmul.mubr.bf16.vlgmr.msra.gmra.mrb[0].mxu0 %v774_v32  ;;  %5179 = vmatmul.mubr.bf16.vlgmr.msra.gmra.mrb[0].mxu1 %v774_v32  ;;  %v6809_v32 = vld [vmem:[%s9135_s1 + $0xbc4] ss:$16 sps:$4 sm:$0xff]  }
 0x148   : > { %4803 = vmatpush1.bf16.msra.mxu0 %v6723_v29  ;;  %5190 = vmatpush1.bf16.msra.mxu1 %v6726_v30  ;;  %v6801_v29 = vld [vmem:[%s9135_s1 + $0xba0] ss:$16 sps:$4 sm:$0xff]   ;;  %v6804_v30 = vld [vmem:[%s9135_s1 + $0xba8] ss:$16 sps:$4 sm:$0xff]  }
 0x149   : > { %4804 = vmatprep.subr.bf16.mxu0 %v6731_v33  ;;  %5191 = vmatprep.subr.bf16.mxu1 %v6734_v34  ;;  %v6812_v33 = vld [vmem:[%s9135_s1 + $0xbcc] ss:$16 sps:$4 sm:$0xff]   ;;  %v5565_v34 = vld.sshfl [vmem:[#allocation2 + $0x10] sm:$0xf pattern:$0x76325410] }
 0x14a   : > { %4834 = vmatprep.mubr.bf16.mxu0 %v853_v35  ;;  %5221 = vmatprep.mubr.bf16.mxu1 %v853_v35  ;;  %v5566_v35 = vld.sshfl [vmem:[#allocation2 + $0x18] sm:$0xf pattern:$0x76325410] }
 0x14c   : > { %4805 = vmatpush1.bf16.msra.mxu0 %v6729_v57  ;;  %5192 = vmatpush1.bf16.msra.mxu1 %v6732_v37  ;;  %v5568_v57 = vld.sshfl [vmem:[#allocation2 + $0x28] sm:$0xf pattern:$0x76325410] }
 0x14d   : > { %4806 = vmatprep.subr.bf16.mxu0 %v6737_v38  ;;  %5193 = vmatprep.subr.bf16.mxu1 %v6740_v39  ;;  %v6810_v37 = vld [vmem:[%s9135_s1 + $0xbc8] ss:$16 sps:$4 sm:$0xff]   ;;  %v6815_v38 = vld [vmem:[%s9135_s1 + $0xbe4] ss:$16 sps:$4 sm:$0xff]   ;;  %v6818_v39 = vld [vmem:[%s9135_s1 + $0xbec] ss:$16 sps:$4 sm:$0xff]  }
 0x150   : > { %4807 = vmatpush1.bf16.msra.mxu0 %v6735_v53  ;;  %5194 = vmatpush1.bf16.msra.mxu1 %v6738_v40  ;;  %v895_v53 = vcombine.low %v5565_v34, %v5566_v35  ;;  %v896_v40 = vcombine.low %v5567_v36, %v5568_v57  ;;  %v6881_v34 = vld [vmem:[%s9135_s1 + $0xd44] ss:$16 sps:$4 sm:$0xff]   ;;  %v6884_v35 = vld [vmem:[%s9135_s1 + $0xd4c] ss:$16 sps:$4 sm:$0xff]  }
 0x151   : > { %4808 = vmatprep.subr.bf16.mxu0 %v6743_v41  ;;  %5195 = vmatprep.subr.bf16.mxu1 %v6746_v42  ;;  %v6813_v41 = vld [vmem:[%s9135_s1 + $0xbe0] ss:$16 sps:$4 sm:$0xff]   ;;  %v6816_v42 = vld [vmem:[%s9135_s1 + $0xbe8] ss:$16 sps:$4 sm:$0xff]  }
 0x154   : > { %4809 = vmatpush1.bf16.msra.mxu0 %v6741_v43  ;;  %5196 = vmatpush1.bf16.msra.mxu1 %v6744_v45  ;;  %v6821_v43 = vld [vmem:[%s9135_s1 + $0xc04] ss:$16 sps:$4 sm:$0xff]   ;;  %v6824_v45 = vld [vmem:[%s9135_s1 + $0xc0c] ss:$16 sps:$4 sm:$0xff]  }
 0x155   : > { %4810 = vmatprep.subr.bf16.mxu0 %v6749_v47  ;;  %5197 = vmatprep.subr.bf16.mxu1 %v6752_v50  ;;  %v8500_v47 = vrot.slane %v895_v53, %v7416_v48  ;;  %v8503_v50 = vrot.slane %v896_v40, %v7416_v48 }
 0x158   : > { %4811 = vmatpush1.bf16.msra.mxu0 %v6747_v51  ;;  %5198 = vmatpush1.bf16.msra.mxu1 %v6750_v52  ;;  %v852_v51 = vcombine.low %v8294_v26, %v8297_v28  ;;  %v6819_v52 = vld [vmem:[%s9135_s1 + $0xc00] ss:$16 sps:$4 sm:$0xff]   ;;  %v6830_v26 = vld [vmem:[%s9135_s1 + $0xc2c] ss:$16 sps:$4 sm:$0xff]   ;;  %v912_v28 = vcombine.high %v8500_v47, %v8503_v50 }
 0x159   : > { %4812 = vmatprep.subr.bf16.mxu0 %v6755_v54  ;;  %5199 = vmatprep.subr.bf16.mxu1 %v6758_v55  ;;  %v6822_v54 = vld [vmem:[%s9135_s1 + $0xc08] ss:$16 sps:$4 sm:$0xff]   ;;  %v6827_v55 = vld [vmem:[%s9135_s1 + $0xc24] ss:$16 sps:$4 sm:$0xff]  }
 0x15c   : > { %4813 = vmatpush1.bf16.msra.mxu0 %v6753_v56  ;;  %5200 = vmatpush1.bf16.msra.mxu1 %v6756_v49  ;;  %v6825_v56 = vld [vmem:[%s9135_s1 + $0xc20] ss:$16 sps:$4 sm:$0xff]   ;;  %v6828_v49 = vld [vmem:[%s9135_s1 + $0xc28] ss:$16 sps:$4 sm:$0xff]  }
 0x15d   : > { %4814 = vmatprep.subr.bf16.mxu0 %v6761_v27  ;;  %5201 = vmatprep.subr.bf16.mxu1 %v6764_v58  ;;  %v6833_v27 = vld [vmem:[%s9135_s1 + $0xc44] ss:$16 sps:$4 sm:$0xff]   ;;  %v6836_v58 = vld [vmem:[%s9135_s1 + $0xc4c] ss:$16 sps:$4 sm:$0xff]  }
 0x160   : > { %4815 = vmatpush1.bf16.msra.mxu0 %v6759_v59  ;;  %5202 = vmatpush1.bf16.msra.mxu1 %v6762_v60  ;;  %v6831_v59 = vld [vmem:[%s9135_s1 + $0xc40] ss:$16 sps:$4 sm:$0xff]   ;;  %v6834_v60 = vld [vmem:[%s9135_s1 + $0xc48] ss:$16 sps:$4 sm:$0xff]  }
 0x161   : > { %4816 = vmatprep.subr.bf16.mxu0 %v6767_v61  ;;  %5203 = vmatprep.subr.bf16.mxu1 %v6770_v4  ;;  %v6839_v61 = vld [vmem:[%s9135_s1 + $0xc64] ss:$16 sps:$4 sm:$0xff]   ;;  %v6842_v4 = vld [vmem:[%s9135_s1 + $0xc6c] ss:$16 sps:$4 sm:$0xff]  }
 0x164   : > { %4817 = vmatpush1.bf16.msra.mxu0 %v6765_v7  ;;  %5204 = vmatpush1.bf16.msra.mxu1 %v6768_v62  ;;  %v6837_v7 = vld [vmem:[%s9135_s1 + $0xc60] ss:$16 sps:$4 sm:$0xff]   ;;  %v6840_v62 = vld [vmem:[%s9135_s1 + $0xc68] ss:$16 sps:$4 sm:$0xff]  }
 0x165   : > { %4818 = vmatprep.subr.bf16.mxu0 %v6773_v63  ;;  %5205 = vmatprep.subr.bf16.mxu1 %v6776_v0  ;;  %v6845_v63 = vld [vmem:[%s9135_s1 + $0xc84] ss:$16 sps:$4 sm:$0xff]   ;;  %v6848_v0 = vld [vmem:[%s9135_s1 + $0xc8c] ss:$16 sps:$4 sm:$0xff]  }
 0x168   : > { %4819 = vmatpush1.bf16.msra.mxu0 %v6771_v1  ;;  %5206 = vmatpush1.bf16.msra.mxu1 %v6774_v2  ;;  %v6843_v1 = vld [vmem:[%s9135_s1 + $0xc80] ss:$16 sps:$4 sm:$0xff]   ;;  %v6846_v2 = vld [vmem:[%s9135_s1 + $0xc88] ss:$16 sps:$4 sm:$0xff]  }
 0x169   : > { %4820 = vmatprep.subr.bf16.mxu0 %v6779_v6  ;;  %5207 = vmatprep.subr.bf16.mxu1 %v6782_v8  ;;  %v6851_v6 = vld [vmem:[%s9135_s1 + $0xca4] ss:$16 sps:$4 sm:$0xff]   ;;  %v6854_v8 = vld [vmem:[%s9135_s1 + $0xcac] ss:$16 sps:$4 sm:$0xff]  }
 0x16c   : > { %4821 = vmatpush1.bf16.msra.mxu0 %v6777_v9  ;;  %5208 = vmatpush1.bf16.msra.mxu1 %v6780_v10  ;;  %v6849_v9 = vld [vmem:[%s9135_s1 + $0xca0] ss:$16 sps:$4 sm:$0xff]   ;;  %v6852_v10 = vld [vmem:[%s9135_s1 + $0xca8] ss:$16 sps:$4 sm:$0xff]  }
 0x16d   : > { %4822 = vmatprep.subr.bf16.mxu0 %v6785_v11  ;;  %5209 = vmatprep.subr.bf16.mxu1 %v6788_v12  ;;  %v6857_v11 = vld [vmem:[%s9135_s1 + $0xcc4] ss:$16 sps:$4 sm:$0xff]   ;;  %v6860_v12 = vld [vmem:[%s9135_s1 + $0xccc] ss:$16 sps:$4 sm:$0xff]  }
 0x170   : > { %4823 = vmatpush1.bf16.msra.mxu0 %v6783_v13  ;;  %5210 = vmatpush1.bf16.msra.mxu1 %v6786_v14  ;;  %v6855_v13 = vld [vmem:[%s9135_s1 + $0xcc0] ss:$16 sps:$4 sm:$0xff]   ;;  %v6858_v14 = vld [vmem:[%s9135_s1 + $0xcc8] ss:$16 sps:$4 sm:$0xff]  }
 0x171   : > { %4824 = vmatprep.subr.bf16.mxu0 %v6791_v15  ;;  %5211 = vmatprep.subr.bf16.mxu1 %v6794_v16  ;;  %v6863_v15 = vld [vmem:[%s9135_s1 + $0xce4] ss:$16 sps:$4 sm:$0xff]   ;;  %v6866_v16 = vld [vmem:[%s9135_s1 + $0xcec] ss:$16 sps:$4 sm:$0xff]  }
 0x174   : > { %4825 = vmatpush1.bf16.msra.mxu0 %v6789_v19  ;;  %5212 = vmatpush1.bf16.msra.mxu1 %v6792_v20  ;;  %v6869_v19 = vld [vmem:[%s9135_s1 + $0xd04] ss:$16 sps:$4 sm:$0xff]   ;;  %v6872_v20 = vld [vmem:[%s9135_s1 + $0xd0c] ss:$16 sps:$4 sm:$0xff]  }
 0x175   : > { %4826 = vmatprep.subr.bf16.mxu0 %v6797_v21  ;;  %5213 = vmatprep.subr.bf16.mxu1 %v6800_v3  ;;  %v6867_v21 = vld [vmem:[%s9135_s1 + $0xd00] ss:$16 sps:$4 sm:$0xff]   ;;  %v6870_v3 = vld [vmem:[%s9135_s1 + $0xd08] ss:$16 sps:$4 sm:$0xff]  }
 0x178   : > { %4827 = vmatpush1.bf16.msra.mxu0 %v6795_v22  ;;  %5214 = vmatpush1.bf16.msra.mxu1 %v6798_v23  ;;  %v6875_v22 = vld [vmem:[%s9135_s1 + $0xd24] ss:$16 sps:$4 sm:$0xff]   ;;  %v6878_v23 = vld [vmem:[%s9135_s1 + $0xd2c] ss:$16 sps:$4 sm:$0xff]  }
 0x179   : > { %4828 = vmatprep.subr.bf16.mxu0 %v6803_v24  ;;  %5215 = vmatprep.subr.bf16.mxu1 %v6806_v25  ;;  %v5569_v24 = vld.sshfl [vmem:[#allocation2 + $0x10] sm:$0x5f pattern:$0x76325410] }
 0x17a   : > { %v5570_v25 = vld.sshfl [vmem:[#allocation2 + $0x18] sm:$0x5f pattern:$0x76325410]  ;;  %v958_v36 = vshrl.u32 %v5569_v24, 16  ;;  %v961_v57 = vshll.u32 %v5569_v24, 16 }
 0x17c   : > { %4829 = vmatpush1.bf16.msra.mxu0 %v6801_v29  ;;  %5216 = vmatpush1.bf16.msra.mxu1 %v6804_v30  ;;  %v6873_v29 = vld [vmem:[%s9135_s1 + $0xd20] ss:$16 sps:$4 sm:$0xff]  }
 0x17d   : > { %4830 = vmatprep.subr.bf16.mxu0 %v6809_v32  ;;  %5217 = vmatprep.subr.bf16.mxu1 %v6812_v33  ;;  %v5571_v30 = vld.sshfl [vmem:[#allocation2 + $0x20] sm:$0x5f pattern:$0x76325410]  ;;  %v6876_v32 = vld [vmem:[%s9135_s1 + $0xd28] ss:$16 sps:$4 sm:$0xff]  }
 0x17e   : > { %v5572_v33 = vld.sshfl [vmem:[#allocation2 + $0x28] sm:$0x5f pattern:$0x76325410] }
 0x17f   : > { %v1000_v53 = vshrl.u32 %v5572_v33, 16  ;;  %v1003_v40 = vshll.u32 %v5572_v33, 16 }
 0x180   : > { %4831 = vmatpush1.bf16.msra.mxu0 %v6807_v46  ;;  %5218 = vmatpush1.bf16.msra.mxu1 %v6810_v37  ;;  %v972_v46 = vshrl.u32 %v5570_v25, 16  ;;  %v975_v37 = vshll.u32 %v5570_v25, 16 }
 0x181   : > { %4832 = vmatprep.subr.bf16.mxu0 %v6815_v38  ;;  %5219 = vmatprep.subr.bf16.mxu1 %v6818_v39  ;;  %v986_v38 = vshrl.u32 %v5571_v30, 16  ;;  %v989_v39 = vshll.u32 %v5571_v30, 16 }
 0x184   : > { %4833 = vmatpush1.bf16.msra.mxu0 %v6813_v41  ;;  %5220 = vmatpush1.bf16.msra.mxu1 %v6816_v42  ;;  %v6879_v41 = vld [vmem:[%s9135_s1 + $0xd40] ss:$16 sps:$4 sm:$0xff]   ;;  %v6882_v42 = vld [vmem:[%s9135_s1 + $0xd48] ss:$16 sps:$4 sm:$0xff]  }
 0x185   : > { %4845 = vmatprep.subr.bf16.mxu0 %v6821_v43  ;;  %5232 = vmatprep.subr.bf16.mxu1 %v6824_v45  ;;  %v6887_v43 = vld [vmem:[%s9135_s1 + $0xd64] ss:$16 sps:$4 sm:$0xff]   ;;  %v6890_v45 = vld [vmem:[%s9135_s1 + $0xd6c] ss:$16 sps:$4 sm:$0xff]  }
 0x187   : > { %4835 = vmatmul.mubr.bf16.vlgmr.msra.gmra.mrb[0].mxu0 %v852_v51  ;;  %5222 = vmatmul.mubr.bf16.vlgmr.msra.gmra.mrb[0].mxu1 %v852_v51  ;;  %v932_v51 = vcombine.high %v5569_v24, %v5569_v24  ;;  %v6905_v24 = vld [vmem:[%s9135_s1 + $0xdc4] ss:$16 sps:$4 sm:$0xff]  }
 0x188   : > { %4846 = vmatpush1.bf16.msra.mxu0 %v6819_v52  ;;  %5233 = vmatpush1.bf16.msra.mxu1 %v6822_v54  ;;  %v940_v52 = vcombine.high %v5570_v25, %v5570_v25  ;;  %v960_v54 = vrot.slane %v958_v36, 6  ;;  %v6908_v25 = vld [vmem:[%s9135_s1 + $0xdcc] ss:$16 sps:$4 sm:$0xff]   ;;  %v6911_v36 = vld [vmem:[%s9135_s1 + $0xde4] ss:$16 sps:$4 sm:$0xff]  }
 0x189   : > { %4847 = vmatprep.subr.bf16.mxu0 %v6827_v55  ;;  %5234 = vmatprep.subr.bf16.mxu1 %v6830_v26  ;;  %v963_v55 = vrot.slane %v961_v57, 7  ;;  %v948_v26 = vcombine.high %v5571_v30, %v5571_v30 }
 0x18a   : > { %4877 = vmatprep.mubr.bf16.mxu0 %v912_v28  ;;  %5264 = vmatprep.mubr.bf16.mxu1 %v912_v28  ;;  %v956_v28 = vcombine.high %v5572_v33, %v5572_v33 }
 0x18c   : > { %4848 = vmatpush1.bf16.msra.mxu0 %v6825_v56  ;;  %5235 = vmatpush1.bf16.msra.mxu1 %v6828_v49  ;;  %v974_v56 = vrot.slane %v972_v46, 6  ;;  %v977_v49 = vrot.slane %v975_v37, 7  ;;  %v6909_v37 = vld [vmem:[%s9135_s1 + $0xde0] ss:$16 sps:$4 sm:$0xff]  }
 0x18d   : > { %4849 = vmatprep.subr.bf16.mxu0 %v6833_v27  ;;  %5236 = vmatprep.subr.bf16.mxu1 %v6836_v58  ;;  %v988_v27 = vrot.slane %v986_v38, 6  ;;  %v991_v58 = vrot.slane %v989_v39, 7  ;;  %v6912_v38 = vld [vmem:[%s9135_s1 + $0xde8] ss:$16 sps:$4 sm:$0xff]   ;;  %v6917_v39 = vld [vmem:[%s9135_s1 + $0xe04] ss:$16 sps:$4 sm:$0xff]  }
 0x190   : > { %4850 = vmatpush1.bf16.msra.mxu0 %v6831_v59  ;;  %5237 = vmatpush1.bf16.msra.mxu1 %v6834_v60  ;;  %v1002_v59 = vrot.slane %v1000_v53, 6  ;;  %v1005_v60 = vrot.slane %v1003_v40, 7  ;;  %v6920_v53 = vld [vmem:[%s9135_s1 + $0xe0c] ss:$16 sps:$4 sm:$0xff]  }
 0x191   : > { %4851 = vmatprep.subr.bf16.mxu0 %v6839_v61  ;;  %5238 = vmatprep.subr.bf16.mxu1 %v6842_v4  ;;  %v6885_v61 = vld [vmem:[%s9135_s1 + $0xd60] ss:$16 sps:$4 sm:$0xff]   ;;  %v6888_v4 = vld [vmem:[%s9135_s1 + $0xd68] ss:$16 sps:$4 sm:$0xff]  }
 0x194   : > { %4852 = vmatpush1.bf16.msra.mxu0 %v6837_v7  ;;  %5239 = vmatpush1.bf16.msra.mxu1 %v6840_v62  ;;  %v6893_v7 = vld [vmem:[%s9135_s1 + $0xd84] ss:$16 sps:$4 sm:$0xff]   ;;  %v6896_v62 = vld [vmem:[%s9135_s1 + $0xd8c] ss:$16 sps:$4 sm:$0xff]  }
 0x195   : > { %4853 = vmatprep.subr.bf16.mxu0 %v6845_v63  ;;  %5240 = vmatprep.subr.bf16.mxu1 %v6848_v0  ;;  %v964_v63 = vor.u32 %v963_v55, %v960_v54  ;;  %v967_v0 = vshll.u32 %v932_v51, 16  ;;  %v6923_v51 = vld [vmem:[%s9135_s1 + $0xe24] ss:$16 sps:$4 sm:$0xff]   ;;  %v6924_v54 = vld [vmem:[%s9135_s1 + $0xe28] ss:$16 sps:$4 sm:$0xff]  }
 0x196   : > { %v6929_v55 = vld [vmem:[%s9135_s1 + $0xe44] ss:$16 sps:$4 sm:$0xff]  }
 0x198   : > { %4854 = vmatpush1.bf16.msra.mxu0 %v6843_v1  ;;  %5241 = vmatpush1.bf16.msra.mxu1 %v6846_v2  ;;  %v978_v1 = vor.u32 %v977_v49, %v974_v56  ;;  %v981_v2 = vshll.u32 %v940_v52, 16  ;;  %v6921_v52 = vld [vmem:[%s9135_s1 + $0xe20] ss:$16 sps:$4 sm:$0xff]   ;;  %v6930_v56 = vld [vmem:[%s9135_s1 + $0xe48] ss:$16 sps:$4 sm:$0xff]  }
 0x199   : > { %4855 = vmatprep.subr.bf16.mxu0 %v6851_v6  ;;  %5242 = vmatprep.subr.bf16.mxu1 %v6854_v8  ;;  %v992_v6 = vor.u32 %v991_v58, %v988_v27  ;;  %v995_v8 = vshll.u32 %v948_v26, 16  ;;  %v6932_v26 = vld [vmem:[%s9135_s1 + $0xe4c] ss:$16 sps:$4 sm:$0xff]   ;;  %v6935_v49 = vld [vmem:[%s9135_s1 + $0xe64] ss:$16 sps:$4 sm:$0xff]  }
 0x19a   : > { %v6938_v27 = vld [vmem:[%s9135_s1 + $0xe6c] ss:$16 sps:$4 sm:$0xff]   ;;  %v6933_v58 = vld [vmem:[%s9135_s1 + $0xe60] ss:$16 sps:$4 sm:$0xff]  }
 0x19c   : > { %4856 = vmatpush1.bf16.msra.mxu0 %v6849_v9  ;;  %5243 = vmatpush1.bf16.msra.mxu1 %v6852_v10  ;;  %v1006_v9 = vor.u32 %v1005_v60, %v1002_v59  ;;  %v1009_v10 = vshll.u32 %v956_v28, 16  ;;  %v6927_v28 = vld [vmem:[%s9135_s1 + $0xe40] ss:$16 sps:$4 sm:$0xff]   ;;  %v6936_v59 = vld [vmem:[%s9135_s1 + $0xe68] ss:$16 sps:$4 sm:$0xff]  }
 0x19d   : > { %4857 = vmatprep.subr.bf16.mxu0 %v6857_v11  ;;  %5244 = vmatprep.subr.bf16.mxu1 %v6860_v12  ;;  %v6891_v11 = vld [vmem:[%s9135_s1 + $0xd80] ss:$16 sps:$4 sm:$0xff]   ;;  %v6894_v12 = vld [vmem:[%s9135_s1 + $0xd88] ss:$16 sps:$4 sm:$0xff]   ;;  %v6941_v60 = vld [vmem:[%s9135_s1 + $0xe84] ss:$16 sps:$4 sm:$0xff]  }
 0x1a0   : > { %4858 = vmatpush1.bf16.msra.mxu0 %v6855_v13  ;;  %5245 = vmatpush1.bf16.msra.mxu1 %v6858_v14  ;;  %v6899_v13 = vld [vmem:[%s9135_s1 + $0xda4] ss:$16 sps:$4 sm:$0xff]   ;;  %v6902_v14 = vld [vmem:[%s9135_s1 + $0xdac] ss:$16 sps:$4 sm:$0xff]  }
 0x1a1   : > { %4859 = vmatprep.subr.bf16.mxu0 %v6863_v15  ;;  %5246 = vmatprep.subr.bf16.mxu1 %v6866_v16  ;;  %v965_v15 = vrot.slane %v964_v63, 2  ;;  %v969_v16 = vrot.slane %v967_v0, 7  ;;  %v6950_v63 = vld [vmem:[%s9135_s1 + $0xeac] ss:$16 sps:$4 sm:$0xff]   ;;  %v6945_v0 = vld [vmem:[%s9135_s1 + $0xea0] ss:$16 sps:$4 sm:$0xff]  }
 0x1a4   : > { %4860 = vmatpush1.bf16.msra.mxu0 %v6861_v17  ;;  %5247 = vmatpush1.bf16.msra.mxu1 %v6864_v18  ;;  %v979_v17 = vrot.slane %v978_v1, 2  ;;  %v983_v18 = vrot.slane %v981_v2, 7  ;;  %v6948_v1 = vld [vmem:[%s9135_s1 + $0xea8] ss:$16 sps:$4 sm:$0xff]   ;;  %v6953_v2 = vld [vmem:[%s9135_s1 + $0xec4] ss:$16 sps:$4 sm:$0xff]  }
 0x1a5   : > { %4861 = vmatprep.subr.bf16.mxu0 %v6869_v19  ;;  %5248 = vmatprep.subr.bf16.mxu1 %v6872_v20  ;;  %v993_v19 = vrot.slane %v992_v6, 2  ;;  %v997_v20 = vrot.slane %v995_v8, 7  ;;  %v6956_v6 = vld [vmem:[%s9135_s1 + $0xecc] ss:$16 sps:$4 sm:$0xff]   ;;  %v6951_v8 = vld [vmem:[%s9135_s1 + $0xec0] ss:$16 sps:$4 sm:$0xff]  }
 0x1a6   : > { %v984_v30 = vsel %vm7560_vm15, %v979_v17, %v983_v18  ;;  %v6966_v17 = vld [vmem:[%s9135_s1 + $0xf08] ss:$16 sps:$4 sm:$0xff]   ;;  %v6971_v18 = vld [vmem:[%s9135_s1 + $0xf24] ss:$16 sps:$4 sm:$0xff]  }
 0x1a8   : > { %4862 = vmatpush1.bf16.msra.mxu0 %v6867_v21  ;;  %5249 = vmatpush1.bf16.msra.mxu1 %v6870_v3  ;;  %v1007_v21 = vrot.slane %v1006_v9, 2  ;;  %v1011_v3 = vrot.slane %v1009_v10, 7  ;;  %v6954_v9 = vld [vmem:[%s9135_s1 + $0xec8] ss:$16 sps:$4 sm:$0xff]   ;;  %v6959_v10 = vld [vmem:[%s9135_s1 + $0xee4] ss:$16 sps:$4 sm:$0xff]  }
 0x1a9   : > { %4863 = vmatprep.subr.bf16.mxu0 %v6875_v22  ;;  %5250 = vmatprep.subr.bf16.mxu1 %v6878_v23  ;;  %v6897_v22 = vld [vmem:[%s9135_s1 + $0xda0] ss:$16 sps:$4 sm:$0xff]   ;;  %v6900_v23 = vld [vmem:[%s9135_s1 + $0xda8] ss:$16 sps:$4 sm:$0xff]  }
 0x1aa   : > { %v1012_v33 = vsel %vm7560_vm15, %v1007_v21, %v1011_v3  ;;  %v6972_v21 = vld [vmem:[%s9135_s1 + $0xf28] ss:$16 sps:$4 sm:$0xff]   ;;  %v6977_v3 = vld [vmem:[%s9135_s1 + $0xf44] ss:$16 sps:$4 sm:$0xff]  }
 0x1ac   : > { %4864 = vmatpush1.bf16.msra.mxu0 %v6873_v29  ;;  %5251 = vmatpush1.bf16.msra.mxu1 %v6876_v32  ;;  %v970_v29 = vsel %vm7560_vm15, %v965_v15, %v969_v16  ;;  %v998_v32 = vsel %vm7560_vm15, %v993_v19, %v997_v20  ;;  %v6968_v15 = vld [vmem:[%s9135_s1 + $0xf0c] ss:$16 sps:$4 sm:$0xff]   ;;  %v6963_v16 = vld [vmem:[%s9135_s1 + $0xf00] ss:$16 sps:$4 sm:$0xff]  }
 0x1ad   : > { %4865 = vmatprep.subr.bf16.mxu0 %v6881_v34  ;;  %5252 = vmatprep.subr.bf16.mxu1 %v6884_v35  ;;  %v6903_v34 = vld [vmem:[%s9135_s1 + $0xdc0] ss:$16 sps:$4 sm:$0xff]   ;;  %v6906_v35 = vld [vmem:[%s9135_s1 + $0xdc8] ss:$16 sps:$4 sm:$0xff]   ;;  %v1013_v57 = vcombine.low %v970_v29, %v984_v30  ;;  %v1014_v46 = vcombine.low %v998_v32, %v1012_v33  ;;  %v6974_v19 = vld [vmem:[%s9135_s1 + $0xf2c] ss:$16 sps:$4 sm:$0xff]  }
 0x1ae   : > { %v6969_v20 = vld [vmem:[%s9135_s1 + $0xf20] ss:$16 sps:$4 sm:$0xff]   ;;  %v6986_v29 = vld [vmem:[%s9135_s1 + $0xf6c] ss:$16 sps:$4 sm:$0xff]  }
 0x1af   : > { %v8710_v40 = vrot.slane %v1013_v57, %v7416_v48  ;;  %v5573_v30 = vld.sshfl [vmem:[#allocation2 + $0x10] sm:$0x5a pattern:$0x76325410]  ;;  %v6992_v57 = vld [vmem:[%s9135_s1 + $0xf8c] ss:$16 sps:$4 sm:$0xff]  }
 0x1b0   : > { %4866 = vmatpush1.bf16.msra.mxu0 %v6879_v41  ;;  %5253 = vmatpush1.bf16.msra.mxu1 %v6882_v42  ;;  %v8713_v41 = vrot.slane %v1014_v46, %v7416_v48  ;;  %v911_v42 = vcombine.low %v8500_v47, %v8503_v50  ;;  %v6926_v47 = vld [vmem:[%s9135_s1 + $0xe2c] ss:$16 sps:$4 sm:$0xff]   ;;  %v6981_v33 = vld [vmem:[%s9135_s1 + $0xf60] ss:$16 sps:$4 sm:$0xff]   ;;  %v1050_v46 = vcombine.high %v5573_v30, %v5573_v30 }
 0x1b1   : > { %4867 = vmatprep.subr.bf16.mxu0 %v6887_v43  ;;  %5254 = vmatprep.subr.bf16.mxu1 %v6890_v45  ;;  %v6915_v43 = vld [vmem:[%s9135_s1 + $0xe00] ss:$16 sps:$4 sm:$0xff]   ;;  %v6918_v45 = vld [vmem:[%s9135_s1 + $0xe08] ss:$16 sps:$4 sm:$0xff]  }
 0x1b2   : > { %v1030_v50 = vcombine.high %v8710_v40, %v8713_v41  ;;  %v5574_v32 = vld.sshfl [vmem:[#allocation2 + $0x18] sm:$0x5a pattern:$0x76325410] }
 0x1b4   : > { %4868 = vmatpush1.bf16.msra.mxu0 %v6885_v61  ;;  %5255 = vmatpush1.bf16.msra.mxu1 %v6888_v4  ;;  %v6944_v61 = vld [vmem:[%s9135_s1 + $0xe8c] ss:$16 sps:$4 sm:$0xff]   ;;  %v6939_v4 = vld [vmem:[%s9135_s1 + $0xe80] ss:$16 sps:$4 sm:$0xff]  }
 0x1b5   : > { %4869 = vmatprep.subr.bf16.mxu0 %v6893_v7  ;;  %5256 = vmatprep.subr.bf16.mxu1 %v6896_v62  ;;  %v6942_v7 = vld [vmem:[%s9135_s1 + $0xe88] ss:$16 sps:$4 sm:$0xff]   ;;  %v6947_v62 = vld [vmem:[%s9135_s1 + $0xea4] ss:$16 sps:$4 sm:$0xff]  }
 0x1b8   : > { %4870 = vmatpush1.bf16.msra.mxu0 %v6891_v11  ;;  %5257 = vmatpush1.bf16.msra.mxu1 %v6894_v12  ;;  %v6962_v11 = vld [vmem:[%s9135_s1 + $0xeec] ss:$16 sps:$4 sm:$0xff]   ;;  %v6957_v12 = vld [vmem:[%s9135_s1 + $0xee0] ss:$16 sps:$4 sm:$0xff]  }
 0x1b9   : > { %4871 = vmatprep.subr.bf16.mxu0 %v6899_v13  ;;  %5258 = vmatprep.subr.bf16.mxu1 %v6902_v14  ;;  %v6960_v13 = vld [vmem:[%s9135_s1 + $0xee8] ss:$16 sps:$4 sm:$0xff]   ;;  %v6965_v14 = vld [vmem:[%s9135_s1 + $0xf04] ss:$16 sps:$4 sm:$0xff]  }
 0x1bc   : > { %4872 = vmatpush1.bf16.msra.mxu0 %v6897_v22  ;;  %5259 = vmatpush1.bf16.msra.mxu1 %v6900_v23  ;;  %v6980_v22 = vld [vmem:[%s9135_s1 + $0xf4c] ss:$16 sps:$4 sm:$0xff]   ;;  %v6975_v23 = vld [vmem:[%s9135_s1 + $0xf40] ss:$16 sps:$4 sm:$0xff]  }
 0x1bd   : > { %4873 = vmatprep.subr.bf16.mxu0 %v6905_v24  ;;  %5260 = vmatprep.subr.bf16.mxu1 %v6908_v25  ;;  %v6978_v24 = vld [vmem:[%s9135_s1 + $0xf48] ss:$16 sps:$4 sm:$0xff]   ;;  %v6983_v25 = vld [vmem:[%s9135_s1 + $0xf64] ss:$16 sps:$4 sm:$0xff]  }
 0x1c0   : > { %4874 = vmatpush1.bf16.msra.mxu0 %v6903_v34  ;;  %5261 = vmatpush1.bf16.msra.mxu1 %v6906_v35  ;;  %v5575_v34 = vld.sshfl [vmem:[#allocation2 + $0x20] sm:$0x5a pattern:$0x76325410]  ;;  %v6984_v35 = vld [vmem:[%s9135_s1 + $0xf68] ss:$16 sps:$4 sm:$0xff]  }
 0x1c1   : > { %4875 = vmatprep.subr.bf16.mxu0 %v6911_v36  ;;  %5262 = vmatprep.subr.bf16.mxu1 %v6914_v5  ;;  %v5576_v36 = vld.sshfl [vmem:[#allocation2 + $0x28] sm:$0x5a pattern:$0x76325410]  ;;  %v6989_v5 = vld [vmem:[%s9135_s1 + $0xf84] ss:$16 sps:$4 sm:$0xff]  }
 0x1c4   : > { %4876 = vmatpush1.bf16.msra.mxu0 %v6909_v37  ;;  %5263 = vmatpush1.bf16.msra.mxu1 %v6912_v38  ;;  %v1058_v37 = vcombine.high %v5574_v32, %v5574_v32  ;;  %v1066_v38 = vcombine.high %v5575_v34, %v5575_v34 }
 0x1c5   : > { %4888 = vmatprep.subr.bf16.mxu0 %v6917_v39  ;;  %5275 = vmatprep.subr.bf16.mxu1 %v6920_v53  ;;  %v1074_v39 = vcombine.high %v5576_v36, %v5576_v36  ;;  %v6987_v53 = vld [vmem:[%s9135_s1 + $0xf80] ss:$16 sps:$4 sm:$0xff]  }
 0x1c7   : > { %4878 = vmatmul.mubr.bf16.vlgmr.msra.gmra.mrb[0].mxu0 %v911_v42  ;;  %5265 = vmatmul.mubr.bf16.vlgmr.msra.gmra.mrb[0].mxu1 %v911_v42  ;;  %v6990_v42 = vld [vmem:[%s9135_s1 + $0xf88] ss:$16 sps:$4 sm:$0xff]  }
 0x1c8   : > { %4889 = vmatpush1.bf16.msra.mxu0 %v6915_v43  ;;  %5276 = vmatpush1.bf16.msra.mxu1 %v6918_v45  ;;  %v6995_v43 = vld [vmem:[%s9135_s1 + $0xfa4] ss:$16 sps:$4 sm:$0xff]   ;;  %v6998_v45 = vld [vmem:[%s9135_s1 + $0xfac] ss:$16 sps:$4 sm:$0xff]  }
 0x1c9   : > { %4890 = vmatprep.subr.bf16.mxu0 %v6923_v51  ;;  %5277 = vmatprep.subr.bf16.mxu1 %v6926_v47  ;;  %v5577_v51 = vrot.slane %v5573_v30, 9  ;;  %v1077_v47 = vrot.slane %v1050_v46, 7  ;;  %v7038_v30 = vld [vmem:[%s9135_s1 + $0x1088] ss:$16 sps:$4 sm:$0xff]  }
 0x1ca   : > { %4920 = vmatprep.mubr.bf16.mxu0 %v1030_v50  ;;  %5307 = vmatprep.mubr.bf16.mxu1 %v1030_v50  ;;  %v5578_v50 = vrot.slane %v5574_v32, 9  ;;  %v7043_v32 = vld [vmem:[%s9135_s1 + $0x10a4] ss:$16 sps:$4 sm:$0xff]   ;;  %v7050_v46 = vld [vmem:[%s9135_s1 + $0x10c8] ss:$16 sps:$4 sm:$0xff]  }
 0x1cc   : > { %4891 = vmatpush1.bf16.msra.mxu0 %v6921_v52  ;;  %5278 = vmatpush1.bf16.msra.mxu1 %v6924_v54  ;;  %v1081_v52 = vrot.slane %v1058_v37, 7  ;;  %v5579_v54 = vrot.slane %v5575_v34, 9  ;;  %v7041_v34 = vld [vmem:[%s9135_s1 + $0x10a0] ss:$16 sps:$4 sm:$0xff]   ;;  %v7055_v37 = vld [vmem:[%s9135_s1 + $0x10e4] ss:$16 sps:$4 sm:$0xff]  }
 0x1cd   : > { %4892 = vmatprep.subr.bf16.mxu0 %v6929_v55  ;;  %5279 = vmatprep.subr.bf16.mxu1 %v6932_v26  ;;  %v1085_v55 = vrot.slane %v1066_v38, 7  ;;  %v5580_v26 = vrot.slane %v5576_v36, 9  ;;  %v7049_v36 = vld [vmem:[%s9135_s1 + $0x10c4] ss:$16 sps:$4 sm:$0xff]   ;;  %v7058_v38 = vld [vmem:[%s9135_s1 + $0x10ec] ss:$16 sps:$4 sm:$0xff]  }
 0x1d0   : > { %4893 = vmatpush1.bf16.msra.mxu0 %v6927_v28  ;;  %5280 = vmatpush1.bf16.msra.mxu1 %v6930_v56  ;;  %v1089_v28 = vrot.slane %v1074_v39, 7  ;;  %v6993_v56 = vld [vmem:[%s9135_s1 + $0xfa0] ss:$16 sps:$4 sm:$0xff]  }
 0x1d1   : > { %4894 = vmatprep.subr.bf16.mxu0 %v6935_v49  ;;  %5281 = vmatprep.subr.bf16.mxu1 %v6938_v27  ;;  %v6996_v49 = vld [vmem:[%s9135_s1 + $0xfa8] ss:$16 sps:$4 sm:$0xff]   ;;  %v7001_v27 = vld [vmem:[%s9135_s1 + $0xfc4] ss:$16 sps:$4 sm:$0xff]   ;;  %v7053_v39 = vld [vmem:[%s9135_s1 + $0x10e0] ss:$16 sps:$4 sm:$0xff]  }
 0x1d4   : > { %4895 = vmatpush1.bf16.msra.mxu0 %v6933_v58  ;;  %5282 = vmatpush1.bf16.msra.mxu1 %v6936_v59  ;;  %v7004_v58 = vld [vmem:[%s9135_s1 + $0xfcc] ss:$16 sps:$4 sm:$0xff]   ;;  %v1078_v59 = vsel %vm7516_vm14, %v5577_v51, %v1077_v47  ;;  %v7062_v51 = vld [vmem:[%s9135_s1 + $0x1108] ss:$16 sps:$4 sm:$0xff]   ;;  %v7067_v47 = vld [vmem:[%s9135_s1 + $0x1124] ss:$16 sps:$4 sm:$0xff]  }
 0x1d5   : > { %4896 = vmatprep.subr.bf16.mxu0 %v6941_v60  ;;  %5283 = vmatprep.subr.bf16.mxu1 %v6944_v61  ;;  %v1082_v60 = vsel %vm7516_vm14, %v5578_v50, %v1081_v52  ;;  %v1086_v61 = vsel %vm7516_vm14, %v5579_v54, %v1085_v55  ;;  %v7070_v50 = vld [vmem:[%s9135_s1 + $0x112c] ss:$16 sps:$4 sm:$0xff]   ;;  %v7065_v52 = vld [vmem:[%s9135_s1 + $0x1120] ss:$16 sps:$4 sm:$0xff]   ;;  %v7068_v54 = vld [vmem:[%s9135_s1 + $0x1128] ss:$16 sps:$4 sm:$0xff]  }
 0x1d6   : > { %v7073_v55 = vld [vmem:[%s9135_s1 + $0x1144] ss:$16 sps:$4 sm:$0xff]  }
 0x1d8   : > { %4897 = vmatpush1.bf16.msra.mxu0 %v6939_v4  ;;  %5284 = vmatpush1.bf16.msra.mxu1 %v6942_v7  ;;  %v1090_v4 = vsel %vm7516_vm14, %v5580_v26, %v1089_v28  ;;  %v6999_v7 = vld [vmem:[%s9135_s1 + $0xfc0] ss:$16 sps:$4 sm:$0xff]   ;;  %v7076_v26 = vld [vmem:[%s9135_s1 + $0x114c] ss:$16 sps:$4 sm:$0xff]  }
 0x1d9   : > { %4898 = vmatprep.subr.bf16.mxu0 %v6947_v62  ;;  %5285 = vmatprep.subr.bf16.mxu1 %v6950_v63  ;;  %v7002_v62 = vld [vmem:[%s9135_s1 + $0xfc8] ss:$16 sps:$4 sm:$0xff]   ;;  %v7007_v63 = vld [vmem:[%s9135_s1 + $0xfe4] ss:$16 sps:$4 sm:$0xff]   ;;  %v7071_v28 = vld [vmem:[%s9135_s1 + $0x1140] ss:$16 sps:$4 sm:$0xff]  }
 0x1dc   : > { %4899 = vmatpush1.bf16.msra.mxu0 %v6945_v0  ;;  %5286 = vmatpush1.bf16.msra.mxu1 %v6948_v1  ;;  %v1091_v0 = vcombine.low %v1078_v59, %v1082_v60  ;;  %v1092_v1 = vcombine.low %v1086_v61, %v1090_v4  ;;  %v7080_v59 = vld [vmem:[%s9135_s1 + $0x1168] ss:$16 sps:$4 sm:$0xff]   ;;  %v7085_v60 = vld [vmem:[%s9135_s1 + $0x1184] ss:$16 sps:$4 sm:$0xff]   ;;  %v7088_v61 = vld [vmem:[%s9135_s1 + $0x118c] ss:$16 sps:$4 sm:$0xff]  }
 0x1dd   : > { %4900 = vmatprep.subr.bf16.mxu0 %v6953_v2  ;;  %5287 = vmatprep.subr.bf16.mxu1 %v6956_v6  ;;  %v7005_v2 = vld [vmem:[%s9135_s1 + $0xfe0] ss:$16 sps:$4 sm:$0xff]   ;;  %v7008_v6 = vld [vmem:[%s9135_s1 + $0xfe8] ss:$16 sps:$4 sm:$0xff]  }
 0x1de   : > { %v7083_v4 = vld [vmem:[%s9135_s1 + $0x1180] ss:$16 sps:$4 sm:$0xff]  }
 0x1e0   : > { %4901 = vmatpush1.bf16.msra.mxu0 %v6951_v8  ;;  %5288 = vmatpush1.bf16.msra.mxu1 %v6954_v9  ;;  %v7013_v8 = vld [vmem:[%s9135_s1 + $0x1004] ss:$16 sps:$4 sm:$0xff]   ;;  %v7016_v9 = vld [vmem:[%s9135_s1 + $0x100c] ss:$16 sps:$4 sm:$0xff]  }
 0x1e1   : > { %4902 = vmatprep.subr.bf16.mxu0 %v6959_v10  ;;  %5289 = vmatprep.subr.bf16.mxu1 %v6962_v11  ;;  %v8920_v10 = vrot.slane %v1091_v0, %v7416_v48  ;;  %v8923_v11 = vrot.slane %v1092_v1, %v7416_v48  ;;  %v7019_v48 = vld [vmem:[%s9135_s1 + $0x1024] ss:$16 sps:$4 sm:$0xff]   ;;  %v7092_v0 = vld [vmem:[%s9135_s1 + $0x11a8] ss:$16 sps:$4 sm:$0xff]  }
 0x1e2   : > { %v7097_v1 = vld [vmem:[%s9135_s1 + $0x11c4] ss:$16 sps:$4 sm:$0xff]  }
 0x1e4   : > { %4903 = vmatpush1.bf16.msra.mxu0 %v6957_v12  ;;  %5290 = vmatpush1.bf16.msra.mxu1 %v6960_v13  ;;  %v1029_v12 = vcombine.low %v8710_v40, %v8713_v41  ;;  %v7011_v13 = vld [vmem:[%s9135_s1 + $0x1000] ss:$16 sps:$4 sm:$0xff]   ;;  %v7022_v40 = vld [vmem:[%s9135_s1 + $0x102c] ss:$16 sps:$4 sm:$0xff]   ;;  %v1108_v41 = vcombine.high %v8920_v10, %v8923_v11 }
 0x1e5   : > { %4904 = vmatprep.subr.bf16.mxu0 %v6965_v14  ;;  %5291 = vmatprep.subr.bf16.mxu1 %v6968_v15  ;;  %v7014_v14 = vld [vmem:[%s9135_s1 + $0x1008] ss:$16 sps:$4 sm:$0xff]   ;;  %v7017_v15 = vld [vmem:[%s9135_s1 + $0x1020] ss:$16 sps:$4 sm:$0xff]  }
 0x1e8   : > { %4905 = vmatpush1.bf16.msra.mxu0 %v6963_v16  ;;  %5292 = vmatpush1.bf16.msra.mxu1 %v6966_v17  ;;  %v7020_v16 = vld [vmem:[%s9135_s1 + $0x1028] ss:$16 sps:$4 sm:$0xff]   ;;  %v7025_v17 = vld [vmem:[%s9135_s1 + $0x1044] ss:$16 sps:$4 sm:$0xff]  }
 0x1e9   : > { %4906 = vmatprep.subr.bf16.mxu0 %v6971_v18  ;;  %5293 = vmatprep.subr.bf16.mxu1 %v6974_v19  ;;  %v7028_v18 = vld [vmem:[%s9135_s1 + $0x104c] ss:$16 sps:$4 sm:$0xff]   ;;  %v7023_v19 = vld [vmem:[%s9135_s1 + $0x1040] ss:$16 sps:$4 sm:$0xff]  }
 0x1ec   : > { %4907 = vmatpush1.bf16.msra.mxu0 %v6969_v20  ;;  %5294 = vmatpush1.bf16.msra.mxu1 %v6972_v21  ;;  %v7026_v20 = vld [vmem:[%s9135_s1 + $0x1048] ss:$16 sps:$4 sm:$0xff]   ;;  %v7031_v21 = vld [vmem:[%s9135_s1 + $0x1064] ss:$16 sps:$4 sm:$0xff]  }
 0x1ed   : > { %4908 = vmatprep.subr.bf16.mxu0 %v6977_v3  ;;  %5295 = vmatprep.subr.bf16.mxu1 %v6980_v22  ;;  %v7034_v3 = vld [vmem:[%s9135_s1 + $0x106c] ss:$16 sps:$4 sm:$0xff]   ;;  %v7029_v22 = vld [vmem:[%s9135_s1 + $0x1060] ss:$16 sps:$4 sm:$0xff]  }
 0x1f0   : > { %4909 = vmatpush1.bf16.msra.mxu0 %v6975_v23  ;;  %5296 = vmatpush1.bf16.msra.mxu1 %v6978_v24  ;;  %v7032_v23 = vld [vmem:[%s9135_s1 + $0x1068] ss:$16 sps:$4 sm:$0xff]   ;;  %v7037_v24 = vld [vmem:[%s9135_s1 + $0x1084] ss:$16 sps:$4 sm:$0xff]  }
 0x1f1   : > { %4910 = vmatprep.subr.bf16.mxu0 %v6983_v25  ;;  %5297 = vmatprep.subr.bf16.mxu1 %v6986_v29  ;;  %v7040_v25 = vld [vmem:[%s9135_s1 + $0x108c] ss:$16 sps:$4 sm:$0xff]   ;;  %v7035_v29 = vld [vmem:[%s9135_s1 + $0x1080] ss:$16 sps:$4 sm:$0xff]  }
 0x1f4   : > { %4911 = vmatpush1.bf16.msra.mxu0 %v6981_v33  ;;  %5298 = vmatpush1.bf16.msra.mxu1 %v6984_v35  ;;  %v7046_v33 = vld [vmem:[%s9135_s1 + $0x10ac] ss:$16 sps:$4 sm:$0xff]   ;;  %v7044_v35 = vld [vmem:[%s9135_s1 + $0x10a8] ss:$16 sps:$4 sm:$0xff]  }
 0x1f5   : > { %4912 = vmatprep.subr.bf16.mxu0 %v6989_v5  ;;  %5299 = vmatprep.subr.bf16.mxu1 %v6992_v57  ;;  %v7052_v5 = vld [vmem:[%s9135_s1 + $0x10cc] ss:$16 sps:$4 sm:$0xff]   ;;  %v7047_v57 = vld [vmem:[%s9135_s1 + $0x10c0] ss:$16 sps:$4 sm:$0xff]  }
 0x1f8   : > { %4913 = vmatpush1.bf16.msra.mxu0 %v6987_v53  ;;  %5300 = vmatpush1.bf16.msra.mxu1 %v6990_v42  ;;  %v7056_v53 = vld [vmem:[%s9135_s1 + $0x10e8] ss:$16 sps:$4 sm:$0xff]   ;;  %v7061_v42 = vld [vmem:[%s9135_s1 + $0x1104] ss:$16 sps:$4 sm:$0xff]  }
 0x1f9   : > { %4914 = vmatprep.subr.bf16.mxu0 %v6995_v43  ;;  %5301 = vmatprep.subr.bf16.mxu1 %v6998_v45  ;;  %v7064_v43 = vld [vmem:[%s9135_s1 + $0x110c] ss:$16 sps:$4 sm:$0xff]   ;;  %v7059_v45 = vld [vmem:[%s9135_s1 + $0x1100] ss:$16 sps:$4 sm:$0xff]  }
 0x1fc   : > { %4915 = vmatpush1.bf16.msra.mxu0 %v6993_v56  ;;  %5302 = vmatpush1.bf16.msra.mxu1 %v6996_v49  ;;  %v7074_v56 = vld [vmem:[%s9135_s1 + $0x1148] ss:$16 sps:$4 sm:$0xff]   ;;  %v7079_v49 = vld [vmem:[%s9135_s1 + $0x1164] ss:$16 sps:$4 sm:$0xff]  }
 0x1fd   : > { %4916 = vmatprep.subr.bf16.mxu0 %v7001_v27  ;;  %5303 = vmatprep.subr.bf16.mxu1 %v7004_v58  ;;  %v7082_v27 = vld [vmem:[%s9135_s1 + $0x116c] ss:$16 sps:$4 sm:$0xff]   ;;  %v7077_v58 = vld [vmem:[%s9135_s1 + $0x1160] ss:$16 sps:$4 sm:$0xff]  }
 0x200   : > { %4917 = vmatpush1.bf16.msra.mxu0 %v6999_v7  ;;  %5304 = vmatpush1.bf16.msra.mxu1 %v7002_v62  ;;  %v7086_v7 = vld [vmem:[%s9135_s1 + $0x1188] ss:$16 sps:$4 sm:$0xff]   ;;  %v7091_v62 = vld [vmem:[%s9135_s1 + $0x11a4] ss:$16 sps:$4 sm:$0xff]  }
 0x201   : > { %4918 = vmatprep.subr.bf16.mxu0 %v7007_v63  ;;  %5305 = vmatprep.subr.bf16.mxu1 %v7010_v31  ;;  %v7094_v63 = vld [vmem:[%s9135_s1 + $0x11ac] ss:$16 sps:$4 sm:$0xff]   ;;  %v7089_v31 = vld [vmem:[%s9135_s1 + $0x11a0] ss:$16 sps:$4 sm:$0xff]  }
 0x204   : > { %4919 = vmatpush1.bf16.msra.mxu0 %v7005_v2  ;;  %5306 = vmatpush1.bf16.msra.mxu1 %v7008_v6  ;;  %v7100_v2 = vld [vmem:[%s9135_s1 + $0x11cc] ss:$16 sps:$4 sm:$0xff]   ;;  %v7095_v6 = vld [vmem:[%s9135_s1 + $0x11c0] ss:$16 sps:$4 sm:$0xff]  }
 0x205   : > { %4931 = vmatprep.subr.bf16.mxu0 %v7013_v8  ;;  %5318 = vmatprep.subr.bf16.mxu1 %v7016_v9  ;;  %v7098_v8 = vld [vmem:[%s9135_s1 + $0x11c8] ss:$16 sps:$4 sm:$0xff]   ;;  %v7103_v9 = vld [vmem:[%s9135_s1 + $0x11e4] ss:$16 sps:$4 sm:$0xff]  }
 0x207   : > { %4921 = vmatmul.mubr.bf16.vlgmr.msra.gmra.mrb[0].mxu0 %v1029_v12  ;;  %5308 = vmatmul.mubr.bf16.vlgmr.msra.gmra.mrb[0].mxu1 %v1029_v12  ;;  %v7106_v12 = vld [vmem:[%s9135_s1 + $0x11ec] ss:$16 sps:$4 sm:$0xff]  }
 0x208   : > { %4932 = vmatpush1.bf16.msra.mxu0 %v7011_v13  ;;  %5319 = vmatpush1.bf16.msra.mxu1 %v7014_v14  ;;  %v7101_v13 = vld [vmem:[%s9135_s1 + $0x11e0] ss:$16 sps:$4 sm:$0xff]   ;;  %v7104_v14 = vld [vmem:[%s9135_s1 + $0x11e8] ss:$16 sps:$4 sm:$0xff]  }
 0x209   : > { %4933 = vmatprep.subr.bf16.mxu0 %v7019_v48  ;;  %5320 = vmatprep.subr.bf16.mxu1 %v7022_v40  ;;  %v1107_v48 = vcombine.low %v8920_v10, %v8923_v11  ;;  %v5365_v40 = vsub.s32 0, %v7407_v44  ;;  %v5391_v10 = vld [vmem:[%s9137_s3] sm:$0xf] }
 0x20a   : > { %4963 = vmatprep.mubr.bf16.mxu0 %v1108_v41  ;;  %5350 = vmatprep.mubr.bf16.mxu1 %v1108_v41  ;;  %v5373_v41 = vsub.s32 2, %v7407_v44 }
 0x20c   : > { %4934 = vmatpush1.bf16.msra.mxu0 %v7017_v15  ;;  %5321 = vmatpush1.bf16.msra.mxu1 %v7020_v16  ;;  %v5361_v15 = vld [vmem:[%s9136_s2] sm:$0xf]  ;;  %v5369_v16 = vsub.s32 1, %v7407_v44 }
 0x20d   : > { %4935 = vmatprep.subr.bf16.mxu0 %v7025_v17  ;;  %5322 = vmatprep.subr.bf16.mxu1 %v7028_v18  ;;  %v5377_v17 = vsub.s32 3, %v7407_v44  ;;  %v5366_v11 = vrot.slane %v5361_v15, %v5365_v40  ;;  %v5374_v18 = vrot.slane %v5361_v15, %v5373_v41 }
 0x210   : > { %4936 = vmatpush1.bf16.msra.mxu0 %v7023_v19  ;;  %5323 = vmatpush1.bf16.msra.mxu1 %v7026_v20  ;;  %v5370_v19 = vrot.slane %v5361_v15, %v5369_v16  ;;  %v5378_v20 = vrot.slane %v5361_v15, %v5377_v17 }
 0x211   : > { %4937 = vmatprep.subr.bf16.mxu0 %v7031_v21  ;;  %5324 = vmatprep.subr.bf16.mxu1 %v7034_v3  ;;  %v5396_v21 = vrot.slane %v5391_v10, %v5365_v40  ;;  %v5404_v3 = vrot.slane %v5391_v10, %v5373_v41 }
 0x214   : > { %4938 = vmatpush1.bf16.msra.mxu0 %v7029_v22  ;;  %5325 = vmatpush1.bf16.msra.mxu1 %v7032_v23 }
 0x215   : > { %4939 = vmatprep.subr.bf16.mxu0 %v7037_v24  ;;  %5326 = vmatprep.subr.bf16.mxu1 %v7040_v25  ;;  %v5400_v24 = vrot.slane %v5391_v10, %v5369_v16  ;;  %v5408_v25 = vrot.slane %v5391_v10, %v5377_v17 }
 0x218   : > { %4940 = vmatpush1.bf16.msra.mxu0 %v7035_v29  ;;  %5327 = vmatpush1.bf16.msra.mxu1 %v7038_v30 }
 0x219   : > { %4941 = vmatprep.subr.bf16.mxu0 %v7043_v32  ;;  %5328 = vmatprep.subr.bf16.mxu1 %v7046_v33 }
 0x21c   : > { %4942 = vmatpush1.bf16.msra.mxu0 %v7041_v34  ;;  %5329 = vmatpush1.bf16.msra.mxu1 %v7044_v35 }
 0x21d   : > { %4943 = vmatprep.subr.bf16.mxu0 %v7049_v36  ;;  %5330 = vmatprep.subr.bf16.mxu1 %v7052_v5 }
 0x220   : > { %4944 = vmatpush1.bf16.msra.mxu0 %v7047_v57  ;;  %5331 = vmatpush1.bf16.msra.mxu1 %v7050_v46 }
 0x221   : > { %4945 = vmatprep.subr.bf16.mxu0 %v7055_v37  ;;  %5332 = vmatprep.subr.bf16.mxu1 %v7058_v38 }
 0x224   : > { %4946 = vmatpush1.bf16.msra.mxu0 %v7053_v39  ;;  %5333 = vmatpush1.bf16.msra.mxu1 %v7056_v53 }
 0x225   : > { %4947 = vmatprep.subr.bf16.mxu0 %v7061_v42  ;;  %5334 = vmatprep.subr.bf16.mxu1 %v7064_v43 }
 0x228   : > { %4948 = vmatpush1.bf16.msra.mxu0 %v7059_v45  ;;  %5335 = vmatpush1.bf16.msra.mxu1 %v7062_v51 }
 0x229   : > { %4949 = vmatprep.subr.bf16.mxu0 %v7067_v47  ;;  %5336 = vmatprep.subr.bf16.mxu1 %v7070_v50 }
 0x22c   : > { %4950 = vmatpush1.bf16.msra.mxu0 %v7065_v52  ;;  %5337 = vmatpush1.bf16.msra.mxu1 %v7068_v54 }
 0x22d   : > { %4951 = vmatprep.subr.bf16.mxu0 %v7073_v55  ;;  %5338 = vmatprep.subr.bf16.mxu1 %v7076_v26 }
 0x230   : > { %4952 = vmatpush1.bf16.msra.mxu0 %v7071_v28  ;;  %5339 = vmatpush1.bf16.msra.mxu1 %v7074_v56 }
 0x231   : > { %4953 = vmatprep.subr.bf16.mxu0 %v7079_v49  ;;  %5340 = vmatprep.subr.bf16.mxu1 %v7082_v27 }
 0x234   : > { %4954 = vmatpush1.bf16.msra.mxu0 %v7077_v58  ;;  %5341 = vmatpush1.bf16.msra.mxu1 %v7080_v59 }
 0x235   : > { %4955 = vmatprep.subr.bf16.mxu0 %v7085_v60  ;;  %5342 = vmatprep.subr.bf16.mxu1 %v7088_v61 }
 0x238   : > { %4956 = vmatpush1.bf16.msra.mxu0 %v7083_v4  ;;  %5343 = vmatpush1.bf16.msra.mxu1 %v7086_v7 }
 0x239   : > { %4957 = vmatprep.subr.bf16.mxu0 %v7091_v62  ;;  %5344 = vmatprep.subr.bf16.mxu1 %v7094_v63 }
 0x23c   : > { %4958 = vmatpush1.bf16.msra.mxu0 %v7089_v31  ;;  %5345 = vmatpush1.bf16.msra.mxu1 %v7092_v0 }
 0x23d   : > { %4959 = vmatprep.subr.bf16.mxu0 %v7097_v1  ;;  %5346 = vmatprep.subr.bf16.mxu1 %v7100_v2 }
 0x240   : > { %4960 = vmatpush1.bf16.msra.mxu0 %v7095_v6  ;;  %5347 = vmatpush1.bf16.msra.mxu1 %v7098_v8 }
 0x241   : > { %4961 = vmatprep.subr.bf16.mxu0 %v7103_v9  ;;  %5348 = vmatprep.subr.bf16.mxu1 %v7106_v12 }
 0x244   : > { %4962 = vmatpush1.bf16.msra.mxu0 %v7101_v13  ;;  %5349 = vmatpush1.bf16.msra.mxu1 %v7104_v14 }
 0x247   : > { %4964 = vmatmul.mubr.bf16.vlgmr.msra.gmra.mrb[0].mxu0 %v1107_v48  ;;  %5351 = vmatmul.mubr.bf16.vlgmr.msra.gmra.mrb[0].mxu1 %v1107_v48 }
 0x31a   : > { %v4965_v22 = vpop.f32.mrb[0].mxu0  ;;  %v5352_v23 = vpop.f32.mrb[0].mxu1 }
 0x31b   : > { %v5383_v29 = vmul.f32 %v5366_v11, %v4965_v22  ;;  %v5385_v30 = vmul.f32 %v5374_v18, %v5352_v23  ;;  %v4967_v32 = vpop.f32.mrb[1].mxu0  ;;  %v5354_v33 = vpop.f32.mrb[1].mxu1 }
 0x31c   : > { %v5384_v34 = vmul.f32 %v5370_v19, %v4967_v32  ;;  %v5386_v44 = vmul.f32 %v5378_v20, %v5354_v33  ;;  %v4969_v35 = vpop.f32.mrb[2].mxu0  ;;  %v5356_v36 = vpop.f32.mrb[2].mxu1 }
 0x31d   : > { %v5413_v5 = vadd.f32 %v5396_v21, %v5383_v29  ;;  %v5415_v57 = vadd.f32 %v5404_v3, %v5385_v30  ;;  %v5387_v46 = vmul.f32 %v5366_v11, %v4969_v35  ;;  %v5389_v37 = vmul.f32 %v5374_v18, %v5356_v36  ;;  %v4971_v38 = vpop.f32.mrb[3].mxu0  ;;  %v5358_v39 = vpop.f32.mrb[3].mxu1 }
 0x31e   : > { %v5414_v53 = vadd.f32 %v5400_v24, %v5384_v34  ;;  %v5416_v42 = vadd.f32 %v5408_v25, %v5386_v44  ;;  %v5388_v43 = vmul.f32 %v5370_v19, %v4971_v38  ;;  %v5390_v45 = vmul.f32 %v5378_v20, %v5358_v39 }
 0x31f   : > { %v5421_v51 = vmul.f32 0.1, %v5413_v5  ;;  %v5423_v47 = vmul.f32 0.1, %v5415_v57  ;;  %v5417_v50 = vadd.f32 %v5396_v21, %v5387_v46  ;;  %v5419_v52 = vadd.f32 %v5404_v3, %v5389_v37 }
 0x320   : > { %v5422_v54 = vmul.f32 0.1, %v5414_v53  ;;  %v5424_v55 = vmul.f32 0.1, %v5416_v42  ;;  %v5418_v26 = vadd.f32 %v5400_v24, %v5388_v43  ;;  %v5420_v28 = vadd.f32 %v5408_v25, %v5390_v45 }
 0x321   : > { %v5429_v56 = vmax.f32 %v5413_v5, %v5421_v51  ;;  %v5431_v49 = vmax.f32 %v5415_v57, %v5423_v47  ;;  %v5425_v27 = vmul.f32 0.1, %v5417_v50  ;;  %v5427_v58 = vmul.f32 0.1, %v5419_v52 }
 0x322   : > { %v5430_v59 = vmax.f32 %v5414_v53, %v5422_v54  ;;  %v5432_v60 = vmax.f32 %v5416_v42, %v5424_v55  ;;  %v5426_v61 = vmul.f32 0.1, %v5418_v26  ;;  %v5428_v4 = vmul.f32 0.1, %v5420_v28 }
 0x323   : > { %v5433_v7 = vmax.f32 %v5417_v50, %v5425_v27  ;;  %v5435_v62 = vmax.f32 %v5419_v52, %v5427_v58 }
 0x324   : > { %v6165_v63 = vpack.c.bf16 %v5430_v59, %v5429_v56  ;;  %v6166_v31 = vpack.c.bf16 %v5432_v60, %v5431_v49  ;;  %v5434_v0 = vmax.f32 %v5418_v26, %v5426_v61  ;;  %v5436_v1 = vmax.f32 %v5420_v28, %v5428_v4 }
 0x326   : > { %5461 = vst [vmem:[%s197_s13] sm:$0xff] %v6165_v63  ;;  %5462 = vst [vmem:[%s197_s13 + $0x8] sm:$0xff] %v6166_v31  ;;  %v6167_v2 = vpack.c.bf16 %v5434_v0, %v5433_v7  ;;  %v6168_v6 = vpack.c.bf16 %v5436_v1, %v5435_v62 }
 0x328   : > { %5463 = vst [vmem:[%s197_s13 + $0x10] sm:$0xff] %v6167_v2  ;;  %5464 = vst [vmem:[%s197_s13 + $0x18] sm:$0xff] %v6168_v6 }
 0x329 PF: > { %s14_s15 = sadd.s32 1, %s7113_s15  }
 0x32a   : > { %p11_p4 = scmp.ge.s32.totalorder %s14_s15, 4  }
 0x32c   :  { %13 = sbr.rel (!%p11_p4) target bundleno = 1 (0x1), region = 69 }

// kernel: yolo_body_forward.10
= control target key start
LH: loop header
LB: loop body
LE: loop exit
PB: predicated region body
PF: predicated region fallthrough
CT: control target
= control target key end

     0   :  { %10 = vsyncpa [#allocation5], 0  ;;  %s9385_s0 = inlined_call_operand.vmem [shape: bf16[2,8,8,256], index: 0, kind: input, shape index: {}]   ;;  %s9386_s1 = inlined_call_operand.vmem [shape: bf16[2,4,4,128], index: 1, kind: input, shape index: {}]   ;;  %s9387_s2 = inlined_call_operand.hbm [shape: bf16[3456,256], index: 2, kind: input, shape index: {}]   ;;  %s9388_s3 = inlined_call_operand.hbm [shape: f32[1,256], index: 3, kind: input, shape index: {}]   ;;  %s9389_s4 = inlined_call_operand.hbm [shape: f32[1,256], index: 4, kind: input, shape index: {}]   ;;  %s9390_s5 = inlined_call_operand.vmem [shape: bf16[2,64,256], index: 5, kind: output, shape index: {}]  }
   0x1   :  { %11 = vsyncpa [#allocation7], 0  ;;  %s8260_s18 = smov 0  }
   0x2 LB: > { %s8224_s19 = smov [#allocation6]   ;;  %s8266_s21 = sadd.s32 4294967295, %s8222_s18   ;;  %s8222_s18 = sphi %s8260_s18, %s17_s18  }
   0x3   : > { %s189_s20 = sshll.u32 %s8224_s19, 4  ;;  %p6570_p0 = scmp.ge.s32.totalorder %s8222_s18, 1  ;;  %s190_s20 = int_to_ptr.vmem [resolvable:$true] %s189_s20 }
   0x4   : > { %p163_p1 = scmp.lt.s32.totalorder %s8222_s18, 3  ;;  %p9391_p2 = scmp.eq.s32.totalorder %s8266_s21, 0 }
   0x5   : > { %s8225_s23 = smov [#allocation4]   ;;  %s8226_s26 = smov [#allocation8]  }
   0x6   : > { %p8271_p3 = pnand %p6570_p0, %p163_p1  ;;  %s175_s24 = sshll.u32 %s8225_s23, 4  ;;  %s8283_s24 = int_to_ptr.vmem [resolvable:$true] %s175_s24 }
   0x7   : > { %s200_s27 = sshll.u32 %s8226_s26, 4  ;;  %s8124_s30 = scalar_lea.hbm %s9388_s3, 32  ;;  %s8285_s27 = int_to_ptr.vmem [resolvable:$true] %s200_s27 }
   0x8   : > { %s9393_s22 = scalar_select %p8271_p3, 1, 0 }
   0x9   : > { %p7418_p4 = pneg %p8271_p3  ;;  %p8125_p6 = scmp.ne.s32.totalorder %s9388_s3, %s8124_s30 }
   0xa   : > { %p8131_p10 = scmp.lt.u32.totalorder %s8124_s30, %s9388_s3 }
   0xb   : > { %p8279_p5 = pnand %p9391_p2, %p7418_p4 }
   0xd   : > { %p8295_p7 = pneg %p8279_p5 }
   0xf   : > { %p8127_p8 = pnand %p8295_p7, %p8125_p6 }
  0x11   : > { %p8128_p9 = pneg %p8127_p8 }
  0x13   : > { %p8133_p11 = pnand %p8131_p10, %p8128_p9 }
  0x15   : > { %8136 = shalt.err (!%p8133_p11)
}
  0x16   : > { %s8137_s11 = scalar_lea.vmem %s190_s20, 32  ;;  %p8145_p1 = scmp.lt.s32.totalorder %s190_s20, %s190_s20 }
  0x17   : > { %p8138_p12 = scmp.ne.s32.totalorder %s190_s20, %s8137_s11  ;;  %p8146_p4 = scmp.lt.s32.totalorder %s8137_s11, %s8137_s11 }
  0x19   : > { %p8140_p13 = pnand %p8138_p12, %p8295_p7  ;;  %p8147_p2 = por %p8146_p4, %p8145_p1 }
  0x1b   : > { %p8141_p0 = pneg %p8140_p13 }
  0x1d   : > { %p8148_p3 = pnand %p8147_p2, %p8141_p0 }
  0x1f   : > { %8151 = shalt.err (!%p8148_p3)
}
  0x20   : > { %7424 = dma.hbm_to_vmem [thread:$0]  (!%p8279_p5), %s9388_s3, 32, %s190_s20, [#allocation7]  }
  0x21   : > { %s8152_s16 = scalar_lea.hbm %s9387_s2, 55296 }
  0x22   : > { %p8153_p6 = scmp.ne.s32.totalorder %s9387_s2, %s8152_s16  ;;  %p8159_p2 = scmp.lt.u32.totalorder %s8152_s16, %s9387_s2 }
  0x24   : > { %p8155_p8 = pnand %p8153_p6, %p8295_p7 }
  0x26   : > { %p8156_p9 = pneg %p8155_p8 }
  0x28   : > { %p8161_p3 = pnand %p8159_p2, %p8156_p9 }
  0x2a   : > { %8164 = shalt.err (!%p8161_p3)
}
  0x2b   : > { %s8165_s20 = scalar_lea.vmem %s8283_s24, 55296  ;;  %p8173_p13 = scmp.lt.s32.totalorder %s8283_s24, %s8283_s24 }
  0x2c   : > { %p8166_p10 = scmp.ne.s32.totalorder %s8283_s24, %s8165_s20  ;;  %p8174_p0 = scmp.lt.s32.totalorder %s8165_s20, %s8165_s20 }
  0x2e   : > { %p8168_p11 = pnand %p8166_p10, %p8295_p7  ;;  %p8175_p1 = por %p8174_p0, %p8173_p13 }
  0x30   : > { %p8169_p12 = pneg %p8168_p11 }
  0x32   : > { %p8176_p4 = pnand %p8175_p1, %p8169_p12 }
  0x34   : > { %8179 = shalt.err (!%p8176_p4)
}
  0x35   : > { %s8227_s28 = smov 128   ;;  %s8228_s29 = smov 8  }
  0x36   : > { %7421 = dma.hbm_to_vmem [thread:$0]  (!%p8279_p5), %s9387_s2, 55296, %s8283_s24, [#allocation5], %s8227_s28, %s8227_s28, %s8228_s29  }
  0x37   : > { %s8180_s10 = scalar_lea.hbm %s9389_s4, 32 }
  0x38   : > { %p8181_p6 = scmp.ne.s32.totalorder %s9389_s4, %s8180_s10  ;;  %p8187_p2 = scmp.lt.u32.totalorder %s8180_s10, %s9389_s4 }
  0x3a   : > { %p8183_p8 = pnand %p8181_p6, %p8295_p7 }
  0x3c   : > { %p8184_p9 = pneg %p8183_p8 }
  0x3e   : > { %p8189_p3 = pnand %p8187_p2, %p8184_p9 }
  0x40   : > { %8192 = shalt.err (!%p8189_p3)
}
  0x41   : > { %s8193_s24 = scalar_lea.vmem %s8285_s27, 32  ;;  %p8201_p13 = scmp.lt.s32.totalorder %s8285_s27, %s8285_s27 }
  0x42   : > { %p8194_p10 = scmp.ne.s32.totalorder %s8285_s27, %s8193_s24  ;;  %p8202_p0 = scmp.lt.s32.totalorder %s8193_s24, %s8193_s24 }
  0x44   : > { %p8196_p11 = pnand %p8194_p10, %p8295_p7  ;;  %p8203_p1 = por %p8202_p0, %p8201_p13 }
  0x46   : > { %p8197_p12 = pneg %p8196_p11 }
  0x48   : > { %p8204_p4 = pnand %p8203_p1, %p8197_p12 }
  0x4a   : > { %8207 = shalt.err (!%p8204_p4)
}
  0x4b   : > { %7427 = dma.hbm_to_vmem [thread:$0]  (!%p8279_p5), %s9389_s4, 32, %s8285_s27, [#allocation7]  }
  0x4c   : > { %p9396_p6 = scmp.ne.s32.totalorder %s9393_s22, 0 }
  0x4d   : > { %p9397_p8 = scmp.eq.s32.totalorder (!%p9396_p6), %s8266_s21, 0 }
  0x4e   : > { %229 = sbr.rel (%p9396_p6) target bundleno = 825 (0x339), region = 40 }
  0x55   : > { %8213 = dma.done.wait (%p9397_p8), [#allocation5], 55296   ;;  %p9398_p7 = pmov %p9397_p8 }
  0x57   : > { %8215 = vsyncadd (%p9398_p7), [#allocation5], 4294912000  ;;  %p9399_p9 = pmov %p9398_p7 }
  0x58   : > { %p9400_p2 = pmov %p9398_p7 }
  0x59   : > { %8217 = dma.done.wait (%p9399_p9), [#allocation7], 64  }
  0x5a   : > { %8219 = vsyncadd (%p9400_p2), [#allocation7], 4294967232  ;;  %v8229_v0 = vmov 0   ;;  %v7448_v1 = vld [vmem:[#allocation4 + $0x4] ss:$8 sps:$4 sm:$0xff]   ;;  %vm295_vm0 = vcmask 1040384   ;;  %v576_v53 = vlaneseq }
  0x5b   : > { %286 = vst [vmem:[#allocation2] sm:$0xff] %v8229_v0  ;;  %287 = vst [vmem:[#allocation2 + $0x8] sm:$0xf] %v8229_v0  ;;  %v7450_v2 = vld [vmem:[#allocation4 + $0x704] ss:$8 sps:$4 sm:$0xff]   ;;  %5304 = vmatprep.subr.bf16.mxu1 %v7448_v1  ;;  %vm298_vm3 = vcmask 1044484  }
  0x5c   : > { %288 = vst [vmem:[#allocation2 + $0xc] sm:$0x11] %v8229_v0  ;;  %289 = vst [vmem:[#allocation2 + $0x14] sm:$0x1] %v8229_v0  ;;  %v7452_v3 = vld [vmem:[#allocation4] ss:$8 sps:$4 sm:$0xff]   ;;  %5815 = vmatprep.subr.bf16.mxu0 %v7450_v2 }
  0x5d   : > { %291 = vst [vmem:[#allocation2 + $0xd8] sm:$0xff] %v8229_v0  ;;  %292 = vst [vmem:[#allocation2 + $0xe0] sm:$0xf] %v8229_v0  ;;  %v7453_v4 = vld [vmem:[#allocation4 + $0x700] ss:$8 sps:$4 sm:$0xff]   ;;  %5305 = vmatpush1.bf16.msra.mxu1 %v7452_v3  ;;  %p270_p5 = scmp.lt.s32.totalorder %s8266_s21, 1 }
  0x5e   : > { %293 = vst [vmem:[#allocation2 + $0xe4] sm:$0x11] %v8229_v0  ;;  %294 = vst [vmem:[#allocation2 + $0xec] sm:$0x1] %v8229_v0  ;;  %v7454_v5 = vld [vmem:[#allocation4 + $0x14] ss:$8 sps:$4 sm:$0xff]   ;;  %5816 = vmatpush1.bf16.msra.mxu0 %v7453_v4 }
  0x5f   : > { %v7456_v6 = vld [vmem:[#allocation4 + $0x714] ss:$8 sps:$4 sm:$0xff]   ;;  %v7458_v7 = vld [vmem:[#allocation4 + $0x10] ss:$8 sps:$4 sm:$0xff]   ;;  %5306 = vmatprep.subr.bf16.mxu1 %v7454_v5  ;;  %v7460_v9 = vld [vmem:[#allocation4 + $0x24] ss:$8 sps:$4 sm:$0xff]  }
  0x60   : > { %v7459_v8 = vld [vmem:[#allocation4 + $0x710] ss:$8 sps:$4 sm:$0xff]   ;;  %5817 = vmatprep.subr.bf16.mxu0 %v7456_v6  ;;  %v7462_v10 = vld [vmem:[#allocation4 + $0x724] ss:$8 sps:$4 sm:$0xff]   ;;  %v7464_v11 = vld [vmem:[#allocation4 + $0x20] ss:$8 sps:$4 sm:$0xff]  }
  0x61   : > { %v7465_v12 = vld [vmem:[#allocation4 + $0x720] ss:$8 sps:$4 sm:$0xff]   ;;  %5307 = vmatpush1.bf16.msra.mxu1 %v7458_v7  ;;  %v7466_v13 = vld [vmem:[#allocation4 + $0x34] ss:$8 sps:$4 sm:$0xff]   ;;  %v7470_v15 = vld [vmem:[#allocation4 + $0x30] ss:$8 sps:$4 sm:$0xff]  }
  0x62   : > { %5818 = vmatpush1.bf16.msra.mxu0 %v7459_v8  ;;  %5308 = vmatprep.subr.bf16.mxu1 %v7460_v9  ;;  %v7468_v14 = vld [vmem:[#allocation4 + $0x734] ss:$8 sps:$4 sm:$0xff]   ;;  %v7471_v16 = vld [vmem:[#allocation4 + $0x730] ss:$8 sps:$4 sm:$0xff]   ;;  %v7472_v17 = vld [vmem:[#allocation4 + $0x44] ss:$8 sps:$4 sm:$0xff]  }
  0x63   : > { %5819 = vmatprep.subr.bf16.mxu0 %v7462_v10  ;;  %v7474_v18 = vld [vmem:[#allocation4 + $0x744] ss:$8 sps:$4 sm:$0xff]   ;;  %v7476_v19 = vld [vmem:[#allocation4 + $0x40] ss:$8 sps:$4 sm:$0xff]   ;;  %v7478_v21 = vld [vmem:[#allocation4 + $0x54] ss:$8 sps:$4 sm:$0xff]  }
  0x64   : > { %v7477_v20 = vld [vmem:[#allocation4 + $0x740] ss:$8 sps:$4 sm:$0xff]   ;;  %v7480_v22 = vld [vmem:[#allocation4 + $0x754] ss:$8 sps:$4 sm:$0xff]   ;;  %v7482_v23 = vld [vmem:[#allocation4 + $0x50] ss:$8 sps:$4 sm:$0xff]  }
  0x65   : > { %5309 = vmatpush1.bf16.msra.mxu1 %v7464_v11  ;;  %v7483_v24 = vld [vmem:[#allocation4 + $0x750] ss:$8 sps:$4 sm:$0xff]   ;;  %v7484_v25 = vld [vmem:[#allocation4 + $0x64] ss:$8 sps:$4 sm:$0xff]   ;;  %v7488_v27 = vld [vmem:[#allocation4 + $0x60] ss:$8 sps:$4 sm:$0xff]  }
  0x66   : > { %5820 = vmatpush1.bf16.msra.mxu0 %v7465_v12  ;;  %5310 = vmatprep.subr.bf16.mxu1 %v7466_v13  ;;  %v7486_v26 = vld [vmem:[#allocation4 + $0x764] ss:$8 sps:$4 sm:$0xff]   ;;  %v7489_v28 = vld [vmem:[#allocation4 + $0x760] ss:$8 sps:$4 sm:$0xff]   ;;  %v7490_v29 = vld [vmem:[#allocation4 + $0x74] ss:$8 sps:$4 sm:$0xff]  }
  0x67   : > { %5821 = vmatprep.subr.bf16.mxu0 %v7468_v14  ;;  %v7492_v30 = vld [vmem:[#allocation4 + $0x774] ss:$8 sps:$4 sm:$0xff]   ;;  %vm296_vm1 = vsmask.f32 256  ;;  %v7494_v31 = vld [vmem:[#allocation4 + $0x70] ss:$8 sps:$4 sm:$0xff]  }
  0x68   : > { %vm299_vm2 = vsmask.f32 4352  ;;  %v7495_v32 = vld [vmem:[#allocation4 + $0x770] ss:$8 sps:$4 sm:$0xff]   ;;  %v7496_v33 = vld [vmem:[#allocation4 + $0x84] ss:$8 sps:$4 sm:$0xff]   ;;  %vm8377_vm4 = vmand %vm295_vm0, %vm296_vm1 }
  0x69   : > { %5311 = vmatpush1.bf16.msra.mxu1 %v7470_v15  ;;  %v7498_v34 = vld [vmem:[#allocation4 + $0x784] ss:$8 sps:$4 sm:$0xff]   ;;  %v7500_v36 = vld [vmem:[#allocation4 + $0x80] ss:$8 sps:$4 sm:$0xff]   ;;  %vm300_vm5 = vmand %vm298_vm3, %vm299_vm2  ;;  %s9430_s21 = smov (!%p270_p5, %s8266_s21), 1  ;;  %vm516_vm11 = vcmask 1043456  }
  0x6a   : > { %5822 = vmatpush1.bf16.msra.mxu0 %v7471_v16  ;;  %5312 = vmatprep.subr.bf16.mxu1 %v7472_v17  ;;  %v7501_v37 = vld [vmem:[#allocation4 + $0x780] ss:$8 sps:$4 sm:$0xff]   ;;  %v7502_v38 = vld [vmem:[#allocation4 + $0x94] ss:$8 sps:$4 sm:$0xff]   ;;  %vm8387_vm6 = vmor %vm300_vm5, %vm8377_vm4  ;;  %vm362_vm7 = vsmask.f32 7938 }
  0x6b   : > { %5823 = vmatprep.subr.bf16.mxu0 %v7474_v18  ;;  %v7504_v39 = vld [vmem:[#allocation4 + $0x794] ss:$8 sps:$4 sm:$0xff]   ;;  %v7506_v41 = vld [vmem:[#allocation4 + $0x90] ss:$8 sps:$4 sm:$0xff]   ;;  %vm364_vm8 = vsmask.f32 7954  ;;  %vm8394_vm9 = vmand %vm295_vm0, %vm362_vm7 }
  0x6c   : > { %v7507_v42 = vld [vmem:[#allocation4 + $0x790] ss:$8 sps:$4 sm:$0xff]   ;;  %v7508_v43 = vld [vmem:[#allocation4 + $0xa4] ss:$8 sps:$4 sm:$0xff]   ;;  %s7187_s22 = sshll.u32 %s9430_s21, 6  ;;  %vm8400_vm10 = vmand %vm298_vm3, %vm364_vm8  ;;  %vm518_vm13 = vcmask 1047556  }
  0x6d   : > { %5313 = vmatpush1.bf16.msra.mxu1 %v7476_v19  ;;  %v7510_v44 = vld [vmem:[#allocation4 + $0x7a4] ss:$8 sps:$4 sm:$0xff]   ;;  %v7512_v46 = vld [vmem:[#allocation4 + $0xa0] ss:$8 sps:$4 sm:$0xff]   ;;  %v7514_v49 = vld [vmem:[#allocation4 + $0xb4] ss:$8 sps:$4 sm:$0xff]   ;;  %s8409_s8 = scalar_lea.vmem %s9385_s0, %s7187_s22  ;;  %s9348_s29 = scalar_lea.vmem %s9390_s5, %s7187_s22 }
  0x6e   : > { %5824 = vmatpush1.bf16.msra.mxu0 %v7477_v20  ;;  %5314 = vmatprep.subr.bf16.mxu1 %v7478_v21  ;;  %v7513_v47 = vld [vmem:[#allocation4 + $0x7a0] ss:$8 sps:$4 sm:$0xff]   ;;  %v7516_v50 = vld [vmem:[#allocation4 + $0x7b4] ss:$8 sps:$4 sm:$0xff]   ;;  %v7518_v51 = vld [vmem:[#allocation4 + $0xb0] ss:$8 sps:$4 sm:$0xff]  }
  0x6f   : > { %5825 = vmatprep.subr.bf16.mxu0 %v7480_v22  ;;  %v302_v52 = vld [vmem:[#allocation2] sm:$0x11]  ;;  %v308_v56 = vld [vmem:[#allocation2 + $0x18] sm:$0x11]  ;;  %vm8420_vm12 = vmor %vm8400_vm10, %vm8394_vm9  ;;  %v8432_v6 = vshrl.u32 %v576_v53, 7  ;;  %s7188_s17 = sshll.u32 %s9430_s21, 3 }
  0x70   : > { %v7519_v54 = vld [vmem:[#allocation4 + $0x7b0] ss:$8 sps:$4 sm:$0xff]   ;;  %v303_v55 = vsel %vm8387_vm6, 0, %v302_v52  ;;  %v309_v58 = vsel %vm8387_vm6, 0, %v308_v56  ;;  %v7520_v61 = vld [vmem:[#allocation4 + $0xc4] ss:$8 sps:$4 sm:$0xff]   ;;  %vm8428_vm14 = vmand %vm516_vm11, %vm362_vm7  ;;  %s8459_s26 = scalar_lea.vmem %s9386_s1, %s7188_s17 }
  0x71   : > { %5315 = vmatpush1.bf16.msra.mxu1 %v7482_v23  ;;  %v427_v57 = vld [vmem:[%s8409_s8] sm:$0xff]  ;;  %304 = vst [vmem:[#allocation2] sm:$0x11] %v303_v55  ;;  %v7522_v62 = vld [vmem:[#allocation4 + $0x7c4] ss:$8 sps:$4 sm:$0xff]   ;;  %vm8435_vm0 = vmand %vm518_vm13, %vm364_vm8  ;;  %vm601_vm2 = vcmask 1041408  }
  0x72   : > { %5826 = vmatpush1.bf16.msra.mxu0 %v7483_v24  ;;  %5316 = vmatprep.subr.bf16.mxu1 %v7484_v25  ;;  %v436_v60 = vshrl.u32 %v427_v57, 16  ;;  %310 = vst [vmem:[#allocation2 + $0x18] sm:$0x11] %v309_v58  ;;  %v439_v63 = vshll.u32 %v427_v57, 16  ;;  %v7524_v1 = vld [vmem:[#allocation4 + $0xc0] ss:$8 sps:$4 sm:$0xff]   ;;  %vm8452_vm1 = vmor %vm8435_vm0, %vm8428_vm14 }
  0x73   : > { %5827 = vmatprep.subr.bf16.mxu0 %v7486_v26  ;;  %v314_v4 = vld [vmem:[#allocation2 + $0x30] sm:$0x11]  ;;  %v373_v5 = vld [vmem:[#allocation2 + $0x24] sm:$0x11]  ;;  %vm602_vm15 = vsmask.f32 1282 }
  0x74   : > { %v8424_v2 = vrot.slane %v436_v60, 7  ;;  %v315_v8 = vsel %vm8387_vm6, 0, %v314_v4  ;;  %v374_v9 = vsel %vm8420_vm12, 0, %v373_v5  ;;  %v379_v10 = vld [vmem:[#allocation2 + $0x3c] sm:$0x11]  ;;  %v428_v11 = vld [vmem:[%s8409_s8 + $0x8] sm:$0xff]  ;;  %vm8498_vm3 = vmand %vm601_vm2, %vm602_vm15 }
  0x75   : > { %5317 = vmatpush1.bf16.msra.mxu1 %v7488_v27  ;;  %v7525_v12 = vld [vmem:[#allocation4 + $0x7c0] ss:$8 sps:$4 sm:$0xff]   ;;  %316 = vst [vmem:[#allocation2 + $0x30] sm:$0x11] %v315_v8  ;;  %375 = vst [vmem:[#allocation2 + $0x24] sm:$0x11] %v374_v9 }
  0x76   : > { %5828 = vmatpush1.bf16.msra.mxu0 %v7489_v28  ;;  %5318 = vmatprep.subr.bf16.mxu1 %v7490_v29  ;;  %v380_v13 = vsel %vm8420_vm12, 0, %v379_v10  ;;  %v444_v14 = vshrl.u32 %v428_v11, 16  ;;  %v7526_v15 = vld [vmem:[#allocation4 + $0xd4] ss:$8 sps:$4 sm:$0xff]   ;;  %v441_v17 = vor.u32 %v439_v63, %v8424_v2  ;;  %v447_v18 = vshll.u32 %v428_v11, 16 }
  0x77   : > { %5829 = vmatprep.subr.bf16.mxu0 %v7492_v30  ;;  %v7528_v16 = vld [vmem:[#allocation4 + $0x7d4] ss:$8 sps:$4 sm:$0xff]   ;;  %381 = vst [vmem:[#allocation2 + $0x3c] sm:$0x11] %v380_v13  ;;  %v7530_v19 = vld [vmem:[#allocation4 + $0xd0] ss:$8 sps:$4 sm:$0xff]  }
  0x78   : > { %v7531_v20 = vld [vmem:[#allocation4 + $0x7d0] ss:$8 sps:$4 sm:$0xff]   ;;  %v446_v22 = vrot.slane %v444_v14, 7  ;;  %v317_v24 = vld [vmem:[#allocation2 + $0x38] sm:$0x1]  ;;  %vm1284_vm5 = vcmask 1042432  }
  0x79   : > { %5319 = vmatpush1.bf16.msra.mxu1 %v7494_v31  ;;  %v311_v23 = vld [vmem:[#allocation2 + $0x20] sm:$0x1]  ;;  %v7532_v25 = vld [vmem:[#allocation4 + $0xe4] ss:$8 sps:$4 sm:$0xff]   ;;  %v318_v29 = vsel %vm8377_vm4, 0, %v317_v24  ;;  %v442_v31 = vrot.slane %v8424_v2, 4 }
  0x7a   : > { %5830 = vmatpush1.bf16.msra.mxu0 %v7495_v32  ;;  %5320 = vmatprep.subr.bf16.mxu1 %v7496_v33  ;;  %v7534_v26 = vld [vmem:[#allocation4 + $0x7e4] ss:$8 sps:$4 sm:$0xff]   ;;  %v8461_v27 = vld [vmem:[#allocation2] sm:$0xff]  ;;  %v312_v28 = vsel %vm8377_vm4, 0, %v311_v23  ;;  %v376_v30 = vld [vmem:[#allocation2 + $0x2c] sm:$0x1]  ;;  %v449_v33 = vor.u32 %v447_v18, %v446_v22 }
  0x7b   : > { %5831 = vmatprep.subr.bf16.mxu0 %v7498_v34  ;;  %v521_v32 = vld [vmem:[#allocation2 + $0x18] sm:$0xff]  ;;  %313 = vst [vmem:[#allocation2 + $0x20] sm:$0x1] %v312_v28  ;;  %319 = vst [vmem:[#allocation2 + $0x38] sm:$0x1] %v318_v29  ;;  %v377_v34 = vsel %vm8394_vm9, 0, %v376_v30 }
  0x7c   : > { %378 = vst [vmem:[#allocation2 + $0x2c] sm:$0x1] %v377_v34  ;;  %v7540_v52 = vld [vmem:[#allocation4 + $0x7f4] ss:$8 sps:$4 sm:$0xff]   ;;  %v7543_v63 = vld [vmem:[#allocation4 + $0x7f0] ss:$8 sps:$4 sm:$0xff]  }
  0x7d   : > { %5321 = vmatpush1.bf16.msra.mxu1 %v7500_v36  ;;  %v382_v36 = vld [vmem:[#allocation2 + $0x44] sm:$0x1]  ;;  %vm1285_vm7 = vcmask 1046532   ;;  %v7549_v5 = vld [vmem:[#allocation4 + $0x804] ss:$8 sps:$4 sm:$0xff]   ;;  %vm656_vm8 = vcmask 1042433  }
  0x7e   : > { %5832 = vmatpush1.bf16.msra.mxu0 %v7501_v37  ;;  %5322 = vmatprep.subr.bf16.mxu1 %v7502_v38  ;;  %v8471_v37 = vsub.s32 0, %v8432_v6  ;;  %v8475_v38 = vsel %vm8452_vm1, %v441_v17, %v521_v32  ;;  %v530_v55 = vld [vmem:[#allocation2 + $0x3c] sm:$0x11]  ;;  %vm657_vm10 = vsmask.f32 2310  ;;  %vm8516_vm11 = vmor %vm1284_vm5, %vm1285_vm7  ;;  %vm699_vm14 = vcmask 1043458  }
  0x7f   : > { %5833 = vmatprep.subr.bf16.mxu0 %v7504_v39  ;;  %v450_v39 = vrot.slane %v446_v22, 4  ;;  %523 = vst [vmem:[#allocation2 + $0x18] sm:$0xff] %v8475_v38  ;;  %v6589_v13 = vcombine.low %v8461_v27, %v8475_v38  ;;  %v7552_v18 = vld [vmem:[#allocation4 + $0x114] ss:$8 sps:$4 sm:$0xff]   ;;  %vm8529_vm13 = vmand %vm656_vm8, %vm657_vm10  ;;  %v7550_v29 = vld [vmem:[#allocation4 + $0x110] ss:$8 sps:$4 sm:$0xff]  }
  0x80   : > { %vm700_vm15 = vsmask.f32 3338  ;;  %vm758_vm2 = vcmask 1043459   ;;  %vm759_vm5 = vsmask.f32 7950 }
  0x81   : > { %5323 = vmatpush1.bf16.msra.mxu1 %v7506_v41  ;;  %v383_v41 = vsel %vm8394_vm9, 0, %v382_v36  ;;  %v531_v57 = vsel %vm8387_vm6, %v450_v39, %v530_v55  ;;  %v7558_v39 = vld [vmem:[#allocation4 + $0x124] ss:$8 sps:$4 sm:$0xff]   ;;  %vm8551_vm0 = vmand %vm699_vm14, %vm700_vm15  ;;  %v7574_v55 = vld [vmem:[#allocation4 + $0x150] ss:$8 sps:$4 sm:$0xff]  }
  0x82   : > { %5834 = vmatpush1.bf16.msra.mxu0 %v7507_v42  ;;  %5324 = vmatprep.subr.bf16.mxu1 %v7508_v43  ;;  %v569_v42 = vld [vmem:[%s8459_s26] sm:$0x3]  ;;  %v7536_v43 = vld [vmem:[#allocation4 + $0xe0] ss:$8 sps:$4 sm:$0xff]   ;;  %384 = vst [vmem:[#allocation2 + $0x44] sm:$0x1] %v383_v41  ;;  %vm8560_vm7 = vmand %vm758_vm2, %vm759_vm5 }
  0x83   : > { %5835 = vmatprep.subr.bf16.mxu0 %v7510_v44  ;;  %v7537_v44 = vld [vmem:[#allocation4 + $0x7e0] ss:$8 sps:$4 sm:$0xff]   ;;  %v628_v48 = vshrl.u32 %v569_v42, 16  ;;  %532 = vst [vmem:[#allocation2 + $0x3c] sm:$0x11] %v531_v57 }
  0x84   : > { %v604_v2 = vld [vmem:[#allocation2 + $0x20] sm:$0x3]  ;;  %v607_v3 = vld [vmem:[#allocation2 + $0x38] sm:$0x3]  ;;  %v764_v8 = vld [vmem:[#allocation2 + $0x2c] sm:$0x1] }
  0x85   : > { %5325 = vmatpush1.bf16.msra.mxu1 %v7512_v46  ;;  %v6590_v46 = vcombine.high %v8461_v27, %v8475_v38  ;;  %v629_v60 = vpack.i.b16 %v628_v48, %v628_v48  ;;  %v7556_v41 = vld [vmem:[#allocation4 + $0x120] ss:$8 sps:$4 sm:$0xff]   ;;  %v7570_v48 = vld [vmem:[#allocation4 + $0x144] ss:$8 sps:$4 sm:$0xff]   ;;  %vm933_vm8 = vsmask.f32 3328 }
  0x86   : > { %5836 = vmatpush1.bf16.msra.mxu0 %v7513_v47  ;;  %5326 = vmatprep.subr.bf16.mxu1 %v7514_v49  ;;  %v8483_v47 = vpack.i.b16 %v569_v42, %v569_v42  ;;  %v524_v49 = vld [vmem:[#allocation2 + $0x24] sm:$0x11]  ;;  %v1819_v9 = vld [vmem:[#allocation2 + $0x18] sm:$0xee]  ;;  %v429_v57 = vld [vmem:[%s8409_s8 + $0x10] sm:$0xff] }
  0x87   : > { %5837 = vmatprep.subr.bf16.mxu0 %v7516_v50  ;;  %v527_v50 = vld [vmem:[#allocation2 + $0x30] sm:$0xff]  ;;  %v525_v53 = vsel %vm8387_vm6, %v442_v31, %v524_v49  ;;  %5336 = vmatprep.mubr.bf16.mxu1 %v6590_v46  ;;  %v7564_v42 = vld [vmem:[#allocation4 + $0x134] ss:$8 sps:$4 sm:$0xff]   ;;  %v7562_v46 = vld [vmem:[#allocation4 + $0x130] ss:$8 sps:$4 sm:$0xff]  }
  0x88   : > { %v579_v56 = vrot.slane %v8483_v47, %v8471_v37  ;;  %526 = vst [vmem:[#allocation2 + $0x24] sm:$0x11] %v525_v53  ;;  %v7576_v53 = vld [vmem:[#allocation4 + $0x154] ss:$8 sps:$4 sm:$0xff]   ;;  %vm934_vm10 = vsmask.f32 7440 }
  0x89   : > { %5327 = vmatpush1.bf16.msra.mxu1 %v7518_v51  ;;  %v7538_v51 = vld [vmem:[#allocation4 + $0xf4] ss:$8 sps:$4 sm:$0xff]   ;;  %vm8625_vm14 = vmor %vm933_vm8, %vm934_vm10  ;;  %v7597_v21 = vld [vmem:[#allocation4 + $0x884] ss:$8 sps:$4 sm:$0xff]  }
  0x8a   : > { %5838 = vmatpush1.bf16.msra.mxu0 %v7519_v54  ;;  %5328 = vmatprep.subr.bf16.mxu1 %v7520_v61  ;;  %v8489_v54 = vsel %vm8452_vm1, %v449_v33, %v527_v50  ;;  %v8503_v61 = vsub.s32 1, %v8432_v6  ;;  %v605_v7 = vsel %vm8498_vm3, %v579_v56, %v604_v2  ;;  %v608_v6 = vsel %vm8498_vm3, %v579_v56, %v607_v3  ;;  %v770_v11 = vld [vmem:[#allocation2 + $0x44] sm:$0x1]  ;;  %v1825_v22 = vld [vmem:[#allocation2 + $0x3c] sm:$0x11] }
  0x8b   : > { %5839 = vmatprep.subr.bf16.mxu0 %v7522_v62  ;;  %529 = vst [vmem:[#allocation2 + $0x30] sm:$0xff] %v8489_v54  ;;  %v7542_v62 = vld [vmem:[#allocation4 + $0xf0] ss:$8 sps:$4 sm:$0xff]   ;;  %606 = vst [vmem:[#allocation2 + $0x20] sm:$0x3] %v605_v7  ;;  %v455_v2 = vshll.u32 %v429_v57, 16 }
  0x8c   : > { %v729_v4 = vrot.slane %v629_v60, %v8503_v61  ;;  %609 = vst [vmem:[#allocation2 + $0x38] sm:$0x3] %v608_v6  ;;  %v320_v56 = vld [vmem:[#allocation2 + $0x48] sm:$0x11]  ;;  %v326_v3 = vld [vmem:[#allocation2 + $0x60] sm:$0x11] }
  0x8d   : > { %5329 = vmatpush1.bf16.msra.mxu1 %v7524_v1  ;;  %v7546_v1 = vld [vmem:[#allocation4 + $0x104] ss:$8 sps:$4 sm:$0xff]  }
  0x8e   : > { %5840 = vmatpush1.bf16.msra.mxu0 %v7525_v12  ;;  %5330 = vmatprep.subr.bf16.mxu1 %v7526_v15  ;;  %v8510_v10 = vcombine.low %v729_v4, %v729_v4  ;;  %v7544_v12 = vld [vmem:[#allocation4 + $0x100] ss:$8 sps:$4 sm:$0xff]   ;;  %v6665_v15 = vrot.slane %v1819_v9, 9  ;;  %v7771_v40 = vld [vmem:[#allocation4 + $0xa44] ss:$8 sps:$4 sm:$0xff]  }
  0x8f   : > { %5841 = vmatprep.subr.bf16.mxu0 %v7528_v16  ;;  %v385_v4 = vld [vmem:[#allocation2 + $0x54] sm:$0x11] }
  0x90   : > { %v765_v16 = vsel %vm8377_vm4, %v8510_v10, %v764_v8  ;;  %v771_v17 = vsel %vm8377_vm4, %v8510_v10, %v770_v11  ;;  %v327_v8 = vsel %vm8387_vm6, 0, %v326_v3 }
  0x91   : > { %5331 = vmatpush1.bf16.msra.mxu1 %v7530_v19  ;;  %v1821_v19 = vld [vmem:[#allocation2 + $0x24] sm:$0x11]  ;;  %766 = vst [vmem:[#allocation2 + $0x2c] sm:$0x1] %v765_v16  ;;  %772 = vst [vmem:[#allocation2 + $0x44] sm:$0x1] %v771_v17 }
  0x92   : > { %5842 = vmatpush1.bf16.msra.mxu0 %v7531_v20  ;;  %5332 = vmatprep.subr.bf16.mxu1 %v7532_v25  ;;  %v1823_v20 = vld [vmem:[#allocation2 + $0x30] sm:$0xee]  ;;  %v1885_v23 = vrot.slane %v1821_v19, 5  ;;  %v634_v25 = vrot.slane %v629_v60, %v8471_v37  ;;  %v659_v31 = vld [vmem:[#allocation2 + $0x20] sm:$0x6]  ;;  %v430_v16 = vld [vmem:[%s8409_s8 + $0x18] sm:$0xff] }
  0x93   : > { %5843 = vmatprep.subr.bf16.mxu0 %v7534_v26  ;;  %v6667_v24 = vrot.slane %v1823_v20, 9  ;;  %v1893_v26 = vrot.slane %v1825_v22, 5  ;;  %v662_v32 = vld [vmem:[#allocation2 + $0x38] sm:$0x6]  ;;  %328 = vst [vmem:[#allocation2 + $0x60] sm:$0x11] %v327_v8 }
  0x94   : > { %v8535_v28 = vsel %vm8516_vm11, %v6665_v15, %v1885_v23  ;;  %v660_v36 = vsel %vm8529_vm13, %v634_v25, %v659_v31  ;;  %v663_v38 = vsel %vm8529_vm13, %v634_v25, %v662_v32  ;;  %v391_v15 = vld [vmem:[#allocation2 + $0x6c] sm:$0x11]  ;;  %v460_v19 = vshrl.u32 %v430_v16, 16  ;;  %v7586_v25 = vld [vmem:[#allocation4 + $0x170] ss:$8 sps:$4 sm:$0xff]  }
  0x95   : > { %5333 = vmatpush1.bf16.msra.mxu1 %v7536_v43  ;;  %v8539_v30 = vsel %vm8516_vm11, %v6667_v24, %v1893_v26  ;;  %661 = vst [vmem:[#allocation2 + $0x20] sm:$0x6] %v660_v36  ;;  %664 = vst [vmem:[#allocation2 + $0x38] sm:$0x6] %v663_v38  ;;  %v686_v43 = vrot.slane %v8483_v47, %v8503_v61  ;;  %v7568_v47 = vld [vmem:[#allocation4 + $0x140] ss:$8 sps:$4 sm:$0xff]  }
  0x96   : > { %5844 = vmatpush1.bf16.msra.mxu0 %v7537_v44  ;;  %5334 = vmatprep.subr.bf16.mxu1 %v7538_v51  ;;  %v6681_v33 = vcombine.low %v8535_v28, %v8539_v30  ;;  %v6682_v34 = vcombine.high %v8535_v28, %v8539_v30  ;;  %v7580_v17 = vld [vmem:[#allocation4 + $0x160] ss:$8 sps:$4 sm:$0xff]   ;;  %v463_v23 = vshll.u32 %v430_v16, 16  ;;  %v462_v26 = vrot.slane %v460_v19, 7  ;;  %v329_v31 = vld [vmem:[#allocation2 + $0x68] sm:$0x1] }
  0x97   : > { %5845 = vmatprep.subr.bf16.mxu0 %v7540_v52  ;;  %v323_v24 = vld [vmem:[#allocation2 + $0x50] sm:$0x1]  ;;  %v388_v32 = vld [vmem:[#allocation2 + $0x5c] sm:$0x1]  ;;  %v394_v38 = vld [vmem:[#allocation2 + $0x74] sm:$0x1] }
  0x98   : > { %5847 = vmatprep.mubr.bf16.mxu0 %v6681_v33  ;;  %v8583_v20 = vld [vmem:[#allocation2 + $0x44] sm:$0x1]  ;;  %v330_v33 = vsel %vm8377_vm4, 0, %v329_v31  ;;  %v389_v36 = vsel %vm8394_vm9, 0, %v388_v32  ;;  %v332_v16 = vld [vmem:[#allocation2 + $0x78] sm:$0x11] }
  0x99   : > { %5335 = vmatpush1.bf16.msra.mxu1 %v7542_v62  ;;  %v7582_v62 = vld [vmem:[#allocation4 + $0x164] ss:$8 sps:$4 sm:$0xff]   ;;  %331 = vst [vmem:[#allocation2 + $0x68] sm:$0x1] %v330_v33  ;;  %390 = vst [vmem:[#allocation2 + $0x5c] sm:$0x1] %v389_v36 }
  0x9a   : > { %5846 = vmatpush1.bf16.msra.mxu0 %v7543_v63  ;;  %5377 = vmatprep.subr.bf16.mxu1 %v7546_v1  ;;  %v321_v63 = vsel %vm8387_vm6, 0, %v320_v56  ;;  %v452_v1 = vshrl.u32 %v429_v57, 16  ;;  %v539_v57 = vld [vmem:[#allocation2 + $0x60] sm:$0xff]  ;;  %v333_v31 = vsel %vm8387_vm6, 0, %v332_v16 }
  0x9b   : > { %5888 = vmatprep.subr.bf16.mxu0 %v7549_v5  ;;  %322 = vst [vmem:[#allocation2 + $0x48] sm:$0x11] %v321_v63  ;;  %334 = vst [vmem:[#allocation2 + $0x78] sm:$0x11] %v333_v31  ;;  %v7610_v31 = vld [vmem:[#allocation4 + $0x1b0] ss:$8 sps:$4 sm:$0xff]  }
  0x9c   : > { %5337 = vmatmul.mubr.bf16.vlgmr.msra.gmra.mrb[0].mxu1 %v6589_v13  ;;  %v702_v49 = vld [vmem:[#allocation2 + $0x20] sm:$0xc]  ;;  %v705_v50 = vld [vmem:[#allocation2 + $0x38] sm:$0xc]  ;;  %v8566_v6 = vrot.slane %v452_v1, 7  ;;  %v386_v13 = vsel %vm8420_vm12, 0, %v385_v4 }
  0x9d   : > { %5378 = vmatpush1.bf16.msra.mxu1 %v7544_v12  ;;  %v703_v51 = vsel %vm8551_vm0, %v686_v43, %v702_v49  ;;  %v706_v52 = vsel %vm8551_vm0, %v686_v43, %v705_v50  ;;  %v8576_v12 = vld [vmem:[#allocation2 + $0x2c] sm:$0x1]  ;;  %387 = vst [vmem:[#allocation2 + $0x54] sm:$0x11] %v386_v13  ;;  %v7659_v60 = vld [vmem:[#allocation4 + $0x230] ss:$8 sps:$4 sm:$0xff]  }
  0x9e   : > { %5379 = vmatprep.subr.bf16.mxu1 %v7552_v18  ;;  %704 = vst [vmem:[#allocation2 + $0x20] sm:$0xc] %v703_v51  ;;  %707 = vst [vmem:[#allocation2 + $0x38] sm:$0xc] %v706_v52  ;;  %v392_v18 = vsel %vm8420_vm12, 0, %v391_v15  ;;  %v457_v22 = vor.u32 %v455_v2, %v8566_v6  ;;  %v458_v50 = vrot.slane %v8566_v6, 4 }
  0x9f   : > { %393 = vst [vmem:[#allocation2 + $0x6c] sm:$0x11] %v392_v18  ;;  %v466_v52 = vrot.slane %v462_v26, 4  ;;  %v7600_v2 = vld [vmem:[#allocation4 + $0x194] ss:$8 sps:$4 sm:$0xff]  }
  0xa1   : > { %5380 = vmatpush1.bf16.msra.mxu1 %v7550_v29  ;;  %v324_v29 = vsel %vm8377_vm4, 0, %v323_v24  ;;  %v7606_v24 = vld [vmem:[#allocation4 + $0x1a4] ss:$8 sps:$4 sm:$0xff]  }
  0xa2   : > { %5381 = vmatprep.subr.bf16.mxu1 %v7558_v39  ;;  %325 = vst [vmem:[#allocation2 + $0x50] sm:$0x1] %v324_v29  ;;  %v570_v39 = vld [vmem:[%s8459_s26 + $0x2] sm:$0x3]  ;;  %v533_v43 = vld [vmem:[#allocation2 + $0x48] sm:$0xff] }
  0xa3   : > { %v8596_v49 = vpack.i.b16 %v570_v39, %v570_v39  ;;  %v534_v51 = vsel %vm8452_vm1, %v457_v22, %v533_v43  ;;  %v7598_v22 = vld [vmem:[#allocation4 + $0x190] ss:$8 sps:$4 sm:$0xff]  }
  0xa4   : > { %535 = vst [vmem:[#allocation2 + $0x48] sm:$0xff] %v534_v51  ;;  %v6593_v56 = vcombine.high %v8489_v54, %v534_v51  ;;  %v536_v3 = vld [vmem:[#allocation2 + $0x54] sm:$0x11] }
  0xa5   : > { %5382 = vmatpush1.bf16.msra.mxu1 %v7556_v41  ;;  %v761_v5 = vld [vmem:[#allocation2 + $0x20] sm:$0x8]  ;;  %v767_v7 = vld [vmem:[#allocation2 + $0x38] sm:$0x8]  ;;  %v1559_v41 = vshll.u32 %v8576_v12, 16  ;;  %v537_v12 = vsel %vm8387_vm6, %v458_v50, %v536_v3 }
  0xa6   : > { %5383 = vmatprep.subr.bf16.mxu1 %v7564_v42  ;;  %v762_v9 = vsel %vm8560_vm7, %v8510_v10, %v761_v5  ;;  %v768_v11 = vsel %vm8560_vm7, %v8510_v10, %v767_v7  ;;  %v7588_v10 = vld [vmem:[#allocation4 + $0x174] ss:$8 sps:$4 sm:$0xff]   ;;  %v7594_v42 = vld [vmem:[#allocation4 + $0x184] ss:$8 sps:$4 sm:$0xff]   ;;  %v586_v5 = vrot.slane %v8596_v49, %v8471_v37  ;;  %5346 = vmatprep.mubr.bf16.mxu1 %v6593_v56  ;;  %v7604_v56 = vld [vmem:[#allocation4 + $0x1a0] ss:$8 sps:$4 sm:$0xff]  }
  0xa7   : > { %763 = vst [vmem:[#allocation2 + $0x20] sm:$0x8] %v762_v9  ;;  %769 = vst [vmem:[#allocation2 + $0x38] sm:$0x8] %v768_v11  ;;  %v1561_v11 = vrot.slane %v1559_v41, 5 }
  0xa8   : > { %538 = vst [vmem:[#allocation2 + $0x54] sm:$0x11] %v537_v12  ;;  %v776_v41 = vld [vmem:[#allocation2 + $0x5c] sm:$0x1] }
  0xa9   : > { %5384 = vmatpush1.bf16.msra.mxu1 %v7562_v46  ;;  %v465_v46 = vor.u32 %v463_v23, %v462_v26  ;;  %v610_v23 = vld [vmem:[#allocation2 + $0x50] sm:$0x3]  ;;  %v613_v26 = vld [vmem:[#allocation2 + $0x68] sm:$0x3] }
  0xaa   : > { %5385 = vmatprep.subr.bf16.mxu1 %v7570_v48  ;;  %v395_v48 = vsel %vm8394_vm9, 0, %v394_v38 }
  0xab   : > { %396 = vst [vmem:[#allocation2 + $0x74] sm:$0x1] %v395_v48  ;;  %v8606_v4 = vsel %vm8452_vm1, %v465_v46, %v539_v57  ;;  %v1827_v46 = vld [vmem:[#allocation2 + $0x48] sm:$0xee]  ;;  %v338_v57 = vld [vmem:[#allocation2 + $0x90] sm:$0x11] }
  0xac   : > { %541 = vst [vmem:[#allocation2 + $0x60] sm:$0xff] %v8606_v4  ;;  %v6669_v3 = vrot.slane %v1827_v46, 9 }
  0xad   : > { %5386 = vmatpush1.bf16.msra.mxu1 %v7568_v47  ;;  %v635_v47 = vshrl.u32 %v570_v39, 16  ;;  %v614_v39 = vsel %vm8498_vm3, %v586_v5, %v613_v26  ;;  %v7561_v26 = vld [vmem:[#allocation4 + $0x824] ss:$8 sps:$4 sm:$0xff]  }
  0xae   : > { %5387 = vmatprep.subr.bf16.mxu1 %v7576_v53  ;;  %v1587_v53 = vshll.u32 %v8583_v20, 16  ;;  %v1504_v63 = vld [vmem:[#allocation2 + $0x20] sm:$0xf]  ;;  %v1508_v1 = vld [vmem:[#allocation2 + $0x38] sm:$0xf] }
  0xaf   : > { %v1550_v7 = vshrl.u32 %v1504_v63, 16  ;;  %v1553_v6 = vshll.u32 %v1504_v63, 16  ;;  %v1578_v8 = vshrl.u32 %v1508_v1, 16  ;;  %v1581_v9 = vshll.u32 %v1508_v1, 16  ;;  %615 = vst [vmem:[#allocation2 + $0x68] sm:$0x3] %v614_v39 }
  0xb0   : > { %v636_v15 = vpack.i.b16 %v635_v47, %v635_v47  ;;  %v1589_v38 = vrot.slane %v1587_v53, 5  ;;  %v7547_v47 = vld [vmem:[#allocation4 + $0x800] ss:$8 sps:$4 sm:$0xff]   ;;  %v7555_v63 = vld [vmem:[#allocation4 + $0x814] ss:$8 sps:$4 sm:$0xff]  }
  0xb1   : > { %5388 = vmatpush1.bf16.msra.mxu1 %v7574_v55  ;;  %v7592_v55 = vld [vmem:[#allocation4 + $0x180] ss:$8 sps:$4 sm:$0xff]   ;;  %v1552_v18 = vrot.slane %v1550_v7, 4  ;;  %v1555_v19 = vrot.slane %v1553_v6, 5  ;;  %v1580_v20 = vrot.slane %v1578_v8, 4 }
  0xb2   : > { %5389 = vmatprep.subr.bf16.mxu1 %v7582_v62  ;;  %v6592_v62 = vcombine.low %v8489_v54, %v534_v51  ;;  %v542_v54 = vld [vmem:[#allocation2 + $0x6c] sm:$0x11]  ;;  %v733_v29 = vrot.slane %v636_v15, %v8503_v61  ;;  %v397_v8 = vld [vmem:[#allocation2 + $0x84] sm:$0x11] }
  0xb3   : > { %v543_v13 = vsel %vm8387_vm6, %v466_v52, %v542_v54  ;;  %v1556_v33 = vor.u32 %v1555_v19, %v1552_v18  ;;  %v8634_v52 = vld [vmem:[%s8409_s8 + $0x28] sm:$0xff]  ;;  %v1831_v1 = vld [vmem:[#allocation2 + $0x60] sm:$0xee] }
  0xb4   : > { %5347 = vmatmul.mubr.bf16.gmra.mrb[4].mxu1 %v6592_v62  ;;  %544 = vst [vmem:[#allocation2 + $0x6c] sm:$0x11] %v543_v13  ;;  %v8629_v48 = vcombine.low %v733_v29, %v733_v29  ;;  %v476_v62 = vshrl.u32 %v8634_v52, 16  ;;  %v7612_v6 = vld [vmem:[#allocation4 + $0x1b4] ss:$8 sps:$4 sm:$0xff]   ;;  %v6671_v12 = vrot.slane %v1831_v1, 9 }
  0xb5   : > { %5390 = vmatpush1.bf16.msra.mxu1 %v7580_v17  ;;  %v431_v17 = vld [vmem:[%s8409_s8 + $0x20] sm:$0xff]  ;;  %v1557_v53 = vrot.slane %v1556_v33, 4  ;;  %v339_v13 = vsel %vm8387_vm6, 0, %v338_v57  ;;  %v545_v33 = vld [vmem:[#allocation2 + $0x78] sm:$0xff] }
  0xb6   : > { %5391 = vmatprep.subr.bf16.mxu1 %v7588_v10  ;;  %v1583_v10 = vrot.slane %v1581_v9, 5  ;;  %v468_v32 = vshrl.u32 %v431_v17, 16  ;;  %v471_v51 = vshll.u32 %v431_v17, 16  ;;  %v1829_v17 = vld [vmem:[#allocation2 + $0x54] sm:$0x11] }
  0xb7   : > { %v1562_v9 = vsel %vm8625_vm14, %v1557_v53, %v1561_v11  ;;  %340 = vst [vmem:[#allocation2 + $0x90] sm:$0x11] %v339_v13  ;;  %v398_v11 = vsel %vm8420_vm12, 0, %v397_v8 }
  0xb8   : > { %v1584_v36 = vor.u32 %v1583_v10, %v1580_v20  ;;  %v8631_v50 = vrot.slane %v468_v32, 7  ;;  %v7553_v10 = vld [vmem:[#allocation4 + $0x810] ss:$8 sps:$4 sm:$0xff]   ;;  %399 = vst [vmem:[#allocation2 + $0x84] sm:$0x11] %v398_v11 }
  0xb9   : > { %5392 = vmatpush1.bf16.msra.mxu1 %v7586_v25  ;;  %v611_v25 = vsel %vm8498_vm3, %v586_v5, %v610_v23  ;;  %v777_v5 = vsel %vm8377_vm4, %v8629_v48, %v776_v41  ;;  %v668_v41 = vld [vmem:[#allocation2 + $0x68] sm:$0x6] }
  0xba   : > { %5393 = vmatprep.subr.bf16.mxu1 %v7594_v42  ;;  %612 = vst [vmem:[#allocation2 + $0x50] sm:$0x3] %v611_v25  ;;  %v782_v42 = vld [vmem:[#allocation2 + $0x74] sm:$0x1]  ;;  %778 = vst [vmem:[#allocation2 + $0x5c] sm:$0x1] %v777_v5  ;;  %v473_v19 = vor.u32 %v471_v51, %v8631_v50 }
  0xbb   : > { %v783_v7 = vsel %vm8377_vm4, %v8629_v48, %v782_v42  ;;  %v1833_v18 = vld [vmem:[#allocation2 + $0x6c] sm:$0x11]  ;;  %v8655_v25 = vrot.slane %v476_v62, 7  ;;  %v474_v32 = vrot.slane %v8631_v50, 4  ;;  %v7618_v42 = vld [vmem:[#allocation4 + $0x1c4] ss:$8 sps:$4 sm:$0xff]  }
  0xbc   : > { %784 = vst [vmem:[#allocation2 + $0x74] sm:$0x1] %v783_v7  ;;  %v1909_v23 = vrot.slane %v1833_v18, 5  ;;  %v335_v51 = vld [vmem:[#allocation2 + $0x80] sm:$0x1] }
  0xbd   : > { %5394 = vmatpush1.bf16.msra.mxu1 %v7592_v55  ;;  %v1585_v55 = vrot.slane %v1584_v36, 4  ;;  %v482_v46 = vrot.slane %v8655_v25, 4  ;;  %v336_v53 = vsel %vm8377_vm4, 0, %v335_v51  ;;  %v7559_v5 = vld [vmem:[#allocation4 + $0x820] ss:$8 sps:$4 sm:$0xff]  }
  0xbe   : > { %5395 = vmatprep.subr.bf16.mxu1 %v7600_v2  ;;  %v641_v2 = vrot.slane %v636_v15, %v8471_v37  ;;  %v403_v15 = vld [vmem:[#allocation2 + $0x9c] sm:$0x11]  ;;  %337 = vst [vmem:[#allocation2 + $0x80] sm:$0x1] %v336_v53  ;;  %v7571_v51 = vld [vmem:[#allocation4 + $0x840] ss:$8 sps:$4 sm:$0xff]  }
  0xbf   : > { %v1590_v54 = vsel %vm8625_vm14, %v1585_v55, %v1589_v38  ;;  %v404_v20 = vsel %vm8420_vm12, 0, %v403_v15  ;;  %v8665_v38 = vsel %vm8516_vm11, %v6671_v12, %v1909_v23  ;;  %v341_v55 = vld [vmem:[#allocation2 + $0x98] sm:$0x1]  ;;  %v551_v12 = vld [vmem:[#allocation2 + $0x90] sm:$0xff]  ;;  %v690_v15 = vrot.slane %v8596_v49, %v8503_v61  ;;  %v7565_v11 = vld [vmem:[#allocation4 + $0x830] ss:$8 sps:$4 sm:$0xff]  }
  0xc0   : > { %v6655_v16 = vcombine.low %v1562_v9, %v1590_v54  ;;  %405 = vst [vmem:[#allocation2 + $0x9c] sm:$0x11] %v404_v20  ;;  %v342_v1 = vsel %vm8377_vm4, 0, %v341_v55  ;;  %v7567_v9 = vld [vmem:[#allocation4 + $0x834] ss:$8 sps:$4 sm:$0xff]  }
  0xc1   : > { %5396 = vmatpush1.bf16.msra.mxu1 %v7598_v22  ;;  %v1901_v22 = vrot.slane %v1829_v17, 5  ;;  %v665_v29 = vld [vmem:[#allocation2 + $0x50] sm:$0x6]  ;;  %343 = vst [vmem:[#allocation2 + $0x98] sm:$0x1] %v342_v1 }
  0xc2   : > { %5397 = vmatprep.subr.bf16.mxu1 %v7606_v24  ;;  %v479_v24 = vshll.u32 %v8634_v52, 16  ;;  %5848 = vmatmul.mubr.bf16.vlgmr.msra.gmra.mrb[0].mxu0 %v6655_v16  ;;  %v666_v39 = vsel %vm8529_vm13, %v641_v2, %v665_v29  ;;  %v669_v52 = vsel %vm8529_vm13, %v641_v2, %v668_v41  ;;  %v571_v2 = vld [vmem:[%s8459_s26 + $0x4] sm:$0x3]  ;;  %v7616_v54 = vld [vmem:[#allocation4 + $0x1c0] ss:$8 sps:$4 sm:$0xff]  }
  0xc3   : > { %5889 = vmatpush1.bf16.msra.mxu0 %v7547_v47  ;;  %v8661_v36 = vsel %vm8516_vm11, %v6669_v3, %v1901_v22  ;;  %667 = vst [vmem:[#allocation2 + $0x50] sm:$0x6] %v666_v39  ;;  %v546_v47 = vsel %vm8452_vm1, %v473_v19, %v545_v33  ;;  %670 = vst [vmem:[#allocation2 + $0x68] sm:$0x6] %v669_v52  ;;  %v406_v3 = vld [vmem:[#allocation2 + $0xa4] sm:$0x1]  ;;  %v8688_v8 = vpack.i.b16 %v571_v2, %v571_v2 }
  0xc4   : > { %5890 = vmatprep.subr.bf16.mxu0 %v7555_v63  ;;  %v6684_v50 = vcombine.low %v8661_v36, %v8665_v38  ;;  %547 = vst [vmem:[#allocation2 + $0x78] sm:$0xff] %v546_v47  ;;  %v6596_v57 = vcombine.high %v8606_v4, %v546_v47  ;;  %v481_v62 = vor.u32 %v479_v24, %v8655_v25  ;;  %v642_v13 = vshrl.u32 %v571_v2, 16  ;;  %v548_v16 = vld [vmem:[#allocation2 + $0x84] sm:$0x11]  ;;  %v433_v24 = vld [vmem:[%s8409_s8 + $0x30] sm:$0xff] }
  0xc5   : > { %5398 = vmatpush1.bf16.msra.mxu1 %v7604_v56  ;;  %v400_v56 = vld [vmem:[#allocation2 + $0x8c] sm:$0x1]  ;;  %v6595_v63 = vcombine.low %v8606_v4, %v546_v47  ;;  %v6685_v4 = vcombine.high %v8661_v36, %v8665_v38  ;;  %v549_v20 = vsel %vm8387_vm6, %v474_v32, %v548_v16  ;;  %v593_v49 = vrot.slane %v8688_v8, %v8471_v37  ;;  %v7622_v22 = vld [vmem:[#allocation4 + $0x1d0] ss:$8 sps:$4 sm:$0xff]   ;;  %v7573_v33 = vld [vmem:[#allocation4 + $0x844] ss:$8 sps:$4 sm:$0xff]  }
  0xc6   : > { %5399 = vmatprep.subr.bf16.mxu1 %v7612_v6  ;;  %5857 = vmatprep.mubr.bf16.mxu0 %v6684_v50  ;;  %v401_v7 = vsel %vm8394_vm9, 0, %v400_v56  ;;  %v407_v6 = vsel %vm8394_vm9, 0, %v406_v3  ;;  %v8696_v17 = vsel %vm8452_vm1, %v481_v62, %v551_v12  ;;  %v7624_v19 = vld [vmem:[#allocation4 + $0x1d4] ss:$8 sps:$4 sm:$0xff]   ;;  %550 = vst [vmem:[#allocation2 + $0x84] sm:$0x11] %v549_v20  ;;  %v643_v23 = vpack.i.b16 %v642_v13, %v642_v13 }
  0xc7   : > { %5891 = vmatpush1.bf16.msra.mxu0 %v7553_v10  ;;  %402 = vst [vmem:[#allocation2 + $0x8c] sm:$0x1] %v401_v7  ;;  %408 = vst [vmem:[#allocation2 + $0xa4] sm:$0x1] %v407_v6  ;;  %5356 = vmatprep.mubr.bf16.mxu1 %v6596_v57  ;;  %v554_v18 = vld [vmem:[#allocation2 + $0x9c] sm:$0x11] }
  0xc8   : > { %5892 = vmatprep.subr.bf16.mxu0 %v7561_v26  ;;  %553 = vst [vmem:[#allocation2 + $0x90] sm:$0xff] %v8696_v17  ;;  %v555_v10 = vsel %vm8387_vm6, %v482_v46, %v554_v18  ;;  %5357 = vmatmul.mubr.bf16.gmra.mrb[8].mxu1 %v6595_v63  ;;  %v344_v25 = vld [vmem:[#allocation2 + $0xa8] sm:$0x11]  ;;  %v487_v32 = vshll.u32 %v433_v24, 16  ;;  %v737_v46 = vrot.slane %v643_v23, %v8503_v61  ;;  %v619_v47 = vld [vmem:[#allocation2 + $0x98] sm:$0x3] }
  0xc9   : > { %5400 = vmatpush1.bf16.msra.mxu1 %v7610_v31  ;;  %556 = vst [vmem:[#allocation2 + $0x9c] sm:$0x11] %v555_v10  ;;  %v345_v29 = vsel %vm8387_vm6, 0, %v344_v25  ;;  %v484_v31 = vshrl.u32 %v433_v24, 16  ;;  %v7628_v55 = vld [vmem:[#allocation4 + $0x1e0] ss:$8 sps:$4 sm:$0xff]   ;;  %v620_v57 = vsel %vm8498_vm3, %v593_v49, %v619_v47 }
  0xca   : > { %5401 = vmatprep.subr.bf16.mxu1 %v7618_v42  ;;  %v708_v26 = vld [vmem:[#allocation2 + $0x50] sm:$0xc]  ;;  %v711_v41 = vld [vmem:[#allocation2 + $0x68] sm:$0xc]  ;;  %v616_v42 = vld [vmem:[#allocation2 + $0x80] sm:$0x3]  ;;  %v8719_v62 = vcombine.low %v737_v46, %v737_v46 }
  0xcb   : > { %5893 = vmatpush1.bf16.msra.mxu0 %v7559_v5  ;;  %v709_v39 = vsel %vm8551_vm0, %v690_v15, %v708_v26  ;;  %346 = vst [vmem:[#allocation2 + $0xa8] sm:$0x11] %v345_v29  ;;  %v712_v50 = vsel %vm8551_vm0, %v690_v15, %v711_v41  ;;  %v617_v52 = vsel %vm8498_vm3, %v593_v49, %v616_v42  ;;  %v8715_v53 = vrot.slane %v484_v31, 7  ;;  %v7579_v56 = vld [vmem:[#allocation4 + $0x854] ss:$8 sps:$4 sm:$0xff]   ;;  %v434_v6 = vld [vmem:[%s8409_s8 + $0x38] sm:$0xff] }
  0xcc   : > { %5894 = vmatprep.subr.bf16.mxu0 %v7567_v9  ;;  %710 = vst [vmem:[#allocation2 + $0x50] sm:$0xc] %v709_v39  ;;  %713 = vst [vmem:[#allocation2 + $0x68] sm:$0xc] %v712_v50  ;;  %v7630_v3 = vld [vmem:[#allocation4 + $0x1e4] ss:$8 sps:$4 sm:$0xff]  }
  0xcd   : > { %5402 = vmatpush1.bf16.msra.mxu1 %v7616_v54  ;;  %618 = vst [vmem:[#allocation2 + $0x80] sm:$0x3] %v617_v52  ;;  %621 = vst [vmem:[#allocation2 + $0x98] sm:$0x3] %v620_v57  ;;  %v489_v2 = vor.u32 %v487_v32, %v8715_v53  ;;  %v350_v5 = vld [vmem:[#allocation2 + $0xc0] sm:$0x11] }
  0xce   : > { %5403 = vmatprep.subr.bf16.mxu1 %v7624_v19  ;;  %v788_v63 = vld [vmem:[#allocation2 + $0x8c] sm:$0x1]  ;;  %v794_v1 = vld [vmem:[#allocation2 + $0xa4] sm:$0x1]  ;;  %v409_v7 = vld [vmem:[#allocation2 + $0xb4] sm:$0x11] }
  0xcf   : > { %5895 = vmatpush1.bf16.msra.mxu0 %v7565_v11  ;;  %v8723_v9 = vld [vmem:[#allocation2 + $0x5c] sm:$0x1]  ;;  %v789_v54 = vsel %vm8377_vm4, %v8719_v62, %v788_v63  ;;  %v795_v12 = vsel %vm8377_vm4, %v8719_v62, %v794_v1  ;;  %v351_v13 = vsel %vm8387_vm6, 0, %v350_v5  ;;  %v410_v15 = vsel %vm8420_vm12, 0, %v409_v7  ;;  %v415_v16 = vld [vmem:[#allocation2 + $0xcc] sm:$0x11] }
  0xd0   : > { %5896 = vmatprep.subr.bf16.mxu0 %v7573_v33  ;;  %790 = vst [vmem:[#allocation2 + $0x8c] sm:$0x1] %v789_v54  ;;  %796 = vst [vmem:[#allocation2 + $0xa4] sm:$0x1] %v795_v12  ;;  %v416_v18 = vsel %vm8420_vm12, 0, %v415_v16  ;;  %v648_v11 = vrot.slane %v643_v23, %v8471_v37  ;;  %v492_v20 = vshrl.u32 %v434_v6, 16 }
  0xd1   : > { %5404 = vmatpush1.bf16.msra.mxu1 %v7622_v22  ;;  %352 = vst [vmem:[#allocation2 + $0xc0] sm:$0x11] %v351_v13  ;;  %411 = vst [vmem:[#allocation2 + $0xb4] sm:$0x11] %v410_v15  ;;  %v7577_v19 = vld [vmem:[#allocation4 + $0x850] ss:$8 sps:$4 sm:$0xff]  }
  0xd2   : > { %5405 = vmatprep.subr.bf16.mxu1 %v7630_v3  ;;  %417 = vst [vmem:[#allocation2 + $0xcc] sm:$0x11] %v416_v18  ;;  %v495_v10 = vshll.u32 %v434_v6, 16  ;;  %v7585_v49 = vld [vmem:[#allocation4 + $0x864] ss:$8 sps:$4 sm:$0xff]   ;;  %v1615_v22 = vshll.u32 %v8723_v9, 16 }
  0xd3   : > { %5897 = vmatpush1.bf16.msra.mxu0 %v7571_v51  ;;  %v490_v25 = vrot.slane %v8715_v53, 4  ;;  %v557_v24 = vld [vmem:[#allocation2 + $0xa8] sm:$0xff]  ;;  %v773_v26 = vld [vmem:[#allocation2 + $0x50] sm:$0x8]  ;;  %v494_v31 = vrot.slane %v492_v20, 7 }
  0xd4   : > { %5898 = vmatprep.subr.bf16.mxu0 %v7579_v56  ;;  %v8742_v29 = vsel %vm8452_vm1, %v489_v2, %v557_v24  ;;  %v347_v32 = vld [vmem:[#allocation2 + $0xb0] sm:$0x1]  ;;  %v774_v33 = vsel %vm8560_vm7, %v8629_v48, %v773_v26  ;;  %v779_v39 = vld [vmem:[#allocation2 + $0x68] sm:$0x8]  ;;  %v671_v41 = vld [vmem:[#allocation2 + $0x80] sm:$0x6] }
  0xd5   : > { %5406 = vmatpush1.bf16.msra.mxu1 %v7628_v55  ;;  %v7583_v23 = vld [vmem:[#allocation4 + $0x860] ss:$8 sps:$4 sm:$0xff]   ;;  %559 = vst [vmem:[#allocation2 + $0xa8] sm:$0xff] %v8742_v29  ;;  %v6599_v42 = vcombine.high %v8696_v17, %v8742_v29  ;;  %v6598_v46 = vcombine.low %v8696_v17, %v8742_v29  ;;  %v353_v51 = vld [vmem:[#allocation2 + $0xc8] sm:$0x1]  ;;  %v780_v52 = vsel %vm8560_vm7, %v8629_v48, %v779_v39  ;;  %v498_v56 = vrot.slane %v494_v31, 4 }
  0xd6   : > { %v7591_v50 = vld [vmem:[#allocation4 + $0x874] ss:$8 sps:$4 sm:$0xff]   ;;  %775 = vst [vmem:[#allocation2 + $0x50] sm:$0x8] %v774_v33  ;;  %v672_v47 = vsel %vm8529_vm13, %v648_v11, %v671_v41  ;;  %v674_v53 = vld [vmem:[#allocation2 + $0x98] sm:$0x6]  ;;  %v497_v55 = vor.u32 %v495_v10, %v494_v31 }
  0xd7   : > { %v412_v57 = vld [vmem:[#allocation2 + $0xbc] sm:$0x1]  ;;  %5899 = vmatpush1.bf16.msra.mxu0 %v7577_v19  ;;  %781 = vst [vmem:[#allocation2 + $0x68] sm:$0x8] %v780_v52  ;;  %v8757_v63 = vld [vmem:[#allocation2 + $0x74] sm:$0x1]  ;;  %v675_v17 = vsel %vm8529_vm13, %v648_v11, %v674_v53  ;;  %5366 = vmatprep.mubr.bf16.mxu1 %v6599_v42 }
  0xd8   : > { %v8759_v1 = vld [vmem:[#allocation2 + $0x78] sm:$0xee]  ;;  %673 = vst [vmem:[#allocation2 + $0x80] sm:$0x6] %v672_v47  ;;  %v348_v48 = vsel %vm8377_vm4, 0, %v347_v32  ;;  %v354_v3 = vsel %vm8377_vm4, 0, %v353_v51  ;;  %5900 = vmatprep.subr.bf16.mxu0 %v7585_v49  ;;  %5367 = vmatmul.mubr.bf16.gmra.mrb[12].mxu1 %v6598_v46 }
  0xd9   : > { %v413_v2 = vsel %vm8394_vm9, 0, %v412_v57  ;;  %v418_v5 = vld [vmem:[#allocation2 + $0xd4] sm:$0x1]  ;;  %v8769_v7 = vld [vmem:[#allocation2 + $0x84] sm:$0x11]  ;;  %v8790_v32 = vrot.slane %v1615_v22, 5 }
  0xda   : > { %v8771_v6 = vld [vmem:[#allocation2 + $0x90] sm:$0xee]  ;;  %676 = vst [vmem:[#allocation2 + $0x98] sm:$0x6] %v675_v17  ;;  %v560_v54 = vld [vmem:[#allocation2 + $0xb4] sm:$0x11] }
  0xdb   : > { %349 = vst [vmem:[#allocation2 + $0xb0] sm:$0x1] %v348_v48  ;;  %355 = vst [vmem:[#allocation2 + $0xc8] sm:$0x1] %v354_v3  ;;  %v8773_v12 = vld [vmem:[#allocation2 + $0x9c] sm:$0x11]  ;;  %v561_v13 = vsel %vm8387_vm6, %v490_v25, %v560_v54  ;;  %5901 = vmatpush1.bf16.msra.mxu0 %v7583_v23  ;;  %v694_v25 = vrot.slane %v8688_v8, %v8503_v61 }
  0xdc   : > { %414 = vst [vmem:[#allocation2 + $0xbc] sm:$0x1] %v413_v2  ;;  %v563_v15 = vld [vmem:[#allocation2 + $0xc0] sm:$0xff]  ;;  %v566_v16 = vld [vmem:[#allocation2 + $0xcc] sm:$0x11]  ;;  %v419_v18 = vsel %vm8394_vm9, 0, %v418_v5  ;;  %5902 = vmatprep.subr.bf16.mxu0 %v7591_v50 }
  0xdd   : > { %562 = vst [vmem:[#allocation2 + $0xb4] sm:$0x11] %v561_v13  ;;  %v564_v19 = vsel %vm8452_vm1, %v497_v55, %v563_v15  ;;  %v567_v11 = vsel %vm8387_vm6, %v498_v56, %v566_v16  ;;  %420 = vst [vmem:[#allocation2 + $0xd4] sm:$0x1] %v419_v18  ;;  %v572_v20 = vld [vmem:[%s8459_s26 + $0x6] sm:$0x3] }
  0xde   : > { %v7634_v10 = vld [vmem:[#allocation4 + $0x1f0] ss:$8 sps:$4 sm:$0xff]   ;;  %v7636_v49 = vld [vmem:[#allocation4 + $0x1f4] ss:$8 sps:$4 sm:$0xff]   ;;  %565 = vst [vmem:[#allocation2 + $0xc0] sm:$0xff] %v564_v19  ;;  %v8786_v26 = vpack.i.b16 %v572_v20, %v572_v20  ;;  %v649_v31 = vshrl.u32 %v572_v20, 16 }
  0xdf   : > { %v7589_v24 = vld [vmem:[#allocation4 + $0x870] ss:$8 sps:$4 sm:$0xff]   ;;  %568 = vst [vmem:[#allocation2 + $0xcc] sm:$0x11] %v567_v11  ;;  %v1643_v33 = vshll.u32 %v8757_v63, 16  ;;  %v6673_v39 = vrot.slane %v8759_v1, 9  ;;  %5407 = vmatprep.subr.bf16.mxu1 %v7636_v49 }
  0xe0   : > { %v6675_v23 = vrot.slane %v8771_v6, 9  ;;  %v7595_v41 = vld [vmem:[#allocation4 + $0x880] ss:$8 sps:$4 sm:$0xff]   ;;  %v1917_v42 = vrot.slane %v8769_v7, 5  ;;  %v1925_v46 = vrot.slane %v8773_v12, 5  ;;  %v600_v51 = vrot.slane %v8786_v26, %v8471_v37  ;;  %5408 = vmatpush1.bf16.msra.mxu1 %v7634_v10  ;;  %5903 = vmatpush1.bf16.msra.mxu0 %v7589_v24  ;;  %v901_v16 = vld [vmem:[#allocation2] sm:$0xff] }
  0xe1   : > { %v1512_v8 = vld [vmem:[#allocation2 + $0x50] sm:$0xf]  ;;  %v1516_v22 = vld [vmem:[#allocation2 + $0x68] sm:$0xf]  ;;  %v714_v47 = vld [vmem:[#allocation2 + $0x80] sm:$0xc]  ;;  %v650_v1 = vpack.i.b16 %v649_v31, %v649_v31  ;;  %5904 = vmatprep.subr.bf16.mxu0 %v7597_v21  ;;  %v698_v27 = vrot.slane %v8786_v26, %v8503_v61 }
  0xe2   : > { %v367_v9 = vld [vmem:[#allocation2 + $0xc] sm:$0x11]  ;;  %v1606_v50 = vshrl.u32 %v1512_v8, 16  ;;  %v1609_v52 = vshll.u32 %v1512_v8, 16  ;;  %v1634_v53 = vshrl.u32 %v1516_v22, 16  ;;  %v1637_v55 = vshll.u32 %v1516_v22, 16 }
  0xe3   : > { %v715_v56 = vsel %vm8551_vm0, %v694_v25, %v714_v47  ;;  %v717_v57 = vld [vmem:[#allocation2 + $0x98] sm:$0xc]  ;;  %v622_v63 = vld [vmem:[#allocation2 + $0xb0] sm:$0x3]  ;;  %v7603_v17 = vld [vmem:[#allocation4 + $0x894] ss:$8 sps:$4 sm:$0xff]   ;;  %v741_v15 = vrot.slane %v650_v1, %v8503_v61  ;;  %v8816_v58 = vsel %vm8516_vm11, %v6675_v23, %v1925_v46 }
  0xe4   : > { %v1608_v48 = vrot.slane %v1606_v50, 4  ;;  %v1611_v3 = vrot.slane %v1609_v52, 5  ;;  %716 = vst [vmem:[#allocation2 + $0x80] sm:$0xc] %v715_v56  ;;  %v718_v2 = vsel %vm8551_vm0, %v694_v25, %v717_v57  ;;  %v623_v5 = vsel %vm8498_vm3, %v600_v51, %v622_v63  ;;  %v625_v7 = vld [vmem:[#allocation2 + $0xc8] sm:$0x3]  ;;  %5905 = vmatpush1.bf16.msra.mxu0 %v7595_v41 }
  0xe5   : > { %v7601_v6 = vld [vmem:[#allocation4 + $0x890] ss:$8 sps:$4 sm:$0xff]   ;;  %v1636_v54 = vrot.slane %v1634_v53, 4  ;;  %v1639_v12 = vrot.slane %v1637_v55, 5  ;;  %719 = vst [vmem:[#allocation2 + $0x98] sm:$0xc] %v718_v2  ;;  %v626_v13 = vsel %vm8498_vm3, %v600_v51, %v625_v7  ;;  %v8812_v25 = vsel %vm8516_vm11, %v6673_v39, %v1917_v42  ;;  %5906 = vmatprep.subr.bf16.mxu0 %v7603_v17 }
  0xe6   : > { %624 = vst [vmem:[#allocation2 + $0xb0] sm:$0x3] %v623_v5  ;;  %v7609_v18 = vld [vmem:[#allocation4 + $0x8a4] ss:$8 sps:$4 sm:$0xff]   ;;  %v1612_v19 = vor.u32 %v1611_v3, %v1608_v48  ;;  %v1645_v11 = vrot.slane %v1643_v33, 5  ;;  %v368_v49 = vsel %vm8420_vm12, 0, %v367_v9  ;;  %v8818_v31 = vcombine.low %v741_v15, %v741_v15 }
  0xe7   : > { %627 = vst [vmem:[#allocation2 + $0xc8] sm:$0x3] %v626_v13  ;;  %v800_v20 = vld [vmem:[#allocation2 + $0xbc] sm:$0x1]  ;;  %v806_v10 = vld [vmem:[#allocation2 + $0xd4] sm:$0x1]  ;;  %v1640_v24 = vor.u32 %v1639_v12, %v1636_v54  ;;  %v655_v41 = vrot.slane %v650_v1, %v8471_v37  ;;  %v6687_v52 = vcombine.low %v8812_v25, %v8816_v58  ;;  %v6688_v36 = vcombine.high %v8812_v25, %v8816_v58 }
  0xe8   : > { %369 = vst [vmem:[#allocation2 + $0xc] sm:$0x11] %v368_v49  ;;  %v905_v21 = vld [vmem:[#allocation2 + $0x18] sm:$0xff]  ;;  %v1613_v33 = vrot.slane %v1612_v19, 4  ;;  %v907_v8 = vld [vmem:[#allocation2 + $0x24] sm:$0x11]  ;;  %v801_v39 = vsel %vm8377_vm4, %v8818_v31, %v800_v20  ;;  %v807_v23 = vsel %vm8377_vm4, %v8818_v31, %v806_v10  ;;  %5907 = vmatpush1.bf16.msra.mxu0 %v7601_v6 }
  0xe9   : > { %v937_v51 = vshrl.u32 %v901_v16, 16  ;;  %v940_v22 = vshll.u32 %v901_v16, 16  ;;  %v1641_v9 = vrot.slane %v1640_v24, 4  ;;  %v7642_v42 = vld [vmem:[#allocation4 + $0x204] ss:$8 sps:$4 sm:$0xff]   ;;  %v965_v57 = vshrl.u32 %v905_v21, 16  ;;  %5908 = vmatprep.subr.bf16.mxu0 %v7609_v18 }
  0xea   : > { %v7607_v46 = vld [vmem:[#allocation4 + $0x8a0] ss:$8 sps:$4 sm:$0xff]   ;;  %v1618_v50 = vsel %vm8625_vm14, %v1613_v33, %v8790_v32  ;;  %802 = vst [vmem:[#allocation2 + $0xbc] sm:$0x1] %v801_v39  ;;  %808 = vst [vmem:[#allocation2 + $0xd4] sm:$0x1] %v807_v23  ;;  %5450 = vmatprep.subr.bf16.mxu1 %v7642_v42 }
  0xeb   : > { %v939_v47 = vrot.slane %v937_v51, 4  ;;  %v942_v53 = vrot.slane %v940_v22, 5  ;;  %v1646_v55 = vsel %vm8625_vm14, %v1641_v9, %v1645_v11  ;;  %v785_v56 = vld [vmem:[#allocation2 + $0x80] sm:$0x8]  ;;  %v968_v63 = vshll.u32 %v905_v21, 16 }
  0xec   : > { %v974_v1 = vshll.u32 %v907_v8, 16  ;;  %v6658_v17 = vcombine.low %v1618_v50, %v1646_v55  ;;  %v7615_v48 = vld [vmem:[#allocation4 + $0x8b4] ss:$8 sps:$4 sm:$0xff]   ;;  %v786_v32 = vsel %vm8560_vm7, %v8719_v62, %v785_v56  ;;  %v791_v3 = vld [vmem:[#allocation2 + $0x98] sm:$0x8]  ;;  %v967_v13 = vrot.slane %v965_v57, 4  ;;  %5909 = vmatpush1.bf16.msra.mxu0 %v7607_v46 }
  0xed   : > { %v677_v2 = vld [vmem:[#allocation2 + $0xb0] sm:$0x6]  ;;  %v943_v5 = vor.u32 %v942_v53, %v939_v47  ;;  %v7613_v7 = vld [vmem:[#allocation4 + $0x8b0] ss:$8 sps:$4 sm:$0xff]   ;;  %787 = vst [vmem:[#allocation2 + $0x80] sm:$0x8] %v786_v32  ;;  %v792_v6 = vsel %vm8560_vm7, %v8719_v62, %v791_v3  ;;  %5910 = vmatprep.subr.bf16.mxu0 %v7615_v48 }
  0xee   : > { %v678_v54 = vsel %vm8529_vm13, %v655_v41, %v677_v2  ;;  %v680_v12 = vld [vmem:[#allocation2 + $0xc8] sm:$0x6]  ;;  %v970_v15 = vrot.slane %v968_v63, 5  ;;  %5858 = vmatmul.mubr.bf16.gmra.mrb[4].mxu0 %v6658_v17  ;;  %v7621_v16 = vld [vmem:[#allocation4 + $0x8c4] ss:$8 sps:$4 sm:$0xff]   ;;  %v976_v24 = vrot.slane %v974_v1, 5 }
  0xef   : > { %793 = vst [vmem:[#allocation2 + $0x98] sm:$0x8] %v792_v6  ;;  %v1522_v18 = vld [vmem:[#allocation2 + $0x8c] sm:$0x1]  ;;  %679 = vst [vmem:[#allocation2 + $0xb0] sm:$0x6] %v678_v54  ;;  %v681_v19 = vsel %vm8529_vm13, %v655_v41, %v680_v12  ;;  %5867 = vmatprep.mubr.bf16.mxu0 %v6687_v52 }
  0xf0   : > { %v903_v11 = vld [vmem:[#allocation2 + $0xc] sm:$0x11]  ;;  %v1526_v20 = vld [vmem:[#allocation2 + $0xa4] sm:$0x1]  ;;  %682 = vst [vmem:[#allocation2 + $0xc8] sm:$0x6] %v681_v19  ;;  %v971_v49 = vor.u32 %v970_v15, %v967_v13  ;;  %5911 = vmatpush1.bf16.msra.mxu0 %v7613_v7 }
  0xf1   : > { %v944_v62 = vrot.slane %v943_v5, 4  ;;  %v946_v10 = vshll.u32 %v903_v11, 16  ;;  %v305_v21 = vld [vmem:[#allocation2 + $0x8] sm:$0x1]  ;;  %v1843_v33 = vld [vmem:[#allocation2 + $0xa8] sm:$0xee]  ;;  %5912 = vmatprep.subr.bf16.mxu0 %v7621_v16 }
  0xf2   : > { %v1845_v8 = vld [vmem:[#allocation2 + $0xb4] sm:$0x11]  ;;  %v972_v22 = vrot.slane %v971_v49, 4  ;;  %v7627_v39 = vld [vmem:[#allocation4 + $0x8d4] ss:$8 sps:$4 sm:$0xff]   ;;  %v306_v41 = vsel %vm8377_vm4, 0, %v305_v21 }
  0xf3   : > { %v948_v51 = vrot.slane %v946_v10, 5  ;;  %v7619_v9 = vld [vmem:[#allocation4 + $0x8c0] ss:$8 sps:$4 sm:$0xff]   ;;  %v1671_v23 = vshll.u32 %v1522_v18, 16  ;;  %v1699_v42 = vshll.u32 %v1526_v20, 16  ;;  %v6677_v26 = vrot.slane %v1843_v33, 9 }
  0xf4   : > { %v1847_v46 = vld [vmem:[#allocation2 + $0xc0] sm:$0xee]  ;;  %v1849_v50 = vld [vmem:[#allocation2 + $0xcc] sm:$0x11]  ;;  %v8854_v47 = vsel %vm8625_vm14, %v972_v22, %v976_v24  ;;  %307 = vst [vmem:[#allocation2 + $0x8] sm:$0x1] %v306_v41  ;;  %5913 = vmatpush1.bf16.msra.mxu0 %v7619_v9 }
  0xf5   : > { %v8850_v52 = vsel %vm8625_vm14, %v944_v62, %v948_v51  ;;  %v1520_v53 = vld [vmem:[#allocation2 + $0x80] sm:$0xf]  ;;  %v1933_v55 = vrot.slane %v1845_v8, 5  ;;  %v6679_v5 = vrot.slane %v1847_v46, 9  ;;  %v1941_v13 = vrot.slane %v1849_v50, 5  ;;  %5914 = vmatprep.subr.bf16.mxu0 %v7627_v39 }
  0xf6   : > { %v6601_v56 = vcombine.low %v8850_v52, %v8854_v47  ;;  %v6602_v57 = vcombine.high %v8850_v52, %v8854_v47  ;;  %v1524_v63 = vld [vmem:[#allocation2 + $0x98] sm:$0xf]  ;;  %v1662_v1 = vshrl.u32 %v1520_v53, 16  ;;  %v1665_v17 = vshll.u32 %v1520_v53, 16  ;;  %v7625_v48 = vld [vmem:[#allocation4 + $0x8d0] ss:$8 sps:$4 sm:$0xff]  }
  0xf7   : > { %v720_v32 = vld [vmem:[#allocation2 + $0xb0] sm:$0xc]  ;;  %v1690_v3 = vshrl.u32 %v1524_v63, 16  ;;  %v1693_v2 = vshll.u32 %v1524_v63, 16  ;;  %v723_v6 = vld [vmem:[#allocation2 + $0xc8] sm:$0xc]  ;;  %v8866_v8 = vsel %vm8516_vm11, %v6677_v26, %v1933_v55  ;;  %v8870_v44 = vsel %vm8516_vm11, %v6679_v5, %v1941_v13 }
  0xf8   : > { %v721_v7 = vsel %vm8551_vm0, %v698_v27, %v720_v32  ;;  %5409 = vmatprep.mubr.bf16.mxu1 %v6601_v56  ;;  %v1664_v54 = vrot.slane %v1662_v1, 4  ;;  %v1667_v12 = vrot.slane %v1665_v17, 5  ;;  %v724_v15 = vsel %vm8551_vm0, %v698_v27, %v723_v6  ;;  %v7633_v19 = vld [vmem:[#allocation4 + $0x8e4] ss:$8 sps:$4 sm:$0xff]   ;;  %v7640_v62 = vld [vmem:[#allocation4 + $0x200] ss:$8 sps:$4 sm:$0xff]   ;;  %5915 = vmatpush1.bf16.msra.mxu0 %v7625_v48 }
  0xf9   : > { %722 = vst [vmem:[#allocation2 + $0xb0] sm:$0xc] %v721_v7  ;;  %v1692_v16 = vrot.slane %v1690_v3, 4  ;;  %v1695_v18 = vrot.slane %v1693_v2, 5  ;;  %725 = vst [vmem:[#allocation2 + $0xc8] sm:$0xc] %v724_v15  ;;  %5916 = vmatprep.subr.bf16.mxu0 %v7633_v19 }
  0xfa   : > { %v1668_v11 = vor.u32 %v1667_v12, %v1664_v54  ;;  %v1673_v20 = vrot.slane %v1671_v23, 5  ;;  %v7649_v10 = vld [vmem:[#allocation4 + $0x214] ss:$8 sps:$4 sm:$0xff]   ;;  %v1701_v24 = vrot.slane %v1699_v42, 5  ;;  %v7631_v51 = vld [vmem:[#allocation4 + $0x8e0] ss:$8 sps:$4 sm:$0xff]   ;;  %v6690_v23 = vcombine.low %v8866_v8, %v8870_v44 }
  0xfb   : > { %v1696_v49 = vor.u32 %v1695_v18, %v1692_v16  ;;  %v7646_v21 = vld [vmem:[#allocation2 + $0x8] ss:$24 sps:$4 sm:$0xff]   ;;  %v7639_v9 = vld [vmem:[#allocation4 + $0x8f4] ss:$8 sps:$4 sm:$0xff]   ;;  %v7655_v50 = vld [vmem:[#allocation4 + $0x224] ss:$8 sps:$4 sm:$0xff]  }
  0xfc   : > { %v1669_v33 = vrot.slane %v1668_v11, 4  ;;  %5410 = vmatmul.mubr.bf16.vlgmr.msra.gmra.mrb[0].mxu1 %v7646_v21  ;;  %v7647_v27 = vld [vmem:[#allocation4 + $0x210] ss:$8 sps:$4 sm:$0xff]   ;;  %5917 = vmatpush1.bf16.msra.mxu0 %v7631_v51  ;;  %v7645_v1 = vld [vmem:[#allocation4 + $0x904] ss:$8 sps:$4 sm:$0xff]  }
  0xfd   : > { %v1697_v22 = vrot.slane %v1696_v49, 4  ;;  %5451 = vmatpush1.bf16.msra.mxu1 %v7640_v62  ;;  %v7637_v46 = vld [vmem:[#allocation4 + $0x8f0] ss:$8 sps:$4 sm:$0xff]   ;;  %5918 = vmatprep.subr.bf16.mxu0 %v7639_v9  ;;  %v1822_v17 = vld [vmem:[#allocation2 + $0x2c] sm:$0x1] }
  0xfe   : > { %v1674_v39 = vsel %vm8625_vm14, %v1669_v33, %v1673_v20  ;;  %5452 = vmatprep.subr.bf16.mxu1 %v7649_v10  ;;  %v1820_v63 = vld [vmem:[#allocation2 + $0x20] sm:$0xe]  ;;  %v1824_v48 = vld [vmem:[#allocation2 + $0x38] sm:$0xe]  ;;  %v7661_v3 = vld [vmem:[#allocation4 + $0x234] ss:$8 sps:$4 sm:$0xff]  }
  0xff   : > { %v1702_v41 = vsel %vm8625_vm14, %v1697_v22, %v1701_v24  ;;  %v7653_v32 = vld [vmem:[#allocation4 + $0x220] ss:$8 sps:$4 sm:$0xff]   ;;  %v1826_v2 = vld [vmem:[#allocation2 + $0x44] sm:$0x1]  ;;  %v1530_v5 = vld [vmem:[#allocation2 + $0xbc] sm:$0x1] }
 0x100   : > { %v797_v42 = vld [vmem:[#allocation2 + $0xb0] sm:$0x8]  ;;  %v6661_v53 = vcombine.low %v1674_v39, %v1702_v41  ;;  %v803_v55 = vld [vmem:[#allocation2 + $0xc8] sm:$0x8]  ;;  %5919 = vmatpush1.bf16.msra.mxu0 %v7637_v46  ;;  %v1534_v7 = vld [vmem:[#allocation2 + $0xd4] sm:$0x1] }
 0x101   : > { %v798_v26 = vsel %vm8560_vm7, %v8818_v31, %v797_v42  ;;  %v804_v56 = vsel %vm8560_vm7, %v8818_v31, %v803_v55  ;;  %5453 = vmatpush1.bf16.msra.mxu1 %v7647_v27  ;;  %5961 = vmatprep.subr.bf16.mxu0 %v7645_v1  ;;  %v6666_v6 = vrot.slane %v1820_v63, 9  ;;  %v1889_v31 = vrot.slane %v1822_v17, 5  ;;  %v7667_v12 = vld [vmem:[#allocation4 + $0x244] ss:$8 sps:$4 sm:$0xff]   ;;  %v7665_v49 = vld [vmem:[#allocation4 + $0x240] ss:$8 sps:$4 sm:$0xff]  }
 0x102   : > { %799 = vst [vmem:[#allocation2 + $0xb0] sm:$0x8] %v798_v26  ;;  %5868 = vmatmul.mubr.bf16.gmra.mrb[8].mxu0 %v6661_v53  ;;  %805 = vst [vmem:[#allocation2 + $0xc8] sm:$0x8] %v804_v56  ;;  %5454 = vmatprep.subr.bf16.mxu1 %v7655_v50  ;;  %v6668_v54 = vrot.slane %v1824_v48, 9  ;;  %v1727_v15 = vshll.u32 %v1530_v5, 16 }
 0x103   : > { %5877 = vmatprep.mubr.bf16.mxu0 %v6690_v23  ;;  %v1755_v16 = vshll.u32 %v1534_v7, 16  ;;  %v1897_v18 = vrot.slane %v1826_v2, 5  ;;  %v7673_v33 = vld [vmem:[#allocation4 + $0x254] ss:$8 sps:$4 sm:$0xff]   ;;  %v1890_v9 = vsel %vm8516_vm11, %v6666_v6, %v1889_v31  ;;  %v1133_v42 = vshrl.u32 %v8742_v29, 16  ;;  %v8889_v26 = vld [vmem:[#allocation2 + $0x30] sm:$0xff] }
 0x104   : > { %v1729_v41 = vrot.slane %v1727_v15, 5  ;;  %v7671_v50 = vld [vmem:[#allocation4 + $0x250] ss:$8 sps:$4 sm:$0xff]   ;;  %v7679_v53 = vld [vmem:[#allocation4 + $0x264] ss:$8 sps:$4 sm:$0xff]   ;;  %v1136_v55 = vshll.u32 %v8742_v29, 16 }
 0x105   : > { %5455 = vmatpush1.bf16.msra.mxu1 %v7653_v32  ;;  %v1898_v39 = vsel %vm8516_vm11, %v6668_v54, %v1897_v18  ;;  %v1757_v23 = vrot.slane %v1755_v16, 5  ;;  %v911_v1 = vld [vmem:[#allocation2 + $0x3c] sm:$0x11]  ;;  %v8892_v17 = vld [vmem:[#allocation2 + $0x48] sm:$0xff]  ;;  %v915_v48 = vld [vmem:[#allocation2 + $0x54] sm:$0x11] }
 0x106   : > { %5456 = vmatprep.subr.bf16.mxu1 %v7661_v3  ;;  %v6683_v63 = vcombine.low %v1890_v9, %v1898_v39  ;;  %v993_v3 = vshrl.u32 %v8889_v26, 16  ;;  %v996_v2 = vshll.u32 %v8889_v26, 16  ;;  %v1002_v5 = vshll.u32 %v911_v1, 16  ;;  %v7677_v6 = vld [vmem:[#allocation4 + $0x260] ss:$8 sps:$4 sm:$0xff]  }
 0x107   : > { %v1024_v29 = vshll.u32 %v8892_v17, 16  ;;  %v1030_v31 = vshll.u32 %v915_v48, 16  ;;  %v7689_v1 = vld [vmem:[#allocation4 + $0x280] ss:$8 sps:$4 sm:$0xff]   ;;  %v1842_v28 = vld [vmem:[#allocation2 + $0xa4] sm:$0x1] }
 0x108   : > { %v998_v15 = vrot.slane %v996_v2, 5  ;;  %v1004_v16 = vrot.slane %v1002_v5, 5  ;;  %v7697_v2 = vld [vmem:[#allocation4 + $0x294] ss:$8 sps:$4 sm:$0xff]   ;;  %v7717_v52 = vld [vmem:[#allocation4 + $0x9c0] ss:$8 sps:$4 sm:$0xff]  }
 0x109   : > { %v1528_v13 = vld [vmem:[#allocation2 + $0xb0] sm:$0xf]  ;;  %v1532_v19 = vld [vmem:[#allocation2 + $0xc8] sm:$0xf]  ;;  %5457 = vmatpush1.bf16.msra.mxu1 %v7659_v60  ;;  %v1021_v60 = vshrl.u32 %v8892_v17, 16 }
 0x10a   : > { %v1718_v11 = vshrl.u32 %v1528_v13, 16  ;;  %v1721_v20 = vshll.u32 %v1528_v13, 16  ;;  %v1746_v62 = vshrl.u32 %v1532_v19, 16  ;;  %v1749_v10 = vshll.u32 %v1532_v19, 16  ;;  %5458 = vmatprep.subr.bf16.mxu1 %v7667_v12  ;;  %v7685_v12 = vld [vmem:[#allocation4 + $0x274] ss:$8 sps:$4 sm:$0xff]  }
 0x10b   : > { %v995_v13 = vrot.slane %v993_v3, 4  ;;  %v1023_v19 = vrot.slane %v1021_v60, 4  ;;  %v7652_v3 = vld [vmem:[#allocation4 + $0x914] ss:$8 sps:$4 sm:$0xff]   ;;  %v8920_v60 = vrot.slane %v1136_v55, 5 }
 0x10c   : > { %v1720_v24 = vrot.slane %v1718_v11, 4  ;;  %v1723_v21 = vrot.slane %v1721_v20, 5  ;;  %v1748_v51 = vrot.slane %v1746_v62, 4  ;;  %v1751_v22 = vrot.slane %v1749_v10, 5  ;;  %v1828_v62 = vld [vmem:[#allocation2 + $0x50] sm:$0xe] }
 0x10d   : > { %5459 = vmatpush1.bf16.msra.mxu1 %v7665_v49  ;;  %v1026_v11 = vrot.slane %v1024_v29, 5  ;;  %v1032_v20 = vrot.slane %v1030_v31, 5  ;;  %v999_v10 = vor.u32 %v998_v15, %v995_v13  ;;  %v1830_v49 = vld [vmem:[#allocation2 + $0x5c] sm:$0x1] }
 0x10e   : > { %v1724_v27 = vor.u32 %v1723_v21, %v1720_v24  ;;  %v1752_v46 = vor.u32 %v1751_v22, %v1748_v51  ;;  %5460 = vmatprep.subr.bf16.mxu1 %v7673_v33  ;;  %v1832_v24 = vld [vmem:[#allocation2 + $0x68] sm:$0xe]  ;;  %v1834_v21 = vld [vmem:[#allocation2 + $0x74] sm:$0x1]  ;;  %v6693_v33 = vcombine.low %v8889_v26, %v8892_v17  ;;  %v6670_v22 = vrot.slane %v1828_v62, 9 }
 0x10f   : > { %v1027_v51 = vor.u32 %v1026_v11, %v1023_v19  ;;  %v1905_v9 = vrot.slane %v1830_v49, 5  ;;  %v6672_v39 = vrot.slane %v1832_v24, 9  ;;  %v7650_v19 = vld [vmem:[#allocation4 + $0x910] ss:$8 sps:$4 sm:$0xff]   ;;  %v7658_v24 = vld [vmem:[#allocation4 + $0x924] ss:$8 sps:$4 sm:$0xff]  }
 0x110   : > { %v1725_v56 = vrot.slane %v1724_v27, 4  ;;  %v1753_v32 = vrot.slane %v1752_v46, 4  ;;  %v7683_v27 = vld [vmem:[#allocation4 + $0x270] ss:$8 sps:$4 sm:$0xff]   ;;  %v7691_v46 = vld [vmem:[#allocation4 + $0x284] ss:$8 sps:$4 sm:$0xff]  }
 0x111   : > { %5461 = vmatpush1.bf16.msra.mxu1 %v7671_v50  ;;  %v1028_v50 = vrot.slane %v1027_v51, 4  ;;  %v7695_v11 = vld [vmem:[#allocation4 + $0x290] ss:$8 sps:$4 sm:$0xff]   ;;  %v7768_v47 = vld [vmem:[#allocation4 + $0x344] ss:$8 sps:$4 sm:$0xff]  }
 0x112   : > { %v1730_v7 = vsel %vm8625_vm14, %v1725_v56, %v1729_v41  ;;  %v1758_v54 = vsel %vm8625_vm14, %v1753_v32, %v1757_v23  ;;  %5462 = vmatprep.subr.bf16.mxu1 %v7679_v53  ;;  %v1000_v41 = vrot.slane %v999_v10, 4  ;;  %v1913_v23 = vrot.slane %v1834_v21, 5  ;;  %v7643_v56 = vld [vmem:[#allocation4 + $0x900] ss:$8 sps:$4 sm:$0xff]   ;;  %v7703_v21 = vld [vmem:[#allocation4 + $0x2a4] ss:$8 sps:$4 sm:$0xff]  }
 0x113   : > { %v6664_v18 = vcombine.low %v1730_v7, %v1758_v54  ;;  %v1906_v53 = vsel %vm8516_vm11, %v6670_v22, %v1905_v9  ;;  %v8916_v5 = vsel %vm8625_vm14, %v1028_v50, %v1032_v20  ;;  %v7707_v7 = vld [vmem:[#allocation2 + $0x38] ss:$24 sps:$4 sm:$0xff]  }
 0x114   : > { %v8908_v48 = vsel %vm8625_vm14, %v1000_v41, %v1004_v16  ;;  %v1914_v32 = vsel %vm8516_vm11, %v6672_v39, %v1913_v23  ;;  %v919_v54 = vld [vmem:[#allocation2 + $0x6c] sm:$0x11] }
 0x115   : > { %5878 = vmatmul.mubr.bf16.gmra.mrb[12].mxu0 %v6664_v18  ;;  %5463 = vmatpush1.bf16.msra.mxu1 %v7677_v6  ;;  %v8918_v6 = vld [vmem:[#allocation2 + $0x60] sm:$0xff]  ;;  %v6604_v29 = vcombine.low %v8908_v48, %v8916_v5  ;;  %v6686_v31 = vcombine.low %v1906_v53, %v1914_v32  ;;  %v1058_v16 = vshll.u32 %v919_v54, 16  ;;  %v1838_v23 = vld [vmem:[#allocation2 + $0x8c] sm:$0x1] }
 0x116   : > { %5920 = vmatprep.mubr.bf16.mxu0 %v6683_v63  ;;  %5464 = vmatprep.subr.bf16.mxu1 %v7685_v12  ;;  %v8912_v63 = vrot.slane %v1133_v42, 4  ;;  %v8924_v12 = vld [vmem:[#allocation2 + $0x78] sm:$0xff]  ;;  %v923_v42 = vld [vmem:[#allocation2 + $0x84] sm:$0x11]  ;;  %v1049_v13 = vshrl.u32 %v8918_v6, 16  ;;  %v1052_v15 = vshll.u32 %v8918_v6, 16 }
 0x117   : > { %v1077_v18 = vshrl.u32 %v8924_v12, 16  ;;  %v1080_v55 = vshll.u32 %v8924_v12, 16  ;;  %5419 = vmatprep.mubr.bf16.mxu1 %v6604_v29  ;;  %v1086_v62 = vshll.u32 %v923_v42, 16  ;;  %v6697_v10 = vcombine.high %v8918_v6, %v8924_v12  ;;  %v7656_v29 = vld [vmem:[#allocation4 + $0x920] ss:$8 sps:$4 sm:$0xff]  }
 0x118   : > { %v1051_v20 = vrot.slane %v1049_v13, 4  ;;  %v6696_v49 = vcombine.low %v8918_v6, %v8924_v12  ;;  %5420 = vmatmul.mubr.bf16.gmra.mrb[4].mxu1 %v7707_v7  ;;  %v1054_v51 = vrot.slane %v1052_v15, 5  ;;  %v1060_v22 = vrot.slane %v1058_v16, 5  ;;  %v7664_v13 = vld [vmem:[#allocation4 + $0x934] ss:$8 sps:$4 sm:$0xff]  }
 0x119   : > { %5465 = vmatpush1.bf16.msra.mxu1 %v7683_v27  ;;  %v1079_v9 = vrot.slane %v1077_v18, 4  ;;  %v1082_v39 = vrot.slane %v1080_v55, 5  ;;  %v1836_v27 = vld [vmem:[#allocation2 + $0x80] sm:$0xe]  ;;  %v1088_v41 = vrot.slane %v1086_v62, 5  ;;  %v1921_v30 = vrot.slane %v1838_v23, 5 }
 0x11a   : > { %5466 = vmatprep.subr.bf16.mxu1 %v7691_v46  ;;  %v1840_v46 = vld [vmem:[#allocation2 + $0x98] sm:$0xe]  ;;  %v6674_v50 = vrot.slane %v1836_v27, 9  ;;  %v1055_v53 = vor.u32 %v1054_v51, %v1051_v20  ;;  %v1929_v7 = vrot.slane %v1842_v28, 5  ;;  %v1139_v54 = vor.u32 %v8920_v60, %v8912_v63  ;;  %v7710_v15 = vld [vmem:[#allocation4 + $0x2b4] ss:$8 sps:$4 sm:$0xff]  }
 0x11b   : > { %v1083_v32 = vor.u32 %v1082_v39, %v1079_v9  ;;  %v7662_v60 = vld [vmem:[#allocation4 + $0x930] ss:$8 sps:$4 sm:$0xff]   ;;  %v7670_v20 = vld [vmem:[#allocation4 + $0x944] ss:$8 sps:$4 sm:$0xff]   ;;  %v7676_v28 = vld [vmem:[#allocation4 + $0x954] ss:$8 sps:$4 sm:$0xff]  }
 0x11c   : > { %v1056_v42 = vrot.slane %v1055_v53, 4  ;;  %v7720_v55 = vld [vmem:[#allocation2 + $0x68] ss:$24 sps:$4 sm:$0xff]   ;;  %v7716_v27 = vld [vmem:[#allocation4 + $0x2c4] ss:$8 sps:$4 sm:$0xff]  }
 0x11d   : > { %5921 = vmatmul.mubr.bf16.vlgmr.msra.gmra.mrb[0].mxu0 %v6682_v34  ;;  %5467 = vmatpush1.bf16.msra.mxu1 %v7689_v1  ;;  %v6676_v34 = vrot.slane %v1840_v46, 9  ;;  %v1922_v1 = vsel %vm8516_vm11, %v6674_v50, %v1921_v30  ;;  %v927_v62 = vld [vmem:[#allocation2 + $0x9c] sm:$0x11]  ;;  %v1844_v46 = vld [vmem:[#allocation2 + $0xb0] sm:$0xe] }
 0x11e   : > { %5962 = vmatpush1.bf16.msra.mxu0 %v7643_v56  ;;  %5468 = vmatprep.subr.bf16.mxu1 %v7697_v2  ;;  %v1084_v56 = vrot.slane %v1083_v32, 4  ;;  %v1114_v9 = vshll.u32 %v927_v62, 16  ;;  %v7668_v50 = vld [vmem:[#allocation4 + $0x940] ss:$8 sps:$4 sm:$0xff]   ;;  %v1846_v53 = vld [vmem:[#allocation2 + $0xbc] sm:$0x1] }
 0x11f   : > { %5963 = vmatprep.subr.bf16.mxu0 %v7652_v3  ;;  %5930 = vmatprep.mubr.bf16.mxu0 %v6686_v31  ;;  %v7701_v3 = vld [vmem:[#allocation4 + $0x2a0] ss:$8 sps:$4 sm:$0xff]   ;;  %v1930_v2 = vsel %vm8516_vm11, %v6676_v34, %v1929_v7  ;;  %v8945_v31 = vsel %vm8625_vm14, %v1056_v42, %v1060_v22  ;;  %v7708_v22 = vld [vmem:[#allocation4 + $0x2b0] ss:$8 sps:$4 sm:$0xff]   ;;  %v1850_v34 = vld [vmem:[#allocation2 + $0xd4] sm:$0x1] }
 0x120   : > { %v8949_v63 = vsel %vm8625_vm14, %v1084_v56, %v1088_v41  ;;  %v6689_v18 = vcombine.low %v1922_v1, %v1930_v2  ;;  %v1116_v38 = vrot.slane %v1114_v9, 5  ;;  %v1848_v32 = vld [vmem:[#allocation2 + $0xc8] sm:$0xe]  ;;  %v1937_v7 = vrot.slane %v1846_v53, 5  ;;  %v7714_v42 = vld [vmem:[#allocation4 + $0x2c0] ss:$8 sps:$4 sm:$0xff]  }
 0x121   : > { %5469 = vmatpush1.bf16.msra.mxu1 %v7695_v11  ;;  %v6607_v16 = vcombine.low %v8945_v31, %v8949_v63  ;;  %v1140_v11 = vrot.slane %v1139_v54, 4  ;;  %v6680_v54 = vrot.slane %v1848_v32, 9  ;;  %v7723_v56 = vld [vmem:[#allocation4 + $0x2d4] ss:$8 sps:$4 sm:$0xff]   ;;  %v1945_v1 = vrot.slane %v1850_v34, 5 }
 0x122   : > { %5964 = vmatpush1.bf16.msra.mxu0 %v7650_v19  ;;  %5470 = vmatprep.subr.bf16.mxu1 %v7703_v21  ;;  %v8953_v19 = vld [vmem:[#allocation2 + $0x90] sm:$0xff]  ;;  %v9020_v12 = vld [vmem:[#allocation2 + $0xc0] sm:$0xff] }
 0x123   : > { %5965 = vmatprep.subr.bf16.mxu0 %v7658_v24  ;;  %v931_v24 = vld [vmem:[#allocation2 + $0xb4] sm:$0x11]  ;;  %v1105_v21 = vshrl.u32 %v8953_v19, 16  ;;  %v1108_v51 = vshll.u32 %v8953_v19, 16  ;;  %5429 = vmatprep.mubr.bf16.mxu1 %v6607_v16  ;;  %v1946_v2 = vsel %vm8516_vm11, %v6680_v54, %v1945_v1  ;;  %v7686_v54 = vld [vmem:[#allocation4 + $0x970] ss:$8 sps:$4 sm:$0xff]  }
 0x124   : > { %v1142_v39 = vshll.u32 %v931_v24, 16  ;;  %5430 = vmatmul.mubr.bf16.gmra.mrb[8].mxu1 %v7720_v55  ;;  %v7721_v55 = vld [vmem:[#allocation4 + $0x2d0] ss:$8 sps:$4 sm:$0xff]   ;;  %v370_v62 = vld [vmem:[#allocation2 + $0x14] sm:$0x1] }
 0x125   : > { %5931 = vmatmul.mubr.bf16.gmra.mrb[4].mxu0 %v6685_v4  ;;  %5471 = vmatpush1.bf16.msra.mxu1 %v7701_v3  ;;  %v1107_v41 = vrot.slane %v1105_v21, 4  ;;  %v1110_v23 = vrot.slane %v1108_v51, 5  ;;  %v7674_v3 = vld [vmem:[#allocation4 + $0x950] ss:$8 sps:$4 sm:$0xff]   ;;  %v371_v24 = vsel %vm8394_vm9, 0, %v370_v62 }
 0x126   : > { %5966 = vmatpush1.bf16.msra.mxu0 %v7656_v29  ;;  %5472 = vmatprep.subr.bf16.mxu1 %v7710_v15  ;;  %v1144_v4 = vrot.slane %v1142_v39, 5  ;;  %v6678_v29 = vrot.slane %v1844_v46, 9  ;;  %v7682_v15 = vld [vmem:[#allocation4 + $0x964] ss:$8 sps:$4 sm:$0xff]   ;;  %v902_v21 = vld [vmem:[#allocation2 + $0x8] sm:$0xf] }
 0x127   : > { %5967 = vmatprep.subr.bf16.mxu0 %v7664_v13  ;;  %5940 = vmatprep.mubr.bf16.mxu0 %v6689_v18  ;;  %v1111_v30 = vor.u32 %v1110_v23, %v1107_v41  ;;  %v7733_v18 = vld [vmem:[#allocation2 + $0x98] ss:$24 sps:$4 sm:$0xff]   ;;  %v906_v51 = vld [vmem:[#allocation2 + $0x20] sm:$0xf]  ;;  %372 = vst [vmem:[#allocation2 + $0x14] sm:$0x1] %v371_v24 }
 0x128   : > { %v8964_v25 = vsel %vm8625_vm14, %v1140_v11, %v1144_v4  ;;  %v1938_v58 = vsel %vm8516_vm11, %v6678_v29, %v1937_v7  ;;  %v951_v9 = vshrl.u32 %v902_v21, 16  ;;  %v954_v39 = vshll.u32 %v902_v21, 16  ;;  %v7680_v23 = vld [vmem:[#allocation4 + $0x960] ss:$8 sps:$4 sm:$0xff]   ;;  %v7698_v62 = vld [vmem:[#allocation4 + $0x990] ss:$8 sps:$4 sm:$0xff]  }
 0x129   : > { %5473 = vmatpush1.bf16.msra.mxu1 %v7708_v22  ;;  %v1112_v13 = vrot.slane %v1111_v30, 4  ;;  %v6692_v16 = vcombine.low %v1938_v58, %v1946_v2  ;;  %v908_v22 = vld [vmem:[#allocation2 + $0x2c] sm:$0x1]  ;;  %v982_v41 = vshll.u32 %v906_v51, 16  ;;  %v7727_v46 = vld [vmem:[#allocation4 + $0x2e0] ss:$8 sps:$4 sm:$0xff]   ;;  %v6694_v7 = vcombine.high %v8889_v26, %v8892_v17 }
 0x12a   : > { %5968 = vmatpush1.bf16.msra.mxu0 %v7662_v60  ;;  %5474 = vmatprep.subr.bf16.mxu1 %v7716_v27  ;;  %v979_v27 = vshrl.u32 %v906_v51, 16  ;;  %v956_v4 = vrot.slane %v954_v39, 5  ;;  %v7736_v30 = vld [vmem:[#allocation4 + $0x2f4] ss:$8 sps:$4 sm:$0xff]   ;;  %v7692_v2 = vld [vmem:[#allocation4 + $0x980] ss:$8 sps:$4 sm:$0xff]  }
 0x12b   : > { %5969 = vmatprep.subr.bf16.mxu0 %v7670_v20  ;;  %v8972_v60 = vsel %vm8625_vm14, %v1112_v13, %v1116_v38  ;;  %v7729_v20 = vld [vmem:[#allocation4 + $0x2e4] ss:$8 sps:$4 sm:$0xff]   ;;  %v953_v38 = vrot.slane %v951_v9, 4  ;;  %v984_v32 = vrot.slane %v982_v41, 5  ;;  %v7750_v24 = vld [vmem:[#allocation4 + $0x314] ss:$8 sps:$4 sm:$0xff]  }
 0x12c   : > { %v6610_v11 = vcombine.low %v8972_v60, %v8964_v25  ;;  %v981_v53 = vrot.slane %v979_v27, 4  ;;  %v7742_v13 = vld [vmem:[#allocation4 + $0x304] ss:$8 sps:$4 sm:$0xff]   ;;  %v7748_v51 = vld [vmem:[#allocation4 + $0x310] ss:$8 sps:$4 sm:$0xff]  }
 0x12d   : > { %5941 = vmatmul.mubr.bf16.gmra.mrb[8].mxu0 %v6688_v36  ;;  %5475 = vmatpush1.bf16.msra.mxu1 %v7714_v42  ;;  %v988_v36 = vshll.u32 %v908_v22, 16  ;;  %v957_v34 = vor.u32 %v956_v4, %v953_v38  ;;  %v7706_v21 = vld [vmem:[#allocation4 + $0x9a4] ss:$8 sps:$4 sm:$0xff]   ;;  %v7704_v22 = vld [vmem:[#allocation4 + $0x9a0] ss:$8 sps:$4 sm:$0xff]  }
 0x12e   : > { %5970 = vmatpush1.bf16.msra.mxu0 %v7668_v50  ;;  %5476 = vmatprep.subr.bf16.mxu1 %v7723_v56  ;;  %v6691_v50 = vcombine.high %v8866_v8, %v8870_v44  ;;  %v985_v29 = vor.u32 %v984_v32, %v981_v53  ;;  %v7734_v8 = vld [vmem:[#allocation4 + $0x2f0] ss:$8 sps:$4 sm:$0xff]   ;;  %v7694_v56 = vld [vmem:[#allocation4 + $0x984] ss:$8 sps:$4 sm:$0xff]   ;;  %v7713_v39 = vld [vmem:[#allocation4 + $0x9b4] ss:$8 sps:$4 sm:$0xff]  }
 0x12f   : > { %5971 = vmatprep.subr.bf16.mxu0 %v7676_v28  ;;  %5439 = vmatprep.mubr.bf16.mxu1 %v6610_v11  ;;  %v7688_v28 = vld [vmem:[#allocation4 + $0x974] ss:$8 sps:$4 sm:$0xff]   ;;  %v990_v42 = vrot.slane %v988_v36, 5  ;;  %v904_v1 = vld [vmem:[#allocation2 + $0x14] sm:$0x1]  ;;  %v958_v58 = vrot.slane %v957_v34, 4 }
 0x130   : > { %5950 = vmatprep.mubr.bf16.mxu0 %v6692_v16  ;;  %5440 = vmatmul.mubr.bf16.gmra.mrb[12].mxu1 %v7733_v18  ;;  %v986_v44 = vrot.slane %v985_v29, 4  ;;  %v7700_v18 = vld [vmem:[#allocation4 + $0x994] ss:$8 sps:$4 sm:$0xff]   ;;  %v7756_v9 = vld [vmem:[#allocation4 + $0x324] ss:$8 sps:$4 sm:$0xff]  }
 0x131   : > { %5477 = vmatpush1.bf16.msra.mxu1 %v7721_v55  ;;  %v7754_v27 = vld [vmem:[#allocation4 + $0x320] ss:$8 sps:$4 sm:$0xff]   ;;  %v7711_v41 = vld [vmem:[#allocation4 + $0x9b0] ss:$8 sps:$4 sm:$0xff]   ;;  %v912_v53 = vld [vmem:[#allocation2 + $0x44] sm:$0x1] }
 0x132   : > { %5972 = vmatpush1.bf16.msra.mxu0 %v7674_v3  ;;  %5478 = vmatprep.subr.bf16.mxu1 %v7729_v20  ;;  %v960_v3 = vshll.u32 %v904_v1, 16  ;;  %v991_v16 = vsel %vm8625_vm14, %v986_v44, %v990_v42  ;;  %v7740_v20 = vld [vmem:[#allocation4 + $0x300] ss:$8 sps:$4 sm:$0xff]   ;;  %v7724_v38 = vld [vmem:[#allocation4 + $0x9d0] ss:$8 sps:$4 sm:$0xff]   ;;  %v1016_v29 = vshll.u32 %v912_v53, 16 }
 0x133   : > { %5973 = vmatprep.subr.bf16.mxu0 %v7682_v15  ;;  %v7766_v36 = vld [vmem:[#allocation4 + $0x340] ss:$8 sps:$4 sm:$0xff]   ;;  %v7732_v42 = vld [vmem:[#allocation4 + $0x9e4] ss:$8 sps:$4 sm:$0xff]  }
 0x134   : > { %v962_v15 = vrot.slane %v960_v3, 5  ;;  %v910_v4 = vld [vmem:[#allocation2 + $0x38] sm:$0xf]  ;;  %v914_v32 = vld [vmem:[#allocation2 + $0x50] sm:$0xf] }
 0x135   : > { %5951 = vmatmul.mubr.bf16.gmra.mrb[12].mxu0 %v6691_v50  ;;  %5479 = vmatpush1.bf16.msra.mxu1 %v7727_v46  ;;  %v7719_v46 = vld [vmem:[#allocation4 + $0x9c4] ss:$8 sps:$4 sm:$0xff]   ;;  %v7760_v50 = vld [vmem:[#allocation4 + $0x330] ss:$8 sps:$4 sm:$0xff]   ;;  %v1010_v34 = vshll.u32 %v910_v4, 16 }
 0x136   : > { %5974 = vmatpush1.bf16.msra.mxu0 %v7680_v23  ;;  %5480 = vmatprep.subr.bf16.mxu1 %v7736_v30  ;;  %v963_v55 = vsel %vm8625_vm14, %v958_v58, %v962_v15  ;;  %v7762_v23 = vld [vmem:[#allocation4 + $0x334] ss:$8 sps:$4 sm:$0xff]   ;;  %v1007_v30 = vshrl.u32 %v910_v4, 16  ;;  %v7772_v3 = vld [vmem:[#allocation4 + $0x350] ss:$8 sps:$4 sm:$0xff]   ;;  %v1018_v15 = vrot.slane %v1016_v29, 5 }
 0x137   : > { %5975 = vmatprep.subr.bf16.mxu0 %v7688_v28  ;;  %5993 = vmatprep.mubr.bf16.mxu0 %v6694_v7  ;;  %v6603_v11 = vcombine.low %v963_v55, %v991_v16  ;;  %v916_v28 = vld [vmem:[#allocation2 + $0x5c] sm:$0x1]  ;;  %v1035_v7 = vshrl.u32 %v914_v32, 16  ;;  %v1012_v1 = vrot.slane %v1010_v34, 5  ;;  %v7730_v16 = vld [vmem:[#allocation4 + $0x9e0] ss:$8 sps:$4 sm:$0xff]  }
 0x138   : > { %v1044_v44 = vshll.u32 %v916_v28, 16  ;;  %v7747_v4 = vld [vmem:[#allocation4 + $0xa04] ss:$8 sps:$4 sm:$0xff]   ;;  %v7784_v34 = vld [vmem:[#allocation4 + $0x370] ss:$8 sps:$4 sm:$0xff]  }
 0x139   : > { %5481 = vmatpush1.bf16.msra.mxu1 %v7734_v8  ;;  %5482 = vmatprep.mubr.bf16.mxu1 %v6603_v11  ;;  %v1038_v8 = vshll.u32 %v914_v32, 16 }
 0x13a   : > { %5976 = vmatpush1.bf16.msra.mxu0 %v7686_v54  ;;  %5523 = vmatprep.subr.bf16.mxu1 %v7742_v13  ;;  %v7774_v54 = vld [vmem:[#allocation4 + $0x354] ss:$8 sps:$4 sm:$0xff]   ;;  %v1037_v13 = vrot.slane %v1035_v7, 4  ;;  %v1046_v11 = vrot.slane %v1044_v44, 5 }
 0x13b   : > { %5977 = vmatprep.subr.bf16.mxu0 %v7694_v56  ;;  %v1009_v56 = vrot.slane %v1007_v30, 4  ;;  %v1040_v58 = vrot.slane %v1038_v8, 5  ;;  %v7792_v8 = vld [vmem:[#allocation4 + $0x384] ss:$8 sps:$4 sm:$0xff]  }
 0x13c   : > { %5483 = vmatmul.mubr.bf16.vlgmr.msra.gmra.mrb[0].mxu1 %v6602_v57  ;;  %v7726_v57 = vld [vmem:[#allocation4 + $0x9d4] ss:$8 sps:$4 sm:$0xff]  }
 0x13d   : > { %5524 = vmatpush1.bf16.msra.mxu1 %v7740_v20  ;;  %v1041_v55 = vor.u32 %v1040_v58, %v1037_v13  ;;  %v7739_v20 = vld [vmem:[#allocation4 + $0x9f4] ss:$8 sps:$4 sm:$0xff]   ;;  %v7751_v58 = vld [vmem:[#allocation4 + $0xa10] ss:$8 sps:$4 sm:$0xff]  }
 0x13e   : > { %5978 = vmatpush1.bf16.msra.mxu0 %v7692_v2  ;;  %5525 = vmatprep.subr.bf16.mxu1 %v7750_v24  ;;  %v1013_v2 = vor.u32 %v1012_v1, %v1009_v56  ;;  %v7753_v56 = vld [vmem:[#allocation4 + $0xa14] ss:$8 sps:$4 sm:$0xff]   ;;  %v7790_v1 = vld [vmem:[#allocation4 + $0x380] ss:$8 sps:$4 sm:$0xff]  }
 0x13f   : > { %5979 = vmatprep.subr.bf16.mxu0 %v7700_v18  ;;  %v7780_v18 = vld [vmem:[#allocation4 + $0x364] ss:$8 sps:$4 sm:$0xff]  }
 0x140   : > { %v1014_v24 = vrot.slane %v1013_v2, 4  ;;  %v926_v2 = vld [vmem:[#allocation2 + $0x98] sm:$0xf] }
 0x141   : > { %5526 = vmatpush1.bf16.msra.mxu1 %v7748_v51  ;;  %v1042_v51 = vrot.slane %v1041_v55, 4  ;;  %v930_v55 = vld [vmem:[#allocation2 + $0xb0] sm:$0xf] }
 0x142   : > { %5980 = vmatpush1.bf16.msra.mxu0 %v7698_v62  ;;  %5527 = vmatprep.subr.bf16.mxu1 %v7756_v9  ;;  %v7778_v62 = vld [vmem:[#allocation4 + $0x360] ss:$8 sps:$4 sm:$0xff]   ;;  %v920_v9 = vld [vmem:[#allocation2 + $0x74] sm:$0x1]  ;;  %v1147_v26 = vshrl.u32 %v930_v55, 16  ;;  %v1150_v17 = vshll.u32 %v930_v55, 16 }
 0x143   : > { %5981 = vmatprep.subr.bf16.mxu0 %v7706_v21  ;;  %v7737_v21 = vld [vmem:[#allocation4 + $0x9f0] ss:$8 sps:$4 sm:$0xff]   ;;  %v2106_v55 = vld [vmem:[#allocation2 + $0x54] sm:$0x11] }
 0x145   : > { %5528 = vmatpush1.bf16.msra.mxu1 %v7754_v27  ;;  %v6605_v27 = vcombine.high %v8908_v48, %v8916_v5 }
 0x146   : > { %5982 = vmatpush1.bf16.msra.mxu0 %v7704_v22  ;;  %5529 = vmatprep.subr.bf16.mxu1 %v7762_v23  ;;  %v918_v22 = vld [vmem:[#allocation2 + $0x68] sm:$0xf]  ;;  %v924_v23 = vld [vmem:[#allocation2 + $0x8c] sm:$0x1] }
 0x147   : > { %5983 = vmatprep.subr.bf16.mxu0 %v7713_v39  ;;  %v1019_v39 = vsel %vm8625_vm14, %v1014_v24, %v1018_v15  ;;  %v1100_v30 = vshll.u32 %v924_v23, 16  ;;  %v928_v15 = vld [vmem:[#allocation2 + $0xa4] sm:$0x1]  ;;  %v356_v23 = vld [vmem:[#allocation2 + $0xd8] sm:$0x11] }
 0x148   : > { %v7798_v24 = vld [vmem:[#allocation4 + $0x394] ss:$8 sps:$4 sm:$0xff]  }
 0x149   : > { %5530 = vmatpush1.bf16.msra.mxu1 %v7760_v50  ;;  %v1066_v50 = vshll.u32 %v918_v22, 16 }
 0x14a   : > { %5984 = vmatpush1.bf16.msra.mxu0 %v7711_v41  ;;  %5531 = vmatprep.subr.bf16.mxu1 %v7768_v47  ;;  %v922_v41 = vld [vmem:[#allocation2 + $0x80] sm:$0xf]  ;;  %v1047_v47 = vsel %vm8625_vm14, %v1042_v51, %v1046_v11  ;;  %v932_v11 = vld [vmem:[#allocation2 + $0xbc] sm:$0x1]  ;;  %v1128_v51 = vshll.u32 %v928_v15, 16 }
 0x14b   : > { %5985 = vmatprep.subr.bf16.mxu0 %v7719_v46  ;;  %v1063_v46 = vshrl.u32 %v918_v22, 16  ;;  %v6606_v53 = vcombine.low %v1019_v39, %v1047_v47  ;;  %v1068_v28 = vrot.slane %v1066_v50, 5  ;;  %v9007_v39 = vld [vmem:[#allocation2 + $0xa8] sm:$0xff]  ;;  %v357_v47 = vsel %vm8387_vm6, 0, %v356_v23 }
 0x14c   : > { %358 = vst [vmem:[#allocation2 + $0xd8] sm:$0x11] %v357_v47  ;;  %v6699_v15 = vcombine.low %v8953_v19, %v9007_v39  ;;  %v7783_v47 = vld [vmem:[#allocation4 + $0xa64] ss:$8 sps:$4 sm:$0xff]  }
 0x14d   : > { %5532 = vmatpush1.bf16.msra.mxu1 %v7766_v36  ;;  %v1091_v36 = vshrl.u32 %v922_v41, 16  ;;  %v1065_v32 = vrot.slane %v1063_v46, 4  ;;  %5492 = vmatprep.mubr.bf16.mxu1 %v6606_v53  ;;  %v7796_v46 = vld [vmem:[#allocation4 + $0x390] ss:$8 sps:$4 sm:$0xff]   ;;  %v6700_v53 = vcombine.high %v8953_v19, %v9007_v39 }
 0x14e   : > { %5986 = vmatpush1.bf16.msra.mxu0 %v7717_v52  ;;  %5533 = vmatprep.subr.bf16.mxu1 %v7774_v54  ;;  %v7786_v52 = vld [vmem:[#allocation4 + $0x374] ss:$8 sps:$4 sm:$0xff]   ;;  %v7745_v54 = vld [vmem:[#allocation4 + $0xa00] ss:$8 sps:$4 sm:$0xff]  }
 0x14f   : > { %5987 = vmatprep.subr.bf16.mxu0 %v7726_v57  ;;  %v1072_v57 = vshll.u32 %v920_v9, 16  ;;  %v1093_v48 = vrot.slane %v1091_v36, 4  ;;  %v1069_v29 = vor.u32 %v1068_v28, %v1065_v32  ;;  %5493 = vmatmul.mubr.bf16.gmra.mrb[4].mxu1 %v6605_v27  ;;  %v1156_v9 = vshll.u32 %v932_v11, 16  ;;  %v7763_v28 = vld [vmem:[#allocation4 + $0xa30] ss:$8 sps:$4 sm:$0xff]  }
 0x150   : > { %v1149_v27 = vrot.slane %v1147_v26, 4  ;;  %v7777_v26 = vld [vmem:[#allocation4 + $0xa54] ss:$8 sps:$4 sm:$0xff]  }
 0x151   : > { %5534 = vmatpush1.bf16.msra.mxu1 %v7772_v3  ;;  %v1074_v7 = vrot.slane %v1072_v57, 5  ;;  %v1070_v13 = vrot.slane %v1069_v29, 4  ;;  %v7757_v57 = vld [vmem:[#allocation4 + $0xa20] ss:$8 sps:$4 sm:$0xff]   ;;  %v1220_v29 = vld [vmem:[#allocation2] sm:$0xee] }
 0x152   : > { %5988 = vmatpush1.bf16.msra.mxu0 %v7724_v38  ;;  %5535 = vmatprep.subr.bf16.mxu1 %v7780_v18  ;;  %v1094_v38 = vshll.u32 %v922_v41, 16  ;;  %v6608_v18 = vcombine.high %v8945_v31, %v8949_v63  ;;  %v1152_v41 = vrot.slane %v1150_v17, 5 }
 0x153   : > { %5989 = vmatprep.subr.bf16.mxu0 %v7732_v42  ;;  %v1102_v42 = vrot.slane %v1100_v30, 5  ;;  %v7802_v30 = vld [vmem:[#allocation4 + $0x3a0] ss:$8 sps:$4 sm:$0xff]  }
 0x154   : > { %v1096_v5 = vrot.slane %v1094_v38, 5  ;;  %v1153_v36 = vor.u32 %v1152_v41, %v1149_v27  ;;  %v1158_v38 = vrot.slane %v1156_v9, 5  ;;  %v2170_v9 = vshll.u32 %v2106_v55, 16  ;;  %v7775_v27 = vld [vmem:[#allocation4 + $0xa50] ss:$8 sps:$4 sm:$0xff]  }
 0x155   : > { %5536 = vmatpush1.bf16.msra.mxu1 %v7778_v62  ;;  %v1122_v62 = vshll.u32 %v926_v2, 16  ;;  %v7816_v41 = vld [vmem:[#allocation4 + $0x3c0] ss:$8 sps:$4 sm:$0xff]   ;;  %v7815_v55 = vld [vmem:[#allocation4 + $0xab4] ss:$8 sps:$4 sm:$0xff]  }
 0x156   : > { %5990 = vmatpush1.bf16.msra.mxu0 %v7730_v16  ;;  %5537 = vmatprep.subr.bf16.mxu1 %v7786_v52  ;;  %v1097_v44 = vor.u32 %v1096_v5, %v1093_v48  ;;  %v1075_v16 = vsel %vm8625_vm14, %v1070_v13, %v1074_v7  ;;  %v1130_v52 = vrot.slane %v1128_v51, 5  ;;  %v7812_v48 = vld [vmem:[#allocation4 + $0x3b4] ss:$8 sps:$4 sm:$0xff]   ;;  %v1154_v5 = vrot.slane %v1153_v36, 4  ;;  %v7810_v13 = vld [vmem:[#allocation4 + $0x3b0] ss:$8 sps:$4 sm:$0xff]  }
 0x157   : > { %5991 = vmatprep.subr.bf16.mxu0 %v7739_v20  ;;  %v1119_v20 = vshrl.u32 %v926_v2, 16  ;;  %v1124_v22 = vrot.slane %v1122_v62, 5  ;;  %v1222_v7 = vld [vmem:[#allocation2 + $0xc] sm:$0x11]  ;;  %v2172_v36 = vrot.slane %v2170_v9, 5 }
 0x158   : > { %v1098_v3 = vrot.slane %v1097_v44, 4  ;;  %v1226_v44 = vld [vmem:[#allocation2 + $0x24] sm:$0x11]  ;;  %v7769_v2 = vld [vmem:[#allocation4 + $0xa40] ss:$8 sps:$4 sm:$0xff]  }
 0x159   : > { %5538 = vmatpush1.bf16.msra.mxu1 %v7784_v34  ;;  %v1121_v63 = vrot.slane %v1119_v20, 4  ;;  %v9029_v20 = vld [vmem:[#allocation2 + $0xd8] sm:$0xff] }
 0x15a   : > { %5992 = vmatpush1.bf16.msra.mxu0 %v7737_v21  ;;  %5539 = vmatprep.subr.bf16.mxu1 %v7792_v8  ;;  %v1103_v21 = vsel %vm8625_vm14, %v1098_v3, %v1102_v42  ;;  %v1159_v8 = vsel %vm8625_vm14, %v1154_v5, %v1158_v38  ;;  %v6613_v42 = vrot.slane %v1220_v29, 9  ;;  %v9024_v3 = vld [vmem:[#allocation2 + $0x30] sm:$0xff]  ;;  %v6703_v17 = vcombine.high %v9020_v12, %v9029_v20  ;;  %v7824_v38 = vld [vmem:[#allocation4 + $0x3d0] ss:$8 sps:$4 sm:$0xff]  }
 0x15b   : > { %6034 = vmatprep.subr.bf16.mxu0 %v7747_v4  ;;  %v6609_v31 = vcombine.low %v1075_v16, %v1103_v21  ;;  %v1125_v50 = vor.u32 %v1124_v22, %v1121_v63  ;;  %v7765_v4 = vld [vmem:[#allocation4 + $0xa34] ss:$8 sps:$4 sm:$0xff]   ;;  %v2102_v16 = vld [vmem:[#allocation2 + $0x3c] sm:$0x11]  ;;  %v2133_v11 = vshrl.u32 %v9024_v3, 16 }
 0x15c   : > { %v2142_v51 = vshll.u32 %v2102_v16, 16  ;;  %v7806_v16 = vld [vmem:[#allocation4 + $0xaa0] ss:$8 sps:$4 sm:$0xff]  }
 0x15d   : > { %5994 = vmatmul.mubr.bf16.vlgmr.msra.gmra.mrb[0].mxu0 %v6693_v33  ;;  %v7759_v33 = vld [vmem:[#allocation4 + $0xa24] ss:$8 sps:$4 sm:$0xff]   ;;  %5540 = vmatpush1.bf16.msra.mxu1 %v7790_v1  ;;  %v1126_v32 = vrot.slane %v1125_v50, 4  ;;  %v2135_v21 = vrot.slane %v2133_v11, 4  ;;  %v2273_v11 = vshrl.u32 %v9007_v39, 16 }
 0x15e   : > { %6035 = vmatpush1.bf16.msra.mxu0 %v7745_v54  ;;  %6003 = vmatprep.mubr.bf16.mxu0 %v6697_v10  ;;  %v7804_v10 = vld [vmem:[#allocation4 + $0x3a4] ss:$8 sps:$4 sm:$0xff]   ;;  %v2144_v50 = vrot.slane %v2142_v51, 5 }
 0x15f   : > { %6036 = vmatprep.subr.bf16.mxu0 %v7753_v56  ;;  %5502 = vmatprep.mubr.bf16.mxu1 %v6609_v31  ;;  %v1131_v34 = vsel %vm8625_vm14, %v1126_v32, %v1130_v52  ;;  %v1224_v54 = vld [vmem:[#allocation2 + $0x18] sm:$0xee]  ;;  %v1289_v56 = vrot.slane %v1222_v7, 5  ;;  %v7787_v7 = vld [vmem:[#allocation4 + $0xa70] ss:$8 sps:$4 sm:$0xff]  }
 0x160   : > { %5541 = vmatprep.subr.bf16.mxu1 %v7798_v24  ;;  %5503 = vmatmul.mubr.bf16.gmra.mrb[8].mxu1 %v6608_v18  ;;  %v6615_v1 = vrot.slane %v1224_v54, 9  ;;  %v6612_v6 = vcombine.low %v1131_v34, %v1159_v8  ;;  %v2104_v18 = vld [vmem:[#allocation2 + $0x48] sm:$0xff]  ;;  %v7818_v24 = vld [vmem:[#allocation4 + $0x3c4] ss:$8 sps:$4 sm:$0xff]  }
 0x161   : > { %5542 = vmatpush1.bf16.msra.mxu1 %v7796_v46  ;;  %v9033_v62 = vsel %vm8516_vm11, %v6613_v42, %v1289_v56  ;;  %v2161_v19 = vshrl.u32 %v2104_v18, 16  ;;  %v2164_v22 = vshll.u32 %v2104_v18, 16  ;;  %v7826_v46 = vld [vmem:[#allocation4 + $0x3d4] ss:$8 sps:$4 sm:$0xff]   ;;  %v7832_v32 = vld [vmem:[#allocation4 + $0x3e4] ss:$8 sps:$4 sm:$0xff]  }
 0x162   : > { %6037 = vmatpush1.bf16.msra.mxu0 %v7751_v58  ;;  %5543 = vmatprep.subr.bf16.mxu1 %v7804_v10  ;;  %v1297_v58 = vrot.slane %v1226_v44, 5  ;;  %v7840_v54 = vld [vmem:[#allocation4 + $0x3f4] ss:$8 sps:$4 sm:$0xff]   ;;  %v7795_v8 = vld [vmem:[#allocation4 + $0xa84] ss:$8 sps:$4 sm:$0xff]  }
 0x163   : > { %6038 = vmatprep.subr.bf16.mxu0 %v7759_v33  ;;  %5512 = vmatprep.mubr.bf16.mxu1 %v6612_v6  ;;  %v2163_v63 = vrot.slane %v2161_v19, 4  ;;  %v2166_v52 = vrot.slane %v2164_v22, 5  ;;  %v7838_v44 = vld [vmem:[#allocation4 + $0x3f0] ss:$8 sps:$4 sm:$0xff]   ;;  %v7793_v42 = vld [vmem:[#allocation4 + $0xa80] ss:$8 sps:$4 sm:$0xff]  }
 0x164   : > { %v7846_v56 = vld [vmem:[#allocation4 + $0x404] ss:$8 sps:$4 sm:$0xff]   ;;  %v7844_v6 = vld [vmem:[#allocation4 + $0x400] ss:$8 sps:$4 sm:$0xff]   ;;  %v7863_v22 = vld [vmem:[#allocation4 + $0x430] ss:$8 sps:$4 sm:$0xff]  }
 0x165   : > { %6004 = vmatmul.mubr.bf16.gmra.mrb[4].mxu0 %v6696_v49  ;;  %v6611_v49 = vcombine.high %v8972_v60, %v8964_v25  ;;  %5544 = vmatpush1.bf16.msra.mxu1 %v7802_v30  ;;  %v9037_v25 = vsel %vm8516_vm11, %v6615_v1, %v1297_v58  ;;  %v2136_v60 = vshll.u32 %v9024_v3, 16  ;;  %v2167_v10 = vor.u32 %v2166_v52, %v2163_v63  ;;  %v7801_v1 = vld [vmem:[#allocation4 + $0xa94] ss:$8 sps:$4 sm:$0xff]   ;;  %v7859_v18 = vld [vmem:[#allocation4 + $0x424] ss:$8 sps:$4 sm:$0xff]  }
 0x166   : > { %6039 = vmatpush1.bf16.msra.mxu0 %v7757_v57  ;;  %6013 = vmatprep.mubr.bf16.mxu0 %v6700_v53  ;;  %v6630_v31 = vcombine.high %v9033_v62, %v9037_v25  ;;  %v7781_v53 = vld [vmem:[#allocation4 + $0xa60] ss:$8 sps:$4 sm:$0xff]   ;;  %v7853_v58 = vld [vmem:[#allocation4 + $0x414] ss:$8 sps:$4 sm:$0xff]   ;;  %v1230_v19 = vld [vmem:[#allocation2 + $0x3c] sm:$0x11] }
 0x167   : > { %6040 = vmatprep.subr.bf16.mxu0 %v7765_v4  ;;  %5545 = vmatprep.subr.bf16.mxu1 %v7812_v48  ;;  %v2138_v33 = vrot.slane %v2136_v60, 5  ;;  %v6702_v4 = vcombine.low %v9020_v12, %v9029_v20  ;;  %v2168_v30 = vrot.slane %v2167_v10, 4  ;;  %v7789_v48 = vld [vmem:[#allocation4 + $0xa74] ss:$8 sps:$4 sm:$0xff]   ;;  %v1228_v60 = vld [vmem:[#allocation2 + $0x30] sm:$0xee] }
 0x168   : > { %5513 = vmatmul.mubr.bf16.gmra.mrb[12].mxu1 %v6611_v49  ;;  %v7799_v49 = vld [vmem:[#allocation4 + $0xa90] ss:$8 sps:$4 sm:$0xff]   ;;  %v1234_v51 = vld [vmem:[#allocation2 + $0x54] sm:$0x11] }
 0x169   : > { %5546 = vmatpush1.bf16.msra.mxu1 %v7810_v13  ;;  %v2139_v23 = vor.u32 %v2138_v33, %v2135_v21  ;;  %5555 = vmatprep.mubr.bf16.mxu1 %v6630_v31  ;;  %v9052_v5 = vsel %vm8625_vm14, %v2168_v30, %v2172_v36  ;;  %v6629_v13 = vcombine.low %v9033_v62, %v9037_v25  ;;  %v7813_v62 = vld [vmem:[#allocation4 + $0xab0] ss:$8 sps:$4 sm:$0xff]   ;;  %v7857_v25 = vld [vmem:[#allocation4 + $0x420] ss:$8 sps:$4 sm:$0xff]   ;;  %v7865_v33 = vld [vmem:[#allocation4 + $0x434] ss:$8 sps:$4 sm:$0xff]  }
 0x16a   : > { %6041 = vmatpush1.bf16.msra.mxu0 %v7763_v28  ;;  %5547 = vmatprep.subr.bf16.mxu1 %v7818_v24  ;;  %v7822_v24 = vld [vmem:[#allocation4 + $0xac4] ss:$8 sps:$4 sm:$0xff]   ;;  %v1232_v21 = vld [vmem:[#allocation2 + $0x48] sm:$0xee]  ;;  %v1313_v63 = vrot.slane %v1234_v51, 5 }
 0x16b   : > { %6042 = vmatprep.subr.bf16.mxu0 %v7771_v40  ;;  %v2140_v57 = vrot.slane %v2139_v23, 4  ;;  %v7830_v40 = vld [vmem:[#allocation4 + $0x3e0] ss:$8 sps:$4 sm:$0xff]   ;;  %v6619_v31 = vrot.slane %v1232_v21, 9  ;;  %v2276_v23 = vshll.u32 %v9007_v39, 16 }
 0x16c   : > { %v9068_v52 = vld [vmem:[#allocation2 + $0x78] sm:$0xff] }
 0x16d   : > { %6014 = vmatmul.mubr.bf16.gmra.mrb[8].mxu0 %v6699_v15  ;;  %5548 = vmatpush1.bf16.msra.mxu1 %v7816_v41  ;;  %v9048_v28 = vsel %vm8625_vm14, %v2140_v57, %v2144_v50  ;;  %v7851_v15 = vld [vmem:[#allocation4 + $0x410] ss:$8 sps:$4 sm:$0xff]   ;;  %v2110_v41 = vld [vmem:[#allocation2 + $0x6c] sm:$0x11]  ;;  %v1314_v50 = vsel %vm8516_vm11, %v6619_v31, %v1313_v63  ;;  %v7871_v39 = vld [vmem:[#allocation4 + $0x444] ss:$8 sps:$4 sm:$0xff]  }
 0x16e   : > { %6043 = vmatpush1.bf16.msra.mxu0 %v7769_v2  ;;  %6023 = vmatprep.mubr.bf16.mxu0 %v6703_v17  ;;  %v6705_v34 = vcombine.low %v9048_v28, %v9052_v5  ;;  %v6706_v29 = vcombine.high %v9048_v28, %v9052_v5  ;;  %v7808_v2 = vld [vmem:[#allocation4 + $0xaa4] ss:$8 sps:$4 sm:$0xff]   ;;  %v1305_v17 = vrot.slane %v1230_v19, 5  ;;  %v2198_v36 = vshll.u32 %v2110_v41, 16  ;;  %v1242_v19 = vld [vmem:[#allocation2 + $0x84] sm:$0x11] }
 0x16f   : > { %6044 = vmatprep.subr.bf16.mxu0 %v7777_v26  ;;  %5549 = vmatprep.subr.bf16.mxu1 %v7826_v46  ;;  %v6617_v26 = vrot.slane %v1228_v60, 9  ;;  %v7820_v46 = vld [vmem:[#allocation4 + $0xac0] ss:$8 sps:$4 sm:$0xff]  }
 0x170   : > { %v1240_v60 = vld [vmem:[#allocation2 + $0x78] sm:$0xee]  ;;  %v9086_v41 = vld [vmem:[#allocation2 + $0x90] sm:$0xff] }
 0x171   : > { %5550 = vmatpush1.bf16.msra.mxu1 %v7824_v38  ;;  %v1306_v9 = vsel %vm8516_vm11, %v6617_v26, %v1305_v17  ;;  %v7843_v26 = vld [vmem:[#allocation4 + $0xaf4] ss:$8 sps:$4 sm:$0xff]   ;;  %v7875_v17 = vld [vmem:[#allocation4 + $0x450] ss:$8 sps:$4 sm:$0xff]   ;;  %v6623_v63 = vrot.slane %v1240_v60, 9 }
 0x172   : > { %6045 = vmatpush1.bf16.msra.mxu0 %v7775_v27  ;;  %5551 = vmatprep.subr.bf16.mxu1 %v7832_v32  ;;  %v9063_v27 = vld [vmem:[#allocation2 + $0x60] sm:$0xff]  ;;  %v6633_v38 = vcombine.high %v1306_v9, %v1314_v50 }
 0x173   : > { %6046 = vmatprep.subr.bf16.mxu0 %v7783_v47  ;;  %v2114_v47 = vld [vmem:[#allocation2 + $0x84] sm:$0x11]  ;;  %v2189_v57 = vshrl.u32 %v9063_v27, 16  ;;  %v2192_v10 = vshll.u32 %v9063_v27, 16 }
 0x174   : > { %v2226_v32 = vshll.u32 %v2114_v47, 16 }
 0x175   : > { %6024 = vmatmul.mubr.bf16.gmra.mrb[12].mxu0 %v6702_v4  ;;  %5552 = vmatpush1.bf16.msra.mxu1 %v7830_v40  ;;  %v2217_v4 = vshrl.u32 %v9068_v52, 16  ;;  %v2191_v30 = vrot.slane %v2189_v57, 4  ;;  %v6632_v40 = vcombine.low %v1306_v9, %v1314_v50  ;;  %v2329_v50 = vshrl.u32 %v9029_v20, 16 }
 0x176   : > { %6047 = vmatpush1.bf16.msra.mxu0 %v7781_v53  ;;  %6066 = vmatprep.mubr.bf16.mxu0 %v6705_v34  ;;  %v2220_v53 = vshll.u32 %v9068_v52, 16  ;;  %v7829_v34 = vld [vmem:[#allocation4 + $0xad4] ss:$8 sps:$4 sm:$0xff]  }
 0x177   : > { %6048 = vmatprep.subr.bf16.mxu0 %v7789_v48  ;;  %5553 = vmatprep.subr.bf16.mxu1 %v7840_v54  ;;  %v2194_v48 = vrot.slane %v2192_v10, 5  ;;  %v2245_v10 = vshrl.u32 %v9086_v41, 16 }
 0x178   : > { %v2222_v54 = vrot.slane %v2220_v53, 5  ;;  %v7881_v53 = vld [vmem:[#allocation4 + $0x460] ss:$8 sps:$4 sm:$0xff]  }
 0x179   : > { %5554 = vmatpush1.bf16.msra.mxu1 %v7838_v44  ;;  %v2195_v44 = vor.u32 %v2194_v48, %v2191_v30 }
 0x17a   : > { %6049 = vmatpush1.bf16.msra.mxu0 %v7787_v7  ;;  %5596 = vmatprep.subr.bf16.mxu1 %v7846_v56  ;;  %v2219_v7 = vrot.slane %v2217_v4, 4  ;;  %v2278_v56 = vrot.slane %v2276_v23, 5  ;;  %v2118_v23 = vld [vmem:[#allocation2 + $0x9c] sm:$0x11] }
 0x17b   : > { %6050 = vmatprep.subr.bf16.mxu0 %v7795_v8  ;;  %v7827_v8 = vld [vmem:[#allocation4 + $0xad0] ss:$8 sps:$4 sm:$0xff]  }
 0x17c   : > { %5556 = vmatmul.mubr.bf16.vlgmr.msra.gmra.mrb[0].mxu1 %v6629_v13  ;;  %v7869_v13 = vld [vmem:[#allocation4 + $0x440] ss:$8 sps:$4 sm:$0xff]   ;;  %v7841_v4 = vld [vmem:[#allocation4 + $0xaf0] ss:$8 sps:$4 sm:$0xff]  }
 0x17d   : > { %5597 = vmatpush1.bf16.msra.mxu1 %v7844_v6  ;;  %5565 = vmatprep.mubr.bf16.mxu1 %v6633_v38  ;;  %v2200_v6 = vrot.slane %v2198_v36, 5  ;;  %v2248_v36 = vshll.u32 %v9086_v41, 16  ;;  %v2332_v38 = vshll.u32 %v9029_v20, 16 }
 0x17e   : > { %6051 = vmatpush1.bf16.msra.mxu0 %v7793_v42  ;;  %5598 = vmatprep.subr.bf16.mxu1 %v7853_v58  ;;  %v2275_v42 = vrot.slane %v2273_v11, 4  ;;  %v2228_v58 = vrot.slane %v2226_v32, 5  ;;  %v7834_v11 = vld [vmem:[#allocation4 + $0xae0] ss:$8 sps:$4 sm:$0xff]  }
 0x17f   : > { %6052 = vmatprep.subr.bf16.mxu0 %v7801_v1  ;;  %v7836_v1 = vld [vmem:[#allocation4 + $0xae4] ss:$8 sps:$4 sm:$0xff]  }
 0x180   : > { %v2279_v51 = vor.u32 %v2278_v56, %v2275_v42  ;;  %v7850_v42 = vld [vmem:[#allocation2 + $0x38] ss:$24 sps:$4 sm:$0xff]   ;;  %v7887_v56 = vld [vmem:[#allocation4 + $0x470] ss:$8 sps:$4 sm:$0xff]  }
 0x181   : > { %5599 = vmatpush1.bf16.msra.mxu1 %v7851_v15  ;;  %v2196_v15 = vrot.slane %v2195_v44, 4 }
 0x182   : > { %6053 = vmatpush1.bf16.msra.mxu0 %v7799_v49  ;;  %5600 = vmatprep.subr.bf16.mxu1 %v7859_v18  ;;  %v2223_v49 = vor.u32 %v2222_v54, %v2219_v7  ;;  %v2304_v18 = vshll.u32 %v9020_v12, 16  ;;  %v2250_v7 = vrot.slane %v2248_v36, 5  ;;  %v2280_v54 = vrot.slane %v2279_v51, 4 }
 0x183   : > { %6054 = vmatprep.subr.bf16.mxu0 %v7808_v2  ;;  %v7877_v2 = vld [vmem:[#allocation4 + $0x454] ss:$8 sps:$4 sm:$0xff]   ;;  %v9078_v31 = vsel %vm8625_vm14, %v2196_v15, %v2200_v6  ;;  %v2331_v6 = vrot.slane %v2329_v50, 4  ;;  %v1244_v15 = vld [vmem:[#allocation2 + $0x90] sm:$0xee] }
 0x184   : > { %5566 = vmatmul.mubr.bf16.gmra.mrb[4].mxu1 %v6632_v40  ;;  %v7849_v40 = vld [vmem:[#allocation4 + $0xb04] ss:$8 sps:$4 sm:$0xff]   ;;  %v6625_v60 = vrot.slane %v1244_v15, 9  ;;  %v2126_v50 = vld [vmem:[#allocation2 + $0xcc] sm:$0x11] }
 0x185   : > { %5601 = vmatpush1.bf16.msra.mxu1 %v7857_v25  ;;  %v1238_v25 = vld [vmem:[#allocation2 + $0x6c] sm:$0x11] }
 0x186   : > { %6055 = vmatpush1.bf16.msra.mxu0 %v7806_v16  ;;  %5602 = vmatprep.subr.bf16.mxu1 %v7865_v33  ;;  %v2301_v16 = vshrl.u32 %v9020_v12, 16  ;;  %v1321_v21 = vrot.slane %v1238_v25, 5  ;;  %v7883_v33 = vld [vmem:[#allocation4 + $0x464] ss:$8 sps:$4 sm:$0xff]  }
 0x187   : > { %6056 = vmatprep.subr.bf16.mxu0 %v7815_v55  ;;  %v2224_v55 = vrot.slane %v2223_v49, 4  ;;  %v7847_v49 = vld [vmem:[#allocation4 + $0xb00] ss:$8 sps:$4 sm:$0xff]  }
 0x188   : > { %v9096_v44 = vrot.slane %v2301_v16, 4  ;;  %v1250_v16 = vld [vmem:[#allocation2 + $0xb4] sm:$0x11] }
 0x189   : > { %5603 = vmatpush1.bf16.msra.mxu1 %v7863_v22  ;;  %v9082_v12 = vsel %vm8625_vm14, %v2224_v55, %v2228_v58  ;;  %v1329_v22 = vrot.slane %v1242_v19, 5  ;;  %v7895_v58 = vld [vmem:[#allocation4 + $0x484] ss:$8 sps:$4 sm:$0xff]  }
 0x18a   : > { %6057 = vmatpush1.bf16.msra.mxu0 %v7813_v62  ;;  %5604 = vmatprep.subr.bf16.mxu1 %v7871_v39  ;;  %v1236_v62 = vld [vmem:[#allocation2 + $0x60] sm:$0xee]  ;;  %v6709_v47 = vcombine.high %v9078_v31, %v9082_v12  ;;  %v2254_v39 = vshll.u32 %v2118_v23, 16  ;;  %v1246_v55 = vld [vmem:[#allocation2 + $0x9c] sm:$0x11]  ;;  %v6708_v51 = vcombine.low %v9078_v31, %v9082_v12 }
 0x18b   : > { %6058 = vmatprep.subr.bf16.mxu0 %v7822_v24  ;;  %v6621_v24 = vrot.slane %v1236_v62, 9  ;;  %v1330_v57 = vsel %vm8516_vm11, %v6623_v63, %v1329_v22  ;;  %v2334_v62 = vrot.slane %v2332_v38, 5  ;;  %v1337_v19 = vrot.slane %v1246_v55, 5  ;;  %v7893_v63 = vld [vmem:[#allocation4 + $0x480] ss:$8 sps:$4 sm:$0xff]  }
 0x18c   : > { %v359_v38 = vld [vmem:[#allocation2 + $0xe0] sm:$0x1]  ;;  %v2420_v31 = vld [vmem:[#allocation2 + $0x48] sm:$0xee]  ;;  %v2422_v12 = vld [vmem:[#allocation2 + $0x54] sm:$0x11] }
 0x18d   : > { %5605 = vmatpush1.bf16.msra.mxu1 %v7869_v13  ;;  %v1322_v9 = vsel %vm8516_vm11, %v6621_v24, %v1321_v21  ;;  %v2306_v13 = vrot.slane %v2304_v18, 5  ;;  %v1345_v21 = vrot.slane %v1250_v16, 5  ;;  %v7856_v18 = vld [vmem:[#allocation4 + $0xb14] ss:$8 sps:$4 sm:$0xff]   ;;  %v360_v59 = vsel %vm8377_vm4, 0, %v359_v38 }
 0x18e   : > { %6059 = vmatpush1.bf16.msra.mxu0 %v7820_v46  ;;  %5606 = vmatprep.subr.bf16.mxu1 %v7877_v2  ;;  %v2122_v46 = vld [vmem:[#allocation2 + $0xb4] sm:$0x11]  ;;  %v6636_v32 = vcombine.high %v1322_v9, %v1330_v57  ;;  %v6635_v48 = vcombine.low %v1322_v9, %v1330_v57  ;;  %v2256_v2 = vrot.slane %v2254_v39, 5  ;;  %v1338_v9 = vsel %vm8516_vm11, %v6625_v60, %v1337_v19  ;;  %v7901_v57 = vld [vmem:[#allocation4 + $0x494] ss:$8 sps:$4 sm:$0xff]  }
 0x18f   : > { %6060 = vmatprep.subr.bf16.mxu0 %v7829_v34  ;;  %v2282_v30 = vshll.u32 %v2122_v46, 16  ;;  %v2247_v34 = vrot.slane %v2245_v10, 4  ;;  %v2307_v36 = vor.u32 %v2306_v13, %v9096_v44  ;;  %v7862_v39 = vld [vmem:[#allocation4 + $0xb24] ss:$8 sps:$4 sm:$0xff]   ;;  %361 = vst [vmem:[#allocation2 + $0xe0] sm:$0x1] %v360_v59 }
 0x190   : > { %5575 = vmatprep.mubr.bf16.mxu1 %v6636_v32  ;;  %v2335_v32 = vor.u32 %v2334_v62, %v2331_v6  ;;  %v7905_v13 = vld [vmem:[#allocation4 + $0x4a0] ss:$8 sps:$4 sm:$0xff]   ;;  %v7866_v55 = vld [vmem:[#allocation4 + $0xb30] ss:$8 sps:$4 sm:$0xff]  }
 0x191   : > { %5607 = vmatpush1.bf16.msra.mxu1 %v7875_v17  ;;  %v2251_v20 = vor.u32 %v2250_v7, %v2247_v34  ;;  %v421_v17 = vld [vmem:[#allocation2 + $0xe4] sm:$0x11]  ;;  %v9119_v34 = vld [vmem:[#allocation2 + $0x18] sm:$0xff] }
 0x192   : > { %6061 = vmatpush1.bf16.msra.mxu0 %v7827_v8  ;;  %5608 = vmatprep.subr.bf16.mxu1 %v7883_v33  ;;  %v7889_v8 = vld [vmem:[#allocation4 + $0x474] ss:$8 sps:$4 sm:$0xff]   ;;  %v7854_v33 = vld [vmem:[#allocation4 + $0xb10] ss:$8 sps:$4 sm:$0xff]   ;;  %v422_v46 = vsel %vm8420_vm12, 0, %v421_v17  ;;  %v6641_v44 = vcombine.low %v9119_v34, %v9024_v3  ;;  %v6642_v35 = vcombine.high %v9119_v34, %v9024_v3 }
 0x193   : > { %6062 = vmatprep.subr.bf16.mxu0 %v7836_v1  ;;  %v2284_v1 = vrot.slane %v2282_v30, 5  ;;  %5576 = vmatmul.mubr.bf16.gmra.mrb[8].mxu1 %v6635_v48  ;;  %v2252_v25 = vrot.slane %v2251_v20, 4  ;;  %423 = vst [vmem:[#allocation2 + $0xe4] sm:$0x11] %v422_v46  ;;  %v7860_v48 = vld [vmem:[#allocation4 + $0xb20] ss:$8 sps:$4 sm:$0xff]  }
 0x194   : > { %v7868_v7 = vld [vmem:[#allocation4 + $0xb34] ss:$8 sps:$4 sm:$0xff]   ;;  %v2336_v20 = vrot.slane %v2335_v32, 4  ;;  %v7872_v38 = vld [vmem:[#allocation4 + $0xb40] ss:$8 sps:$4 sm:$0xff]  }
 0x195   : > { %5609 = vmatpush1.bf16.msra.mxu1 %v7881_v53  ;;  %v9106_v22 = vsel %vm8625_vm14, %v2252_v25, %v2256_v2  ;;  %v2310_v53 = vshll.u32 %v2126_v50, 16  ;;  %v2107_v25 = vld [vmem:[#allocation2 + $0x5c] sm:$0x1]  ;;  %v7912_v50 = vld [vmem:[#allocation4 + $0x4b0] ss:$8 sps:$4 sm:$0xff]  }
 0x196   : > { %6063 = vmatpush1.bf16.msra.mxu0 %v7834_v11  ;;  %v1248_v11 = vld [vmem:[#allocation2 + $0xa8] sm:$0xee]  ;;  %5610 = vmatprep.subr.bf16.mxu1 %v7889_v8  ;;  %v2308_v8 = vrot.slane %v2307_v36, 4  ;;  %v2184_v46 = vshll.u32 %v2107_v25, 16  ;;  %v8023_v3 = vld [vmem:[#allocation4 + $0xcc0] ss:$8 sps:$4 sm:$0xff]  }
 0x197   : > { %6064 = vmatprep.subr.bf16.mxu0 %v7843_v26  ;;  %v6627_v24 = vrot.slane %v1248_v11, 9  ;;  %v9102_v26 = vsel %vm8625_vm14, %v2280_v54, %v2284_v1  ;;  %v7911_v54 = vld [vmem:[#allocation2 + $0x68] ss:$24 sps:$4 sm:$0xff]   ;;  %v2101_v1 = vld [vmem:[#allocation2 + $0x38] sm:$0xf] }
 0x198   : > { %v6711_v6 = vcombine.low %v9106_v22, %v9102_v26  ;;  %v2147_v2 = vshrl.u32 %v2101_v1, 16  ;;  %v2150_v15 = vshll.u32 %v2101_v1, 16  ;;  %v7880_v32 = vld [vmem:[#allocation4 + $0xb54] ss:$8 sps:$4 sm:$0xff]   ;;  %v7933_v1 = vld [vmem:[#allocation4 + $0x4e4] ss:$8 sps:$4 sm:$0xff]  }
 0x199   : > { %v1346_v23 = vsel %vm8516_vm11, %v6627_v24, %v1345_v21  ;;  %5611 = vmatpush1.bf16.msra.mxu1 %v7887_v56  ;;  %v2312_v56 = vrot.slane %v2310_v53, 5  ;;  %v7914_v21 = vld [vmem:[#allocation4 + $0x4b4] ss:$8 sps:$4 sm:$0xff]   ;;  %v7920_v53 = vld [vmem:[#allocation4 + $0x4c4] ss:$8 sps:$4 sm:$0xff]  }
 0x19a   : > { %6065 = vmatpush1.bf16.msra.mxu0 %v7841_v4  ;;  %v6639_v10 = vcombine.high %v1338_v9, %v1346_v23  ;;  %v6712_v4 = vcombine.high %v9106_v22, %v9102_v26  ;;  %5612 = vmatprep.subr.bf16.mxu1 %v7895_v58  ;;  %v6638_v30 = vcombine.low %v1338_v9, %v1346_v23  ;;  %v2105_v58 = vld [vmem:[#allocation2 + $0x50] sm:$0xf]  ;;  %v2130_v62 = vld [vmem:[#allocation2 + $0xe4] sm:$0x11]  ;;  %v2149_v19 = vrot.slane %v2147_v2, 4 }
 0x19b   : > { %6107 = vmatprep.subr.bf16.mxu0 %v7849_v40  ;;  %v7899_v40 = vld [vmem:[#allocation4 + $0x490] ss:$8 sps:$4 sm:$0xff]   ;;  %v2175_v11 = vshrl.u32 %v2105_v58, 16  ;;  %v2178_v16 = vshll.u32 %v2105_v58, 16  ;;  %v2338_v60 = vshll.u32 %v2130_v62, 16  ;;  %v2152_v24 = vrot.slane %v2150_v15, 5 }
 0x19c   : > { %5585 = vmatprep.mubr.bf16.mxu1 %v6639_v10  ;;  %v1221_v58 = vld [vmem:[#allocation2 + $0x8] sm:$0xe]  ;;  %v1223_v2 = vld [vmem:[#allocation2 + $0x14] sm:$0x1]  ;;  %v1225_v15 = vld [vmem:[#allocation2 + $0x20] sm:$0xe] }
 0x19d   : > { %6067 = vmatmul.mubr.bf16.vlgmr.msra.gmra.mrb[0].mxu0 %v7850_v42  ;;  %5613 = vmatpush1.bf16.msra.mxu1 %v7893_v63  ;;  %v7907_v42 = vld [vmem:[#allocation4 + $0x4a4] ss:$8 sps:$4 sm:$0xff]   ;;  %v2340_v17 = vrot.slane %v2338_v60, 5  ;;  %v9129_v63 = vsel %vm8625_vm14, %v2308_v8, %v2312_v56  ;;  %v2153_v9 = vor.u32 %v2152_v24, %v2149_v19  ;;  %v7918_v8 = vld [vmem:[#allocation4 + $0x4c0] ss:$8 sps:$4 sm:$0xff]   ;;  %v1293_v60 = vrot.slane %v1223_v2, 5 }
 0x19e   : > { %6108 = vmatpush1.bf16.msra.mxu0 %v7847_v49  ;;  %6076 = vmatprep.mubr.bf16.mxu0 %v6708_v51  ;;  %v2103_v49 = vld [vmem:[#allocation2 + $0x44] sm:$0x1]  ;;  %v7874_v51 = vld [vmem:[#allocation4 + $0xb44] ss:$8 sps:$4 sm:$0xff]   ;;  %v7925_v56 = vld [vmem:[#allocation4 + $0x4d0] ss:$8 sps:$4 sm:$0xff]  }
 0x19f   : > { %6109 = vmatprep.subr.bf16.mxu0 %v7856_v18  ;;  %5614 = vmatprep.subr.bf16.mxu1 %v7901_v57  ;;  %v2177_v18 = vrot.slane %v2175_v11, 4  ;;  %v2156_v23 = vshll.u32 %v2103_v49, 16  ;;  %v7924_v57 = vld [vmem:[#allocation2 + $0x98] ss:$24 sps:$4 sm:$0xff]   ;;  %v9133_v10 = vsel %vm8625_vm14, %v2336_v20, %v2340_v17  ;;  %v7892_v62 = vld [vmem:[#allocation4 + $0xb74] ss:$8 sps:$4 sm:$0xff]  }
 0x1a0   : > { %5586 = vmatmul.mubr.bf16.gmra.mrb[12].mxu1 %v6638_v30  ;;  %v6714_v59 = vcombine.low %v9129_v63, %v9133_v10  ;;  %v2154_v30 = vrot.slane %v2153_v9, 4  ;;  %v7884_v20 = vld [vmem:[#allocation4 + $0xb60] ss:$8 sps:$4 sm:$0xff]   ;;  %v6616_v19 = vrot.slane %v1225_v15, 9  ;;  %v7938_v17 = vld [vmem:[#allocation4 + $0x4f0] ss:$8 sps:$4 sm:$0xff]  }
 0x1a1   : > { %5628 = vmatprep.mubr.bf16.mxu1 %v6641_v44  ;;  %5615 = vmatpush1.bf16.msra.mxu1 %v7899_v40  ;;  %v7886_v44 = vld [vmem:[#allocation4 + $0xb64] ss:$8 sps:$4 sm:$0xff]   ;;  %v7931_v11 = vld [vmem:[#allocation4 + $0x4e0] ss:$8 sps:$4 sm:$0xff]   ;;  %v7964_v2 = vld [vmem:[#allocation4 + $0x530] ss:$8 sps:$4 sm:$0xff]  }
 0x1a2   : > { %6110 = vmatpush1.bf16.msra.mxu0 %v7854_v33  ;;  %5616 = vmatprep.subr.bf16.mxu1 %v7907_v42  ;;  %v2180_v33 = vrot.slane %v2178_v16, 5  ;;  %v7927_v42 = vld [vmem:[#allocation4 + $0x4d4] ss:$8 sps:$4 sm:$0xff]   ;;  %v6614_v16 = vrot.slane %v1221_v58, 9  ;;  %v6648_v58 = vcombine.high %v9068_v52, %v9086_v41  ;;  %v8035_v26 = vld [vmem:[#allocation4 + $0x5e4] ss:$8 sps:$4 sm:$0xff]  }
 0x1a3   : > { %6111 = vmatprep.subr.bf16.mxu0 %v7862_v39  ;;  %v6715_v39 = vcombine.high %v9129_v63, %v9133_v10  ;;  %v7993_v22 = vld [vmem:[#allocation4 + $0xc74] ss:$8 sps:$4 sm:$0xff]   ;;  %v8003_v63 = vld [vmem:[#allocation4 + $0xc90] ss:$8 sps:$4 sm:$0xff]  }
 0x1a4   : > { %v2181_v36 = vor.u32 %v2180_v33, %v2177_v18  ;;  %v7940_v18 = vld [vmem:[#allocation4 + $0x4f4] ss:$8 sps:$4 sm:$0xff]   ;;  %v1294_v33 = vsel %vm8516_vm11, %v6614_v16, %v1293_v60  ;;  %v1233_v16 = vld [vmem:[#allocation2 + $0x50] sm:$0xe]  ;;  %v1235_v60 = vld [vmem:[#allocation2 + $0x5c] sm:$0x1] }
 0x1a5   : > { %6077 = vmatmul.mubr.bf16.gmra.mrb[4].mxu0 %v7911_v54  ;;  %5617 = vmatpush1.bf16.msra.mxu1 %v7905_v13  ;;  %v7878_v54 = vld [vmem:[#allocation4 + $0xb50] ss:$8 sps:$4 sm:$0xff]   ;;  %v8054_v10 = vld [vmem:[#allocation4 + $0x614] ss:$8 sps:$4 sm:$0xff]  }
 0x1a6   : > { %6112 = vmatpush1.bf16.msra.mxu0 %v7860_v48  ;;  %6086 = vmatprep.mubr.bf16.mxu0 %v6711_v6  ;;  %v2158_v48 = vrot.slane %v2156_v23, 5  ;;  %v2182_v40 = vrot.slane %v2181_v36, 4  ;;  %v7937_v13 = vld [vmem:[#allocation2 + $0xc8] ss:$24 sps:$4 sm:$0xff]   ;;  %v7896_v23 = vld [vmem:[#allocation4 + $0xb80] ss:$8 sps:$4 sm:$0xff]  }
 0x1a7   : > { %6113 = vmatprep.subr.bf16.mxu0 %v7868_v7  ;;  %5618 = vmatprep.subr.bf16.mxu1 %v7914_v21  ;;  %v2186_v7 = vrot.slane %v2184_v46, 5  ;;  %v7890_v21 = vld [vmem:[#allocation4 + $0xb70] ss:$8 sps:$4 sm:$0xff]   ;;  %v7948_v46 = vld [vmem:[#allocation4 + $0x504] ss:$8 sps:$4 sm:$0xff]  }
 0x1a8   : > { %v2159_v6 = vsel %vm8625_vm14, %v2154_v30, %v2158_v48  ;;  %v7946_v36 = vld [vmem:[#allocation4 + $0x500] ss:$8 sps:$4 sm:$0xff]   ;;  %v7917_v48 = vld [vmem:[#allocation4 + $0xbb4] ss:$8 sps:$4 sm:$0xff]  }
 0x1a9   : > { %5619 = vmatpush1.bf16.msra.mxu1 %v7912_v50  ;;  %v2187_v49 = vsel %vm8625_vm14, %v2182_v40, %v2186_v7  ;;  %v7904_v50 = vld [vmem:[#allocation4 + $0xb94] ss:$8 sps:$4 sm:$0xff]   ;;  %v7908_v30 = vld [vmem:[#allocation4 + $0xba0] ss:$8 sps:$4 sm:$0xff]   ;;  %v7960_v40 = vld [vmem:[#allocation4 + $0x524] ss:$8 sps:$4 sm:$0xff]  }
 0x1aa   : > { %6114 = vmatpush1.bf16.msra.mxu0 %v7866_v55  ;;  %5620 = vmatprep.subr.bf16.mxu1 %v7920_v53  ;;  %v1227_v55 = vld [vmem:[#allocation2 + $0x2c] sm:$0x1]  ;;  %v6707_v25 = vcombine.low %v2159_v6, %v2187_v49  ;;  %v2109_v7 = vld [vmem:[#allocation2 + $0x68] sm:$0xf] }
 0x1ab   : > { %6115 = vmatprep.subr.bf16.mxu0 %v7874_v51  ;;  %v1301_v24 = vrot.slane %v1227_v55, 5  ;;  %v7898_v51 = vld [vmem:[#allocation4 + $0xb84] ss:$8 sps:$4 sm:$0xff]   ;;  %v7954_v53 = vld [vmem:[#allocation4 + $0x514] ss:$8 sps:$4 sm:$0xff]   ;;  %v2203_v6 = vshrl.u32 %v2109_v7, 16 }
 0x1ac   : > { %v2206_v49 = vshll.u32 %v2109_v7, 16  ;;  %v7936_v7 = vld [vmem:[#allocation4 + $0xbe4] ss:$8 sps:$4 sm:$0xff]   ;;  %v8031_v34 = vld [vmem:[#allocation4 + $0xcd4] ss:$8 sps:$4 sm:$0xff]  }
 0x1ad   : > { %6087 = vmatmul.mubr.bf16.gmra.mrb[8].mxu0 %v7924_v57  ;;  %5621 = vmatpush1.bf16.msra.mxu1 %v7918_v8  ;;  %v1302_v9 = vsel %vm8516_vm11, %v6616_v19, %v1301_v24  ;;  %v2113_v8 = vld [vmem:[#allocation2 + $0x80] sm:$0xf] }
 0x1ae   : > { %6116 = vmatpush1.bf16.msra.mxu0 %v7872_v38  ;;  %6096 = vmatprep.mubr.bf16.mxu0 %v6714_v59  ;;  %v6631_v57 = vcombine.low %v1294_v33, %v1302_v9  ;;  %v7902_v38 = vld [vmem:[#allocation4 + $0xb90] ss:$8 sps:$4 sm:$0xff]   ;;  %v2231_v15 = vshrl.u32 %v2113_v8, 16  ;;  %v2234_v55 = vshll.u32 %v2113_v8, 16  ;;  %v2111_v33 = vld [vmem:[#allocation2 + $0x74] sm:$0x1] }
 0x1af   : > { %6117 = vmatprep.subr.bf16.mxu0 %v7880_v32  ;;  %5622 = vmatprep.subr.bf16.mxu1 %v7927_v42  ;;  %v7910_v32 = vld [vmem:[#allocation4 + $0xba4] ss:$8 sps:$4 sm:$0xff]   ;;  %v7952_v59 = vld [vmem:[#allocation4 + $0x510] ss:$8 sps:$4 sm:$0xff]  }
 0x1b1   : > { %5623 = vmatpush1.bf16.msra.mxu1 %v7925_v56  ;;  %v7915_v56 = vld [vmem:[#allocation4 + $0xbb0] ss:$8 sps:$4 sm:$0xff]  }
 0x1b2   : > { %6118 = vmatpush1.bf16.msra.mxu0 %v7878_v54  ;;  %5624 = vmatprep.subr.bf16.mxu1 %v7933_v1  ;;  %v9147_v54 = vld [vmem:[#allocation2 + $0x48] sm:$0xff]  ;;  %v7958_v1 = vld [vmem:[#allocation4 + $0x520] ss:$8 sps:$4 sm:$0xff]  }
 0x1b3   : > { %6119 = vmatprep.subr.bf16.mxu0 %v7886_v44  ;;  %v6644_v44 = vcombine.low %v9147_v54, %v9063_v27  ;;  %v6645_v42 = vcombine.high %v9147_v54, %v9063_v27  ;;  %v8078_v27 = vld [vmem:[#allocation4 + $0x654] ss:$8 sps:$4 sm:$0xff]  }
 0x1b5   : > { %6097 = vmatmul.mubr.bf16.gmra.mrb[12].mxu0 %v7937_v13  ;;  %5625 = vmatpush1.bf16.msra.mxu1 %v7931_v11  ;;  %v7966_v13 = vld [vmem:[#allocation4 + $0x534] ss:$8 sps:$4 sm:$0xff]   ;;  %v7921_v11 = vld [vmem:[#allocation4 + $0xbc0] ss:$8 sps:$4 sm:$0xff]  }
 0x1b6   : > { %6120 = vmatpush1.bf16.msra.mxu0 %v7884_v20  ;;  %6139 = vmatprep.mubr.bf16.mxu0 %v6707_v25  ;;  %v7923_v20 = vld [vmem:[#allocation4 + $0xbc4] ss:$8 sps:$4 sm:$0xff]   ;;  %v1231_v25 = vld [vmem:[#allocation2 + $0x44] sm:$0x1] }
 0x1b7   : > { %6121 = vmatprep.subr.bf16.mxu0 %v7892_v62  ;;  %5626 = vmatprep.subr.bf16.mxu1 %v7940_v18  ;;  %v1229_v62 = vld [vmem:[#allocation2 + $0x38] sm:$0xe]  ;;  %v1309_v24 = vrot.slane %v1231_v25, 5  ;;  %v7972_v18 = vld [vmem:[#allocation4 + $0x544] ss:$8 sps:$4 sm:$0xff]  }
 0x1b8   : > { %v6618_v19 = vrot.slane %v1229_v62, 9  ;;  %v9161_v25 = vld [vmem:[#allocation2 + $0xa4] sm:$0x1] }
 0x1b9   : > { %5627 = vmatpush1.bf16.msra.mxu1 %v7938_v17  ;;  %v1317_v17 = vrot.slane %v1235_v60, 5  ;;  %v2123_v60 = vld [vmem:[#allocation2 + $0xbc] sm:$0x1] }
 0x1ba   : > { %6122 = vmatpush1.bf16.msra.mxu0 %v7890_v21  ;;  %5669 = vmatprep.subr.bf16.mxu1 %v7948_v46  ;;  %v7930_v21 = vld [vmem:[#allocation4 + $0xbd4] ss:$8 sps:$4 sm:$0xff]   ;;  %v1310_v9 = vsel %vm8516_vm11, %v6618_v19, %v1309_v24 }
 0x1bb   : > { %6123 = vmatprep.subr.bf16.mxu0 %v7898_v51  ;;  %v6620_v51 = vrot.slane %v1233_v16, 9  ;;  %v2115_v46 = vld [vmem:[#allocation2 + $0x8c] sm:$0x1] }
 0x1bc   : > { %5629 = vmatmul.mubr.bf16.vlgmr.msra.gmra.mrb[0].mxu1 %v6631_v57  ;;  %v2240_v62 = vshll.u32 %v2115_v46, 16 }
 0x1bd   : > { %5670 = vmatpush1.bf16.msra.mxu1 %v7946_v36  ;;  %5638 = vmatprep.mubr.bf16.mxu1 %v6644_v44  ;;  %v1318_v57 = vsel %vm8516_vm11, %v6620_v51, %v1317_v17  ;;  %v2117_v36 = vld [vmem:[#allocation2 + $0x98] sm:$0xf]  ;;  %v1237_v51 = vld [vmem:[#allocation2 + $0x68] sm:$0xe]  ;;  %v1241_v17 = vld [vmem:[#allocation2 + $0x80] sm:$0xe] }
 0x1be   : > { %6124 = vmatpush1.bf16.msra.mxu0 %v7896_v23  ;;  %5671 = vmatprep.subr.bf16.mxu1 %v7954_v53  ;;  %v7970_v23 = vld [vmem:[#allocation4 + $0x540] ss:$8 sps:$4 sm:$0xff]   ;;  %v7928_v53 = vld [vmem:[#allocation4 + $0xbd0] ss:$8 sps:$4 sm:$0xff]   ;;  %v2259_v8 = vshrl.u32 %v2117_v36, 16  ;;  %v2262_v44 = vshll.u32 %v2117_v36, 16 }
 0x1bf   : > { %6125 = vmatprep.subr.bf16.mxu0 %v7904_v50  ;;  %v2205_v50 = vrot.slane %v2203_v6, 4  ;;  %v2212_v6 = vshll.u32 %v2111_v33, 16  ;;  %v1243_v33 = vld [vmem:[#allocation2 + $0x8c] sm:$0x1]  ;;  %v6624_v36 = vrot.slane %v1241_v17, 9 }
 0x1c0   : > { %v2264_v19 = vrot.slane %v2262_v44, 5 }
 0x1c1   : > { %5672 = vmatpush1.bf16.msra.mxu1 %v7952_v59  ;;  %v2233_v59 = vrot.slane %v2231_v15, 4  ;;  %v7984_v15 = vld [vmem:[#allocation4 + $0x564] ss:$8 sps:$4 sm:$0xff]  }
 0x1c2   : > { %6126 = vmatpush1.bf16.msra.mxu0 %v7902_v38  ;;  %5673 = vmatprep.subr.bf16.mxu1 %v7960_v40  ;;  %v6647_v38 = vcombine.low %v9068_v52, %v9086_v41  ;;  %v2121_v40 = vld [vmem:[#allocation2 + $0xb0] sm:$0xf] }
 0x1c3   : > { %6127 = vmatprep.subr.bf16.mxu0 %v7910_v32  ;;  %v2208_v32 = vrot.slane %v2206_v49, 5  ;;  %v7934_v49 = vld [vmem:[#allocation4 + $0xbe0] ss:$8 sps:$4 sm:$0xff]  }
 0x1c5   : > { %5674 = vmatpush1.bf16.msra.mxu1 %v7958_v1  ;;  %v2290_v1 = vshll.u32 %v2121_v40, 16 }
 0x1c6   : > { %6128 = vmatpush1.bf16.msra.mxu0 %v7908_v30  ;;  %5675 = vmatprep.subr.bf16.mxu1 %v7966_v13  ;;  %v2236_v30 = vrot.slane %v2234_v55, 5  ;;  %v7976_v13 = vld [vmem:[#allocation4 + $0x550] ss:$8 sps:$4 sm:$0xff]   ;;  %v2209_v55 = vor.u32 %v2208_v32, %v2205_v50  ;;  %v2242_v50 = vrot.slane %v2240_v62, 5  ;;  %v1333_v32 = vrot.slane %v1243_v33, 5 }
 0x1c7   : > { %6129 = vmatprep.subr.bf16.mxu0 %v7917_v48  ;;  %v6634_v48 = vcombine.low %v1310_v9, %v1318_v57  ;;  %v6622_v9 = vrot.slane %v1237_v51, 9  ;;  %v2214_v57 = vrot.slane %v2212_v6, 5  ;;  %v7990_v6 = vld [vmem:[#allocation4 + $0x574] ss:$8 sps:$4 sm:$0xff]   ;;  %v7988_v51 = vld [vmem:[#allocation4 + $0x570] ss:$8 sps:$4 sm:$0xff]  }
 0x1c8   : > { %v2237_v16 = vor.u32 %v2236_v30, %v2233_v59  ;;  %v7941_v59 = vld [vmem:[#allocation4 + $0xbf0] ss:$8 sps:$4 sm:$0xff]   ;;  %v7982_v30 = vld [vmem:[#allocation4 + $0x560] ss:$8 sps:$4 sm:$0xff]  }
 0x1c9   : > { %5676 = vmatpush1.bf16.msra.mxu1 %v7964_v2  ;;  %v2261_v2 = vrot.slane %v2259_v8, 4 }
 0x1ca   : > { %6130 = vmatpush1.bf16.msra.mxu0 %v7915_v56  ;;  %5677 = vmatprep.subr.bf16.mxu1 %v7972_v18  ;;  %v7978_v56 = vld [vmem:[#allocation4 + $0x554] ss:$8 sps:$4 sm:$0xff]   ;;  %v2292_v18 = vrot.slane %v2290_v1, 5  ;;  %v2125_v1 = vld [vmem:[#allocation2 + $0xc8] sm:$0xf] }
 0x1cb   : > { %6131 = vmatprep.subr.bf16.mxu0 %v7923_v20  ;;  %v2287_v20 = vshrl.u32 %v2121_v40, 16  ;;  %5639 = vmatmul.mubr.bf16.gmra.mrb[4].mxu1 %v6634_v48  ;;  %v2238_v48 = vrot.slane %v2237_v16, 4  ;;  %v2265_v8 = vor.u32 %v2264_v19, %v2261_v2  ;;  %v2315_v16 = vshrl.u32 %v2125_v1, 16  ;;  %v9172_v19 = vld [vmem:[#allocation2 + $0xc0] sm:$0xff] }
 0x1cc   : > { %5648 = vmatprep.mubr.bf16.mxu1 %v6647_v38  ;;  %v2210_v38 = vrot.slane %v2209_v55, 4  ;;  %v2129_v55 = vld [vmem:[#allocation2 + $0xe0] sm:$0xf] }
 0x1cd   : > { %5678 = vmatpush1.bf16.msra.mxu1 %v7970_v23  ;;  %v2289_v24 = vrot.slane %v2287_v20, 4  ;;  %v2268_v23 = vshll.u32 %v9161_v25, 16  ;;  %v424_v20 = vld [vmem:[#allocation2 + $0xec] sm:$0x1]  ;;  %v2343_v2 = vshrl.u32 %v2129_v55, 16  ;;  %v2243_v45 = vsel %vm8625_vm14, %v2238_v48, %v2242_v50 }
 0x1ce   : > { %6132 = vmatpush1.bf16.msra.mxu0 %v7921_v11  ;;  %v7943_v11 = vld [vmem:[#allocation4 + $0xbf4] ss:$8 sps:$4 sm:$0xff]   ;;  %5679 = vmatprep.subr.bf16.mxu1 %v7978_v56  ;;  %v2296_v56 = vshll.u32 %v2123_v60, 16  ;;  %v425_v25 = vsel %vm8394_vm9, 0, %v424_v20  ;;  %v2266_v17 = vrot.slane %v2265_v8, 4 }
 0x1cf   : > { %6133 = vmatprep.subr.bf16.mxu0 %v7930_v21  ;;  %v1239_v21 = vld [vmem:[#allocation2 + $0x74] sm:$0x1]  ;;  %v2293_v44 = vor.u32 %v2292_v18, %v2289_v24  ;;  %426 = vst [vmem:[#allocation2 + $0xec] sm:$0x1] %v425_v25  ;;  %v9170_v60 = vld [vmem:[#allocation2 + $0xa8] sm:$0xff]  ;;  %v2270_v33 = vrot.slane %v2268_v23, 5 }
 0x1d0   : > { %v1325_v46 = vrot.slane %v1239_v21, 5  ;;  %v7949_v24 = vld [vmem:[#allocation4 + $0xc00] ss:$8 sps:$4 sm:$0xff]   ;;  %v7996_v18 = vld [vmem:[#allocation4 + $0x584] ss:$8 sps:$4 sm:$0xff]   ;;  %v6651_v52 = vcombine.high %v9170_v60, %v9172_v19 }
 0x1d1   : > { %5680 = vmatpush1.bf16.msra.mxu1 %v7976_v13  ;;  %v2318_v13 = vshll.u32 %v2125_v1, 16  ;;  %v7957_v21 = vld [vmem:[#allocation4 + $0xc14] ss:$8 sps:$4 sm:$0xff]   ;;  %v1245_v48 = vld [vmem:[#allocation2 + $0x98] sm:$0xe] }
 0x1d2   : > { %6134 = vmatpush1.bf16.msra.mxu0 %v7928_v53  ;;  %v1326_v40 = vsel %vm8516_vm11, %v6622_v9, %v1325_v46  ;;  %v7951_v53 = vld [vmem:[#allocation4 + $0xc04] ss:$8 sps:$4 sm:$0xff]   ;;  %5681 = vmatprep.subr.bf16.mxu1 %v7984_v15  ;;  %v2346_v15 = vshll.u32 %v2129_v55, 16  ;;  %v2294_v9 = vrot.slane %v2293_v44, 4  ;;  %v2298_v46 = vrot.slane %v2296_v56, 5 }
 0x1d3   : > { %6135 = vmatprep.subr.bf16.mxu0 %v7936_v7  ;;  %v1334_v7 = vsel %vm8516_vm11, %v6624_v36, %v1333_v32  ;;  %v2127_v36 = vld [vmem:[#allocation2 + $0xd4] sm:$0x1]  ;;  %v2317_v32 = vrot.slane %v2315_v16, 4  ;;  %v1249_v20 = vld [vmem:[#allocation2 + $0xb0] sm:$0xe]  ;;  %v2271_v55 = vsel %vm8625_vm14, %v2266_v17, %v2270_v33 }
 0x1d4   : > { %v6637_v62 = vcombine.low %v1326_v40, %v1334_v7  ;;  %v2320_v40 = vrot.slane %v2318_v13, 5  ;;  %v1247_v7 = vld [vmem:[#allocation2 + $0xa4] sm:$0x1]  ;;  %v7955_v1 = vld [vmem:[#allocation4 + $0xc10] ss:$8 sps:$4 sm:$0xff]   ;;  %v6628_v23 = vrot.slane %v1249_v20, 9  ;;  %v2299_v5 = vsel %vm8625_vm14, %v2294_v9, %v2298_v46 }
 0x1d5   : > { %5682 = vmatpush1.bf16.msra.mxu1 %v7982_v30  ;;  %v6626_v30 = vrot.slane %v1245_v48, 9  ;;  %v1341_v8 = vrot.slane %v1247_v7, 5  ;;  %v8002_v44 = vld [vmem:[#allocation4 + $0x594] ss:$8 sps:$4 sm:$0xff]   ;;  %v7963_v25 = vld [vmem:[#allocation4 + $0xc24] ss:$8 sps:$4 sm:$0xff]  }
 0x1d6   : > { %6136 = vmatpush1.bf16.msra.mxu0 %v7934_v49  ;;  %v2215_v49 = vsel %vm8625_vm14, %v2210_v38, %v2214_v57  ;;  %5649 = vmatmul.mubr.bf16.gmra.mrb[8].mxu1 %v6637_v62  ;;  %v2345_v57 = vrot.slane %v2343_v2, 4  ;;  %v2348_v38 = vrot.slane %v2346_v15, 5  ;;  %v1251_v62 = vld [vmem:[#allocation2 + $0xbc] sm:$0x1]  ;;  %v2321_v16 = vor.u32 %v2320_v40, %v2317_v32  ;;  %v8007_v9 = vld [vmem:[#allocation4 + $0x5a0] ss:$8 sps:$4 sm:$0xff]  }
 0x1d7   : > { %6137 = vmatprep.subr.bf16.mxu0 %v7943_v11  ;;  %v6650_v11 = vcombine.low %v9170_v60, %v9172_v19  ;;  %5683 = vmatprep.subr.bf16.mxu1 %v7990_v6  ;;  %v6710_v50 = vcombine.low %v2215_v49, %v2243_v45  ;;  %v1349_v56 = vrot.slane %v1251_v62, 5  ;;  %v1342_v6 = vsel %vm8516_vm11, %v6626_v30, %v1341_v8  ;;  %v8009_v49 = vld [vmem:[#allocation4 + $0x5a4] ss:$8 sps:$4 sm:$0xff]   ;;  %v7969_v45 = vld [vmem:[#allocation4 + $0xc34] ss:$8 sps:$4 sm:$0xff]  }
 0x1d8   : > { %v2324_v13 = vshll.u32 %v2127_v36, 16  ;;  %v6713_v15 = vcombine.low %v2271_v55, %v2299_v5  ;;  %v8045_v36 = vld [vmem:[#allocation2 + $0x20] ss:$24 sps:$4 sm:$0xff]   ;;  %v8015_v32 = vld [vmem:[#allocation4 + $0x5b4] ss:$8 sps:$4 sm:$0xff]  }
 0x1d9   : > { %5658 = vmatprep.mubr.bf16.mxu1 %v6650_v11  ;;  %5684 = vmatpush1.bf16.msra.mxu1 %v7988_v51  ;;  %v1350_v28 = vsel %vm8516_vm11, %v6628_v23, %v1349_v56  ;;  %v2322_v11 = vrot.slane %v2321_v16, 4  ;;  %v7967_v46 = vld [vmem:[#allocation4 + $0xc30] ss:$8 sps:$4 sm:$0xff]   ;;  %v7975_v40 = vld [vmem:[#allocation4 + $0xc44] ss:$8 sps:$4 sm:$0xff]   ;;  %v6719_v23 = vrot.slane %v2420_v31, 9 }
 0x1da   : > { %6138 = vmatpush1.bf16.msra.mxu0 %v7941_v59  ;;  %v7994_v59 = vld [vmem:[#allocation4 + $0x580] ss:$8 sps:$4 sm:$0xff]   ;;  %5685 = vmatprep.subr.bf16.mxu1 %v7996_v18  ;;  %v6640_v2 = vcombine.low %v1342_v6, %v1350_v28  ;;  %v8000_v18 = vld [vmem:[#allocation4 + $0x590] ss:$8 sps:$4 sm:$0xff]   ;;  %v8022_v20 = vld [vmem:[#allocation4 + $0x5c4] ss:$8 sps:$4 sm:$0xff]  }
 0x1db   : > { %6180 = vmatprep.subr.bf16.mxu0 %v7951_v53  ;;  %v2131_v53 = vld [vmem:[#allocation2 + $0xec] sm:$0x1]  ;;  %v2416_v48 = vld [vmem:[#allocation2 + $0x30] sm:$0xee]  ;;  %v2418_v7 = vld [vmem:[#allocation2 + $0x3c] sm:$0x11] }
 0x1dc   : > { %v2352_v51 = vshll.u32 %v2131_v53, 16  ;;  %v6717_v30 = vrot.slane %v2416_v48, 9  ;;  %v2482_v8 = vrot.slane %v2418_v7, 5  ;;  %v7979_v56 = vld [vmem:[#allocation4 + $0xc50] ss:$8 sps:$4 sm:$0xff]  }
 0x1dd   : > { %6140 = vmatmul.mubr.bf16.vlgmr.msra.gmra.mrb[0].mxu0 %v6706_v29  ;;  %v2349_v29 = vor.u32 %v2348_v38, %v2345_v57  ;;  %5686 = vmatpush1.bf16.msra.mxu1 %v7994_v59  ;;  %v8013_v57 = vld [vmem:[#allocation4 + $0x5b0] ss:$8 sps:$4 sm:$0xff]   ;;  %v2490_v59 = vrot.slane %v2422_v12, 5  ;;  %v8028_v53 = vld [vmem:[#allocation4 + $0x5d4] ss:$8 sps:$4 sm:$0xff]  }
 0x1de   : > { %6181 = vmatpush1.bf16.msra.mxu0 %v7949_v24  ;;  %6149 = vmatprep.mubr.bf16.mxu0 %v6710_v50  ;;  %v7961_v24 = vld [vmem:[#allocation4 + $0xc20] ss:$8 sps:$4 sm:$0xff]   ;;  %v2354_v33 = vrot.slane %v2352_v51, 5  ;;  %v7987_v6 = vld [vmem:[#allocation4 + $0xc64] ss:$8 sps:$4 sm:$0xff]  }
 0x1df   : > { %6182 = vmatprep.subr.bf16.mxu0 %v7957_v21  ;;  %5687 = vmatprep.subr.bf16.mxu1 %v8002_v44  ;;  %v2326_v21 = vrot.slane %v2324_v13, 5  ;;  %v2350_v17 = vrot.slane %v2349_v29, 4  ;;  %v8020_v44 = vld [vmem:[#allocation4 + $0x5c0] ss:$8 sps:$4 sm:$0xff]   ;;  %v9207_v55 = vsel %vm8516_vm11, %v6719_v23, %v2490_v59  ;;  %v8026_v13 = vld [vmem:[#allocation4 + $0x5d0] ss:$8 sps:$4 sm:$0xff]  }
 0x1e0   : > { %5659 = vmatmul.mubr.bf16.gmra.mrb[12].mxu1 %v6640_v2  ;;  %v7985_v16 = vld [vmem:[#allocation4 + $0xc60] ss:$8 sps:$4 sm:$0xff]   ;;  %v7991_v5 = vld [vmem:[#allocation4 + $0xc70] ss:$8 sps:$4 sm:$0xff]   ;;  %v8041_v29 = vld [vmem:[#allocation4 + $0x5f4] ss:$8 sps:$4 sm:$0xff]  }
 0x1e1   : > { %5688 = vmatpush1.bf16.msra.mxu1 %v8000_v18  ;;  %v2327_v38 = vsel %vm8625_vm14, %v2322_v11, %v2326_v21  ;;  %v2355_v50 = vsel %vm8625_vm14, %v2350_v17, %v2354_v33  ;;  %5701 = vmatprep.mubr.bf16.mxu1 %v8045_v36  ;;  %v8033_v28 = vld [vmem:[#allocation4 + $0x5e0] ss:$8 sps:$4 sm:$0xff]   ;;  %v7999_v51 = vld [vmem:[#allocation4 + $0xc84] ss:$8 sps:$4 sm:$0xff]   ;;  %v8052_v11 = vld [vmem:[#allocation4 + $0x610] ss:$8 sps:$4 sm:$0xff]  }
 0x1e2   : > { %6183 = vmatpush1.bf16.msra.mxu0 %v7955_v1  ;;  %5689 = vmatprep.subr.bf16.mxu1 %v8009_v49  ;;  %v7981_v1 = vld [vmem:[#allocation4 + $0xc54] ss:$8 sps:$4 sm:$0xff]   ;;  %v6716_v62 = vcombine.low %v2327_v38, %v2355_v50  ;;  %v7997_v2 = vld [vmem:[#allocation4 + $0xc80] ss:$8 sps:$4 sm:$0xff]   ;;  %v8048_v18 = vld [vmem:[#allocation4 + $0x604] ss:$8 sps:$4 sm:$0xff]  }
 0x1e3   : > { %6184 = vmatprep.subr.bf16.mxu0 %v7963_v25  ;;  %v9203_v25 = vsel %vm8516_vm11, %v6717_v30, %v2482_v8  ;;  %v8005_v49 = vld [vmem:[#allocation4 + $0xc94] ss:$8 sps:$4 sm:$0xff]   ;;  %v8060_v21 = vld [vmem:[#allocation4 + $0x624] ss:$8 sps:$4 sm:$0xff]   ;;  %v8100_v17 = vld [vmem:[#allocation2 + $0x50] ss:$24 sps:$4 sm:$0xff]  }
 0x1e4   : > { %v8018_v33 = vld [vmem:[#allocation4 + $0xcb4] ss:$8 sps:$4 sm:$0xff]   ;;  %v8016_v36 = vld [vmem:[#allocation4 + $0xcb0] ss:$8 sps:$4 sm:$0xff]   ;;  %v8072_v50 = vld [vmem:[#allocation4 + $0x644] ss:$8 sps:$4 sm:$0xff]  }
 0x1e5   : > { %6150 = vmatmul.mubr.bf16.gmra.mrb[4].mxu0 %v6709_v47  ;;  %5690 = vmatpush1.bf16.msra.mxu1 %v8007_v9  ;;  %v7973_v47 = vld [vmem:[#allocation4 + $0xc40] ss:$8 sps:$4 sm:$0xff]   ;;  %v2430_v7 = vld [vmem:[#allocation2 + $0x84] sm:$0x11]  ;;  %v1707_v8 = vshll.u32 %v9170_v60, 16 }
 0x1e6   : > { %6185 = vmatpush1.bf16.msra.mxu0 %v7961_v24  ;;  %6159 = vmatprep.mubr.bf16.mxu0 %v6713_v15  ;;  %v8039_v24 = vld [vmem:[#allocation4 + $0x5f0] ss:$8 sps:$4 sm:$0xff]   ;;  %v8010_v15 = vld [vmem:[#allocation4 + $0xca0] ss:$8 sps:$4 sm:$0xff]   ;;  %v2506_v59 = vrot.slane %v2430_v7, 5 }
 0x1e7   : > { %6186 = vmatprep.subr.bf16.mxu0 %v7969_v45  ;;  %5691 = vmatprep.subr.bf16.mxu1 %v8015_v32  ;;  %v8046_v45 = vld [vmem:[#allocation4 + $0x600] ss:$8 sps:$4 sm:$0xff]   ;;  %v8066_v32 = vld [vmem:[#allocation4 + $0x634] ss:$8 sps:$4 sm:$0xff]  }
 0x1e8   : > { %v8058_v9 = vld [vmem:[#allocation4 + $0x620] ss:$8 sps:$4 sm:$0xff]  }
 0x1e9   : > { %5692 = vmatpush1.bf16.msra.mxu1 %v8013_v57  ;;  %v2424_v57 = vld [vmem:[#allocation2 + $0x60] sm:$0xee]  ;;  %v2426_v38 = vld [vmem:[#allocation2 + $0x6c] sm:$0x11]  ;;  %v2428_v48 = vld [vmem:[#allocation2 + $0x78] sm:$0xee] }
 0x1ea   : > { %6187 = vmatpush1.bf16.msra.mxu0 %v7967_v46  ;;  %5693 = vmatprep.subr.bf16.mxu1 %v8022_v20  ;;  %v8025_v46 = vld [vmem:[#allocation4 + $0xcc4] ss:$8 sps:$4 sm:$0xff]   ;;  %v8070_v31 = vld [vmem:[#allocation4 + $0x640] ss:$8 sps:$4 sm:$0xff]   ;;  %v6723_v30 = vrot.slane %v2428_v48, 9 }
 0x1eb   : > { %6188 = vmatprep.subr.bf16.mxu0 %v7975_v40  ;;  %v8108_v40 = vld [vmem:[#allocation2 + $0x80] ss:$24 sps:$4 sm:$0xff]   ;;  %v8116_v12 = vld [vmem:[#allocation2 + $0xb0] ss:$24 sps:$4 sm:$0xff]   ;;  %v8038_v20 = vld [vmem:[#allocation4 + $0xce4] ss:$8 sps:$4 sm:$0xff]  }
 0x1ec   : > { %v8036_v23 = vld [vmem:[#allocation4 + $0xce0] ss:$8 sps:$4 sm:$0xff]   ;;  %v8088_v48 = vld [vmem:[#allocation4 + $0x670] ss:$8 sps:$4 sm:$0xff]  }
 0x1ed   : > { %6160 = vmatmul.mubr.bf16.gmra.mrb[8].mxu0 %v6712_v4  ;;  %5694 = vmatpush1.bf16.msra.mxu1 %v8020_v44  ;;  %v6734_v4 = vcombine.high %v9203_v25, %v9207_v55  ;;  %v8076_v44 = vld [vmem:[#allocation4 + $0x650] ss:$8 sps:$4 sm:$0xff]  }
 0x1ee   : > { %6189 = vmatpush1.bf16.msra.mxu0 %v7973_v47  ;;  %6169 = vmatprep.mubr.bf16.mxu0 %v6716_v62  ;;  %v8029_v47 = vld [vmem:[#allocation4 + $0xcd0] ss:$8 sps:$4 sm:$0xff]   ;;  %v2498_v62 = vrot.slane %v2426_v38, 5  ;;  %v8049_v38 = vld [vmem:[#allocation4 + $0xd00] ss:$8 sps:$4 sm:$0xff]  }
 0x1ef   : > { %6190 = vmatprep.subr.bf16.mxu0 %v7981_v1  ;;  %5695 = vmatprep.subr.bf16.mxu1 %v8028_v53  ;;  %v6721_v1 = vrot.slane %v2424_v57, 9  ;;  %v8084_v53 = vld [vmem:[#allocation4 + $0x664] ss:$8 sps:$4 sm:$0xff]   ;;  %v6733_v57 = vcombine.low %v9203_v25, %v9207_v55 }
 0x1f1   : > { %5696 = vmatpush1.bf16.msra.mxu1 %v8026_v13  ;;  %v1735_v13 = vshll.u32 %v9172_v19, 16 }
 0x1f2   : > { %6191 = vmatpush1.bf16.msra.mxu0 %v7979_v56  ;;  %5697 = vmatprep.subr.bf16.mxu1 %v8035_v26  ;;  %v1732_v56 = vshrl.u32 %v9172_v19, 16  ;;  %v1507_v26 = vld [vmem:[#allocation2 + $0x30] sm:$0xff]  ;;  %v1709_v19 = vrot.slane %v1707_v8, 5 }
 0x1f3   : > { %6192 = vmatprep.subr.bf16.mxu0 %v7987_v6  ;;  %v1503_v6 = vld [vmem:[#allocation2 + $0x18] sm:$0xff]  ;;  %v1564_v41 = vshrl.u32 %v1507_v26, 16  ;;  %v1533_v8 = vld [vmem:[#allocation2 + $0xcc] sm:$0x11] }
 0x1f5   : > { %6170 = vmatmul.mubr.bf16.gmra.mrb[12].mxu0 %v6715_v39  ;;  %5698 = vmatpush1.bf16.msra.mxu1 %v8033_v28  ;;  %v8012_v39 = vld [vmem:[#allocation4 + $0xca4] ss:$8 sps:$4 sm:$0xff]   ;;  %v1539_v28 = vshll.u32 %v1503_v6, 16 }
 0x1f6   : > { %6193 = vmatpush1.bf16.msra.mxu0 %v7985_v16  ;;  %6212 = vmatprep.mubr.bf16.mxu0 %v6734_v4  ;;  %v1505_v16 = vld [vmem:[#allocation2 + $0x24] sm:$0x11]  ;;  %v1536_v4 = vshrl.u32 %v1503_v6, 16  ;;  %v8063_v6 = vld [vmem:[#allocation4 + $0xd24] ss:$8 sps:$4 sm:$0xff]  }
 0x1f7   : > { %6194 = vmatprep.subr.bf16.mxu0 %v7993_v22  ;;  %5699 = vmatprep.subr.bf16.mxu1 %v8041_v29  ;;  %v1509_v22 = vld [vmem:[#allocation2 + $0x3c] sm:$0x11]  ;;  %v8044_v29 = vld [vmem:[#allocation4 + $0xcf4] ss:$8 sps:$4 sm:$0xff]  }
 0x1f9   : > { %5700 = vmatpush1.bf16.msra.mxu1 %v8039_v24  ;;  %v9231_v24 = vsel %vm8516_vm11, %v6721_v1, %v2498_v62  ;;  %v8096_v62 = vld [vmem:[#allocation4 + $0x684] ss:$8 sps:$4 sm:$0xff]  }
 0x1fa   : > { %6195 = vmatpush1.bf16.msra.mxu0 %v7991_v5  ;;  %5742 = vmatprep.subr.bf16.mxu1 %v8048_v18  ;;  %v1545_v5 = vshll.u32 %v1505_v16, 16  ;;  %v1538_v18 = vrot.slane %v1536_v4, 4  ;;  %v8099_v16 = vld [vmem:[#allocation4 + $0x694] ss:$8 sps:$4 sm:$0xff]  }
 0x1fb   : > { %6196 = vmatprep.subr.bf16.mxu0 %v7999_v51  ;;  %v1573_v51 = vshll.u32 %v1509_v22, 16 }
 0x1fc   : > { %5702 = vmatmul.mubr.bf16.vlgmr.msra.gmra.mrb[0].mxu1 %v6642_v35  ;;  %v8064_v35 = vld [vmem:[#allocation4 + $0x630] ss:$8 sps:$4 sm:$0xff]  }
 0x1fd   : > { %5743 = vmatpush1.bf16.msra.mxu1 %v8046_v45  ;;  %5711 = vmatprep.mubr.bf16.mxu1 %v8100_v17  ;;  %v1547_v17 = vrot.slane %v1545_v5, 5  ;;  %v2442_v5 = vld [vmem:[#allocation2 + $0xcc] sm:$0x11] }
 0x1fe   : > { %6197 = vmatpush1.bf16.msra.mxu0 %v7997_v2  ;;  %5744 = vmatprep.subr.bf16.mxu1 %v8054_v10  ;;  %v8042_v2 = vld [vmem:[#allocation4 + $0xcf0] ss:$8 sps:$4 sm:$0xff]   ;;  %v9235_v10 = vsel %vm8516_vm11, %v6723_v30, %v2506_v59 }
 0x1ff   : > { %6198 = vmatprep.subr.bf16.mxu0 %v8005_v49  ;;  %v1541_v49 = vrot.slane %v1539_v28, 5  ;;  %v8055_v59 = vld [vmem:[#allocation4 + $0xd10] ss:$8 sps:$4 sm:$0xff]  }
 0x200   : > { %v2440_v28 = vld [vmem:[#allocation2 + $0xc0] sm:$0xee] }
 0x201   : > { %5745 = vmatpush1.bf16.msra.mxu1 %v8052_v11  ;;  %v8090_v11 = vld [vmem:[#allocation4 + $0x674] ss:$8 sps:$4 sm:$0xff]  }
 0x202   : > { %6199 = vmatpush1.bf16.msra.mxu0 %v8003_v63  ;;  %5746 = vmatprep.subr.bf16.mxu1 %v8060_v21  ;;  %v8051_v63 = vld [vmem:[#allocation4 + $0xd04] ss:$8 sps:$4 sm:$0xff]   ;;  %v1542_v21 = vor.u32 %v1541_v49, %v1538_v18  ;;  %v1592_v18 = vshrl.u32 %v9147_v54, 16  ;;  %v1595_v49 = vshll.u32 %v9147_v54, 16 }
 0x203   : > { %6200 = vmatprep.subr.bf16.mxu0 %v8012_v39  ;;  %v8082_v39 = vld [vmem:[#allocation4 + $0x660] ss:$8 sps:$4 sm:$0xff]   ;;  %v8104_v54 = vld [vmem:[#allocation4 + $0x6a4] ss:$8 sps:$4 sm:$0xff]  }
 0x204   : > { %5712 = vmatmul.mubr.bf16.gmra.mrb[4].mxu1 %v6645_v42  ;;  %v1704_v42 = vshrl.u32 %v9170_v60, 16 }
 0x205   : > { %5747 = vmatpush1.bf16.msra.mxu1 %v8058_v9  ;;  %5721 = vmatprep.mubr.bf16.mxu1 %v8108_v40  ;;  %v2432_v9 = vld [vmem:[#allocation2 + $0x90] sm:$0xee]  ;;  %v1575_v40 = vrot.slane %v1573_v51, 5  ;;  %v6736_v51 = vcombine.low %v9231_v24, %v9235_v10 }
 0x206   : > { %6201 = vmatpush1.bf16.msra.mxu0 %v8010_v15  ;;  %5748 = vmatprep.subr.bf16.mxu1 %v8066_v32  ;;  %v1706_v45 = vrot.slane %v1704_v42, 4  ;;  %v1566_v15 = vrot.slane %v1564_v41, 4  ;;  %v2446_v41 = vld [vmem:[#allocation2 + $0xe4] sm:$0x11] }
 0x207   : > { %6202 = vmatprep.subr.bf16.mxu0 %v8018_v33  ;;  %v1734_v33 = vrot.slane %v1732_v56, 4 }
 0x209   : > { %5749 = vmatpush1.bf16.msra.mxu1 %v8064_v35  ;;  %v1543_v35 = vrot.slane %v1542_v21, 4 }
 0x20a   : > { %6203 = vmatpush1.bf16.msra.mxu0 %v8016_v36  ;;  %5750 = vmatprep.subr.bf16.mxu1 %v8072_v50  ;;  %v1737_v36 = vrot.slane %v1735_v13, 5  ;;  %v6737_v50 = vcombine.high %v9231_v24, %v9235_v10  ;;  %v8069_v10 = vld [vmem:[#allocation4 + $0xd34] ss:$8 sps:$4 sm:$0xff]  }
 0x20b   : > { %6204 = vmatprep.subr.bf16.mxu0 %v8025_v46  ;;  %v2434_v46 = vld [vmem:[#allocation2 + $0x9c] sm:$0x11]  ;;  %v9243_v42 = vsel %vm8625_vm14, %v1543_v35, %v1547_v17  ;;  %v1597_v35 = vrot.slane %v1595_v49, 5 }
 0x20c   : > { %5722 = vmatmul.mubr.bf16.gmra.mrb[8].mxu1 %v6648_v58  ;;  %v1567_v58 = vshll.u32 %v1507_v26, 16  ;;  %v1738_v1 = vor.u32 %v1737_v36, %v1734_v33  ;;  %v1741_v26 = vshll.u32 %v1533_v8, 16  ;;  %v8102_v33 = vld [vmem:[#allocation4 + $0x6a0] ss:$8 sps:$4 sm:$0xff]   ;;  %v8067_v36 = vld [vmem:[#allocation4 + $0xd30] ss:$8 sps:$4 sm:$0xff]  }
 0x20d   : > { %5751 = vmatpush1.bf16.msra.mxu1 %v8070_v31  ;;  %5731 = vmatprep.mubr.bf16.mxu1 %v8116_v12  ;;  %v1710_v31 = vor.u32 %v1709_v19, %v1706_v45  ;;  %v8057_v12 = vld [vmem:[#allocation4 + $0xd14] ss:$8 sps:$4 sm:$0xff]   ;;  %v8110_v8 = vld [vmem:[#allocation4 + $0x6c0] ss:$8 sps:$4 sm:$0xff]  }
 0x20e   : > { %6205 = vmatpush1.bf16.msra.mxu0 %v8023_v3  ;;  %5752 = vmatprep.subr.bf16.mxu1 %v8078_v27  ;;  %v1569_v60 = vrot.slane %v1567_v58, 5  ;;  %v2436_v3 = vld [vmem:[#allocation2 + $0xa8] sm:$0xee]  ;;  %v2514_v27 = vrot.slane %v2434_v46, 5  ;;  %v1739_v13 = vrot.slane %v1738_v1, 4  ;;  %v1743_v58 = vrot.slane %v1741_v26, 5 }
 0x20f   : > { %6206 = vmatprep.subr.bf16.mxu0 %v8031_v34  ;;  %v2438_v34 = vld [vmem:[#allocation2 + $0xb4] sm:$0x11]  ;;  %v6727_v25 = vrot.slane %v2436_v3, 9  ;;  %v1711_v56 = vrot.slane %v1710_v31, 4  ;;  %v1515_v3 = vld [vmem:[#allocation2 + $0x60] sm:$0xff] }
 0x210   : > { %v1570_v32 = vor.u32 %v1569_v60, %v1566_v15  ;;  %v2522_v55 = vrot.slane %v2438_v34, 5  ;;  %v6729_v15 = vrot.slane %v2440_v28, 9  ;;  %v2530_v60 = vrot.slane %v2442_v5, 5  ;;  %v8075_v46 = vld [vmem:[#allocation4 + $0xd44] ss:$8 sps:$4 sm:$0xff]  }
 0x211   : > { %5753 = vmatpush1.bf16.msra.mxu1 %v8076_v44  ;;  %v8094_v44 = vld [vmem:[#allocation4 + $0x680] ss:$8 sps:$4 sm:$0xff]   ;;  %v9268_v24 = vsel %vm8625_vm14, %v1739_v13, %v1743_v58  ;;  %v1594_v34 = vrot.slane %v1592_v18, 4  ;;  %v1623_v31 = vshll.u32 %v1515_v3, 16  ;;  %v8079_v1 = vld [vmem:[#allocation4 + $0xd50] ss:$8 sps:$4 sm:$0xff]  }
 0x212   : > { %6207 = vmatpush1.bf16.msra.mxu0 %v8029_v47  ;;  %5754 = vmatprep.subr.bf16.mxu1 %v8084_v53  ;;  %v1571_v7 = vrot.slane %v1570_v32, 4  ;;  %v6725_v47 = vrot.slane %v2432_v9, 9  ;;  %v2523_v4 = vsel %vm8516_vm11, %v6727_v25, %v2522_v55  ;;  %v8107_v9 = vld [vmem:[#allocation4 + $0x6b4] ss:$8 sps:$4 sm:$0xff]   ;;  %v9276_v32 = vsel %vm8516_vm11, %v6729_v15, %v2530_v60  ;;  %v2421_v55 = vld [vmem:[#allocation2 + $0x50] sm:$0xe] }
 0x213   : > { %6208 = vmatprep.subr.bf16.mxu0 %v8038_v20  ;;  %v1529_v20 = vld [vmem:[#allocation2 + $0xb4] sm:$0x11]  ;;  %v2419_v25 = vld [vmem:[#allocation2 + $0x44] sm:$0x1]  ;;  %v2425_v60 = vld [vmem:[#allocation2 + $0x68] sm:$0xe] }
 0x214   : > { %5732 = vmatmul.mubr.bf16.gmra.mrb[12].mxu1 %v6651_v52  ;;  %v9247_v30 = vsel %vm8625_vm14, %v1571_v7, %v1575_v40  ;;  %v1713_v53 = vshll.u32 %v1529_v20, 16  ;;  %v9253_v22 = vsel %vm8516_vm11, %v6725_v47, %v2514_v27  ;;  %v2444_v52 = vld [vmem:[#allocation2 + $0xd8] sm:$0xee]  ;;  %v1620_v7 = vshrl.u32 %v1515_v3, 16  ;;  %v1523_v26 = vld [vmem:[#allocation2 + $0x90] sm:$0xff] }
 0x215   : > { %5755 = vmatpush1.bf16.msra.mxu1 %v8082_v39  ;;  %v6740_v39 = vcombine.high %v9253_v22, %v2523_v4  ;;  %v6731_v19 = vrot.slane %v2444_v52, 9  ;;  %v2417_v47 = vld [vmem:[#allocation2 + $0x38] sm:$0xe]  ;;  %v8112_v27 = vld [vmem:[#allocation4 + $0x6c4] ss:$8 sps:$4 sm:$0xff]   ;;  %v1598_v20 = vor.u32 %v1597_v35, %v1594_v34  ;;  %v2486_v5 = vrot.slane %v2419_v25, 5 }
 0x216   : > { %6209 = vmatpush1.bf16.msra.mxu0 %v8036_v23  ;;  %5756 = vmatprep.subr.bf16.mxu1 %v8090_v11  ;;  %v6654_v23 = vcombine.high %v9243_v42, %v9247_v30  ;;  %v2538_v11 = vrot.slane %v2446_v41, 5  ;;  %v6718_v28 = vrot.slane %v2417_v47, 9  ;;  %v8113_v41 = vld [vmem:[#allocation4 + $0x6d0] ss:$8 sps:$4 sm:$0xff]   ;;  %v8093_v18 = vld [vmem:[#allocation4 + $0xd74] ss:$8 sps:$4 sm:$0xff]  }
 0x217   : > { %6210 = vmatprep.subr.bf16.mxu0 %v8044_v29  ;;  %v1715_v29 = vrot.slane %v1713_v53, 5  ;;  %v1625_v53 = vrot.slane %v1623_v31, 5  ;;  %v1599_v13 = vrot.slane %v1598_v20, 4  ;;  %v1679_v15 = vshll.u32 %v1523_v26, 16 }
 0x218   : > { %5774 = vmatprep.mubr.bf16.mxu1 %v6654_v23  ;;  %v9280_v40 = vsel %vm8516_vm11, %v6731_v19, %v2538_v11  ;;  %v8115_v23 = vld [vmem:[#allocation4 + $0x6d4] ss:$8 sps:$4 sm:$0xff]   ;;  %v8120_v19 = vld [vmem:[#allocation4 + $0x6e4] ss:$8 sps:$4 sm:$0xff]   ;;  %v8091_v11 = vld [vmem:[#allocation4 + $0xd70] ss:$8 sps:$4 sm:$0xff]  }
 0x219   : > { %5757 = vmatpush1.bf16.msra.mxu1 %v8088_v48  ;;  %v9263_v45 = vsel %vm8625_vm14, %v1711_v56, %v1715_v29  ;;  %v6743_v48 = vcombine.high %v9276_v32, %v9280_v40  ;;  %v1622_v56 = vrot.slane %v1620_v7, 4  ;;  %v6720_v29 = vrot.slane %v2421_v55, 9  ;;  %v1525_v7 = vld [vmem:[#allocation2 + $0x9c] sm:$0x11] }
 0x21a   : > { %6211 = vmatpush1.bf16.msra.mxu0 %v8042_v2  ;;  %5758 = vmatprep.subr.bf16.mxu1 %v8096_v62  ;;  %v8097_v2 = vld [vmem:[#allocation4 + $0x690] ss:$8 sps:$4 sm:$0xff]   ;;  %v6663_v21 = vcombine.high %v9263_v45, %v9268_v24  ;;  %v6662_v17 = vcombine.low %v9263_v45, %v9268_v24  ;;  %v2423_v62 = vld [vmem:[#allocation2 + $0x5c] sm:$0x1] }
 0x21b   : > { %6253 = vmatprep.subr.bf16.mxu0 %v8051_v63  ;;  %v8061_v63 = vld [vmem:[#allocation4 + $0xd20] ss:$8 sps:$4 sm:$0xff]   ;;  %v2494_v52 = vrot.slane %v2423_v62, 5  ;;  %v1626_v49 = vor.u32 %v1625_v53, %v1622_v56 }
 0x21d   : > { %6213 = vmatmul.mubr.bf16.vlgmr.msra.gmra.mrb[0].mxu0 %v6733_v57  ;;  %5759 = vmatpush1.bf16.msra.mxu1 %v8094_v44  ;;  %v6739_v57 = vcombine.low %v9253_v22, %v2523_v4  ;;  %v1517_v44 = vld [vmem:[#allocation2 + $0x6c] sm:$0x11]  ;;  %v6742_v22 = vcombine.low %v9276_v32, %v9280_v40  ;;  %v1627_v35 = vrot.slane %v1626_v49, 4 }
 0x21e   : > { %6254 = vmatpush1.bf16.msra.mxu0 %v8049_v38  ;;  %6222 = vmatprep.mubr.bf16.mxu0 %v6737_v50  ;;  %v8105_v38 = vld [vmem:[#allocation4 + $0x6b0] ss:$8 sps:$4 sm:$0xff]   ;;  %v8073_v50 = vld [vmem:[#allocation4 + $0xd40] ss:$8 sps:$4 sm:$0xff]   ;;  %v8123_v32 = vld [vmem:[#allocation4 + $0x6f4] ss:$8 sps:$4 sm:$0xff]  }
 0x21f   : > { %6255 = vmatprep.subr.bf16.mxu0 %v8057_v12  ;;  %5760 = vmatprep.subr.bf16.mxu1 %v8099_v16  ;;  %v8081_v12 = vld [vmem:[#allocation4 + $0xd54] ss:$8 sps:$4 sm:$0xff]   ;;  %v8087_v16 = vld [vmem:[#allocation4 + $0xd64] ss:$8 sps:$4 sm:$0xff]   ;;  %v8085_v4 = vld [vmem:[#allocation4 + $0xd60] ss:$8 sps:$4 sm:$0xff]  }
 0x221   : > { %5761 = vmatpush1.bf16.msra.mxu1 %v8097_v2 }
 0x222   : > { %6256 = vmatpush1.bf16.msra.mxu0 %v8055_v59  ;;  %5762 = vmatprep.subr.bf16.mxu1 %v8104_v54  ;;  %v1513_v59 = vld [vmem:[#allocation2 + $0x54] sm:$0x11]  ;;  %v2487_v54 = vsel %vm8516_vm11, %v6718_v28, %v2486_v5  ;;  %v2437_v5 = vld [vmem:[#allocation2 + $0xb0] sm:$0xe] }
 0x223   : > { %6257 = vmatprep.subr.bf16.mxu0 %v8063_v6  ;;  %v1519_v6 = vld [vmem:[#allocation2 + $0x78] sm:$0xff]  ;;  %v1601_v58 = vshll.u32 %v1513_v59, 16  ;;  %v1685_v59 = vshll.u32 %v1525_v7, 16 }
 0x224   : > { %v1648_v2 = vshrl.u32 %v1519_v6, 16 }
 0x225   : > { %6223 = vmatmul.mubr.bf16.gmra.mrb[4].mxu0 %v6736_v51  ;;  %5763 = vmatpush1.bf16.msra.mxu1 %v8102_v33  ;;  %v1629_v51 = vshll.u32 %v1517_v44, 16  ;;  %v2429_v33 = vld [vmem:[#allocation2 + $0x80] sm:$0xe]  ;;  %v1603_v40 = vrot.slane %v1601_v58, 5  ;;  %v6653_v44 = vcombine.low %v9243_v42, %v9247_v30  ;;  %v1687_v28 = vrot.slane %v1685_v59, 5 }
 0x226   : > { %6258 = vmatpush1.bf16.msra.mxu0 %v8061_v63  ;;  %6232 = vmatprep.mubr.bf16.mxu0 %v6740_v39  ;;  %v1651_v63 = vshll.u32 %v1519_v6, 16  ;;  %v1676_v39 = vshrl.u32 %v1523_v26, 16  ;;  %v1650_v34 = vrot.slane %v1648_v2, 4  ;;  %v2433_v6 = vld [vmem:[#allocation2 + $0x98] sm:$0xe] }
 0x227   : > { %6259 = vmatprep.subr.bf16.mxu0 %v8069_v10  ;;  %5764 = vmatprep.subr.bf16.mxu1 %v8107_v9  ;;  %v2427_v10 = vld [vmem:[#allocation2 + $0x74] sm:$0x1]  ;;  %v8118_v9 = vld [vmem:[#allocation4 + $0x6e0] ss:$8 sps:$4 sm:$0xff]   ;;  %v1631_v3 = vrot.slane %v1629_v51, 5  ;;  %v1604_v25 = vsel %vm8625_vm14, %v1599_v13, %v1603_v40  ;;  %v6726_v30 = vrot.slane %v2433_v6, 9 }
 0x228   : > { %v2502_v47 = vrot.slane %v2427_v10, 5  ;;  %v2435_v13 = vld [vmem:[#allocation2 + $0xa4] sm:$0x1]  ;;  %v2445_v10 = vld [vmem:[#allocation2 + $0xe0] sm:$0xe] }
 0x229   : > { %5765 = vmatpush1.bf16.msra.mxu1 %v8105_v38  ;;  %v1653_v38 = vrot.slane %v1651_v63, 5  ;;  %v1632_v62 = vsel %vm8625_vm14, %v1627_v35, %v1631_v3  ;;  %v6326_v3 = vld [vmem:[#allocation6] sm:$0x3]  ;;  %v6354_v35 = vld [vmem:[#allocation8] sm:$0x3] }
 0x22a   : > { %6260 = vmatpush1.bf16.msra.mxu0 %v8067_v36  ;;  %5766 = vmatprep.subr.bf16.mxu1 %v8112_v27  ;;  %v2431_v36 = vld [vmem:[#allocation2 + $0x8c] sm:$0x1]  ;;  %v6724_v27 = vrot.slane %v2429_v33, 9  ;;  %v6732_v33 = vrot.slane %v2445_v10, 9  ;;  %v9333_v24 = vrot.slane %v6354_v35, %v8503_v61 }
 0x22b   : > { %6261 = vmatprep.subr.bf16.mxu0 %v8075_v46  ;;  %v2495_v46 = vsel %vm8516_vm11, %v6720_v29, %v2494_v52  ;;  %v2510_v20 = vrot.slane %v2431_v36, 5  ;;  %v2439_v29 = vld [vmem:[#allocation2 + $0xbc] sm:$0x1]  ;;  %v2518_v52 = vrot.slane %v2435_v13, 5 }
 0x22c   : > { %v6735_v31 = vcombine.low %v2487_v54, %v2495_v46  ;;  %v2526_v58 = vrot.slane %v2439_v29, 5 }
 0x22d   : > { %6233 = vmatmul.mubr.bf16.gmra.mrb[8].mxu0 %v6739_v57  ;;  %5767 = vmatpush1.bf16.msra.mxu1 %v8110_v8  ;;  %v1521_v57 = vld [vmem:[#allocation2 + $0x84] sm:$0x11]  ;;  %v1654_v8 = vor.u32 %v1653_v38, %v1650_v34  ;;  %v2511_v53 = vsel %vm8516_vm11, %v6724_v27, %v2510_v20  ;;  %v2519_v63 = vsel %vm8516_vm11, %v6726_v30, %v2518_v52 }
 0x22e   : > { %6262 = vmatpush1.bf16.msra.mxu0 %v8073_v50  ;;  %6242 = vmatprep.mubr.bf16.mxu0 %v6743_v48  ;;  %v1678_v50 = vrot.slane %v1676_v39, 4  ;;  %v1681_v48 = vrot.slane %v1679_v15, 5  ;;  %v1657_v55 = vshll.u32 %v1521_v57, 16  ;;  %v2441_v15 = vld [vmem:[#allocation2 + $0xc8] sm:$0xe]  ;;  %v9324_v38 = vrot.slane %v6326_v3, %v8471_v37 }
 0x22f   : > { %6263 = vmatprep.subr.bf16.mxu0 %v8081_v12  ;;  %5768 = vmatprep.subr.bf16.mxu1 %v8115_v23  ;;  %v6722_v12 = vrot.slane %v2425_v60, 9  ;;  %v1655_v26 = vrot.slane %v1654_v8, 4  ;;  %v2443_v60 = vld [vmem:[#allocation2 + $0xd4] sm:$0x1]  ;;  %v6730_v43 = vrot.slane %v2441_v15, 9 }
 0x230   : > { %v1682_v23 = vor.u32 %v1681_v48, %v1678_v50  ;;  %v2534_v54 = vrot.slane %v2443_v60, 5  ;;  %v9327_v48 = vrot.slane %v6326_v3, %v8503_v61 }
 0x231   : > { %5769 = vmatpush1.bf16.msra.mxu1 %v8113_v41  ;;  %v2503_v56 = vsel %vm8516_vm11, %v6722_v12, %v2502_v47  ;;  %v6728_v41 = vrot.slane %v2437_v5, 9 }
 0x232   : > { %6264 = vmatpush1.bf16.msra.mxu0 %v8079_v1  ;;  %5770 = vmatprep.subr.bf16.mxu1 %v8120_v19  ;;  %v8121_v1 = vld [vmem:[#allocation4 + $0x6f0] ss:$8 sps:$4 sm:$0xff]   ;;  %v6738_v42 = vcombine.low %v2503_v56, %v2511_v53  ;;  %v2447_v19 = vld [vmem:[#allocation2 + $0xec] sm:$0x1]  ;;  %v2535_v46 = vsel %vm8516_vm11, %v6730_v43, %v2534_v54 }
 0x233   : > { %6265 = vmatprep.subr.bf16.mxu0 %v8087_v16  ;;  %v6657_v16 = vcombine.high %v1604_v25, %v1632_v62  ;;  %v2527_v39 = vsel %vm8516_vm11, %v6728_v41, %v2526_v58  ;;  %v2542_v36 = vrot.slane %v2447_v19, 5 }
 0x235   : > { %6243 = vmatmul.mubr.bf16.gmra.mrb[12].mxu0 %v6742_v22  ;;  %5771 = vmatpush1.bf16.msra.mxu1 %v8118_v9  ;;  %v1659_v22 = vrot.slane %v1657_v55, 5 }
 0x236   : > { %6266 = vmatpush1.bf16.msra.mxu0 %v8085_v4  ;;  %6285 = vmatprep.mubr.bf16.mxu0 %v8229_v0  ;;  %v1683_v4 = vrot.slane %v1682_v23, 4 }
 0x237   : > { %6267 = vmatprep.subr.bf16.mxu0 %v8093_v18  ;;  %5772 = vmatprep.subr.bf16.mxu1 %v8123_v32  ;;  %v1660_v51 = vsel %vm8625_vm14, %v1655_v26, %v1659_v22  ;;  %v6656_v18 = vcombine.low %v1604_v25, %v1632_v62  ;;  %v2543_v32 = vsel %vm8516_vm11, %v6732_v33, %v2542_v36 }
 0x238   : > { %v1688_v2 = vsel %vm8625_vm14, %v1683_v4, %v1687_v28  ;;  %v6744_v40 = vcombine.low %v2535_v46, %v2543_v32 }
 0x239   : > { %5773 = vmatpush1.bf16.msra.mxu1 %v8121_v1  ;;  %v6660_v49 = vcombine.high %v1660_v51, %v1688_v2  ;;  %v6659_v9 = vcombine.low %v1660_v51, %v1688_v2 }
 0x23a   : > { %6268 = vmatpush1.bf16.msra.mxu0 %v8091_v11  ;;  %v6741_v11 = vcombine.low %v2519_v63, %v2527_v39 }
 0x23c   : > { %5775 = vmatmul.mubr.bf16.vlgmr.msra.gmra.mrb[0].mxu1 %v6653_v44 }
 0x23d   : > { %6286 = vmatmul.mubr.bf16.vlgmr.msra.gmra.mrb[0].mxu0 %v6735_v31  ;;  %5784 = vmatprep.mubr.bf16.mxu1 %v6657_v16 }
 0x23e   : > { %6295 = vmatprep.mubr.bf16.mxu0 %v8229_v0 }
 0x244   : > { %5785 = vmatmul.mubr.bf16.gmra.mrb[4].mxu1 %v6656_v18 }
 0x245   : > { %6296 = vmatmul.mubr.bf16.gmra.mrb[4].mxu0 %v6738_v42  ;;  %5794 = vmatprep.mubr.bf16.mxu1 %v6660_v49 }
 0x246   : > { %6305 = vmatprep.mubr.bf16.mxu0 %v8229_v0 }
 0x24c   : > { %5795 = vmatmul.mubr.bf16.gmra.mrb[8].mxu1 %v6659_v9 }
 0x24d   : > { %6306 = vmatmul.mubr.bf16.gmra.mrb[8].mxu0 %v6741_v11  ;;  %5804 = vmatprep.mubr.bf16.mxu1 %v6663_v21  ;;  %v9330_v21 = vrot.slane %v6354_v35, %v8471_v37 }
 0x24e   : > { %6315 = vmatprep.mubr.bf16.mxu0 %v8229_v0 }
 0x254   : > { %5805 = vmatmul.mubr.bf16.gmra.mrb[12].mxu1 %v6662_v17 }
 0x255   : > { %6316 = vmatmul.mubr.bf16.gmra.mrb[12].mxu0 %v6744_v40 }
 0x30f   : > { %v5776_v50 = vpop.f32.mrb[0].mxu1 }
 0x310   : > { %v6287_v34 = vpop.f32.mrb[0].mxu0  ;;  %v5778_v31 = vpop.f32.mrb[1].mxu1 }
 0x311   : > { %v6289_v0 = vpop.f32.mrb[1].mxu0  ;;  %v7198_v7 = vadd.f32 %v6287_v34, %v5776_v50  ;;  %v5780_v17 = vpop.f32.mrb[2].mxu1 }
 0x312   : > { %v6291_v57 = vpop.f32.mrb[2].mxu0  ;;  %v7199_v45 = vadd.f32 %v6289_v0, %v5778_v31  ;;  %v5782_v27 = vpop.f32.mrb[3].mxu1 }
 0x313   : > { %v6293_v14 = vpop.f32.mrb[3].mxu0  ;;  %v6338_v12 = vmul.f32 %v7198_v7, %v9324_v38  ;;  %v7200_v47 = vadd.f32 %v6291_v57, %v5780_v17 }
 0x314   : > { %v6339_v20 = vmul.f32 %v7199_v45, %v9327_v48  ;;  %v7201_v1 = vadd.f32 %v6293_v14, %v5782_v27 }
 0x315   : > { %v6366_v55 = vadd.f32 %v9330_v21, %v6338_v12  ;;  %v6340_v62 = vmul.f32 %v7200_v47, %v9324_v38 }
 0x316   : > { %v6367_v8 = vadd.f32 %v9333_v24, %v6339_v20  ;;  %v6341_v23 = vmul.f32 %v7201_v1, %v9327_v48 }
 0x317   : > { %v6382_v59 = vmul.f32 0.1, %v6366_v55  ;;  %v6368_v44 = vadd.f32 %v9330_v21, %v6340_v62  ;;  %v5786_v16 = vpop.f32.mrb[4].mxu1 }
 0x318   : > { %v6297_v25 = vpop.f32.mrb[4].mxu0  ;;  %v6383_v53 = vmul.f32 0.1, %v6367_v8  ;;  %v6369_v6 = vadd.f32 %v9333_v24, %v6341_v23  ;;  %v5788_v4 = vpop.f32.mrb[5].mxu1 }
 0x319   : > { %v6299_v37 = vpop.f32.mrb[5].mxu0  ;;  %v6398_v13 = vmax.f32 %v6366_v55, %v6382_v59  ;;  %v6384_v26 = vmul.f32 0.1, %v6368_v44  ;;  %v7202_v22 = vadd.f32 %v6297_v25, %v5786_v16  ;;  %v5790_v42 = vpop.f32.mrb[6].mxu1 }
 0x31a   : > { %v6301_v61 = vpop.f32.mrb[6].mxu0  ;;  %v6399_v28 = vmax.f32 %v6367_v8, %v6383_v53  ;;  %v6385_v5 = vmul.f32 0.1, %v6369_v6  ;;  %v7203_v29 = vadd.f32 %v6299_v37, %v5788_v4  ;;  %v5792_v58 = vpop.f32.mrb[7].mxu1 }
 0x31b   : > { %v6303_v56 = vpop.f32.mrb[7].mxu0  ;;  %v6400_v30 = vmax.f32 %v6368_v44, %v6384_v26  ;;  %v6342_v52 = vmul.f32 %v7202_v22, %v9324_v38  ;;  %v7204_v41 = vadd.f32 %v6301_v61, %v5790_v42 }
 0x31c   : > { %v7190_v51 = vpack.c.bf16 %v6399_v28, %v6398_v13  ;;  %v6401_v2 = vmax.f32 %v6369_v6, %v6385_v5  ;;  %v6343_v18 = vmul.f32 %v7203_v29, %v9327_v48  ;;  %v7205_v49 = vadd.f32 %v6303_v56, %v5792_v58 }
 0x31d   : > { %v6370_v39 = vadd.f32 %v9330_v21, %v6342_v52  ;;  %v6344_v15 = vmul.f32 %v7204_v41, %v9324_v38 }
 0x31e   : > { %6462 = vst [vmem:[%s9348_s29] sm:$0xff] %v7190_v51  ;;  %v7191_v10 = vpack.c.bf16 %v6401_v2, %v6400_v30  ;;  %v6371_v19 = vadd.f32 %v9333_v24, %v6343_v18  ;;  %v6345_v11 = vmul.f32 %v7205_v49, %v9327_v48 }
 0x31f   : > { %v6386_v54 = vmul.f32 0.1, %v6370_v39  ;;  %v6372_v33 = vadd.f32 %v9330_v21, %v6344_v15  ;;  %v5796_v32 = vpop.f32.mrb[8].mxu1 }
 0x320   : > { %v6307_v63 = vpop.f32.mrb[8].mxu0  ;;  %6463 = vst [vmem:[%s9348_s29 + $0x8] sm:$0xff] %v7191_v10  ;;  %v6387_v9 = vmul.f32 0.1, %v6371_v19  ;;  %v6373_v46 = vadd.f32 %v9333_v24, %v6345_v11  ;;  %v5798_v0 = vpop.f32.mrb[9].mxu1 }
 0x321   : > { %v6309_v60 = vpop.f32.mrb[9].mxu0  ;;  %v6402_v40 = vmax.f32 %v6370_v39, %v6386_v54  ;;  %v6388_v3 = vmul.f32 0.1, %v6372_v33  ;;  %v7206_v34 = vadd.f32 %v6307_v63, %v5796_v32  ;;  %v5800_v50 = vpop.f32.mrb[10].mxu1 }
 0x322   : > { %v6311_v43 = vpop.f32.mrb[10].mxu0  ;;  %v6403_v35 = vmax.f32 %v6371_v19, %v6387_v9  ;;  %v6389_v57 = vmul.f32 0.1, %v6373_v46  ;;  %v7207_v14 = vadd.f32 %v6309_v60, %v5798_v0  ;;  %v5802_v17 = vpop.f32.mrb[11].mxu1 }
 0x323   : > { %v6313_v36 = vpop.f32.mrb[11].mxu0  ;;  %v6404_v7 = vmax.f32 %v6372_v33, %v6388_v3  ;;  %v6346_v31 = vmul.f32 %v7206_v34, %v9324_v38  ;;  %v7208_v45 = vadd.f32 %v6311_v43, %v5800_v50 }
 0x324   : > { %v7192_v12 = vpack.c.bf16 %v6403_v35, %v6402_v40  ;;  %v6405_v47 = vmax.f32 %v6373_v46, %v6389_v57  ;;  %v6347_v27 = vmul.f32 %v7207_v14, %v9327_v48  ;;  %v7209_v20 = vadd.f32 %v6313_v36, %v5802_v17 }
 0x325   : > { %v6374_v25 = vadd.f32 %v9330_v21, %v6346_v31  ;;  %v6348_v55 = vmul.f32 %v7208_v45, %v9324_v38 }
 0x326   : > { %6464 = vst [vmem:[%s9348_s29 + $0x10] sm:$0xff] %v7192_v12  ;;  %v7193_v37 = vpack.c.bf16 %v6405_v47, %v6404_v7  ;;  %v6375_v8 = vadd.f32 %v9333_v24, %v6347_v27  ;;  %v6349_v23 = vmul.f32 %v7209_v20, %v9327_v48 }
 0x327   : > { %v6390_v59 = vmul.f32 0.1, %v6374_v25  ;;  %v6376_v44 = vadd.f32 %v9330_v21, %v6348_v55  ;;  %v5806_v16 = vpop.f32.mrb[12].mxu1 }
 0x328   : > { %v6317_v1 = vpop.f32.mrb[12].mxu0  ;;  %6465 = vst [vmem:[%s9348_s29 + $0x18] sm:$0xff] %v7193_v37  ;;  %v6391_v53 = vmul.f32 0.1, %v6375_v8  ;;  %v6377_v6 = vadd.f32 %v9333_v24, %v6349_v23  ;;  %v5808_v4 = vpop.f32.mrb[13].mxu1 }
 0x329   : > { %v6319_v62 = vpop.f32.mrb[13].mxu0  ;;  %v6406_v13 = vmax.f32 %v6374_v25, %v6390_v59  ;;  %v6392_v26 = vmul.f32 0.1, %v6376_v44  ;;  %v7210_v22 = vadd.f32 %v6317_v1, %v5806_v16  ;;  %v5810_v42 = vpop.f32.mrb[14].mxu1 }
 0x32a   : > { %v6321_v61 = vpop.f32.mrb[14].mxu0  ;;  %v6407_v28 = vmax.f32 %v6375_v8, %v6391_v53  ;;  %v6393_v5 = vmul.f32 0.1, %v6377_v6  ;;  %v7211_v29 = vadd.f32 %v6319_v62, %v5808_v4  ;;  %v5812_v58 = vpop.f32.mrb[15].mxu1 }
 0x32b   : > { %v6323_v56 = vpop.f32.mrb[15].mxu0  ;;  %v6408_v30 = vmax.f32 %v6376_v44, %v6392_v26  ;;  %v6350_v52 = vmul.f32 %v7210_v22, %v9324_v38  ;;  %v7212_v41 = vadd.f32 %v6321_v61, %v5810_v42 }
 0x32c   : > { %v7194_v51 = vpack.c.bf16 %v6407_v28, %v6406_v13  ;;  %v6409_v2 = vmax.f32 %v6377_v6, %v6393_v5  ;;  %v6351_v18 = vmul.f32 %v7211_v29, %v9327_v48  ;;  %v7213_v49 = vadd.f32 %v6323_v56, %v5812_v58 }
 0x32d   : > { %v6378_v63 = vadd.f32 %v9330_v21, %v6350_v52  ;;  %v6352_v39 = vmul.f32 %v7212_v41, %v9324_v38 }
 0x32e   : > { %6466 = vst [vmem:[%s9348_s29 + $0x20] sm:$0xff] %v7194_v51  ;;  %v7195_v15 = vpack.c.bf16 %v6409_v2, %v6408_v30  ;;  %v6379_v60 = vadd.f32 %v9333_v24, %v6351_v18  ;;  %v6353_v10 = vmul.f32 %v7213_v49, %v9327_v48 }
 0x32f   : > { %v6394_v19 = vmul.f32 0.1, %v6378_v63  ;;  %v6380_v11 = vadd.f32 %v9330_v21, %v6352_v39 }
 0x330   : > { %6467 = vst [vmem:[%s9348_s29 + $0x28] sm:$0xff] %v7195_v15  ;;  %v6395_v43 = vmul.f32 0.1, %v6379_v60  ;;  %v6381_v54 = vadd.f32 %v9333_v24, %v6353_v10 }
 0x331   : > { %v6410_v33 = vmax.f32 %v6378_v63, %v6394_v19  ;;  %v6396_v36 = vmul.f32 0.1, %v6380_v11 }
 0x332   : > { %v6411_v9 = vmax.f32 %v6379_v60, %v6395_v43  ;;  %v6397_v46 = vmul.f32 0.1, %v6381_v54 }
 0x333   : > { %v6412_v38 = vmax.f32 %v6380_v11, %v6396_v36 }
 0x334   : > { %v7196_v32 = vpack.c.bf16 %v6411_v9, %v6410_v33  ;;  %v6413_v40 = vmax.f32 %v6381_v54, %v6397_v46 }
 0x336   : > { %6468 = vst [vmem:[%s9348_s29 + $0x30] sm:$0xff] %v7196_v32  ;;  %v7197_v3 = vpack.c.bf16 %v6413_v40, %v6412_v38 }
 0x338   : > { %6469 = vst [vmem:[%s9348_s29 + $0x38] sm:$0xff] %v7197_v3 }
 0x339 PF: > { %s17_s18 = sadd.s32 1, %s8222_s18  }
 0x33a   : > { %p14_p3 = scmp.ge.s32.totalorder %s17_s18, 4  }
 0x33c   :  { %16 = sbr.rel (!%p14_p3) target bundleno = 2 (0x2), region = 89 }
 0x343   :  { %6491 = vsyncpa [#allocation5], 1 }
 0x344   :  { %6493 = vsyncpa [#allocation5 + $0x1], 1 }
 0x345   :  { %6494 = vsyncpa [#allocation7], 1 }

</bundles_post_ra>
